<compile_context>
chip_gen: v7x
topology: tpu7x:2x2x1
jax: 0.10.0
libtpu: 0.0.40
codegen_flags: <defaults>
</compile_context>

<pallas_src>
import functools

import numpy as np
import jax
import jax.numpy as jnp
from jax.experimental import pallas as pl
from jax.experimental.pallas import tpu as pltpu

NUM_ANCHORS = 36
LANE = 128


def _round_up(x, m):
    return ((x + m - 1) // m) * m


# ----------------------------------------------------------------------------
# Pallas kernel: out = act(x @ w + b), tiled over the M (row) dimension.
# ----------------------------------------------------------------------------
def _dense_act_kernel(x_ref, w_ref, b_ref, o_ref, *, act):
    y = jnp.dot(x_ref[...], w_ref[...], preferred_element_type=jnp.float32)
    y = y + b_ref[...]                      # (TM, N) + (1, N) broadcast
    if act == "relu":
        y = jnp.maximum(y, 0.0)
    elif act == "sigmoid":
        # sigmoid(y) == 0.5*(tanh(y/2)+1): rides the EUP slot, stays in [0,1].
        y = 0.5 * (jnp.tanh(0.5 * y) + 1.0)
    o_ref[...] = y.astype(o_ref.dtype)


def _pick_tm(M):
    # Rows per grid step: up to 512 (amortize ~0.35us per-step overhead) but
    # keep at least 2 grid steps when M allows so v7x's two TCs share the work.
    half = -(-M // 2)                       # cdiv(M, 2)
    return min(512, max(128, _round_up(half, 128)))


def dense_act(x, w, b, act):
    """x: (M, K) f32, w: (K, N) f32, b: (N,) f32 -> act(x @ w + b), (M, N).

    N should be a multiple of 128 (lane-dense output stores).  M need not be a
    multiple of the row tile: Pallas masks the ragged last block.
    """
    M, K = x.shape
    N = w.shape[1]
    tm = _pick_tm(M)
    b2 = b.reshape(1, N)

    return pl.pallas_call(
        functools.partial(_dense_act_kernel, act=act),
        out_shape=jax.ShapeDtypeStruct((M, N), jnp.float32),
        grid=(pl.cdiv(M, tm),),
        in_specs=[
            pl.BlockSpec((tm, K), lambda i: (i, 0)),   # activation tile
            pl.BlockSpec((K, N), lambda i: (0, 0)),    # full weight, resident
            pl.BlockSpec((1, N), lambda i: (0, 0)),    # bias row
        ],
        out_specs=pl.BlockSpec((tm, N), lambda i: (i, 0)),
        compiler_params=pltpu.CompilerParams(
            dimension_semantics=("parallel",)),
    )(x, w, b2)


# ----------------------------------------------------------------------------
# Pallas kernel: fused fc1(relu) -> fc2(relu) -> fc3(sigmoid), grid=(1,).
# ----------------------------------------------------------------------------
def _fc_head_kernel(x_ref, w1_ref, b1_ref, w2_ref, b2_ref, w3_ref, b3_ref,
                    o_ref):
    h = jnp.dot(x_ref[...], w1_ref[...], preferred_element_type=jnp.float32)
    h = jnp.maximum(h + b1_ref[...], 0.0)
    h = jnp.dot(h, w2_ref[...], preferred_element_type=jnp.float32)
    h = jnp.maximum(h + b2_ref[...], 0.0)
    h = jnp.dot(h, w3_ref[...], preferred_element_type=jnp.float32)
    h = h + b3_ref[...]
    o_ref[...] = 0.5 * (jnp.tanh(0.5 * h) + 1.0)    # exact sigmoid via EUP tanh


def fc_head(x, w1, b1, w2, b2, w3, b3):
    """x: (B, 6400); weights already transposed to (in, out).  -> (B, 720)."""
    B = x.shape[0]
    Bp = max(8, _round_up(B, 8))            # keep MXU M-dim a sublane multiple
    xp = jnp.pad(x, ((0, Bp - B), (0, 0)))
    b1r, b2r, b3r = (v.reshape(1, -1) for v in (b1, b2, b3))
    N3 = w3.shape[1]

    out = pl.pallas_call(
        _fc_head_kernel,
        out_shape=jax.ShapeDtypeStruct((Bp, N3), jnp.float32),
        grid=(1,),
        in_specs=[
            pl.BlockSpec(xp.shape, lambda i: (0, 0)),
            pl.BlockSpec(w1.shape, lambda i: (0, 0)),
            pl.BlockSpec(b1r.shape, lambda i: (0, 0)),
            pl.BlockSpec(w2.shape, lambda i: (0, 0)),
            pl.BlockSpec(b2r.shape, lambda i: (0, 0)),
            pl.BlockSpec(w3.shape, lambda i: (0, 0)),
            pl.BlockSpec(b3r.shape, lambda i: (0, 0)),
        ],
        out_specs=pl.BlockSpec((Bp, N3), lambda i: (0, 0)),
    )(xp, w1, b1r, w2, b2r, w3, b3r)
    return out[:B]


# ----------------------------------------------------------------------------
# Glue: channels-last im2col, conv wrapper, adaptive average pool.
# ----------------------------------------------------------------------------
def _im2col_nhwc(x, c_real, kh, kw, stride, pad):
    """x: (B, H, W, Cpad) NHWC; only the first c_real channels are real."""
    B, H, W, _ = x.shape
    Ho = (H + 2 * pad - kh) // stride + 1
    Wo = (W + 2 * pad - kw) // stride + 1
    xp = jnp.pad(x[..., :c_real], ((0, 0), (pad, pad), (pad, pad), (0, 0)))
    cols = []
    for i in range(kh):
        for j in range(kw):
            cols.append(xp[:, i:i + stride * Ho:stride,
                              j:j + stride * Wo:stride, :])   # (B, Ho, Wo, C)
    cols = jnp.stack(cols, axis=3)                            # (B,Ho,Wo,kh*kw,C)
    return cols.reshape(B * Ho * Wo, kh * kw * c_real), Ho, Wo


def conv2d_relu_nhwc(x, w, b, c_real, stride=2, pad=2):
    """x: (B,H,W,Cpad) NHWC (first c_real channels real); w: (O,C,kh,kw) torch
    layout; b: (O,).  Returns ((B, Ho, Wo, Opad), O) with Opad = ceil128(O)."""
    O, C, kh, kw = w.shape
    assert C == c_real
    patches, Ho, Wo = _im2col_nhwc(x, c_real, kh, kw, stride, pad)
    # Row ordering (kh, kw, C) matches the patch column ordering above.
    w_mat = jnp.transpose(w, (2, 3, 1, 0)).reshape(kh * kw * C, O)
    Op = _round_up(O, LANE)                                   # lane-dense N
    w_mat = jnp.pad(w_mat, ((0, 0), (0, Op - O)))
    b_pad = jnp.pad(b, (0, Op - O))
    y = dense_act(patches, w_mat, b_pad, act="relu")          # (B*Ho*Wo, Op)
    B = x.shape[0]
    return y.reshape(B, Ho, Wo, Op), O


def adaptive_avg_pool_nhwc(x, out_h, out_w):
    """Exact nn.AdaptiveAvgPool2d semantics (floor/ceil windows), NHWC."""
    B, H, W, C = x.shape
    if H == out_h and W == out_w:           # identity for the 80x80 input path
        return x

    def pool_matrix(in_size, out_size):
        m = np.zeros((out_size, in_size), np.float32)
        for i in range(out_size):
            s = (i * in_size) // out_size
            e = -(-((i + 1) * in_size) // out_size)   # ceil div
            m[i, s:e] = 1.0 / (e - s)
        return jnp.asarray(m)

    L = pool_matrix(H, out_h)   # (out_h, H)
    R = pool_matrix(W, out_w)   # (out_w, W)
    return jnp.einsum("oh,bhwc,pw->bopc", L, x, R)


# ----------------------------------------------------------------------------
# Parameters (deterministic synthetic init) and forward pass.
# ----------------------------------------------------------------------------
def init_params(key):
    def conv_p(k, o, c, kh, kw):
        k1, k2 = jax.random.split(k)
        scale = 1.0 / np.sqrt(c * kh * kw)
        return (jax.random.normal(k1, (o, c, kh, kw), jnp.float32) * scale,
                jax.random.normal(k2, (o,), jnp.float32) * scale)

    def fc_p(k, o, i):
        k1, k2 = jax.random.split(k)
        scale = 1.0 / np.sqrt(i)
        return (jax.random.normal(k1, (o, i), jnp.float32) * scale,
                jax.random.normal(k2, (o,), jnp.float32) * scale)

    ks = jax.random.split(key, 6)
    p = {}
    p["conv1_w"], p["conv1_b"] = conv_p(ks[0], 16, 3, 5, 5)
    p["conv2_w"], p["conv2_b"] = conv_p(ks[1], 32, 16, 5, 5)
    p["conv3_w"], p["conv3_b"] = conv_p(ks[2], 64, 32, 5, 5)
    p["fc1_w"], p["fc1_b"] = fc_p(ks[3], 128, 64 * 10 * 10)
    p["fc2_w"], p["fc2_b"] = fc_p(ks[4], 64, 128)
    p["fc3_w"], p["fc3_b"] = fc_p(ks[5], NUM_ANCHORS * 20, 64)
    return p


def lane_net_forward(params, x):
    # x: (B, 3, H, W) NCHW float32.  Single layout conversion at the boundary,
    # then stay channels-last between layers.
    x = jnp.transpose(x, (0, 2, 3, 1))                         # NHWC
    x, c = conv2d_relu_nhwc(x, params["conv1_w"], params["conv1_b"], 3)
    x, c = conv2d_relu_nhwc(x, params["conv2_w"], params["conv2_b"], c)
    x, c = conv2d_relu_nhwc(x, params["conv3_w"], params["conv3_b"], c)
    x = adaptive_avg_pool_nhwc(x, 10, 10)                      # (B,10,10,Cpad)
    B = x.shape[0]
    # torch's .view flattens NCHW as (c, h, w): transpose the tiny pooled map.
    x = jnp.transpose(x[..., :c], (0, 3, 1, 2)).reshape(B, -1)  # (B, 6400)
    x = fc_head(x,
                params["fc1_w"].T, params["fc1_b"],
                params["fc2_w"].T, params["fc2_b"],
                params["fc3_w"].T, params["fc3_b"])             # (B, 720)
    return x.reshape(B, NUM_ANCHORS, 20)


if __name__ == "__main__":
    key = jax.random.PRNGKey(0)
    pkey, xkey = jax.random.split(key)
    params = init_params(pkey)
    # 80x80 input -> 40 -> 20 -> 10 after the three stride-2 convs.
    x = jax.random.normal(xkey, (2, 3, 80, 80), jnp.float32)

    out = jax.jit(lane_net_forward)(params, x)
    out = jax.block_until_ready(out)

    assert out.shape == (2, NUM_ANCHORS, 20), out.shape
    assert bool(jnp.all(jnp.isfinite(out)))
    assert bool(jnp.all((out >= 0.0) & (out <= 1.0)))   # sigmoid range
    print("KERNEL_OK")
</pallas_src>

<mosaic_0001>
module attributes {stable_mosaic.version = 11 : i64} {
  func.func @_dense_act_kernel(%arg0: i32, %arg1: memref<512x75xf32, #tpu.memory_space<vmem>>, %arg2: memref<75x128xf32, #tpu.memory_space<vmem>>, %arg3: memref<1x128xf32, #tpu.memory_space<vmem>>, %arg4: memref<512x128xf32, #tpu.memory_space<vmem>>) attributes {dimension_semantics = [#tpu.dimension_semantics<parallel>], iteration_bounds = array<i64: 7>, scalar_prefetch = 0 : i64, scratch_operands = 0 : i64, tpu.core_type = #tpu.core_type<tc>, window_params = [{transform_indices = @transform_0, window_bounds = array<i64: 512, 75>}, {pipeline_mode = #tpu.pipeline_mode<synchronous>, transform_indices = @transform_1, window_bounds = array<i64: 75, 128>}, {pipeline_mode = #tpu.pipeline_mode<synchronous>, transform_indices = @transform_2, window_bounds = array<i64: 1, 128>}, {transform_indices = @transform_3, window_bounds = array<i64: 512, 128>}]} {
    %c0 = arith.constant 0 : index
    %c0_0 = arith.constant 0 : index
    %0 = vector.load %arg1[%c0, %c0_0] : memref<512x75xf32, #tpu.memory_space<vmem>>, vector<512x75xf32>
    %c0_1 = arith.constant 0 : index
    %c0_2 = arith.constant 0 : index
    %1 = vector.load %arg2[%c0_1, %c0_2] : memref<75x128xf32, #tpu.memory_space<vmem>>, vector<75x128xf32>
    %cst = arith.constant dense<0.000000e+00> : vector<512x128xf32>
    %2 = tpu.matmul %0, %1, %cst {dimension_numbers = #tpu.dot_dimension_numbers<[1], [0], [0], [1], [0, 0, 1, 1], [], []>} : vector<512x75xf32>, vector<75x128xf32>, vector<512x128xf32> -> vector<512x128xf32>
    %c0_3 = arith.constant 0 : index
    %c0_4 = arith.constant 0 : index
    %3 = vector.load %arg3[%c0_3, %c0_4] : memref<1x128xf32, #tpu.memory_space<vmem>>, vector<1x128xf32>
    %4 = vector.broadcast %3 : vector<1x128xf32> to vector<512x128xf32>
    %5 = arith.addf %2, %4 : vector<512x128xf32>
    %cst_5 = arith.constant 0.000000e+00 : f32
    %6 = vector.broadcast %cst_5 : f32 to vector<512x128xf32>
    %7 = arith.maximumf %5, %6 : vector<512x128xf32>
    %c0_6 = arith.constant 0 : index
    %c0_7 = arith.constant 0 : index
    %8 = vector.load %arg4[%c0_6, %c0_7] : memref<512x128xf32, #tpu.memory_space<vmem>>, vector<512x128xf32>
    tpu.vector_store %arg4[%c0_6, %c0_7], %7 {strides = array<i32>} : memref<512x128xf32, #tpu.memory_space<vmem>>, vector<512x128xf32>,
    return
  }
  func.func @transform_0(%arg0: i32) -> (i32, i32) {
    %c0_i32 = arith.constant 0 : i32
    %c0_i32_0 = arith.constant 0 : i32
    return %arg0, %c0_i32 : i32, i32
  }
  func.func @transform_1(%arg0: i32) -> (i32, i32) {
    %c0_i32 = arith.constant 0 : i32
    %c0_i32_0 = arith.constant 0 : i32
    %c0_i32_1 = arith.constant 0 : i32
    return %c0_i32, %c0_i32_0 : i32, i32
  }
  func.func @transform_2(%arg0: i32) -> (i32, i32) {
    %c0_i32 = arith.constant 0 : i32
    %c0_i32_0 = arith.constant 0 : i32
    %c0_i32_1 = arith.constant 0 : i32
    return %c0_i32, %c0_i32_0 : i32, i32
  }
  func.func @transform_3(%arg0: i32) -> (i32, i32) {
    %c0_i32 = arith.constant 0 : i32
    %c0_i32_0 = arith.constant 0 : i32
    return %arg0, %c0_i32 : i32, i32
  }
}

module attributes {stable_mosaic.version = 11 : i64} {
  func.func @_dense_act_kernel(%arg0: i32, %arg1: memref<512x400xf32, #tpu.memory_space<vmem>>, %arg2: memref<400x128xf32, #tpu.memory_space<vmem>>, %arg3: memref<1x128xf32, #tpu.memory_space<vmem>>, %arg4: memref<512x128xf32, #tpu.memory_space<vmem>>) attributes {dimension_semantics = [#tpu.dimension_semantics<parallel>], iteration_bounds = array<i64: 2>, scalar_prefetch = 0 : i64, scratch_operands = 0 : i64, tpu.core_type = #tpu.core_type<tc>, window_params = [{transform_indices = @transform_0, window_bounds = array<i64: 512, 400>}, {pipeline_mode = #tpu.pipeline_mode<synchronous>, transform_indices = @transform_1, window_bounds = array<i64: 400, 128>}, {pipeline_mode = #tpu.pipeline_mode<synchronous>, transform_indices = @transform_2, window_bounds = array<i64: 1, 128>}, {transform_indices = @transform_3, window_bounds = array<i64: 512, 128>}]} {
    %c0 = arith.constant 0 : index
    %c0_0 = arith.constant 0 : index
    %0 = vector.load %arg1[%c0, %c0_0] : memref<512x400xf32, #tpu.memory_space<vmem>>, vector<512x400xf32>
    %c0_1 = arith.constant 0 : index
    %c0_2 = arith.constant 0 : index
    %1 = vector.load %arg2[%c0_1, %c0_2] : memref<400x128xf32, #tpu.memory_space<vmem>>, vector<400x128xf32>
    %cst = arith.constant dense<0.000000e+00> : vector<512x128xf32>
    %2 = tpu.matmul %0, %1, %cst {dimension_numbers = #tpu.dot_dimension_numbers<[1], [0], [0], [1], [0, 0, 1, 1], [], []>} : vector<512x400xf32>, vector<400x128xf32>, vector<512x128xf32> -> vector<512x128xf32>
    %c0_3 = arith.constant 0 : index
    %c0_4 = arith.constant 0 : index
    %3 = vector.load %arg3[%c0_3, %c0_4] : memref<1x128xf32, #tpu.memory_space<vmem>>, vector<1x128xf32>
    %4 = vector.broadcast %3 : vector<1x128xf32> to vector<512x128xf32>
    %5 = arith.addf %2, %4 : vector<512x128xf32>
    %cst_5 = arith.constant 0.000000e+00 : f32
    %6 = vector.broadcast %cst_5 : f32 to vector<512x128xf32>
    %7 = arith.maximumf %5, %6 : vector<512x128xf32>
    %c0_6 = arith.constant 0 : index
    %c0_7 = arith.constant 0 : index
    %8 = vector.load %arg4[%c0_6, %c0_7] : memref<512x128xf32, #tpu.memory_space<vmem>>, vector<512x128xf32>
    tpu.vector_store %arg4[%c0_6, %c0_7], %7 {strides = array<i32>} : memref<512x128xf32, #tpu.memory_space<vmem>>, vector<512x128xf32>,
    return
  }
  func.func @transform_0(%arg0: i32) -> (i32, i32) {
    %c0_i32 = arith.constant 0 : i32
    %c0_i32_0 = arith.constant 0 : i32
    return %arg0, %c0_i32 : i32, i32
  }
  func.func @transform_1(%arg0: i32) -> (i32, i32) {
    %c0_i32 = arith.constant 0 : i32
    %c0_i32_0 = arith.constant 0 : i32
    %c0_i32_1 = arith.constant 0 : i32
    return %c0_i32, %c0_i32_0 : i32, i32
  }
  func.func @transform_2(%arg0: i32) -> (i32, i32) {
    %c0_i32 = arith.constant 0 : i32
    %c0_i32_0 = arith.constant 0 : i32
    %c0_i32_1 = arith.constant 0 : i32
    return %c0_i32, %c0_i32_0 : i32, i32
  }
  func.func @transform_3(%arg0: i32) -> (i32, i32) {
    %c0_i32 = arith.constant 0 : i32
    %c0_i32_0 = arith.constant 0 : i32
    return %arg0, %c0_i32 : i32, i32
  }
}

module attributes {stable_mosaic.version = 11 : i64} {
  func.func @_dense_act_kernel(%arg0: i32, %arg1: memref<128x800xf32, #tpu.memory_space<vmem>>, %arg2: memref<800x128xf32, #tpu.memory_space<vmem>>, %arg3: memref<1x128xf32, #tpu.memory_space<vmem>>, %arg4: memref<128x128xf32, #tpu.memory_space<vmem>>) attributes {dimension_semantics = [#tpu.dimension_semantics<parallel>], iteration_bounds = array<i64: 2>, scalar_prefetch = 0 : i64, scratch_operands = 0 : i64, tpu.core_type = #tpu.core_type<tc>, window_params = [{transform_indices = @transform_0, window_bounds = array<i64: 128, 800>}, {pipeline_mode = #tpu.pipeline_mode<synchronous>, transform_indices = @transform_1, window_bounds = array<i64: 800, 128>}, {pipeline_mode = #tpu.pipeline_mode<synchronous>, transform_indices = @transform_2, window_bounds = array<i64: 1, 128>}, {transform_indices = @transform_3, window_bounds = array<i64: 128, 128>}]} {
    %c0 = arith.constant 0 : index
    %c0_0 = arith.constant 0 : index
    %0 = vector.load %arg1[%c0, %c0_0] : memref<128x800xf32, #tpu.memory_space<vmem>>, vector<128x800xf32>
    %c0_1 = arith.constant 0 : index
    %c0_2 = arith.constant 0 : index
    %1 = vector.load %arg2[%c0_1, %c0_2] : memref<800x128xf32, #tpu.memory_space<vmem>>, vector<800x128xf32>
    %cst = arith.constant dense<0.000000e+00> : vector<128x128xf32>
    %2 = tpu.matmul %0, %1, %cst {dimension_numbers = #tpu.dot_dimension_numbers<[1], [0], [0], [1], [0, 0, 1, 1], [], []>} : vector<128x800xf32>, vector<800x128xf32>, vector<128x128xf32> -> vector<128x128xf32>
    %c0_3 = arith.constant 0 : index
    %c0_4 = arith.constant 0 : index
    %3 = vector.load %arg3[%c0_3, %c0_4] : memref<1x128xf32, #tpu.memory_space<vmem>>, vector<1x128xf32>
    %4 = vector.broadcast %3 : vector<1x128xf32> to vector<128x128xf32>
    %5 = arith.addf %2, %4 : vector<128x128xf32>
    %cst_5 = arith.constant 0.000000e+00 : f32
    %6 = vector.broadcast %cst_5 : f32 to vector<128x128xf32>
    %7 = arith.maximumf %5, %6 : vector<128x128xf32>
    %c0_6 = arith.constant 0 : index
    %c0_7 = arith.constant 0 : index
    %8 = vector.load %arg4[%c0_6, %c0_7] : memref<128x128xf32, #tpu.memory_space<vmem>>, vector<128x128xf32>
    tpu.vector_store %arg4[%c0_6, %c0_7], %7 {strides = array<i32>} : memref<128x128xf32, #tpu.memory_space<vmem>>, vector<128x128xf32>,
    return
  }
  func.func @transform_0(%arg0: i32) -> (i32, i32) {
    %c0_i32 = arith.constant 0 : i32
    %c0_i32_0 = arith.constant 0 : i32
    return %arg0, %c0_i32 : i32, i32
  }
  func.func @transform_1(%arg0: i32) -> (i32, i32) {
    %c0_i32 = arith.constant 0 : i32
    %c0_i32_0 = arith.constant 0 : i32
    %c0_i32_1 = arith.constant 0 : i32
    return %c0_i32, %c0_i32_0 : i32, i32
  }
  func.func @transform_2(%arg0: i32) -> (i32, i32) {
    %c0_i32 = arith.constant 0 : i32
    %c0_i32_0 = arith.constant 0 : i32
    %c0_i32_1 = arith.constant 0 : i32
    return %c0_i32, %c0_i32_0 : i32, i32
  }
  func.func @transform_3(%arg0: i32) -> (i32, i32) {
    %c0_i32 = arith.constant 0 : i32
    %c0_i32_0 = arith.constant 0 : i32
    return %arg0, %c0_i32 : i32, i32
  }
}

module attributes {stable_mosaic.version = 11 : i64} {
  func.func @_fc_head_kernel(%arg0: i32, %arg1: memref<8x6400xf32, #tpu.memory_space<vmem>>, %arg2: memref<6400x128xf32, #tpu.memory_space<vmem>>, %arg3: memref<1x128xf32, #tpu.memory_space<vmem>>, %arg4: memref<128x64xf32, #tpu.memory_space<vmem>>, %arg5: memref<1x64xf32, #tpu.memory_space<vmem>>, %arg6: memref<64x720xf32, #tpu.memory_space<vmem>>, %arg7: memref<1x720xf32, #tpu.memory_space<vmem>>, %arg8: memref<8x720xf32, #tpu.memory_space<vmem>>) attributes {dimension_semantics = [#tpu.dimension_semantics<arbitrary>], iteration_bounds = array<i64: 1>, scalar_prefetch = 0 : i64, scratch_operands = 0 : i64, tpu.core_type = #tpu.core_type<tc>, window_params = [{pipeline_mode = #tpu.pipeline_mode<synchronous>, transform_indices = @transform_0, window_bounds = array<i64: 8, 6400>}, {pipeline_mode = #tpu.pipeline_mode<synchronous>, transform_indices = @transform_1, window_bounds = array<i64: 6400, 128>}, {pipeline_mode = #tpu.pipeline_mode<synchronous>, transform_indices = @transform_2, window_bounds = array<i64: 1, 128>}, {pipeline_mode = #tpu.pipeline_mode<synchronous>, transform_indices = @transform_3, window_bounds = array<i64: 128, 64>}, {pipeline_mode = #tpu.pipeline_mode<synchronous>, transform_indices = @transform_4, window_bounds = array<i64: 1, 64>}, {pipeline_mode = #tpu.pipeline_mode<synchronous>, transform_indices = @transform_5, window_bounds = array<i64: 64, 720>}, {pipeline_mode = #tpu.pipeline_mode<synchronous>, transform_indices = @transform_6, window_bounds = array<i64: 1, 720>}, {pipeline_mode = #tpu.pipeline_mode<synchronous>, transform_indices = @transform_7, window_bounds = array<i64: 8, 720>}]} {
    %c0 = arith.constant 0 : index
    %c0_0 = arith.constant 0 : index
    %0 = vector.load %arg1[%c0, %c0_0] : memref<8x6400xf32, #tpu.memory_space<vmem>>, vector<8x6400xf32>
    %c0_1 = arith.constant 0 : index
    %c0_2 = arith.constant 0 : index
    %1 = vector.load %arg2[%c0_1, %c0_2] : memref<6400x128xf32, #tpu.memory_space<vmem>>, vector<6400x128xf32>
    %cst = arith.constant dense<0.000000e+00> : vector<8x128xf32>
    %2 = tpu.matmul %0, %1, %cst {dimension_numbers = #tpu.dot_dimension_numbers<[1], [0], [0], [1], [0, 0, 1, 1], [], []>} : vector<8x6400xf32>, vector<6400x128xf32>, vector<8x128xf32> -> vector<8x128xf32>
    %c0_3 = arith.constant 0 : index
    %c0_4 = arith.constant 0 : index
    %3 = vector.load %arg3[%c0_3, %c0_4] : memref<1x128xf32, #tpu.memory_space<vmem>>, vector<1x128xf32>
    %4 = vector.broadcast %3 : vector<1x128xf32> to vector<8x128xf32>
    %5 = arith.addf %2, %4 : vector<8x128xf32>
    %cst_5 = arith.constant 0.000000e+00 : f32
    %6 = vector.broadcast %cst_5 : f32 to vector<8x128xf32>
    %7 = arith.maximumf %5, %6 : vector<8x128xf32>
    %c0_6 = arith.constant 0 : index
    %c0_7 = arith.constant 0 : index
    %8 = vector.load %arg4[%c0_6, %c0_7] : memref<128x64xf32, #tpu.memory_space<vmem>>, vector<128x64xf32>
    %cst_8 = arith.constant dense<0.000000e+00> : vector<8x64xf32>
    %9 = tpu.matmul %7, %8, %cst_8 {dimension_numbers = #tpu.dot_dimension_numbers<[1], [0], [0], [1], [0, 0, 1, 1], [], []>} : vector<8x128xf32>, vector<128x64xf32>, vector<8x64xf32> -> vector<8x64xf32>
    %c0_9 = arith.constant 0 : index
    %c0_10 = arith.constant 0 : index
    %10 = vector.load %arg5[%c0_9, %c0_10] : memref<1x64xf32, #tpu.memory_space<vmem>>, vector<1x64xf32>
    %11 = vector.broadcast %10 : vector<1x64xf32> to vector<8x64xf32>
    %12 = arith.addf %9, %11 : vector<8x64xf32>
    %cst_11 = arith.constant 0.000000e+00 : f32
    %13 = vector.broadcast %cst_11 : f32 to vector<8x64xf32>
    %14 = arith.maximumf %12, %13 : vector<8x64xf32>
    %c0_12 = arith.constant 0 : index
    %c0_13 = arith.constant 0 : index
    %15 = vector.load %arg6[%c0_12, %c0_13] : memref<64x720xf32, #tpu.memory_space<vmem>>, vector<64x720xf32>
    %cst_14 = arith.constant dense<0.000000e+00> : vector<8x720xf32>
    %16 = tpu.matmul %14, %15, %cst_14 {dimension_numbers = #tpu.dot_dimension_numbers<[1], [0], [0], [1], [0, 0, 1, 1], [], []>} : vector<8x64xf32>, vector<64x720xf32>, vector<8x720xf32> -> vector<8x720xf32>
    %c0_15 = arith.constant 0 : index
    %c0_16 = arith.constant 0 : index
    %17 = vector.load %arg7[%c0_15, %c0_16] : memref<1x720xf32, #tpu.memory_space<vmem>>, vector<1x720xf32>
    %18 = vector.broadcast %17 : vector<1x720xf32> to vector<8x720xf32>
    %19 = arith.addf %16, %18 : vector<8x720xf32>
    %cst_17 = arith.constant 5.000000e-01 : f32
    %20 = vector.broadcast %cst_17 : f32 to vector<8x720xf32>
    %21 = arith.mulf %20, %19 : vector<8x720xf32>
    %22 = math.tanh %21 : vector<8x720xf32>
    %cst_18 = arith.constant 1.000000e+00 : f32
    %23 = vector.broadcast %cst_18 : f32 to vector<8x720xf32>
    %24 = arith.addf %22, %23 : vector<8x720xf32>
    %cst_19 = arith.constant 5.000000e-01 : f32
    %25 = vector.broadcast %cst_19 : f32 to vector<8x720xf32>
    %26 = arith.mulf %25, %24 : vector<8x720xf32>
    %c0_20 = arith.constant 0 : index
    %c0_21 = arith.constant 0 : index
    %27 = vector.load %arg8[%c0_20, %c0_21] : memref<8x720xf32, #tpu.memory_space<vmem>>, vector<8x720xf32>
    tpu.vector_store %arg8[%c0_20, %c0_21], %26 {strides = array<i32>} : memref<8x720xf32, #tpu.memory_space<vmem>>, vector<8x720xf32>,
    return
  }
  func.func @transform_0(%arg0: i32) -> (i32, i32) {
    %c0_i32 = arith.constant 0 : i32
    %c0_i32_0 = arith.constant 0 : i32
    %c0_i32_1 = arith.constant 0 : i32
    return %c0_i32, %c0_i32_0 : i32, i32
  }
  func.func @transform_1(%arg0: i32) -> (i32, i32) {
    %c0_i32 = arith.constant 0 : i32
    %c0_i32_0 = arith.constant 0 : i32
    %c0_i32_1 = arith.constant 0 : i32
    return %c0_i32, %c0_i32_0 : i32, i32
  }
  func.func @transform_2(%arg0: i32) -> (i32, i32) {
    %c0_i32 = arith.constant 0 : i32
    %c0_i32_0 = arith.constant 0 : i32
    %c0_i32_1 = arith.constant 0 : i32
    return %c0_i32, %c0_i32_0 : i32, i32
  }
  func.func @transform_3(%arg0: i32) -> (i32, i32) {
    %c0_i32 = arith.constant 0 : i32
    %c0_i32_0 = arith.constant 0 : i32
    %c0_i32_1 = arith.constant 0 : i32
    return %c0_i32, %c0_i32_0 : i32, i32
  }
  func.func @transform_4(%arg0: i32) -> (i32, i32) {
    %c0_i32 = arith.constant 0 : i32
    %c0_i32_0 = arith.constant 0 : i32
    %c0_i32_1 = arith.constant 0 : i32
    return %c0_i32, %c0_i32_0 : i32, i32
  }
  func.func @transform_5(%arg0: i32) -> (i32, i32) {
    %c0_i32 = arith.constant 0 : i32
    %c0_i32_0 = arith.constant 0 : i32
    %c0_i32_1 = arith.constant 0 : i32
    return %c0_i32, %c0_i32_0 : i32, i32
  }
  func.func @transform_6(%arg0: i32) -> (i32, i32) {
    %c0_i32 = arith.constant 0 : i32
    %c0_i32_0 = arith.constant 0 : i32
    %c0_i32_1 = arith.constant 0 : i32
    return %c0_i32, %c0_i32_0 : i32, i32
  }
  func.func @transform_7(%arg0: i32) -> (i32, i32) {
    %c0_i32 = arith.constant 0 : i32
    %c0_i32_0 = arith.constant 0 : i32
    %c0_i32_1 = arith.constant 0 : i32
    return %c0_i32, %c0_i32_0 : i32, i32
  }
}

</mosaic_0001>

<bundles_post_ra>
// kernel: lane_net_forward.4
= control target key start
LH: loop header
LB: loop body
LE: loop exit
PB: predicated region body
PF: predicated region fallthrough
CT: control target
= control target key end

     0   :  { %s1963_s12 = smov 0   ;;  %s1965_s13 = smov 0   ;;  %s2502_s0 = inlined_call_operand.vmem [shape: f32[3200,75], index: 0, kind: input, shape index: {}]   ;;  %s2503_s1 = inlined_call_operand.vmem [shape: f32[75,128], index: 1, kind: input, shape index: {}]   ;;  %s2504_s2 = inlined_call_operand.vmem [shape: f32[1,128], index: 2, kind: input, shape index: {}]   ;;  %s2505_s3 = inlined_call_operand.vmem [shape: f32[3200,128], index: 3, kind: output, shape index: {}]  }
   0x1   :  { %s1967_s14 = smov 0  }
   0x2 LB: > { %s1976_s15 = sadd.s32 4294967295, %s1908_s14   ;;  %s1978_s16 = sadd.s32 1, %s1908_s14   ;;  %s1908_s14 = sphi %s1967_s14, %s2514_s14   ;;  %s1904_s13 = sphi %s1965_s13, %s2513_s13   ;;  %s1900_s12 = sphi %s1963_s12, %s2512_s12  }
   0x3   : > { %s85_s17 = ssub.s32 %s1908_s14, %s1978_s16  ;;  %s88_s18 = sadd.s32 1, %s1904_s13 }
   0x4   : > { %p86_p0 = scmp.eq.s32.totalorder %s85_s17, 0  ;;  %p98_p1 = scmp.ne.s32.totalorder %s1904_s13, %s1900_s12 }
   0x5   : > { %p99_p2 = scmp.eq.s32.totalorder %s1976_s15, 6  ;;  %p1453_p3 = scmp.ge.s32.totalorder %s1908_s14, 1 }
   0x6   : > { %s1986_s19 = scalar_select %p86_p0, %s1904_s13, %s88_s18  }
   0x7   : > { %p1988_p4 = por %p99_p2, %p98_p1  ;;  %p146_p5 = scmp.lt.s32.totalorder %s1908_s14, 8 }
   0x9   : > { %p147_p6 = pnand %p1453_p3, %p146_p5 }
   0xa   : > { %v256_v0 = vld [vmem:[%s2503_s1] sm:$0xff] (!%p147_p6)  ;;  %v257_v1 = vld [vmem:[%s2503_s1 + $0x8] sm:$0xff] (!%p147_p6)  ;;  %v258_v2 = vld [vmem:[%s2503_s1 + $0x10] sm:$0xff] (!%p147_p6)  ;;  %s2002_s27 = sshll.u32 (!%p147_p6), %s1976_s15, 6  ;;  %vm273_vm0 = vcmask (!%p147_p6), 613376   ;;  %vm466_vm1 = vcmask (!%p147_p6), 1042432  }
   0xb   : > { %150 = sbr.rel (%p147_p6) target bundleno = 383 (0x17f), region = 32  ;;  %v1733_v3 = vpack.c.bf16 (!%p147_p6), %v257_v1, %v256_v0  ;;  %v259_v4 = vld [vmem:[%s2503_s1 + $0x18] sm:$0xff] (!%p147_p6)  ;;  %p178_p7 = scmp.lt.s32.totalorder (!%p147_p6), %s2002_s27, 399  ;;  %v260_v6 = vld [vmem:[%s2503_s1 + $0x20] sm:$0xff] (!%p147_p6)  ;;  %v261_v7 = vld [vmem:[%s2503_s1 + $0x28] sm:$0xff] (!%p147_p6)  ;;  %vm1942_vm2 = vmmov (!%p147_p6), 1  }
   0xc   : > { %v1737_v5 = vpack.c.bf16 (!%p147_p6), %v259_v4, %v258_v2  ;;  %v1741_v8 = vpack.c.bf16 (!%p147_p6), %v261_v7, %v260_v6  ;;  %v262_v9 = vld [vmem:[%s2503_s1 + $0x30] sm:$0xff] (!%p147_p6)  ;;  %v263_v10 = vld [vmem:[%s2503_s1 + $0x38] sm:$0xff] (!%p147_p6)  ;;  %v264_v14 = vld [vmem:[%s2503_s1 + $0x40] sm:$0xff] (!%p147_p6)  ;;  %s170_s26 = sand.u32 (!%p147_p6), 1, %s1900_s12  }
   0xd   : > { %1734 = vmatprep.subr.bf16.mxu0 (!%p147_p6), %v1733_v3  ;;  %1755 = vmatprep.subr.bf16.mxu1 (!%p147_p6), %v1733_v3  ;;  %v1745_v13 = vpack.c.bf16 (!%p147_p6), %v263_v10, %v262_v9  ;;  %v265_v15 = vld [vmem:[%s2503_s1 + $0x48] sm:$0x7] (!%p147_p6)  ;;  %vm1750_vm3 = vmpackc.low (!%p147_p6), %vm466_vm1, %vm1942_vm2  ;;  %s1454_s30 = sshll.u32 (!%p147_p6), %s170_s26, 9 }
   0xe   : > { %1736 = vmatpush3.bf16.msra.mxu0 (!%p147_p6), %v1733_v3  ;;  %1760 = vmatpush3.bf16.msra.mxu1 (!%p147_p6), %v1733_v3  ;;  %v1749_v16 = vpack.c.bf16 (!%p147_p6), %v265_v15, %v264_v14  ;;  %v2164_v15 = vld [vmem:[%s2504_s2] ss:$0 sm:$0xff] (!%p147_p6)  ;;  %s2170_s12 = scalar_lea.vmem (!%p147_p6), [#allocation2], %s1454_s30  }
   0xf   : > { %1738 = vmatprep.subr.bf16.mxu0 (!%p147_p6), %v1737_v5  ;;  %1756 = vmatprep.subr.bf16.mxu1 (!%p147_p6), %v1737_v5 }
  0x12   : > { %s179_s7 = scalar_select %p178_p7, %s2002_s27, 399  ;;  %1740 = vmatpush3.bf16.msra.mxu0 %v1737_v5  ;;  %1761 = vmatpush3.bf16.msra.mxu1 %v1737_v5 }
  0x13   : > { %1742 = vmatprep.subr.bf16.mxu0 %v1741_v8  ;;  %1757 = vmatprep.subr.bf16.mxu1 %v1741_v8  ;;  %s991_s4 = ssub.s32 (%p1988_p4), 400, %s2002_s27  ;;  %s1540_s5 = sshll.u32 (%p1988_p4), %s1976_s15, 9 }
  0x14   : > { %s1456_s8 = sshll.u32 %s179_s7, 3  ;;  %p992_p8 = scmp.lt.s32.totalorder (%p1988_p4), %s991_s4, 64 }
  0x15   : > { %s2024_s21 = scalar_lea.vmem %s2502_s0, %s1456_s8  ;;  %s2303_s8 = scalar_lea.vmem (%p1988_p4), %s2505_s3, %s1540_s5  }
  0x16   : > { %v192_v11 = vld [vmem:[%s2024_s21] sm:$0xff]  ;;  %1744 = vmatpush3.bf16.msra.mxu0 %v1741_v8  ;;  %1762 = vmatpush3.bf16.msra.mxu1 %v1741_v8  ;;  %v193_v17 = vld [vmem:[%s2024_s21 + $0x8] sm:$0xff]  ;;  %v194_v19 = vld [vmem:[%s2024_s21 + $0x10] sm:$0xff] }
  0x17   : > { %v224_v12 = vld [vmem:[%s2024_s21 + $0x100] sm:$0xff]  ;;  %1637 = vmatprep.mubr.msk.f32.mxu0 %vm273_vm0, %v192_v11  ;;  %1746 = vmatprep.subr.bf16.mxu0 %v1745_v13  ;;  %v225_v18 = vld [vmem:[%s2024_s21 + $0x108] sm:$0xff]  ;;  %v226_v20 = vld [vmem:[%s2024_s21 + $0x110] sm:$0xff] }
  0x18   : > { %1685 = vmatprep.mubr.msk.f32.mxu1 %vm273_vm0, %v224_v12  ;;  %1758 = vmatprep.subr.bf16.mxu1 %v1745_v13  ;;  %v195_v21 = vld [vmem:[%s2024_s21 + $0x18] sm:$0xff]  ;;  %v196_v23 = vld [vmem:[%s2024_s21 + $0x20] sm:$0xff]  ;;  %v197_v25 = vld [vmem:[%s2024_s21 + $0x28] sm:$0xff] }
  0x19   : > { %v227_v22 = vld [vmem:[%s2024_s21 + $0x118] sm:$0xff]  ;;  %v228_v24 = vld [vmem:[%s2024_s21 + $0x120] sm:$0xff]  ;;  %v229_v26 = vld [vmem:[%s2024_s21 + $0x128] sm:$0xff] }
  0x1a   : > { %1748 = vmatpush3.bf16.msra.mxu0 %v1745_v13  ;;  %1763 = vmatpush3.bf16.msra.mxu1 %v1745_v13  ;;  %v198_v27 = vld [vmem:[%s2024_s21 + $0x30] sm:$0xff]  ;;  %v199_v29 = vld [vmem:[%s2024_s21 + $0x38] sm:$0xff]  ;;  %v200_v31 = vld [vmem:[%s2024_s21 + $0x40] sm:$0xff] }
  0x1b   : > { %1751 = vmatprep.subr.msk.bf16.mxu0 %vm1750_vm3, %v1749_v16  ;;  %1759 = vmatprep.subr.msk.bf16.mxu1 %vm1750_vm3, %v1749_v16  ;;  %v230_v28 = vld [vmem:[%s2024_s21 + $0x130] sm:$0xff]  ;;  %v231_v30 = vld [vmem:[%s2024_s21 + $0x138] sm:$0xff]  ;;  %v232_v32 = vld [vmem:[%s2024_s21 + $0x140] sm:$0xff] }
  0x1c   : > { %v201_v33 = vld [vmem:[%s2024_s21 + $0x48] sm:$0xff]  ;;  %v202_v35 = vld [vmem:[%s2024_s21 + $0x50] sm:$0xff]  ;;  %v203_v37 = vld [vmem:[%s2024_s21 + $0x58] sm:$0xff] }
  0x1d   : > { %v233_v34 = vld [vmem:[%s2024_s21 + $0x148] sm:$0xff]  ;;  %v234_v36 = vld [vmem:[%s2024_s21 + $0x150] sm:$0xff]  ;;  %v235_v38 = vld [vmem:[%s2024_s21 + $0x158] sm:$0xff] }
  0x1e   : > { %1754 = vmatpush3.bf16.msk.msra.mxu0 %vm1750_vm3, %v1749_v16  ;;  %1764 = vmatpush3.bf16.msk.msra.mxu1 %vm1750_vm3, %v1749_v16  ;;  %v204_v39 = vld [vmem:[%s2024_s21 + $0x60] sm:$0xff]  ;;  %v205_v41 = vld [vmem:[%s2024_s21 + $0x68] sm:$0xff]  ;;  %v206_v43 = vld [vmem:[%s2024_s21 + $0x70] sm:$0xff] }
  0x1f   : > { %v236_v40 = vld [vmem:[%s2024_s21 + $0x160] sm:$0xff]  ;;  %v237_v42 = vld [vmem:[%s2024_s21 + $0x168] sm:$0xff]  ;;  %v238_v44 = vld [vmem:[%s2024_s21 + $0x170] sm:$0xff] }
  0x20   : > { %v207_v45 = vld [vmem:[%s2024_s21 + $0x78] sm:$0xff]  ;;  %v208_v47 = vld [vmem:[%s2024_s21 + $0x80] sm:$0xff]  ;;  %v209_v49 = vld [vmem:[%s2024_s21 + $0x88] sm:$0xff] }
  0x21   : > { %1638 = vmatmul.mubr.msk.f32.vlgmr.msra.gmra.mrb[0].mxu0 %vm273_vm0, %v193_v17  ;;  %1686 = vmatmul.mubr.msk.f32.vlgmr.msra.gmra.mrb[0].mxu1 %vm273_vm0, %v225_v18  ;;  %v239_v46 = vld [vmem:[%s2024_s21 + $0x178] sm:$0xff]  ;;  %v240_v48 = vld [vmem:[%s2024_s21 + $0x180] sm:$0xff]  ;;  %v241_v50 = vld [vmem:[%s2024_s21 + $0x188] sm:$0xff] }
  0x22   : > { %1640 = vmatprep.mubr.msk.f32.mxu0 %vm273_vm0, %v194_v19  ;;  %1688 = vmatprep.mubr.msk.f32.mxu1 %vm273_vm0, %v226_v20  ;;  %v210_v51 = vld [vmem:[%s2024_s21 + $0x90] sm:$0xff]  ;;  %v211_v53 = vld [vmem:[%s2024_s21 + $0x98] sm:$0xff]  ;;  %v212_v55 = vld [vmem:[%s2024_s21 + $0xa0] sm:$0xff] }
  0x23   : > { %v242_v52 = vld [vmem:[%s2024_s21 + $0x190] sm:$0xff]  ;;  %v243_v54 = vld [vmem:[%s2024_s21 + $0x198] sm:$0xff]  ;;  %v244_v56 = vld [vmem:[%s2024_s21 + $0x1a0] sm:$0xff] }
  0x24   : > { %v213_v57 = vld [vmem:[%s2024_s21 + $0xa8] sm:$0xff]  ;;  %v214_v59 = vld [vmem:[%s2024_s21 + $0xb0] sm:$0xff]  ;;  %v215_v61 = vld [vmem:[%s2024_s21 + $0xb8] sm:$0xff] }
  0x25   : > { %1641 = vmatmul.mubr.msk.f32.gmra.mrb[2].mxu0 %vm273_vm0, %v195_v21  ;;  %1689 = vmatmul.mubr.msk.f32.gmra.mrb[2].mxu1 %vm273_vm0, %v227_v22  ;;  %v245_v58 = vld [vmem:[%s2024_s21 + $0x1a8] sm:$0xff]  ;;  %v246_v60 = vld [vmem:[%s2024_s21 + $0x1b0] sm:$0xff]  ;;  %v247_v62 = vld [vmem:[%s2024_s21 + $0x1b8] sm:$0xff] }
  0x26   : > { %1643 = vmatprep.mubr.msk.f32.mxu0 %vm273_vm0, %v196_v23  ;;  %1691 = vmatprep.mubr.msk.f32.mxu1 %vm273_vm0, %v228_v24  ;;  %v216_v63 = vld [vmem:[%s2024_s21 + $0xc0] sm:$0xff]  ;;  %v217_v1 = vld [vmem:[%s2024_s21 + $0xc8] sm:$0xff]  ;;  %v218_v3 = vld [vmem:[%s2024_s21 + $0xd0] sm:$0xff] }
  0x27   : > { %v248_v0 = vld [vmem:[%s2024_s21 + $0x1c0] sm:$0xff]  ;;  %v249_v2 = vld [vmem:[%s2024_s21 + $0x1c8] sm:$0xff]  ;;  %v250_v4 = vld [vmem:[%s2024_s21 + $0x1d0] sm:$0xff] }
  0x28   : > { %v219_v5 = vld [vmem:[%s2024_s21 + $0xd8] sm:$0xff]  ;;  %v220_v7 = vld [vmem:[%s2024_s21 + $0xe0] sm:$0xff]  ;;  %v221_v9 = vld [vmem:[%s2024_s21 + $0xe8] sm:$0xff] }
  0x29   : > { %1644 = vmatmul.mubr.msk.f32.gmra.mrb[4].mxu0 %vm273_vm0, %v197_v25  ;;  %1692 = vmatmul.mubr.msk.f32.gmra.mrb[4].mxu1 %vm273_vm0, %v229_v26  ;;  %v251_v6 = vld [vmem:[%s2024_s21 + $0x1d8] sm:$0xff]  ;;  %v252_v8 = vld [vmem:[%s2024_s21 + $0x1e0] sm:$0xff]  ;;  %v253_v10 = vld [vmem:[%s2024_s21 + $0x1e8] sm:$0xff] }
  0x2a   : > { %1646 = vmatprep.mubr.msk.f32.mxu0 %vm273_vm0, %v198_v27  ;;  %1694 = vmatprep.mubr.msk.f32.mxu1 %vm273_vm0, %v230_v28  ;;  %v222_v11 = vld [vmem:[%s2024_s21 + $0xf0] sm:$0xff]  ;;  %v223_v13 = vld [vmem:[%s2024_s21 + $0xf8] sm:$0xff] }
  0x2b   : > { %v254_v12 = vld [vmem:[%s2024_s21 + $0x1f0] sm:$0xff]  ;;  %v255_v14 = vld [vmem:[%s2024_s21 + $0x1f8] sm:$0xff] }
  0x2d   : > { %1647 = vmatmul.mubr.msk.f32.gmra.mrb[6].mxu0 %vm273_vm0, %v199_v29  ;;  %1695 = vmatmul.mubr.msk.f32.gmra.mrb[6].mxu1 %vm273_vm0, %v231_v30 }
  0x2e   : > { %1649 = vmatprep.mubr.msk.f32.mxu0 %vm273_vm0, %v200_v31  ;;  %1697 = vmatprep.mubr.msk.f32.mxu1 %vm273_vm0, %v232_v32 }
  0x31   : > { %1650 = vmatmul.mubr.msk.f32.gmra.mrb[8].mxu0 %vm273_vm0, %v201_v33  ;;  %1698 = vmatmul.mubr.msk.f32.gmra.mrb[8].mxu1 %vm273_vm0, %v233_v34 }
  0x32   : > { %1652 = vmatprep.mubr.msk.f32.mxu0 %vm273_vm0, %v202_v35  ;;  %1700 = vmatprep.mubr.msk.f32.mxu1 %vm273_vm0, %v234_v36 }
  0x35   : > { %1653 = vmatmul.mubr.msk.f32.gmra.mrb[10].mxu0 %vm273_vm0, %v203_v37  ;;  %1701 = vmatmul.mubr.msk.f32.gmra.mrb[10].mxu1 %vm273_vm0, %v235_v38 }
  0x36   : > { %1655 = vmatprep.mubr.msk.f32.mxu0 %vm273_vm0, %v204_v39  ;;  %1703 = vmatprep.mubr.msk.f32.mxu1 %vm273_vm0, %v236_v40 }
  0x39   : > { %1656 = vmatmul.mubr.msk.f32.gmra.mrb[12].mxu0 %vm273_vm0, %v205_v41  ;;  %1704 = vmatmul.mubr.msk.f32.gmra.mrb[12].mxu1 %vm273_vm0, %v237_v42 }
  0x3a   : > { %1658 = vmatprep.mubr.msk.f32.mxu0 %vm273_vm0, %v206_v43  ;;  %1706 = vmatprep.mubr.msk.f32.mxu1 %vm273_vm0, %v238_v44 }
  0x3d   : > { %1659 = vmatmul.mubr.msk.f32.gmra.mrb[14].mxu0 %vm273_vm0, %v207_v45  ;;  %1707 = vmatmul.mubr.msk.f32.gmra.mrb[14].mxu1 %vm273_vm0, %v239_v46 }
  0x3e   : > { %1661 = vmatprep.mubr.msk.f32.mxu0 %vm273_vm0, %v208_v47  ;;  %1709 = vmatprep.mubr.msk.f32.mxu1 %vm273_vm0, %v240_v48 }
  0x41   : > { %1662 = vmatmul.mubr.msk.f32.gmra.mrb[16].mxu0 %vm273_vm0, %v209_v49  ;;  %1710 = vmatmul.mubr.msk.f32.gmra.mrb[16].mxu1 %vm273_vm0, %v241_v50 }
  0x42   : > { %1664 = vmatprep.mubr.msk.f32.mxu0 %vm273_vm0, %v210_v51  ;;  %1712 = vmatprep.mubr.msk.f32.mxu1 %vm273_vm0, %v242_v52 }
  0x45   : > { %1665 = vmatmul.mubr.msk.f32.gmra.mrb[18].mxu0 %vm273_vm0, %v211_v53  ;;  %1713 = vmatmul.mubr.msk.f32.gmra.mrb[18].mxu1 %vm273_vm0, %v243_v54 }
  0x46   : > { %1667 = vmatprep.mubr.msk.f32.mxu0 %vm273_vm0, %v212_v55  ;;  %1715 = vmatprep.mubr.msk.f32.mxu1 %vm273_vm0, %v244_v56 }
  0x49   : > { %1668 = vmatmul.mubr.msk.f32.gmra.mrb[20].mxu0 %vm273_vm0, %v213_v57  ;;  %1716 = vmatmul.mubr.msk.f32.gmra.mrb[20].mxu1 %vm273_vm0, %v245_v58 }
  0x4a   : > { %1670 = vmatprep.mubr.msk.f32.mxu0 %vm273_vm0, %v214_v59  ;;  %1718 = vmatprep.mubr.msk.f32.mxu1 %vm273_vm0, %v246_v60 }
  0x4d   : > { %1671 = vmatmul.mubr.msk.f32.gmra.mrb[22].mxu0 %vm273_vm0, %v215_v61  ;;  %1719 = vmatmul.mubr.msk.f32.gmra.mrb[22].mxu1 %vm273_vm0, %v247_v62 }
  0x4e   : > { %1673 = vmatprep.mubr.msk.f32.mxu0 %vm273_vm0, %v216_v63  ;;  %1721 = vmatprep.mubr.msk.f32.mxu1 %vm273_vm0, %v248_v0 }
  0x51   : > { %1674 = vmatmul.mubr.msk.f32.gmra.mrb[24].mxu0 %vm273_vm0, %v217_v1  ;;  %1722 = vmatmul.mubr.msk.f32.gmra.mrb[24].mxu1 %vm273_vm0, %v249_v2 }
  0x52   : > { %1676 = vmatprep.mubr.msk.f32.mxu0 %vm273_vm0, %v218_v3  ;;  %1724 = vmatprep.mubr.msk.f32.mxu1 %vm273_vm0, %v250_v4 }
  0x55   : > { %1677 = vmatmul.mubr.msk.f32.gmra.mrb[26].mxu0 %vm273_vm0, %v219_v5  ;;  %1725 = vmatmul.mubr.msk.f32.gmra.mrb[26].mxu1 %vm273_vm0, %v251_v6 }
  0x56   : > { %1679 = vmatprep.mubr.msk.f32.mxu0 %vm273_vm0, %v220_v7  ;;  %1727 = vmatprep.mubr.msk.f32.mxu1 %vm273_vm0, %v252_v8 }
  0x59   : > { %1680 = vmatmul.mubr.msk.f32.gmra.mrb[28].mxu0 %vm273_vm0, %v221_v9  ;;  %1728 = vmatmul.mubr.msk.f32.gmra.mrb[28].mxu1 %vm273_vm0, %v253_v10 }
  0x5a   : > { %1682 = vmatprep.mubr.msk.f32.mxu0 %vm273_vm0, %v222_v11  ;;  %1730 = vmatprep.mubr.msk.f32.mxu1 %vm273_vm0, %v254_v12 }
  0x5d   : > { %1683 = vmatmul.mubr.msk.f32.gmra.mrb[30].mxu0 %vm273_vm0, %v223_v13  ;;  %1731 = vmatmul.mubr.msk.f32.gmra.mrb[30].mxu1 %vm273_vm0, %v255_v14 }
  0xf4   : > { %v1639_v16 = vpop.f32.mrb[0].mxu0  ;;  %v1687_v17 = vpop.f32.mrb[0].mxu1 }
  0xf5   : > { %v542_v18 = vadd.f32 %v1639_v16, %v2164_v15  ;;  %v702_v19 = vadd.f32 %v1687_v17, %v2164_v15  ;;  %v536_v20 = vpop.f32.mrb[1].mxu0  ;;  %v696_v21 = vpop.f32.mrb[1].mxu1 }
  0xf6   : > { %v537_v22 = vadd.f32 %v2164_v15, %v536_v20  ;;  %v697_v23 = vadd.f32 %v2164_v15, %v696_v21 }
  0xf7   : > { %v856_v24 = vmax.f32 %v542_v18, 0.0  ;;  %v888_v25 = vmax.f32 %v702_v19, 0.0 }
  0xf8   : > { %v855_v26 = vmax.f32 %v537_v22, 0.0  ;;  %v887_v27 = vmax.f32 %v697_v23, 0.0  ;;  %v1642_v28 = vpop.f32.mrb[2].mxu0  ;;  %v1690_v29 = vpop.f32.mrb[2].mxu1 }
  0xf9   : > { %920 = vst [vmem:[%s2170_s12 + $0x8] sm:$0xff] %v856_v24  ;;  %952 = vst [vmem:[%s2170_s12 + $0x108] sm:$0xff] %v888_v25  ;;  %v552_v30 = vadd.f32 %v1642_v28, %v2164_v15  ;;  %v712_v31 = vadd.f32 %v1690_v29, %v2164_v15  ;;  %v546_v32 = vpop.f32.mrb[3].mxu0  ;;  %v706_v33 = vpop.f32.mrb[3].mxu1 }
  0xfa   : > { %919 = vst [vmem:[%s2170_s12] sm:$0xff] %v855_v26  ;;  %951 = vst [vmem:[%s2170_s12 + $0x100] sm:$0xff] %v887_v27  ;;  %v547_v34 = vadd.f32 %v2164_v15, %v546_v32  ;;  %v707_v35 = vadd.f32 %v2164_v15, %v706_v33 }
  0xfb   : > { %v858_v36 = vmax.f32 %v552_v30, 0.0  ;;  %v890_v37 = vmax.f32 %v712_v31, 0.0 }
  0xfc   : > { %v857_v38 = vmax.f32 %v547_v34, 0.0  ;;  %v889_v39 = vmax.f32 %v707_v35, 0.0  ;;  %v1645_v40 = vpop.f32.mrb[4].mxu0  ;;  %v1693_v41 = vpop.f32.mrb[4].mxu1 }
  0xfd   : > { %922 = vst [vmem:[%s2170_s12 + $0x18] sm:$0xff] %v858_v36  ;;  %954 = vst [vmem:[%s2170_s12 + $0x118] sm:$0xff] %v890_v37  ;;  %v562_v42 = vadd.f32 %v1645_v40, %v2164_v15  ;;  %v722_v43 = vadd.f32 %v1693_v41, %v2164_v15  ;;  %v556_v44 = vpop.f32.mrb[5].mxu0  ;;  %v716_v45 = vpop.f32.mrb[5].mxu1 }
  0xfe   : > { %921 = vst [vmem:[%s2170_s12 + $0x10] sm:$0xff] %v857_v38  ;;  %953 = vst [vmem:[%s2170_s12 + $0x110] sm:$0xff] %v889_v39  ;;  %v557_v46 = vadd.f32 %v2164_v15, %v556_v44  ;;  %v717_v47 = vadd.f32 %v2164_v15, %v716_v45 }
  0xff   : > { %v860_v48 = vmax.f32 %v562_v42, 0.0  ;;  %v892_v49 = vmax.f32 %v722_v43, 0.0 }
 0x100   : > { %v859_v50 = vmax.f32 %v557_v46, 0.0  ;;  %v891_v51 = vmax.f32 %v717_v47, 0.0  ;;  %v1648_v52 = vpop.f32.mrb[6].mxu0  ;;  %v1696_v53 = vpop.f32.mrb[6].mxu1 }
 0x101   : > { %924 = vst [vmem:[%s2170_s12 + $0x28] sm:$0xff] %v860_v48  ;;  %956 = vst [vmem:[%s2170_s12 + $0x128] sm:$0xff] %v892_v49  ;;  %v572_v54 = vadd.f32 %v1648_v52, %v2164_v15  ;;  %v732_v55 = vadd.f32 %v1696_v53, %v2164_v15  ;;  %v566_v56 = vpop.f32.mrb[7].mxu0  ;;  %v726_v57 = vpop.f32.mrb[7].mxu1 }
 0x102   : > { %923 = vst [vmem:[%s2170_s12 + $0x20] sm:$0xff] %v859_v50  ;;  %955 = vst [vmem:[%s2170_s12 + $0x120] sm:$0xff] %v891_v51  ;;  %v567_v58 = vadd.f32 %v2164_v15, %v566_v56  ;;  %v727_v59 = vadd.f32 %v2164_v15, %v726_v57 }
 0x103   : > { %v862_v60 = vmax.f32 %v572_v54, 0.0  ;;  %v894_v61 = vmax.f32 %v732_v55, 0.0 }
 0x104   : > { %v861_v62 = vmax.f32 %v567_v58, 0.0  ;;  %v893_v63 = vmax.f32 %v727_v59, 0.0  ;;  %v1651_v0 = vpop.f32.mrb[8].mxu0  ;;  %v1699_v1 = vpop.f32.mrb[8].mxu1 }
 0x105   : > { %926 = vst [vmem:[%s2170_s12 + $0x38] sm:$0xff] %v862_v60  ;;  %958 = vst [vmem:[%s2170_s12 + $0x138] sm:$0xff] %v894_v61  ;;  %v582_v2 = vadd.f32 %v1651_v0, %v2164_v15  ;;  %v742_v3 = vadd.f32 %v1699_v1, %v2164_v15  ;;  %v576_v4 = vpop.f32.mrb[9].mxu0  ;;  %v736_v5 = vpop.f32.mrb[9].mxu1 }
 0x106   : > { %925 = vst [vmem:[%s2170_s12 + $0x30] sm:$0xff] %v861_v62  ;;  %957 = vst [vmem:[%s2170_s12 + $0x130] sm:$0xff] %v893_v63  ;;  %v577_v6 = vadd.f32 %v2164_v15, %v576_v4  ;;  %v737_v7 = vadd.f32 %v2164_v15, %v736_v5 }
 0x107   : > { %v864_v8 = vmax.f32 %v582_v2, 0.0  ;;  %v896_v9 = vmax.f32 %v742_v3, 0.0 }
 0x108   : > { %v863_v10 = vmax.f32 %v577_v6, 0.0  ;;  %v895_v11 = vmax.f32 %v737_v7, 0.0  ;;  %v1654_v12 = vpop.f32.mrb[10].mxu0  ;;  %v1702_v13 = vpop.f32.mrb[10].mxu1 }
 0x109   : > { %928 = vst [vmem:[%s2170_s12 + $0x48] sm:$0xff] %v864_v8  ;;  %960 = vst [vmem:[%s2170_s12 + $0x148] sm:$0xff] %v896_v9  ;;  %v592_v14 = vadd.f32 %v1654_v12, %v2164_v15  ;;  %v752_v16 = vadd.f32 %v1702_v13, %v2164_v15  ;;  %v586_v17 = vpop.f32.mrb[11].mxu0  ;;  %v746_v18 = vpop.f32.mrb[11].mxu1 }
 0x10a   : > { %927 = vst [vmem:[%s2170_s12 + $0x40] sm:$0xff] %v863_v10  ;;  %959 = vst [vmem:[%s2170_s12 + $0x140] sm:$0xff] %v895_v11  ;;  %v587_v19 = vadd.f32 %v2164_v15, %v586_v17  ;;  %v747_v20 = vadd.f32 %v2164_v15, %v746_v18 }
 0x10b   : > { %v866_v21 = vmax.f32 %v592_v14, 0.0  ;;  %v898_v22 = vmax.f32 %v752_v16, 0.0 }
 0x10c   : > { %v865_v23 = vmax.f32 %v587_v19, 0.0  ;;  %v897_v24 = vmax.f32 %v747_v20, 0.0  ;;  %v1657_v25 = vpop.f32.mrb[12].mxu0  ;;  %v1705_v26 = vpop.f32.mrb[12].mxu1 }
 0x10d   : > { %930 = vst [vmem:[%s2170_s12 + $0x58] sm:$0xff] %v866_v21  ;;  %962 = vst [vmem:[%s2170_s12 + $0x158] sm:$0xff] %v898_v22  ;;  %v602_v27 = vadd.f32 %v1657_v25, %v2164_v15  ;;  %v762_v28 = vadd.f32 %v1705_v26, %v2164_v15  ;;  %v596_v29 = vpop.f32.mrb[13].mxu0  ;;  %v756_v30 = vpop.f32.mrb[13].mxu1 }
 0x10e   : > { %929 = vst [vmem:[%s2170_s12 + $0x50] sm:$0xff] %v865_v23  ;;  %961 = vst [vmem:[%s2170_s12 + $0x150] sm:$0xff] %v897_v24  ;;  %v597_v31 = vadd.f32 %v2164_v15, %v596_v29  ;;  %v757_v32 = vadd.f32 %v2164_v15, %v756_v30 }
 0x10f   : > { %v868_v33 = vmax.f32 %v602_v27, 0.0  ;;  %v900_v34 = vmax.f32 %v762_v28, 0.0 }
 0x110   : > { %v867_v35 = vmax.f32 %v597_v31, 0.0  ;;  %v899_v36 = vmax.f32 %v757_v32, 0.0  ;;  %v1660_v37 = vpop.f32.mrb[14].mxu0  ;;  %v1708_v38 = vpop.f32.mrb[14].mxu1 }
 0x111   : > { %932 = vst [vmem:[%s2170_s12 + $0x68] sm:$0xff] %v868_v33  ;;  %964 = vst [vmem:[%s2170_s12 + $0x168] sm:$0xff] %v900_v34  ;;  %v612_v39 = vadd.f32 %v1660_v37, %v2164_v15  ;;  %v772_v40 = vadd.f32 %v1708_v38, %v2164_v15  ;;  %v606_v41 = vpop.f32.mrb[15].mxu0  ;;  %v766_v42 = vpop.f32.mrb[15].mxu1 }
 0x112   : > { %931 = vst [vmem:[%s2170_s12 + $0x60] sm:$0xff] %v867_v35  ;;  %963 = vst [vmem:[%s2170_s12 + $0x160] sm:$0xff] %v899_v36  ;;  %v607_v43 = vadd.f32 %v2164_v15, %v606_v41  ;;  %v767_v44 = vadd.f32 %v2164_v15, %v766_v42 }
 0x113   : > { %v870_v45 = vmax.f32 %v612_v39, 0.0  ;;  %v902_v46 = vmax.f32 %v772_v40, 0.0 }
 0x114   : > { %v869_v47 = vmax.f32 %v607_v43, 0.0  ;;  %v901_v48 = vmax.f32 %v767_v44, 0.0  ;;  %v1663_v49 = vpop.f32.mrb[16].mxu0  ;;  %v1711_v50 = vpop.f32.mrb[16].mxu1 }
 0x115   : > { %934 = vst [vmem:[%s2170_s12 + $0x78] sm:$0xff] %v870_v45  ;;  %966 = vst [vmem:[%s2170_s12 + $0x178] sm:$0xff] %v902_v46  ;;  %v622_v51 = vadd.f32 %v1663_v49, %v2164_v15  ;;  %v782_v52 = vadd.f32 %v1711_v50, %v2164_v15  ;;  %v616_v53 = vpop.f32.mrb[17].mxu0  ;;  %v776_v54 = vpop.f32.mrb[17].mxu1 }
 0x116   : > { %933 = vst [vmem:[%s2170_s12 + $0x70] sm:$0xff] %v869_v47  ;;  %965 = vst [vmem:[%s2170_s12 + $0x170] sm:$0xff] %v901_v48  ;;  %v617_v55 = vadd.f32 %v2164_v15, %v616_v53  ;;  %v777_v56 = vadd.f32 %v2164_v15, %v776_v54 }
 0x117   : > { %v872_v57 = vmax.f32 %v622_v51, 0.0  ;;  %v904_v58 = vmax.f32 %v782_v52, 0.0 }
 0x118   : > { %v871_v59 = vmax.f32 %v617_v55, 0.0  ;;  %v903_v60 = vmax.f32 %v777_v56, 0.0  ;;  %v1666_v61 = vpop.f32.mrb[18].mxu0  ;;  %v1714_v62 = vpop.f32.mrb[18].mxu1 }
 0x119   : > { %936 = vst [vmem:[%s2170_s12 + $0x88] sm:$0xff] %v872_v57  ;;  %968 = vst [vmem:[%s2170_s12 + $0x188] sm:$0xff] %v904_v58  ;;  %v632_v63 = vadd.f32 %v1666_v61, %v2164_v15  ;;  %v792_v0 = vadd.f32 %v1714_v62, %v2164_v15  ;;  %v626_v1 = vpop.f32.mrb[19].mxu0  ;;  %v786_v2 = vpop.f32.mrb[19].mxu1 }
 0x11a   : > { %935 = vst [vmem:[%s2170_s12 + $0x80] sm:$0xff] %v871_v59  ;;  %967 = vst [vmem:[%s2170_s12 + $0x180] sm:$0xff] %v903_v60  ;;  %v627_v3 = vadd.f32 %v2164_v15, %v626_v1  ;;  %v787_v4 = vadd.f32 %v2164_v15, %v786_v2 }
 0x11b   : > { %v874_v5 = vmax.f32 %v632_v63, 0.0  ;;  %v906_v6 = vmax.f32 %v792_v0, 0.0 }
 0x11c   : > { %v873_v7 = vmax.f32 %v627_v3, 0.0  ;;  %v905_v8 = vmax.f32 %v787_v4, 0.0  ;;  %v1669_v9 = vpop.f32.mrb[20].mxu0  ;;  %v1717_v10 = vpop.f32.mrb[20].mxu1 }
 0x11d   : > { %938 = vst [vmem:[%s2170_s12 + $0x98] sm:$0xff] %v874_v5  ;;  %970 = vst [vmem:[%s2170_s12 + $0x198] sm:$0xff] %v906_v6  ;;  %v642_v11 = vadd.f32 %v1669_v9, %v2164_v15  ;;  %v802_v12 = vadd.f32 %v1717_v10, %v2164_v15  ;;  %v636_v13 = vpop.f32.mrb[21].mxu0  ;;  %v796_v14 = vpop.f32.mrb[21].mxu1 }
 0x11e   : > { %937 = vst [vmem:[%s2170_s12 + $0x90] sm:$0xff] %v873_v7  ;;  %969 = vst [vmem:[%s2170_s12 + $0x190] sm:$0xff] %v905_v8  ;;  %v637_v16 = vadd.f32 %v2164_v15, %v636_v13  ;;  %v797_v17 = vadd.f32 %v2164_v15, %v796_v14 }
 0x11f   : > { %v876_v18 = vmax.f32 %v642_v11, 0.0  ;;  %v908_v19 = vmax.f32 %v802_v12, 0.0 }
 0x120   : > { %v875_v20 = vmax.f32 %v637_v16, 0.0  ;;  %v907_v21 = vmax.f32 %v797_v17, 0.0  ;;  %v1672_v22 = vpop.f32.mrb[22].mxu0  ;;  %v1720_v23 = vpop.f32.mrb[22].mxu1 }
 0x121   : > { %940 = vst [vmem:[%s2170_s12 + $0xa8] sm:$0xff] %v876_v18  ;;  %972 = vst [vmem:[%s2170_s12 + $0x1a8] sm:$0xff] %v908_v19  ;;  %v652_v24 = vadd.f32 %v1672_v22, %v2164_v15  ;;  %v812_v25 = vadd.f32 %v1720_v23, %v2164_v15  ;;  %v646_v26 = vpop.f32.mrb[23].mxu0  ;;  %v806_v27 = vpop.f32.mrb[23].mxu1 }
 0x122   : > { %939 = vst [vmem:[%s2170_s12 + $0xa0] sm:$0xff] %v875_v20  ;;  %971 = vst [vmem:[%s2170_s12 + $0x1a0] sm:$0xff] %v907_v21  ;;  %v647_v28 = vadd.f32 %v2164_v15, %v646_v26  ;;  %v807_v29 = vadd.f32 %v2164_v15, %v806_v27 }
 0x123   : > { %v878_v30 = vmax.f32 %v652_v24, 0.0  ;;  %v910_v31 = vmax.f32 %v812_v25, 0.0 }
 0x124   : > { %v877_v32 = vmax.f32 %v647_v28, 0.0  ;;  %v909_v33 = vmax.f32 %v807_v29, 0.0  ;;  %v1675_v34 = vpop.f32.mrb[24].mxu0  ;;  %v1723_v35 = vpop.f32.mrb[24].mxu1 }
 0x125   : > { %942 = vst [vmem:[%s2170_s12 + $0xb8] sm:$0xff] %v878_v30  ;;  %974 = vst [vmem:[%s2170_s12 + $0x1b8] sm:$0xff] %v910_v31  ;;  %v662_v36 = vadd.f32 %v1675_v34, %v2164_v15  ;;  %v822_v37 = vadd.f32 %v1723_v35, %v2164_v15  ;;  %v656_v38 = vpop.f32.mrb[25].mxu0  ;;  %v816_v39 = vpop.f32.mrb[25].mxu1 }
 0x126   : > { %941 = vst [vmem:[%s2170_s12 + $0xb0] sm:$0xff] %v877_v32  ;;  %973 = vst [vmem:[%s2170_s12 + $0x1b0] sm:$0xff] %v909_v33  ;;  %v657_v40 = vadd.f32 %v2164_v15, %v656_v38  ;;  %v817_v41 = vadd.f32 %v2164_v15, %v816_v39 }
 0x127   : > { %v880_v42 = vmax.f32 %v662_v36, 0.0  ;;  %v912_v43 = vmax.f32 %v822_v37, 0.0 }
 0x128   : > { %v879_v44 = vmax.f32 %v657_v40, 0.0  ;;  %v911_v45 = vmax.f32 %v817_v41, 0.0  ;;  %v1678_v46 = vpop.f32.mrb[26].mxu0  ;;  %v1726_v47 = vpop.f32.mrb[26].mxu1 }
 0x129   : > { %944 = vst [vmem:[%s2170_s12 + $0xc8] sm:$0xff] %v880_v42  ;;  %976 = vst [vmem:[%s2170_s12 + $0x1c8] sm:$0xff] %v912_v43  ;;  %v672_v48 = vadd.f32 %v1678_v46, %v2164_v15  ;;  %v832_v49 = vadd.f32 %v1726_v47, %v2164_v15  ;;  %v666_v50 = vpop.f32.mrb[27].mxu0  ;;  %v826_v51 = vpop.f32.mrb[27].mxu1 }
 0x12a   : > { %943 = vst [vmem:[%s2170_s12 + $0xc0] sm:$0xff] %v879_v44  ;;  %975 = vst [vmem:[%s2170_s12 + $0x1c0] sm:$0xff] %v911_v45  ;;  %v667_v52 = vadd.f32 %v2164_v15, %v666_v50  ;;  %v827_v53 = vadd.f32 %v2164_v15, %v826_v51 }
 0x12b   : > { %v882_v54 = vmax.f32 %v672_v48, 0.0  ;;  %v914_v55 = vmax.f32 %v832_v49, 0.0 }
 0x12c   : > { %v881_v56 = vmax.f32 %v667_v52, 0.0  ;;  %v913_v57 = vmax.f32 %v827_v53, 0.0  ;;  %v1681_v58 = vpop.f32.mrb[28].mxu0  ;;  %v1729_v59 = vpop.f32.mrb[28].mxu1 }
 0x12d   : > { %946 = vst [vmem:[%s2170_s12 + $0xd8] sm:$0xff] %v882_v54  ;;  %978 = vst [vmem:[%s2170_s12 + $0x1d8] sm:$0xff] %v914_v55  ;;  %v682_v60 = vadd.f32 %v1681_v58, %v2164_v15  ;;  %v842_v61 = vadd.f32 %v1729_v59, %v2164_v15  ;;  %v676_v62 = vpop.f32.mrb[29].mxu0  ;;  %v836_v63 = vpop.f32.mrb[29].mxu1 }
 0x12e   : > { %945 = vst [vmem:[%s2170_s12 + $0xd0] sm:$0xff] %v881_v56  ;;  %977 = vst [vmem:[%s2170_s12 + $0x1d0] sm:$0xff] %v913_v57  ;;  %v677_v0 = vadd.f32 %v2164_v15, %v676_v62  ;;  %v837_v1 = vadd.f32 %v2164_v15, %v836_v63 }
 0x12f   : > { %v884_v2 = vmax.f32 %v682_v60, 0.0  ;;  %v916_v3 = vmax.f32 %v842_v61, 0.0 }
 0x130   : > { %v883_v4 = vmax.f32 %v677_v0, 0.0  ;;  %v915_v5 = vmax.f32 %v837_v1, 0.0  ;;  %v1684_v6 = vpop.f32.mrb[30].mxu0  ;;  %v1732_v7 = vpop.f32.mrb[30].mxu1  ;;  %989 = sbr.rel (!%p1988_p4) target bundleno = 383 (0x17f), region = 36 }
 0x131   : > { %948 = vst [vmem:[%s2170_s12 + $0xe8] sm:$0xff] %v884_v2  ;;  %980 = vst [vmem:[%s2170_s12 + $0x1e8] sm:$0xff] %v916_v3  ;;  %v692_v8 = vadd.f32 %v1684_v6, %v2164_v15  ;;  %v852_v9 = vadd.f32 %v1732_v7, %v2164_v15  ;;  %v686_v10 = vpop.f32.mrb[31].mxu0  ;;  %v846_v11 = vpop.f32.mrb[31].mxu1 }
 0x132   : > { %947 = vst [vmem:[%s2170_s12 + $0xe0] sm:$0xff] %v883_v4  ;;  %979 = vst [vmem:[%s2170_s12 + $0x1e0] sm:$0xff] %v915_v5  ;;  %v687_v12 = vadd.f32 %v2164_v15, %v686_v10  ;;  %v847_v13 = vadd.f32 %v2164_v15, %v846_v11 }
 0x133   : > { %v886_v14 = vmax.f32 %v692_v8, 0.0  ;;  %v918_v16 = vmax.f32 %v852_v9, 0.0 }
 0x134   : > { %v885_v17 = vmax.f32 %v687_v12, 0.0  ;;  %v917_v18 = vmax.f32 %v847_v13, 0.0 }
 0x135   : > { %950 = vst [vmem:[%s2170_s12 + $0xf8] sm:$0xff] %v886_v14  ;;  %982 = vst [vmem:[%s2170_s12 + $0x1f8] sm:$0xff] %v918_v16 }
 0x136   : > { %949 = vst [vmem:[%s2170_s12 + $0xf0] sm:$0xff] %v885_v17  ;;  %981 = vst [vmem:[%s2170_s12 + $0x1f0] sm:$0xff] %v917_v18 }
 0x137   : > { %s2516_s4 = smov (!%p992_p8, %s991_s4), 64 }
 0x138   : > { %s1525_s9 = sshll.u32 %s2516_s4, 7 }
 0x139   : > { %p1528_p9 = scmp.eq.s32.totalorder %s1525_s9, 0 }
 0x13a   : > { %s2309_s10 = sshrl.u32 (!%p1528_p9), %s2516_s4, 6 }
 0x13b   : > { %1000 = sbr.rel (%p1528_p9) target bundleno = 383 (0x17f), region = 40  ;;  %p1529_p10 = scmp.le.s32.totalorder (!%p1528_p9), %s2309_s10, 0 }
 0x142   : > { %1406 = sbr.rel (%p1529_p10) target bundleno = 362 (0x16a), region = 116  ;;  %s2507_s15 = smov (!%p1529_p10), %s2303_s8 }
 0x143   : > { %s2508_s20 = smov (!%p1529_p10), %s2170_s12  ;;  %s2318_s27 = smov (!%p1529_p10), 0  }
 0x144   : > { %s2320_s11 = smov (!%p1529_p10), 0  }
 0x149 LB: >> { %v1188_v15 = vld [vmem:[%s1916_s20] sm:$0xff]  ;;  %v1190_v19 = vld [vmem:[%s1916_s20 + $0x8] sm:$0xff]  ;;  %v1192_v20 = vld [vmem:[%s1916_s20 + $0x10] sm:$0xff]  ;;  %s1316_s14 = sadd.s32 1, %s1920_s27  ;;  %s1182_s11 = sadd.s32 1, %s1924_s11   ;;  %s1924_s11 = sphi %s2320_s11, %s1182_s11   ;;  %s1920_s27 = sphi %s2318_s27, %s2511_s27   ;;  %s1916_s20 = sphi %s2508_s20, %s2510_s20   ;;  %s1912_s15 = sphi %s2507_s15, %s2509_s15  }
 0x14a   : >> { %1189 = vst [vmem:[%s1912_s15] sm:$0xff] %v1188_v15  ;;  %1191 = vst [vmem:[%s1912_s15 + $0x8] sm:$0xff] %v1190_v19  ;;  %v1194_v21 = vld [vmem:[%s1916_s20 + $0x18] sm:$0xff]  ;;  %v1196_v22 = vld [vmem:[%s1916_s20 + $0x20] sm:$0xff]  ;;  %p1317_p11 = scmp.ge.s32.totalorder %s1316_s14, %s2309_s10  ;;  %p1181_p12 = scmp.ge.s32.totalorder %s1182_s11, %s2309_s10 }
 0x14b   : >> { %1193 = vst [vmem:[%s1912_s15 + $0x10] sm:$0xff] %v1192_v20  ;;  %v1198_v23 = vld [vmem:[%s1916_s20 + $0x28] sm:$0xff]  ;;  %1195 = vst [vmem:[%s1912_s15 + $0x18] sm:$0xff] %v1194_v21  ;;  %v1200_v24 = vld [vmem:[%s1916_s20 + $0x30] sm:$0xff] }
 0x14c   : >> { %1197 = vst [vmem:[%s1912_s15 + $0x20] sm:$0xff] %v1196_v22  ;;  %1199 = vst [vmem:[%s1912_s15 + $0x28] sm:$0xff] %v1198_v23  ;;  %v1202_v25 = vld [vmem:[%s1916_s20 + $0x38] sm:$0xff]  ;;  %v1204_v26 = vld [vmem:[%s1916_s20 + $0x40] sm:$0xff]  ;;  %s2518_s14 = smov (%p1317_p11, %s1316_s14), 0 }
 0x14d   : >> { %1201 = vst [vmem:[%s1912_s15 + $0x30] sm:$0xff] %v1200_v24  ;;  %1203 = vst [vmem:[%s1912_s15 + $0x38] sm:$0xff] %v1202_v25  ;;  %v1206_v27 = vld [vmem:[%s1916_s20 + $0x48] sm:$0xff]  ;;  %v1208_v28 = vld [vmem:[%s1916_s20 + $0x50] sm:$0xff]  ;;  %s1530_s17 = sshll.u32 %s2518_s14, 9  ;;  %s2511_s27 = smov %s2518_s14 }
 0x14e   : >> { %1205 = vst [vmem:[%s1912_s15 + $0x40] sm:$0xff] %v1204_v26  ;;  %v1210_v29 = vld [vmem:[%s1916_s20 + $0x58] sm:$0xff]  ;;  %1207 = vst [vmem:[%s1912_s15 + $0x48] sm:$0xff] %v1206_v27  ;;  %v1212_v30 = vld [vmem:[%s1916_s20 + $0x60] sm:$0xff]  ;;  %s2376_s18 = scalar_lea.vmem %s2170_s12, %s1530_s17 [#allocation2]   ;;  %s2379_s21 = scalar_lea.vmem %s2303_s8, %s1530_s17  }
 0x14f   : >> { %1209 = vst [vmem:[%s1912_s15 + $0x50] sm:$0xff] %v1208_v28  ;;  %1211 = vst [vmem:[%s1912_s15 + $0x58] sm:$0xff] %v1210_v29  ;;  %v1214_v31 = vld [vmem:[%s1916_s20 + $0x68] sm:$0xff]  ;;  %v1216_v32 = vld [vmem:[%s1916_s20 + $0x70] sm:$0xff] }
 0x150   : >> { %1213 = vst [vmem:[%s1912_s15 + $0x60] sm:$0xff] %v1212_v30  ;;  %1215 = vst [vmem:[%s1912_s15 + $0x68] sm:$0xff] %v1214_v31  ;;  %v1218_v33 = vld [vmem:[%s1916_s20 + $0x78] sm:$0xff]  ;;  %v1220_v34 = vld [vmem:[%s1916_s20 + $0x80] sm:$0xff] }
 0x151   : >> { %1217 = vst [vmem:[%s1912_s15 + $0x70] sm:$0xff] %v1216_v32  ;;  %v1222_v35 = vld [vmem:[%s1916_s20 + $0x88] sm:$0xff]  ;;  %1219 = vst [vmem:[%s1912_s15 + $0x78] sm:$0xff] %v1218_v33  ;;  %v1224_v36 = vld [vmem:[%s1916_s20 + $0x90] sm:$0xff] }
 0x152   : >> { %1221 = vst [vmem:[%s1912_s15 + $0x80] sm:$0xff] %v1220_v34  ;;  %1223 = vst [vmem:[%s1912_s15 + $0x88] sm:$0xff] %v1222_v35  ;;  %v1226_v37 = vld [vmem:[%s1916_s20 + $0x98] sm:$0xff]  ;;  %v1228_v38 = vld [vmem:[%s1916_s20 + $0xa0] sm:$0xff] }
 0x153   : >> { %1225 = vst [vmem:[%s1912_s15 + $0x90] sm:$0xff] %v1224_v36  ;;  %1227 = vst [vmem:[%s1912_s15 + $0x98] sm:$0xff] %v1226_v37  ;;  %v1230_v39 = vld [vmem:[%s1916_s20 + $0xa8] sm:$0xff]  ;;  %v1232_v40 = vld [vmem:[%s1916_s20 + $0xb0] sm:$0xff] }
 0x154   : >> { %1229 = vst [vmem:[%s1912_s15 + $0xa0] sm:$0xff] %v1228_v38  ;;  %v1234_v41 = vld [vmem:[%s1916_s20 + $0xb8] sm:$0xff]  ;;  %1231 = vst [vmem:[%s1912_s15 + $0xa8] sm:$0xff] %v1230_v39  ;;  %v1236_v42 = vld [vmem:[%s1916_s20 + $0xc0] sm:$0xff] }
 0x155   : >> { %1233 = vst [vmem:[%s1912_s15 + $0xb0] sm:$0xff] %v1232_v40  ;;  %1235 = vst [vmem:[%s1912_s15 + $0xb8] sm:$0xff] %v1234_v41  ;;  %v1238_v43 = vld [vmem:[%s1916_s20 + $0xc8] sm:$0xff]  ;;  %v1240_v44 = vld [vmem:[%s1916_s20 + $0xd0] sm:$0xff] }
 0x156   : >> { %1237 = vst [vmem:[%s1912_s15 + $0xc0] sm:$0xff] %v1236_v42  ;;  %1239 = vst [vmem:[%s1912_s15 + $0xc8] sm:$0xff] %v1238_v43  ;;  %v1242_v45 = vld [vmem:[%s1916_s20 + $0xd8] sm:$0xff]  ;;  %v1244_v46 = vld [vmem:[%s1916_s20 + $0xe0] sm:$0xff] }
 0x157   : >> { %1241 = vst [vmem:[%s1912_s15 + $0xd0] sm:$0xff] %v1240_v44  ;;  %v1246_v47 = vld [vmem:[%s1916_s20 + $0xe8] sm:$0xff]  ;;  %1243 = vst [vmem:[%s1912_s15 + $0xd8] sm:$0xff] %v1242_v45  ;;  %v1248_v48 = vld [vmem:[%s1916_s20 + $0xf0] sm:$0xff] }
 0x158   : >> { %1245 = vst [vmem:[%s1912_s15 + $0xe0] sm:$0xff] %v1244_v46  ;;  %1247 = vst [vmem:[%s1912_s15 + $0xe8] sm:$0xff] %v1246_v47  ;;  %v1250_v49 = vld [vmem:[%s1916_s20 + $0xf8] sm:$0xff]  ;;  %v1252_v50 = vld [vmem:[%s1916_s20 + $0x100] sm:$0xff] }
 0x159   : >> { %1249 = vst [vmem:[%s1912_s15 + $0xf0] sm:$0xff] %v1248_v48  ;;  %1251 = vst [vmem:[%s1912_s15 + $0xf8] sm:$0xff] %v1250_v49  ;;  %v1254_v51 = vld [vmem:[%s1916_s20 + $0x108] sm:$0xff]  ;;  %v1256_v52 = vld [vmem:[%s1916_s20 + $0x110] sm:$0xff] }
 0x15a   : >> { %1253 = vst [vmem:[%s1912_s15 + $0x100] sm:$0xff] %v1252_v50  ;;  %v1258_v53 = vld [vmem:[%s1916_s20 + $0x118] sm:$0xff]  ;;  %1255 = vst [vmem:[%s1912_s15 + $0x108] sm:$0xff] %v1254_v51  ;;  %v1260_v54 = vld [vmem:[%s1916_s20 + $0x120] sm:$0xff] }
 0x15b   : >> { %1257 = vst [vmem:[%s1912_s15 + $0x110] sm:$0xff] %v1256_v52  ;;  %1259 = vst [vmem:[%s1912_s15 + $0x118] sm:$0xff] %v1258_v53  ;;  %v1262_v55 = vld [vmem:[%s1916_s20 + $0x128] sm:$0xff]  ;;  %v1264_v56 = vld [vmem:[%s1916_s20 + $0x130] sm:$0xff] }
 0x15c   : >> { %1261 = vst [vmem:[%s1912_s15 + $0x120] sm:$0xff] %v1260_v54  ;;  %1263 = vst [vmem:[%s1912_s15 + $0x128] sm:$0xff] %v1262_v55  ;;  %v1266_v57 = vld [vmem:[%s1916_s20 + $0x138] sm:$0xff]  ;;  %v1268_v58 = vld [vmem:[%s1916_s20 + $0x140] sm:$0xff] }
 0x15d   : >> { %1265 = vst [vmem:[%s1912_s15 + $0x130] sm:$0xff] %v1264_v56  ;;  %v1270_v59 = vld [vmem:[%s1916_s20 + $0x148] sm:$0xff]  ;;  %1267 = vst [vmem:[%s1912_s15 + $0x138] sm:$0xff] %v1266_v57  ;;  %v1272_v60 = vld [vmem:[%s1916_s20 + $0x150] sm:$0xff] }
 0x15e   : >> { %1269 = vst [vmem:[%s1912_s15 + $0x140] sm:$0xff] %v1268_v58  ;;  %1271 = vst [vmem:[%s1912_s15 + $0x148] sm:$0xff] %v1270_v59  ;;  %v1274_v61 = vld [vmem:[%s1916_s20 + $0x158] sm:$0xff]  ;;  %v1276_v62 = vld [vmem:[%s1916_s20 + $0x160] sm:$0xff] }
 0x15f   : >> { %1273 = vst [vmem:[%s1912_s15 + $0x150] sm:$0xff] %v1272_v60  ;;  %1275 = vst [vmem:[%s1912_s15 + $0x158] sm:$0xff] %v1274_v61  ;;  %v1278_v63 = vld [vmem:[%s1916_s20 + $0x168] sm:$0xff]  ;;  %v1280_v0 = vld [vmem:[%s1916_s20 + $0x170] sm:$0xff] }
 0x160   : >> { %1277 = vst [vmem:[%s1912_s15 + $0x160] sm:$0xff] %v1276_v62  ;;  %v1282_v1 = vld [vmem:[%s1916_s20 + $0x178] sm:$0xff]  ;;  %1279 = vst [vmem:[%s1912_s15 + $0x168] sm:$0xff] %v1278_v63  ;;  %v1284_v2 = vld [vmem:[%s1916_s20 + $0x180] sm:$0xff] }
 0x161   : >> { %1281 = vst [vmem:[%s1912_s15 + $0x170] sm:$0xff] %v1280_v0  ;;  %1283 = vst [vmem:[%s1912_s15 + $0x178] sm:$0xff] %v1282_v1  ;;  %v1286_v3 = vld [vmem:[%s1916_s20 + $0x188] sm:$0xff]  ;;  %v1288_v4 = vld [vmem:[%s1916_s20 + $0x190] sm:$0xff] }
 0x162   : >> { %1285 = vst [vmem:[%s1912_s15 + $0x180] sm:$0xff] %v1284_v2  ;;  %1287 = vst [vmem:[%s1912_s15 + $0x188] sm:$0xff] %v1286_v3  ;;  %v1290_v5 = vld [vmem:[%s1916_s20 + $0x198] sm:$0xff]  ;;  %v1292_v6 = vld [vmem:[%s1916_s20 + $0x1a0] sm:$0xff] }
 0x163   : >> { %1289 = vst [vmem:[%s1912_s15 + $0x190] sm:$0xff] %v1288_v4  ;;  %v1294_v7 = vld [vmem:[%s1916_s20 + $0x1a8] sm:$0xff]  ;;  %1291 = vst [vmem:[%s1912_s15 + $0x198] sm:$0xff] %v1290_v5  ;;  %v1296_v8 = vld [vmem:[%s1916_s20 + $0x1b0] sm:$0xff]  ;;  %1184 = sbr.rel (!%p1181_p12) target bundleno = 329 (0x149), region = 122 }
 0x164   : >> { %1293 = vst [vmem:[%s1912_s15 + $0x1a0] sm:$0xff] %v1292_v6  ;;  %1295 = vst [vmem:[%s1912_s15 + $0x1a8] sm:$0xff] %v1294_v7  ;;  %v1298_v9 = vld [vmem:[%s1916_s20 + $0x1b8] sm:$0xff]  ;;  %v1300_v10 = vld [vmem:[%s1916_s20 + $0x1c0] sm:$0xff] }
 0x165   : >> { %1297 = vst [vmem:[%s1912_s15 + $0x1b0] sm:$0xff] %v1296_v8  ;;  %1299 = vst [vmem:[%s1912_s15 + $0x1b8] sm:$0xff] %v1298_v9  ;;  %v1302_v11 = vld [vmem:[%s1916_s20 + $0x1c8] sm:$0xff]  ;;  %v1304_v12 = vld [vmem:[%s1916_s20 + $0x1d0] sm:$0xff] }
 0x166   : >> { %1301 = vst [vmem:[%s1912_s15 + $0x1c0] sm:$0xff] %v1300_v10  ;;  %v1306_v13 = vld [vmem:[%s1916_s20 + $0x1d8] sm:$0xff]  ;;  %1303 = vst [vmem:[%s1912_s15 + $0x1c8] sm:$0xff] %v1302_v11  ;;  %v1308_v14 = vld [vmem:[%s1916_s20 + $0x1e0] sm:$0xff] }
 0x167   : >> { %1305 = vst [vmem:[%s1912_s15 + $0x1d0] sm:$0xff] %v1304_v12  ;;  %1307 = vst [vmem:[%s1912_s15 + $0x1d8] sm:$0xff] %v1306_v13  ;;  %v1310_v16 = vld [vmem:[%s1916_s20 + $0x1e8] sm:$0xff]  ;;  %v1312_v17 = vld [vmem:[%s1916_s20 + $0x1f0] sm:$0xff] }
 0x168   : >> { %1309 = vst [vmem:[%s1912_s15 + $0x1e0] sm:$0xff] %v1308_v14  ;;  %1311 = vst [vmem:[%s1912_s15 + $0x1e8] sm:$0xff] %v1310_v16  ;;  %v1314_v18 = vld [vmem:[%s1916_s20 + $0x1f8] sm:$0xff]  ;;  %s2510_s20 = smov %s2376_s18 }
 0x169   : >> { %1313 = vst [vmem:[%s1912_s15 + $0x1f0] sm:$0xff] %v1312_v17  ;;  %1315 = vst [vmem:[%s1912_s15 + $0x1f8] sm:$0xff] %v1314_v18  ;;  %s2509_s15 = smov %s2379_s21 }
 0x16a PF: > { %s2484_s22 = sand.u32 63, %s2516_s4   ;;  %s1541_s23 = sshll.u32 %s2309_s10, 9 }
 0x16b   : > { %s1327_s24 = scalar_lea.vmem %s2170_s12, %s1541_s23 [#allocation2]   ;;  %s1329_s25 = scalar_lea.vmem %s2303_s8, %s1541_s23  }
 0x16c   : > { %p1535_p13 = scmp.le.s32.totalorder %s2484_s22, 0 }
 0x16d   : > { %s1926_s26 = smov (!%p1535_p13), %s1329_s25   ;;  %s1930_s28 = smov (!%p1535_p13), %s1327_s24  }
 0x16e   : > { %1420 = sbr.rel (%p1535_p13) target bundleno = 383 (0x17f), region = 127  ;;  %s1934_s29 = smov (!%p1535_p13), 0  }
 0x16f   : > { %s1938_s30 = smov (!%p1535_p13), 0  }
 0x175 LB: >> { %v1339_v15 = vld [vmem:[%s1932_s28] sm:$0xff]  ;;  %s1341_s4 = sadd.s32 1, %s1936_s29  ;;  %s1333_s30 = sadd.s32 1, %s1940_s30   ;;  %s1940_s30 = sphi %s1938_s30, %s1333_s30   ;;  %s1936_s29 = sphi %s1934_s29, %s1935_s29   ;;  %s1932_s28 = sphi %s1930_s28, %s1346_s28   ;;  %s1928_s26 = sphi %s1926_s26, %s1347_s26  }
 0x176   : >> { %1340 = vst [vmem:[%s1928_s26] sm:$0xff] %v1339_v15  ;;  %p1342_p0 = scmp.ge.s32.totalorder %s1341_s4, %s2484_s22  ;;  %p1332_p1 = scmp.ge.s32.totalorder %s1333_s30, %s2484_s22 }
 0x178   : >> { %s2520_s4 = smov (%p1342_p0, %s1341_s4), 0  ;;  %1335 = sbr.rel (!%p1332_p1) target bundleno = 373 (0x175), region = 133 }
 0x179   : >> { %s1536_s12 = sshll.u32 %s2520_s4, 3  ;;  %s1935_s29 = smov %s2520_s4  }
 0x17a   : >> { %s1346_s28 = scalar_lea.vmem %s1327_s24, %s1536_s12 [#allocation2]   ;;  %s1347_s26 = scalar_lea.vmem %s1329_s25, %s1536_s12  }
 0x17f PF: > { %p10_p2 = scmp.ge.s32.totalorder %s1978_s16, 9   ;;  %s2512_s12 = smov %s1904_s13 }
 0x180   : > { %s2513_s13 = smov %s1986_s19  ;;  %s2514_s14 = smov %s1978_s16 }
 0x181   :  { %12 = sbr.rel (!%p10_p2) target bundleno = 2 (0x2), region = 144 }

// kernel: lane_net_forward.5
= control target key start
LH: loop header
LB: loop body
LE: loop exit
PB: predicated region body
PF: predicated region fallthrough
CT: control target
= control target key end

     0   :  { %s2567_s12 = smov 0   ;;  %s2569_s13 = smov 0   ;;  %s3477_s0 = inlined_call_operand.vmem [shape: f32[800,400], index: 0, kind: input, shape index: {}]   ;;  %s3478_s1 = inlined_call_operand.vmem [shape: f32[400,128], index: 1, kind: input, shape index: {}]   ;;  %s3479_s2 = inlined_call_operand.vmem [shape: f32[1,128], index: 2, kind: input, shape index: {}]   ;;  %s3480_s3 = inlined_call_operand.vmem [shape: f32[800,128], index: 3, kind: output, shape index: {}]  }
   0x1   :  { %s2571_s14 = smov 0  }
   0x2 LB: > { %s2580_s15 = sadd.s32 4294967295, %s2512_s14   ;;  %s2582_s16 = sadd.s32 1, %s2512_s14   ;;  %s2512_s14 = sphi %s2571_s14, %s3489_s14   ;;  %s2508_s13 = sphi %s2569_s13, %s3488_s13   ;;  %s2504_s12 = sphi %s2567_s12, %s3487_s12  }
   0x3   : > { %s85_s17 = ssub.s32 %s2512_s14, %s2582_s16  ;;  %s88_s18 = sadd.s32 1, %s2508_s13 }
   0x4   : > { %p86_p0 = scmp.eq.s32.totalorder %s85_s17, 0  ;;  %p98_p1 = scmp.ne.s32.totalorder %s2508_s13, %s2504_s12 }
   0x5   : > { %p99_p2 = scmp.eq.s32.totalorder %s2580_s15, 1  ;;  %p2074_p3 = scmp.ge.s32.totalorder %s2512_s14, 1 }
   0x6   : > { %s2590_s19 = scalar_select %p86_p0, %s2508_s13, %s88_s18  }
   0x7   : > { %p2592_p4 = por %p99_p2, %p98_p1  ;;  %p149_p5 = scmp.lt.s32.totalorder %s2512_s14, 3 }
   0x9   : > { %p150_p6 = pnand %p2074_p3, %p149_p5 }
   0xa   : > { %v456_v0 = vld [vmem:[%s3478_s1] sm:$0xff] (!%p150_p6)  ;;  %v457_v1 = vld [vmem:[%s3478_s1 + $0x8] sm:$0xff] (!%p150_p6)  ;;  %v458_v2 = vld [vmem:[%s3478_s1 + $0x10] sm:$0xff] (!%p150_p6)  ;;  %s2606_s27 = sshll.u32 (!%p150_p6), %s2580_s15, 6  ;;  %v2546_v3 = vmov (!%p150_p6), 0.0|0.0   ;;  %vm513_vm0 = vcmask (!%p150_p6), 130048  }
   0xb   : > { %153 = sbr.rel (%p150_p6) target bundleno = 619 (0x26b), region = 32  ;;  %2165 = vmatprep.subr.bf16.mxu1 (!%p150_p6), %v2546_v3  ;;  %v2166_v4 = vpack.c.bf16 (!%p150_p6), %v457_v1, %v456_v0  ;;  %v459_v5 = vld [vmem:[%s3478_s1 + $0x18] sm:$0xff] (!%p150_p6)  ;;  %2213 = vmatprep.subr.bf16.mxu0 (!%p150_p6), %v2546_v3  ;;  %p184_p7 = scmp.lt.s32.totalorder (!%p150_p6), %s2606_s27, 99  ;;  %v460_v7 = vld [vmem:[%s3478_s1 + $0x20] sm:$0xff] (!%p150_p6)  ;;  %v461_v8 = vld [vmem:[%s3478_s1 + $0x28] sm:$0xff] (!%p150_p6) }
   0xc   : > { %v2169_v6 = vpack.c.bf16 (!%p150_p6), %v459_v5, %v458_v2  ;;  %v488_v9 = vld [vmem:[%s3478_s1 + $0x100] sm:$0xff] (!%p150_p6)  ;;  %v489_v10 = vld [vmem:[%s3478_s1 + $0x108] sm:$0xff] (!%p150_p6)  ;;  %v490_v12 = vld [vmem:[%s3478_s1 + $0x110] sm:$0xff] (!%p150_p6)  ;;  %v2172_v13 = vpack.c.bf16 (!%p150_p6), %v461_v8, %v460_v7  ;;  %s175_s5 = sand.u32 (!%p150_p6), 1, %s2504_s12  }
   0xd   : > { %2167 = vmatpush1.bf16.msra.mxu1 (!%p150_p6), %v2166_v4  ;;  %v2214_v11 = vpack.c.bf16 (!%p150_p6), %v489_v10, %v488_v9  ;;  %v491_v14 = vld [vmem:[%s3478_s1 + $0x118] sm:$0xff] (!%p150_p6)  ;;  %v462_v15 = vld [vmem:[%s3478_s1 + $0x30] sm:$0xff] (!%p150_p6)  ;;  %v492_v18 = vld [vmem:[%s3478_s1 + $0x120] sm:$0xff] (!%p150_p6)  ;;  %s2075_s6 = sshll.u32 (!%p150_p6), %s175_s5, 9 }
   0xe   : > { %2168 = vmatprep.subr.bf16.mxu1 (!%p150_p6), %v2546_v3  ;;  %v463_v16 = vld [vmem:[%s3478_s1 + $0x38] sm:$0xff] (!%p150_p6)  ;;  %v2217_v17 = vpack.c.bf16 (!%p150_p6), %v491_v14, %v490_v12  ;;  %v493_v19 = vld [vmem:[%s3478_s1 + $0x128] sm:$0xff] (!%p150_p6)  ;;  %v464_v21 = vld [vmem:[%s3478_s1 + $0x40] sm:$0xff] (!%p150_p6)  ;;  %s3102_s12 = scalar_lea.vmem (!%p150_p6), [#allocation2], %s2075_s6  }
   0xf   : > { %2215 = vmatpush1.bf16.msra.mxu0 (!%p150_p6), %v2214_v11  ;;  %v2175_v20 = vpack.c.bf16 (!%p150_p6), %v463_v16, %v462_v15  ;;  %v465_v22 = vld [vmem:[%s3478_s1 + $0x48] sm:$0xff] (!%p150_p6)  ;;  %v2220_v23 = vpack.c.bf16 (!%p150_p6), %v493_v19, %v492_v18  ;;  %v494_v24 = vld [vmem:[%s3478_s1 + $0x130] sm:$0xff] (!%p150_p6)  ;;  %v495_v25 = vld [vmem:[%s3478_s1 + $0x138] sm:$0xff] (!%p150_p6) }
  0x10   : > { %2216 = vmatprep.subr.bf16.mxu0 (!%p150_p6), %v2546_v3  ;;  %v2178_v26 = vpack.c.bf16 (!%p150_p6), %v465_v22, %v464_v21  ;;  %v466_v27 = vld [vmem:[%s3478_s1 + $0x50] sm:$0xff] (!%p150_p6)  ;;  %v467_v28 = vld [vmem:[%s3478_s1 + $0x58] sm:$0xff] (!%p150_p6)  ;;  %v2223_v29 = vpack.c.bf16 (!%p150_p6), %v495_v25, %v494_v24  ;;  %v496_v31 = vld [vmem:[%s3478_s1 + $0x140] sm:$0xff] (!%p150_p6) }
  0x11   : > { %2170 = vmatpush1.bf16.msra.mxu1 (!%p150_p6), %v2169_v6  ;;  %v497_v32 = vld [vmem:[%s3478_s1 + $0x148] sm:$0xff] (!%p150_p6)  ;;  %v2181_v34 = vpack.c.bf16 (!%p150_p6), %v467_v28, %v466_v27  ;;  %v468_v35 = vld [vmem:[%s3478_s1 + $0x60] sm:$0xff] (!%p150_p6)  ;;  %v498_v38 = vld [vmem:[%s3478_s1 + $0x150] sm:$0xff] (!%p150_p6) }
  0x12   : > { %s185_s17 = scalar_select %p184_p7, %s2606_s27, 99  ;;  %2171 = vmatprep.subr.bf16.mxu1 %v2546_v3  ;;  %v469_v36 = vld [vmem:[%s3478_s1 + $0x68] sm:$0xff]  ;;  %v2226_v37 = vpack.c.bf16 %v497_v32, %v496_v31  ;;  %v499_v39 = vld [vmem:[%s3478_s1 + $0x158] sm:$0xff]  ;;  %v470_v41 = vld [vmem:[%s3478_s1 + $0x70] sm:$0xff] }
  0x13   : > { %2218 = vmatpush1.bf16.msra.mxu0 %v2217_v17  ;;  %v2184_v40 = vpack.c.bf16 %v469_v36, %v468_v35  ;;  %v471_v42 = vld [vmem:[%s3478_s1 + $0x78] sm:$0xff]  ;;  %v2229_v43 = vpack.c.bf16 %v499_v39, %v498_v38  ;;  %v500_v44 = vld [vmem:[%s3478_s1 + $0x160] sm:$0xff]  ;;  %v501_v45 = vld [vmem:[%s3478_s1 + $0x168] sm:$0xff]  ;;  %s1612_s8 = ssub.s32 (%p2592_p4), 100, %s2606_s27  ;;  %s2162_s9 = sshll.u32 (%p2592_p4), %s2580_s15, 9 }
  0x14   : > { %s2161_s4 = sshll.u32 %s185_s17, 5  ;;  %2219 = vmatprep.subr.bf16.mxu0 %v2546_v3  ;;  %v2187_v46 = vpack.c.bf16 %v471_v42, %v470_v41  ;;  %v472_v47 = vld [vmem:[%s3478_s1 + $0x80] sm:$0xff]  ;;  %v473_v48 = vld [vmem:[%s3478_s1 + $0x88] sm:$0xff]  ;;  %v2232_v49 = vpack.c.bf16 %v501_v45, %v500_v44  ;;  %v502_v50 = vld [vmem:[%s3478_s1 + $0x170] sm:$0xff]  ;;  %p1613_p8 = scmp.lt.s32.totalorder (%p2592_p4), %s1612_s8, 64 }
  0x15   : > { %2173 = vmatpush1.bf16.msra.mxu1 %v2172_v13  ;;  %s2665_s21 = scalar_lea.vmem %s3477_s0, %s2161_s4  ;;  %v503_v51 = vld [vmem:[%s3478_s1 + $0x178] sm:$0xff]  ;;  %v2190_v52 = vpack.c.bf16 %v473_v48, %v472_v47  ;;  %v474_v53 = vld [vmem:[%s3478_s1 + $0x90] sm:$0xff]  ;;  %v504_v56 = vld [vmem:[%s3478_s1 + $0x180] sm:$0xff]  ;;  %s3278_s14 = scalar_lea.vmem (%p2592_p4), %s3480_s3, %s2162_s9  }
  0x16   : > { %2174 = vmatprep.subr.bf16.mxu1 %v2546_v3  ;;  %v201_v30 = vld [vmem:[%s2665_s21 + $0x8] sm:$0xff]  ;;  %v203_v33 = vld [vmem:[%s2665_s21 + $0x18] sm:$0xff]  ;;  %v2235_v55 = vpack.c.bf16 %v503_v51, %v502_v50  ;;  %v476_v59 = vld [vmem:[%s3478_s1 + $0xa0] sm:$0xff] }
  0x17   : > { %2221 = vmatpush1.bf16.msra.mxu0 %v2220_v23  ;;  %770 = vmatprep.mubr.f32.mxu1 %v201_v30  ;;  %v475_v54 = vld [vmem:[%s3478_s1 + $0x98] sm:$0xff]  ;;  %v505_v57 = vld [vmem:[%s3478_s1 + $0x188] sm:$0xff]  ;;  %v478_v63 = vld [vmem:[%s3478_s1 + $0xb0] sm:$0xff] }
  0x18   : > { %2222 = vmatprep.subr.bf16.mxu0 %v2546_v3  ;;  %2080 = vmatprep.mubr.msk.f32.mxu0 %vm513_vm0, %v203_v33  ;;  %v2193_v58 = vpack.c.bf16 %v475_v54, %v474_v53  ;;  %v477_v60 = vld [vmem:[%s3478_s1 + $0xa8] sm:$0xff]  ;;  %v2238_v61 = vpack.c.bf16 %v505_v57, %v504_v56  ;;  %v479_v0 = vld [vmem:[%s3478_s1 + $0xb8] sm:$0xff]  ;;  %v202_v1 = vld [vmem:[%s2665_s21 + $0x10] sm:$0xff] }
  0x19   : > { %2176 = vmatpush1.bf16.msra.mxu1 %v2175_v20  ;;  %v2196_v62 = vpack.c.bf16 %v477_v60, %v476_v59  ;;  %v207_v2 = vld [vmem:[%s2665_s21 + $0x38] sm:$0xff]  ;;  %v2199_v4 = vpack.c.bf16 %v479_v0, %v478_v63  ;;  %v480_v5 = vld [vmem:[%s3478_s1 + $0xc0] sm:$0xff]  ;;  %v481_v6 = vld [vmem:[%s3478_s1 + $0xc8] sm:$0xff] }
  0x1a   : > { %2177 = vmatprep.subr.bf16.mxu1 %v2546_v3  ;;  %v206_v7 = vld [vmem:[%s2665_s21 + $0x30] sm:$0xff]  ;;  %v211_v8 = vld [vmem:[%s2665_s21 + $0x58] sm:$0xff]  ;;  %v2202_v9 = vpack.c.bf16 %v481_v6, %v480_v5  ;;  %v484_v15 = vld [vmem:[%s3478_s1 + $0xe0] sm:$0xff] }
  0x1b   : > { %2224 = vmatpush1.bf16.msra.mxu0 %v2223_v29  ;;  %v482_v10 = vld [vmem:[%s3478_s1 + $0xd0] sm:$0xff]  ;;  %v483_v11 = vld [vmem:[%s3478_s1 + $0xd8] sm:$0xff]  ;;  %v485_v16 = vld [vmem:[%s3478_s1 + $0xe8] sm:$0xff] }
  0x1c   : > { %2225 = vmatprep.subr.bf16.mxu0 %v2546_v3  ;;  %v210_v12 = vld [vmem:[%s2665_s21 + $0x50] sm:$0xff]  ;;  %v215_v13 = vld [vmem:[%s2665_s21 + $0x78] sm:$0xff]  ;;  %v2205_v14 = vpack.c.bf16 %v483_v11, %v482_v10  ;;  %v2208_v19 = vpack.c.bf16 %v485_v16, %v484_v15  ;;  %v200_v27 = vld [vmem:[%s2665_s21] sm:$0xff] }
  0x1d   : > { %2179 = vmatpush1.bf16.msra.mxu1 %v2178_v26  ;;  %v214_v17 = vld [vmem:[%s2665_s21 + $0x70] sm:$0xff]  ;;  %v219_v18 = vld [vmem:[%s2665_s21 + $0x98] sm:$0xff]  ;;  %v205_v28 = vld [vmem:[%s2665_s21 + $0x28] sm:$0xff] }
  0x1e   : > { %2180 = vmatprep.subr.bf16.mxu1 %v2546_v3  ;;  %v486_v20 = vld [vmem:[%s3478_s1 + $0xf0] sm:$0xff]  ;;  %v487_v21 = vld [vmem:[%s3478_s1 + $0xf8] sm:$0xff]  ;;  %v209_v31 = vld [vmem:[%s2665_s21 + $0x48] sm:$0xff] }
  0x1f   : > { %2227 = vmatpush1.bf16.msra.mxu0 %v2226_v37  ;;  %v218_v22 = vld [vmem:[%s2665_s21 + $0x90] sm:$0xff]  ;;  %v223_v23 = vld [vmem:[%s2665_s21 + $0xb8] sm:$0xff]  ;;  %v2211_v24 = vpack.c.bf16 %v487_v21, %v486_v20  ;;  %v213_v35 = vld [vmem:[%s2665_s21 + $0x68] sm:$0xff] }
  0x20   : > { %2228 = vmatprep.subr.bf16.mxu0 %v2546_v3  ;;  %v222_v25 = vld [vmem:[%s2665_s21 + $0xb0] sm:$0xff]  ;;  %v227_v26 = vld [vmem:[%s2665_s21 + $0xd8] sm:$0xff]  ;;  %v212_v38 = vld [vmem:[%s2665_s21 + $0x60] sm:$0xff] }
  0x21   : > { %2182 = vmatpush1.bf16.msra.mxu1 %v2181_v34  ;;  %v226_v29 = vld [vmem:[%s2665_s21 + $0xd0] sm:$0xff]  ;;  %v231_v30 = vld [vmem:[%s2665_s21 + $0xf8] sm:$0xff]  ;;  %v208_v34 = vld [vmem:[%s2665_s21 + $0x40] sm:$0xff] }
  0x22   : > { %2183 = vmatprep.subr.bf16.mxu1 %v2546_v3  ;;  %v230_v32 = vld [vmem:[%s2665_s21 + $0xf0] sm:$0xff]  ;;  %v235_v33 = vld [vmem:[%s2665_s21 + $0x118] sm:$0xff]  ;;  %v217_v39 = vld [vmem:[%s2665_s21 + $0x88] sm:$0xff] }
  0x23   : > { %2230 = vmatpush1.bf16.msra.mxu0 %v2229_v43  ;;  %v234_v36 = vld [vmem:[%s2665_s21 + $0x110] sm:$0xff]  ;;  %v239_v37 = vld [vmem:[%s2665_s21 + $0x138] sm:$0xff]  ;;  %v216_v42 = vld [vmem:[%s2665_s21 + $0x80] sm:$0xff] }
  0x24   : > { %2231 = vmatprep.subr.bf16.mxu0 %v2546_v3  ;;  %v243_v41 = vld [vmem:[%s2665_s21 + $0x158] sm:$0xff]  ;;  %v221_v43 = vld [vmem:[%s2665_s21 + $0xa8] sm:$0xff]  ;;  %v242_v44 = vld [vmem:[%s2665_s21 + $0x150] sm:$0xff] }
  0x25   : > { %2185 = vmatpush1.bf16.msra.mxu1 %v2184_v40  ;;  %v238_v40 = vld [vmem:[%s2665_s21 + $0x130] sm:$0xff]  ;;  %v247_v45 = vld [vmem:[%s2665_s21 + $0x178] sm:$0xff]  ;;  %v225_v47 = vld [vmem:[%s2665_s21 + $0xc8] sm:$0xff] }
  0x26   : > { %2186 = vmatprep.subr.bf16.mxu1 %v2546_v3  ;;  %v246_v48 = vld [vmem:[%s2665_s21 + $0x170] sm:$0xff]  ;;  %v224_v50 = vld [vmem:[%s2665_s21 + $0xc0] sm:$0xff]  ;;  %v229_v51 = vld [vmem:[%s2665_s21 + $0xe8] sm:$0xff] }
  0x27   : > { %2233 = vmatpush1.bf16.msra.mxu0 %v2232_v49  ;;  %v251_v49 = vld [vmem:[%s2665_s21 + $0x198] sm:$0xff]  ;;  %v228_v54 = vld [vmem:[%s2665_s21 + $0xe0] sm:$0xff]  ;;  %v254_v56 = vld [vmem:[%s2665_s21 + $0x1b0] sm:$0xff] }
  0x28   : > { %2234 = vmatprep.subr.bf16.mxu0 %v2546_v3  ;;  %v255_v53 = vld [vmem:[%s2665_s21 + $0x1b8] sm:$0xff]  ;;  %v237_v59 = vld [vmem:[%s2665_s21 + $0x128] sm:$0xff]  ;;  %v258_v60 = vld [vmem:[%s2665_s21 + $0x1d0] sm:$0xff] }
  0x29   : > { %2188 = vmatpush1.bf16.msra.mxu1 %v2187_v46  ;;  %v220_v46 = vld [vmem:[%s2665_s21 + $0xa0] sm:$0xff]  ;;  %v259_v57 = vld [vmem:[%s2665_s21 + $0x1d8] sm:$0xff]  ;;  %v241_v63 = vld [vmem:[%s2665_s21 + $0x148] sm:$0xff] }
  0x2a   : > { %2189 = vmatprep.subr.bf16.mxu1 %v2546_v3  ;;  %v262_v0 = vld [vmem:[%s2665_s21 + $0x1f0] sm:$0xff]  ;;  %v271_v6 = vld [vmem:[%s2665_s21 + $0x238] sm:$0xff]  ;;  %v248_v11 = vld [vmem:[%s2665_s21 + $0x180] sm:$0xff] }
  0x2b   : > { %2236 = vmatpush1.bf16.msra.mxu0 %v2235_v55  ;;  %v233_v55 = vld [vmem:[%s2665_s21 + $0x108] sm:$0xff]  ;;  %v266_v5 = vld [vmem:[%s2665_s21 + $0x210] sm:$0xff]  ;;  %v275_v10 = vld [vmem:[%s2665_s21 + $0x258] sm:$0xff] }
  0x2c   : > { %2237 = vmatprep.subr.bf16.mxu0 %v2546_v3  ;;  %v252_v15 = vld [vmem:[%s2665_s21 + $0x1a0] sm:$0xff]  ;;  %v257_v16 = vld [vmem:[%s2665_s21 + $0x1c8] sm:$0xff]  ;;  %v282_v21 = vld [vmem:[%s2665_s21 + $0x290] sm:$0xff] }
  0x2d   : > { %2191 = vmatpush1.bf16.msra.mxu1 %v2190_v52  ;;  %v250_v52 = vld [vmem:[%s2665_s21 + $0x190] sm:$0xff]  ;;  %v261_v20 = vld [vmem:[%s2665_s21 + $0x1e8] sm:$0xff] }
  0x2e   : > { %2192 = vmatprep.subr.bf16.mxu1 %v2546_v3 }
  0x2f   : > { %2239 = vmatpush1.bf16.msra.mxu0 %v2238_v61  ;;  %v263_v61 = vld [vmem:[%s2665_s21 + $0x1f8] sm:$0xff] }
  0x31   : > { %2194 = vmatpush1.bf16.msra.mxu1 %v2193_v58  ;;  %v232_v58 = vld [vmem:[%s2665_s21 + $0x100] sm:$0xff] }
  0x32   : > { %2195 = vmatprep.subr.bf16.mxu1 %v2546_v3  ;;  %1156 = vmatmul.mubr.f32.vlgmr.msra.gmra.mrb[0].mxu0 %v202_v1  ;;  %v267_v1 = vld [vmem:[%s2665_s21 + $0x218] sm:$0xff] }
  0x33   : > { %2081 = vmatprep.mubr.msk.f32.mxu0 %vm513_vm0, %v207_v2  ;;  %v240_v2 = vld [vmem:[%s2665_s21 + $0x140] sm:$0xff] }
  0x35   : > { %2197 = vmatpush1.bf16.msra.mxu1 %v2196_v62  ;;  %v236_v62 = vld [vmem:[%s2665_s21 + $0x120] sm:$0xff] }
  0x36   : > { %2198 = vmatprep.subr.bf16.mxu1 %v2546_v3  ;;  %1161 = vmatmul.mubr.f32.gmra.mrb[2].mxu0 %v206_v7  ;;  %v244_v7 = vld [vmem:[%s2665_s21 + $0x160] sm:$0xff] }
  0x37   : > { %2082 = vmatprep.mubr.msk.f32.mxu0 %vm513_vm0, %v211_v8  ;;  %v249_v8 = vld [vmem:[%s2665_s21 + $0x188] sm:$0xff] }
  0x39   : > { %2200 = vmatpush1.bf16.msra.mxu1 %v2199_v4  ;;  %v245_v4 = vld [vmem:[%s2665_s21 + $0x168] sm:$0xff] }
  0x3a   : > { %2201 = vmatprep.subr.bf16.mxu1 %v2546_v3  ;;  %1166 = vmatmul.mubr.f32.gmra.mrb[4].mxu0 %v210_v12  ;;  %v253_v12 = vld [vmem:[%s2665_s21 + $0x1a8] sm:$0xff] }
  0x3b   : > { %2083 = vmatprep.mubr.msk.f32.mxu0 %vm513_vm0, %v215_v13  ;;  %v274_v13 = vld [vmem:[%s2665_s21 + $0x250] sm:$0xff] }
  0x3d   : > { %2203 = vmatpush1.bf16.msra.mxu1 %v2202_v9  ;;  %v270_v9 = vld [vmem:[%s2665_s21 + $0x230] sm:$0xff] }
  0x3e   : > { %2204 = vmatprep.subr.bf16.mxu1 %v2546_v3  ;;  %1171 = vmatmul.mubr.f32.gmra.mrb[6].mxu0 %v214_v17  ;;  %v278_v17 = vld [vmem:[%s2665_s21 + $0x270] sm:$0xff] }
  0x3f   : > { %2084 = vmatprep.mubr.msk.f32.mxu0 %vm513_vm0, %v219_v18  ;;  %v283_v18 = vld [vmem:[%s2665_s21 + $0x298] sm:$0xff] }
  0x41   : > { %2206 = vmatpush1.bf16.msra.mxu1 %v2205_v14  ;;  %v279_v14 = vld [vmem:[%s2665_s21 + $0x278] sm:$0xff] }
  0x42   : > { %2207 = vmatprep.subr.bf16.mxu1 %v2546_v3  ;;  %1176 = vmatmul.mubr.f32.gmra.mrb[8].mxu0 %v218_v22  ;;  %v287_v22 = vld [vmem:[%s2665_s21 + $0x2b8] sm:$0xff] }
  0x43   : > { %2085 = vmatprep.mubr.msk.f32.mxu0 %vm513_vm0, %v223_v23  ;;  %v260_v23 = vld [vmem:[%s2665_s21 + $0x1e0] sm:$0xff] }
  0x45   : > { %2209 = vmatpush1.bf16.msra.mxu1 %v2208_v19  ;;  %v256_v19 = vld [vmem:[%s2665_s21 + $0x1c0] sm:$0xff] }
  0x46   : > { %2210 = vmatprep.subr.bf16.mxu1 %v2546_v3  ;;  %1181 = vmatmul.mubr.f32.gmra.mrb[10].mxu0 %v222_v25  ;;  %v204_v3 = vld [vmem:[%s2665_s21 + $0x20] sm:$0xff]  ;;  %v286_v25 = vld [vmem:[%s2665_s21 + $0x2b0] sm:$0xff] }
  0x47   : > { %2086 = vmatprep.mubr.msk.f32.mxu0 %vm513_vm0, %v227_v26  ;;  %v291_v26 = vld [vmem:[%s2665_s21 + $0x2d8] sm:$0xff] }
  0x49   : > { %2212 = vmatpush1.bf16.msra.mxu1 %v2211_v24  ;;  %v265_v24 = vld [vmem:[%s2665_s21 + $0x208] sm:$0xff] }
  0x4a   : > { %1186 = vmatmul.mubr.f32.gmra.mrb[12].mxu0 %v226_v29  ;;  %v290_v29 = vld [vmem:[%s2665_s21 + $0x2d0] sm:$0xff] }
  0x4b   : > { %2087 = vmatprep.mubr.msk.f32.mxu0 %vm513_vm0, %v231_v30  ;;  %v295_v30 = vld [vmem:[%s2665_s21 + $0x2f8] sm:$0xff] }
  0x4c   : > { %771 = vmatmul.mubr.f32.vlgmr.msra.gmra.mrb[0].mxu1 %v200_v27  ;;  %v264_v27 = vld [vmem:[%s2665_s21 + $0x200] sm:$0xff] }
  0x4d   : > { %775 = vmatprep.mubr.f32.mxu1 %v205_v28  ;;  %v269_v28 = vld [vmem:[%s2665_s21 + $0x228] sm:$0xff] }
  0x4e   : > { %1191 = vmatmul.mubr.f32.gmra.mrb[14].mxu0 %v230_v32  ;;  %v294_v32 = vld [vmem:[%s2665_s21 + $0x2f0] sm:$0xff] }
  0x4f   : > { %2088 = vmatprep.mubr.msk.f32.mxu0 %vm513_vm0, %v235_v33  ;;  %v299_v33 = vld [vmem:[%s2665_s21 + $0x318] sm:$0xff] }
  0x50   : > { %776 = vmatmul.mubr.f32.gmra.mrb[2].mxu1 %v204_v3  ;;  %v268_v3 = vld [vmem:[%s2665_s21 + $0x220] sm:$0xff] }
  0x51   : > { %780 = vmatprep.mubr.f32.mxu1 %v209_v31  ;;  %v273_v31 = vld [vmem:[%s2665_s21 + $0x248] sm:$0xff] }
  0x52   : > { %1196 = vmatmul.mubr.f32.gmra.mrb[16].mxu0 %v234_v36  ;;  %v298_v36 = vld [vmem:[%s2665_s21 + $0x310] sm:$0xff] }
  0x53   : > { %2089 = vmatprep.mubr.msk.f32.mxu0 %vm513_vm0, %v239_v37  ;;  %v303_v37 = vld [vmem:[%s2665_s21 + $0x338] sm:$0xff] }
  0x54   : > { %781 = vmatmul.mubr.f32.gmra.mrb[4].mxu1 %v208_v34  ;;  %v272_v34 = vld [vmem:[%s2665_s21 + $0x240] sm:$0xff] }
  0x55   : > { %785 = vmatprep.mubr.f32.mxu1 %v213_v35  ;;  %v277_v35 = vld [vmem:[%s2665_s21 + $0x268] sm:$0xff] }
  0x56   : > { %1201 = vmatmul.mubr.f32.gmra.mrb[18].mxu0 %v238_v40  ;;  %v302_v40 = vld [vmem:[%s2665_s21 + $0x330] sm:$0xff] }
  0x57   : > { %2090 = vmatprep.mubr.msk.f32.mxu0 %vm513_vm0, %v243_v41  ;;  %v307_v41 = vld [vmem:[%s2665_s21 + $0x358] sm:$0xff] }
  0x58   : > { %786 = vmatmul.mubr.f32.gmra.mrb[6].mxu1 %v212_v38  ;;  %v276_v38 = vld [vmem:[%s2665_s21 + $0x260] sm:$0xff] }
  0x59   : > { %790 = vmatprep.mubr.f32.mxu1 %v217_v39  ;;  %v281_v39 = vld [vmem:[%s2665_s21 + $0x288] sm:$0xff] }
  0x5a   : > { %1206 = vmatmul.mubr.f32.gmra.mrb[20].mxu0 %v242_v44  ;;  %v306_v44 = vld [vmem:[%s2665_s21 + $0x350] sm:$0xff] }
  0x5b   : > { %2091 = vmatprep.mubr.msk.f32.mxu0 %vm513_vm0, %v247_v45  ;;  %v311_v45 = vld [vmem:[%s2665_s21 + $0x378] sm:$0xff] }
  0x5c   : > { %791 = vmatmul.mubr.f32.gmra.mrb[8].mxu1 %v216_v42  ;;  %v280_v42 = vld [vmem:[%s2665_s21 + $0x280] sm:$0xff] }
  0x5d   : > { %795 = vmatprep.mubr.f32.mxu1 %v221_v43  ;;  %v285_v43 = vld [vmem:[%s2665_s21 + $0x2a8] sm:$0xff] }
  0x5e   : > { %1211 = vmatmul.mubr.f32.gmra.mrb[22].mxu0 %v246_v48  ;;  %v310_v48 = vld [vmem:[%s2665_s21 + $0x370] sm:$0xff] }
  0x5f   : > { %2092 = vmatprep.mubr.msk.f32.mxu0 %vm513_vm0, %v251_v49  ;;  %v315_v49 = vld [vmem:[%s2665_s21 + $0x398] sm:$0xff] }
  0x60   : > { %796 = vmatmul.mubr.f32.gmra.mrb[10].mxu1 %v220_v46  ;;  %v284_v46 = vld [vmem:[%s2665_s21 + $0x2a0] sm:$0xff] }
  0x61   : > { %800 = vmatprep.mubr.f32.mxu1 %v225_v47  ;;  %v289_v47 = vld [vmem:[%s2665_s21 + $0x2c8] sm:$0xff] }
  0x62   : > { %1216 = vmatmul.mubr.f32.gmra.mrb[24].mxu0 %v250_v52  ;;  %v314_v52 = vld [vmem:[%s2665_s21 + $0x390] sm:$0xff] }
  0x63   : > { %2093 = vmatprep.mubr.msk.f32.mxu0 %vm513_vm0, %v255_v53  ;;  %v319_v53 = vld [vmem:[%s2665_s21 + $0x3b8] sm:$0xff] }
  0x64   : > { %801 = vmatmul.mubr.f32.gmra.mrb[12].mxu1 %v224_v50  ;;  %v288_v50 = vld [vmem:[%s2665_s21 + $0x2c0] sm:$0xff] }
  0x65   : > { %805 = vmatprep.mubr.f32.mxu1 %v229_v51  ;;  %v293_v51 = vld [vmem:[%s2665_s21 + $0x2e8] sm:$0xff] }
  0x66   : > { %1221 = vmatmul.mubr.f32.gmra.mrb[26].mxu0 %v254_v56  ;;  %v318_v56 = vld [vmem:[%s2665_s21 + $0x3b0] sm:$0xff] }
  0x67   : > { %2094 = vmatprep.mubr.msk.f32.mxu0 %vm513_vm0, %v259_v57  ;;  %v323_v57 = vld [vmem:[%s2665_s21 + $0x3d8] sm:$0xff] }
  0x68   : > { %806 = vmatmul.mubr.f32.gmra.mrb[14].mxu1 %v228_v54  ;;  %v292_v54 = vld [vmem:[%s2665_s21 + $0x2e0] sm:$0xff] }
  0x69   : > { %810 = vmatprep.mubr.f32.mxu1 %v233_v55  ;;  %v297_v55 = vld [vmem:[%s2665_s21 + $0x308] sm:$0xff] }
  0x6a   : > { %1226 = vmatmul.mubr.f32.gmra.mrb[28].mxu0 %v258_v60  ;;  %v322_v60 = vld [vmem:[%s2665_s21 + $0x3d0] sm:$0xff] }
  0x6b   : > { %2095 = vmatprep.mubr.msk.f32.mxu0 %vm513_vm0, %v263_v61  ;;  %v327_v61 = vld [vmem:[%s2665_s21 + $0x3f8] sm:$0xff] }
  0x6c   : > { %811 = vmatmul.mubr.f32.gmra.mrb[16].mxu1 %v232_v58  ;;  %v296_v58 = vld [vmem:[%s2665_s21 + $0x300] sm:$0xff] }
  0x6d   : > { %815 = vmatprep.mubr.f32.mxu1 %v237_v59  ;;  %v301_v59 = vld [vmem:[%s2665_s21 + $0x328] sm:$0xff] }
  0x6e   : > { %1231 = vmatmul.mubr.f32.gmra.mrb[30].mxu0 %v262_v0  ;;  %v326_v0 = vld [vmem:[%s2665_s21 + $0x3f0] sm:$0xff] }
  0x6f   : > { %2096 = vmatprep.mubr.msk.f32.mxu0 %vm513_vm0, %v267_v1  ;;  %v331_v1 = vld [vmem:[%s2665_s21 + $0x418] sm:$0xff] }
  0x70   : > { %816 = vmatmul.mubr.f32.gmra.mrb[18].mxu1 %v236_v62  ;;  %v300_v62 = vld [vmem:[%s2665_s21 + $0x320] sm:$0xff] }
  0x71   : > { %820 = vmatprep.mubr.f32.mxu1 %v241_v63  ;;  %v305_v63 = vld [vmem:[%s2665_s21 + $0x348] sm:$0xff] }
  0x72   : > { %1236 = vmatmul.mubr.f32.gmra.mrb[32].mxu0 %v266_v5  ;;  %v330_v5 = vld [vmem:[%s2665_s21 + $0x410] sm:$0xff] }
  0x73   : > { %2097 = vmatprep.mubr.msk.f32.mxu0 %vm513_vm0, %v271_v6  ;;  %v335_v6 = vld [vmem:[%s2665_s21 + $0x438] sm:$0xff] }
  0x74   : > { %821 = vmatmul.mubr.f32.gmra.mrb[20].mxu1 %v240_v2  ;;  %v304_v2 = vld [vmem:[%s2665_s21 + $0x340] sm:$0xff] }
  0x75   : > { %825 = vmatprep.mubr.f32.mxu1 %v245_v4  ;;  %v309_v4 = vld [vmem:[%s2665_s21 + $0x368] sm:$0xff] }
  0x76   : > { %1241 = vmatmul.mubr.f32.gmra.mrb[34].mxu0 %v270_v9  ;;  %v334_v9 = vld [vmem:[%s2665_s21 + $0x430] sm:$0xff] }
  0x77   : > { %2098 = vmatprep.mubr.msk.f32.mxu0 %vm513_vm0, %v275_v10  ;;  %v339_v10 = vld [vmem:[%s2665_s21 + $0x458] sm:$0xff] }
  0x78   : > { %826 = vmatmul.mubr.f32.gmra.mrb[22].mxu1 %v244_v7  ;;  %v308_v7 = vld [vmem:[%s2665_s21 + $0x360] sm:$0xff] }
  0x79   : > { %830 = vmatprep.mubr.f32.mxu1 %v249_v8  ;;  %v313_v8 = vld [vmem:[%s2665_s21 + $0x388] sm:$0xff] }
  0x7a   : > { %1246 = vmatmul.mubr.f32.gmra.mrb[36].mxu0 %v274_v13  ;;  %v338_v13 = vld [vmem:[%s2665_s21 + $0x450] sm:$0xff] }
  0x7b   : > { %2099 = vmatprep.mubr.msk.f32.mxu0 %vm513_vm0, %v279_v14  ;;  %v343_v14 = vld [vmem:[%s2665_s21 + $0x478] sm:$0xff] }
  0x7c   : > { %831 = vmatmul.mubr.f32.gmra.mrb[24].mxu1 %v248_v11  ;;  %v312_v11 = vld [vmem:[%s2665_s21 + $0x380] sm:$0xff] }
  0x7d   : > { %835 = vmatprep.mubr.f32.mxu1 %v253_v12  ;;  %v317_v12 = vld [vmem:[%s2665_s21 + $0x3a8] sm:$0xff] }
  0x7e   : > { %1251 = vmatmul.mubr.f32.gmra.mrb[38].mxu0 %v278_v17  ;;  %v342_v17 = vld [vmem:[%s2665_s21 + $0x470] sm:$0xff] }
  0x7f   : > { %2100 = vmatprep.mubr.msk.f32.mxu0 %vm513_vm0, %v283_v18  ;;  %v347_v18 = vld [vmem:[%s2665_s21 + $0x498] sm:$0xff] }
  0x80   : > { %836 = vmatmul.mubr.f32.gmra.mrb[26].mxu1 %v252_v15  ;;  %v316_v15 = vld [vmem:[%s2665_s21 + $0x3a0] sm:$0xff] }
  0x81   : > { %840 = vmatprep.mubr.f32.mxu1 %v257_v16  ;;  %v321_v16 = vld [vmem:[%s2665_s21 + $0x3c8] sm:$0xff] }
  0x82   : > { %1256 = vmatmul.mubr.f32.gmra.mrb[40].mxu0 %v282_v21  ;;  %v346_v21 = vld [vmem:[%s2665_s21 + $0x490] sm:$0xff] }
  0x83   : > { %2101 = vmatprep.mubr.msk.f32.mxu0 %vm513_vm0, %v287_v22  ;;  %v351_v22 = vld [vmem:[%s2665_s21 + $0x4b8] sm:$0xff] }
  0x84   : > { %841 = vmatmul.mubr.f32.gmra.mrb[28].mxu1 %v256_v19  ;;  %v320_v19 = vld [vmem:[%s2665_s21 + $0x3c0] sm:$0xff] }
  0x85   : > { %845 = vmatprep.mubr.f32.mxu1 %v261_v20  ;;  %v325_v20 = vld [vmem:[%s2665_s21 + $0x3e8] sm:$0xff] }
  0x86   : > { %1261 = vmatmul.mubr.f32.gmra.mrb[42].mxu0 %v286_v25  ;;  %v350_v25 = vld [vmem:[%s2665_s21 + $0x4b0] sm:$0xff] }
  0x87   : > { %2102 = vmatprep.mubr.msk.f32.mxu0 %vm513_vm0, %v291_v26  ;;  %v355_v26 = vld [vmem:[%s2665_s21 + $0x4d8] sm:$0xff] }
  0x88   : > { %846 = vmatmul.mubr.f32.gmra.mrb[30].mxu1 %v260_v23  ;;  %v324_v23 = vld [vmem:[%s2665_s21 + $0x3e0] sm:$0xff] }
  0x89   : > { %850 = vmatprep.mubr.f32.mxu1 %v265_v24  ;;  %v329_v24 = vld [vmem:[%s2665_s21 + $0x408] sm:$0xff] }
  0x8a   : > { %1266 = vmatmul.mubr.f32.gmra.mrb[44].mxu0 %v290_v29  ;;  %v354_v29 = vld [vmem:[%s2665_s21 + $0x4d0] sm:$0xff] }
  0x8b   : > { %2103 = vmatprep.mubr.msk.f32.mxu0 %vm513_vm0, %v295_v30  ;;  %v359_v30 = vld [vmem:[%s2665_s21 + $0x4f8] sm:$0xff] }
  0x8c   : > { %851 = vmatmul.mubr.f32.gmra.mrb[32].mxu1 %v264_v27  ;;  %v328_v27 = vld [vmem:[%s2665_s21 + $0x400] sm:$0xff] }
  0x8d   : > { %855 = vmatprep.mubr.f32.mxu1 %v269_v28  ;;  %v333_v28 = vld [vmem:[%s2665_s21 + $0x428] sm:$0xff] }
  0x8e   : > { %1271 = vmatmul.mubr.f32.gmra.mrb[46].mxu0 %v294_v32  ;;  %v358_v32 = vld [vmem:[%s2665_s21 + $0x4f0] sm:$0xff] }
  0x8f   : > { %2104 = vmatprep.mubr.msk.f32.mxu0 %vm513_vm0, %v299_v33  ;;  %v363_v33 = vld [vmem:[%s2665_s21 + $0x518] sm:$0xff] }
  0x90   : > { %856 = vmatmul.mubr.f32.gmra.mrb[34].mxu1 %v268_v3  ;;  %v332_v3 = vld [vmem:[%s2665_s21 + $0x420] sm:$0xff] }
  0x91   : > { %860 = vmatprep.mubr.f32.mxu1 %v273_v31  ;;  %v337_v31 = vld [vmem:[%s2665_s21 + $0x448] sm:$0xff] }
  0x92   : > { %1276 = vmatmul.mubr.f32.gmra.mrb[48].mxu0 %v298_v36  ;;  %v362_v36 = vld [vmem:[%s2665_s21 + $0x510] sm:$0xff] }
  0x93   : > { %2105 = vmatprep.mubr.msk.f32.mxu0 %vm513_vm0, %v303_v37  ;;  %v367_v37 = vld [vmem:[%s2665_s21 + $0x538] sm:$0xff] }
  0x94   : > { %861 = vmatmul.mubr.f32.gmra.mrb[36].mxu1 %v272_v34  ;;  %v336_v34 = vld [vmem:[%s2665_s21 + $0x440] sm:$0xff] }
  0x95   : > { %865 = vmatprep.mubr.f32.mxu1 %v277_v35  ;;  %v341_v35 = vld [vmem:[%s2665_s21 + $0x468] sm:$0xff] }
  0x96   : > { %1281 = vmatmul.mubr.f32.gmra.mrb[50].mxu0 %v302_v40  ;;  %v366_v40 = vld [vmem:[%s2665_s21 + $0x530] sm:$0xff] }
  0x97   : > { %2106 = vmatprep.mubr.msk.f32.mxu0 %vm513_vm0, %v307_v41  ;;  %v371_v41 = vld [vmem:[%s2665_s21 + $0x558] sm:$0xff] }
  0x98   : > { %866 = vmatmul.mubr.f32.gmra.mrb[38].mxu1 %v276_v38  ;;  %v340_v38 = vld [vmem:[%s2665_s21 + $0x460] sm:$0xff] }
  0x99   : > { %870 = vmatprep.mubr.f32.mxu1 %v281_v39  ;;  %v345_v39 = vld [vmem:[%s2665_s21 + $0x488] sm:$0xff] }
  0x9a   : > { %1286 = vmatmul.mubr.f32.gmra.mrb[52].mxu0 %v306_v44  ;;  %v370_v44 = vld [vmem:[%s2665_s21 + $0x550] sm:$0xff] }
  0x9b   : > { %2107 = vmatprep.mubr.msk.f32.mxu0 %vm513_vm0, %v311_v45  ;;  %v375_v45 = vld [vmem:[%s2665_s21 + $0x578] sm:$0xff] }
  0x9c   : > { %871 = vmatmul.mubr.f32.gmra.mrb[40].mxu1 %v280_v42  ;;  %v344_v42 = vld [vmem:[%s2665_s21 + $0x480] sm:$0xff] }
  0x9d   : > { %875 = vmatprep.mubr.f32.mxu1 %v285_v43  ;;  %v349_v43 = vld [vmem:[%s2665_s21 + $0x4a8] sm:$0xff] }
  0x9e   : > { %1291 = vmatmul.mubr.f32.gmra.mrb[54].mxu0 %v310_v48  ;;  %v374_v48 = vld [vmem:[%s2665_s21 + $0x570] sm:$0xff] }
  0x9f   : > { %2108 = vmatprep.mubr.msk.f32.mxu0 %vm513_vm0, %v315_v49  ;;  %v379_v49 = vld [vmem:[%s2665_s21 + $0x598] sm:$0xff] }
  0xa0   : > { %876 = vmatmul.mubr.f32.gmra.mrb[42].mxu1 %v284_v46  ;;  %v348_v46 = vld [vmem:[%s2665_s21 + $0x4a0] sm:$0xff] }
  0xa1   : > { %880 = vmatprep.mubr.f32.mxu1 %v289_v47  ;;  %v353_v47 = vld [vmem:[%s2665_s21 + $0x4c8] sm:$0xff] }
  0xa2   : > { %1296 = vmatmul.mubr.f32.gmra.mrb[56].mxu0 %v314_v52  ;;  %v378_v52 = vld [vmem:[%s2665_s21 + $0x590] sm:$0xff] }
  0xa3   : > { %2109 = vmatprep.mubr.msk.f32.mxu0 %vm513_vm0, %v319_v53  ;;  %v383_v53 = vld [vmem:[%s2665_s21 + $0x5b8] sm:$0xff] }
  0xa4   : > { %881 = vmatmul.mubr.f32.gmra.mrb[44].mxu1 %v288_v50  ;;  %v352_v50 = vld [vmem:[%s2665_s21 + $0x4c0] sm:$0xff] }
  0xa5   : > { %885 = vmatprep.mubr.f32.mxu1 %v293_v51  ;;  %v357_v51 = vld [vmem:[%s2665_s21 + $0x4e8] sm:$0xff] }
  0xa6   : > { %1301 = vmatmul.mubr.f32.gmra.mrb[58].mxu0 %v318_v56  ;;  %v382_v56 = vld [vmem:[%s2665_s21 + $0x5b0] sm:$0xff] }
  0xa7   : > { %2110 = vmatprep.mubr.msk.f32.mxu0 %vm513_vm0, %v323_v57  ;;  %v387_v57 = vld [vmem:[%s2665_s21 + $0x5d8] sm:$0xff] }
  0xa8   : > { %886 = vmatmul.mubr.f32.gmra.mrb[46].mxu1 %v292_v54  ;;  %v356_v54 = vld [vmem:[%s2665_s21 + $0x4e0] sm:$0xff] }
  0xa9   : > { %890 = vmatprep.mubr.f32.mxu1 %v297_v55  ;;  %v361_v55 = vld [vmem:[%s2665_s21 + $0x508] sm:$0xff] }
  0xaa   : > { %1306 = vmatmul.mubr.f32.gmra.mrb[60].mxu0 %v322_v60  ;;  %v386_v60 = vld [vmem:[%s2665_s21 + $0x5d0] sm:$0xff] }
  0xab   : > { %2111 = vmatprep.mubr.msk.f32.mxu0 %vm513_vm0, %v327_v61  ;;  %v391_v61 = vld [vmem:[%s2665_s21 + $0x5f8] sm:$0xff] }
  0xac   : > { %891 = vmatmul.mubr.f32.gmra.mrb[48].mxu1 %v296_v58  ;;  %v360_v58 = vld [vmem:[%s2665_s21 + $0x500] sm:$0xff] }
  0xad   : > { %895 = vmatprep.mubr.f32.mxu1 %v301_v59  ;;  %v365_v59 = vld [vmem:[%s2665_s21 + $0x528] sm:$0xff] }
  0xae   : > { %1311 = vmatmul.mubr.f32.gmra.mrb[62].mxu0 %v326_v0  ;;  %v390_v0 = vld [vmem:[%s2665_s21 + $0x5f0] sm:$0xff] }
  0xaf   : > { %2112 = vmatprep.mubr.msk.f32.mxu0 %vm513_vm0, %v331_v1  ;;  %v395_v1 = vld [vmem:[%s2665_s21 + $0x618] sm:$0xff] }
  0xb0   : > { %896 = vmatmul.mubr.f32.gmra.mrb[50].mxu1 %v300_v62  ;;  %v364_v62 = vld [vmem:[%s2665_s21 + $0x520] sm:$0xff] }
  0xb1   : > { %900 = vmatprep.mubr.f32.mxu1 %v305_v63  ;;  %v369_v63 = vld [vmem:[%s2665_s21 + $0x548] sm:$0xff] }
  0xb2   : > { %1316 = vmatmul.mubr.f32.gmra.mrb[64].mxu0 %v330_v5  ;;  %v394_v5 = vld [vmem:[%s2665_s21 + $0x610] sm:$0xff] }
  0xb3   : > { %2113 = vmatprep.mubr.msk.f32.mxu0 %vm513_vm0, %v335_v6  ;;  %v399_v6 = vld [vmem:[%s2665_s21 + $0x638] sm:$0xff] }
  0xb4   : > { %901 = vmatmul.mubr.f32.gmra.mrb[52].mxu1 %v304_v2  ;;  %v368_v2 = vld [vmem:[%s2665_s21 + $0x540] sm:$0xff] }
  0xb5   : > { %905 = vmatprep.mubr.f32.mxu1 %v309_v4  ;;  %v373_v4 = vld [vmem:[%s2665_s21 + $0x568] sm:$0xff] }
  0xb6   : > { %1321 = vmatmul.mubr.f32.gmra.mrb[66].mxu0 %v334_v9  ;;  %v398_v9 = vld [vmem:[%s2665_s21 + $0x630] sm:$0xff] }
  0xb7   : > { %2114 = vmatprep.mubr.msk.f32.mxu0 %vm513_vm0, %v339_v10  ;;  %v403_v10 = vld [vmem:[%s2665_s21 + $0x658] sm:$0xff] }
  0xb8   : > { %906 = vmatmul.mubr.f32.gmra.mrb[54].mxu1 %v308_v7  ;;  %v372_v7 = vld [vmem:[%s2665_s21 + $0x560] sm:$0xff] }
  0xb9   : > { %910 = vmatprep.mubr.f32.mxu1 %v313_v8  ;;  %v377_v8 = vld [vmem:[%s2665_s21 + $0x588] sm:$0xff] }
  0xba   : > { %1326 = vmatmul.mubr.f32.gmra.mrb[68].mxu0 %v338_v13  ;;  %v402_v13 = vld [vmem:[%s2665_s21 + $0x650] sm:$0xff] }
  0xbb   : > { %2115 = vmatprep.mubr.msk.f32.mxu0 %vm513_vm0, %v343_v14  ;;  %v407_v14 = vld [vmem:[%s2665_s21 + $0x678] sm:$0xff] }
  0xbc   : > { %911 = vmatmul.mubr.f32.gmra.mrb[56].mxu1 %v312_v11  ;;  %v376_v11 = vld [vmem:[%s2665_s21 + $0x580] sm:$0xff] }
  0xbd   : > { %915 = vmatprep.mubr.f32.mxu1 %v317_v12  ;;  %v381_v12 = vld [vmem:[%s2665_s21 + $0x5a8] sm:$0xff] }
  0xbe   : > { %1331 = vmatmul.mubr.f32.gmra.mrb[70].mxu0 %v342_v17  ;;  %v406_v17 = vld [vmem:[%s2665_s21 + $0x670] sm:$0xff] }
  0xbf   : > { %2116 = vmatprep.mubr.msk.f32.mxu0 %vm513_vm0, %v347_v18  ;;  %v411_v18 = vld [vmem:[%s2665_s21 + $0x698] sm:$0xff] }
  0xc0   : > { %916 = vmatmul.mubr.f32.gmra.mrb[58].mxu1 %v316_v15  ;;  %v380_v15 = vld [vmem:[%s2665_s21 + $0x5a0] sm:$0xff] }
  0xc1   : > { %920 = vmatprep.mubr.f32.mxu1 %v321_v16  ;;  %v385_v16 = vld [vmem:[%s2665_s21 + $0x5c8] sm:$0xff] }
  0xc2   : > { %1336 = vmatmul.mubr.f32.gmra.mrb[72].mxu0 %v346_v21  ;;  %v410_v21 = vld [vmem:[%s2665_s21 + $0x690] sm:$0xff] }
  0xc3   : > { %2117 = vmatprep.mubr.msk.f32.mxu0 %vm513_vm0, %v351_v22  ;;  %v415_v22 = vld [vmem:[%s2665_s21 + $0x6b8] sm:$0xff] }
  0xc4   : > { %921 = vmatmul.mubr.f32.gmra.mrb[60].mxu1 %v320_v19  ;;  %v384_v19 = vld [vmem:[%s2665_s21 + $0x5c0] sm:$0xff] }
  0xc5   : > { %925 = vmatprep.mubr.f32.mxu1 %v325_v20  ;;  %v389_v20 = vld [vmem:[%s2665_s21 + $0x5e8] sm:$0xff] }
  0xc6   : > { %1341 = vmatmul.mubr.f32.gmra.mrb[74].mxu0 %v350_v25  ;;  %v414_v25 = vld [vmem:[%s2665_s21 + $0x6b0] sm:$0xff] }
  0xc7   : > { %2118 = vmatprep.mubr.msk.f32.mxu0 %vm513_vm0, %v355_v26  ;;  %v419_v26 = vld [vmem:[%s2665_s21 + $0x6d8] sm:$0xff] }
  0xc8   : > { %926 = vmatmul.mubr.f32.gmra.mrb[62].mxu1 %v324_v23  ;;  %v388_v23 = vld [vmem:[%s2665_s21 + $0x5e0] sm:$0xff] }
  0xc9   : > { %930 = vmatprep.mubr.f32.mxu1 %v329_v24  ;;  %v393_v24 = vld [vmem:[%s2665_s21 + $0x608] sm:$0xff] }
  0xca   : > { %1346 = vmatmul.mubr.f32.gmra.mrb[76].mxu0 %v354_v29 }
  0xcb   : > { %2119 = vmatprep.mubr.msk.f32.mxu0 %vm513_vm0, %v359_v30  ;;  %v397_v30 = vld [vmem:[%s2665_s21 + $0x628] sm:$0xff] }
  0xcc   : > { %931 = vmatmul.mubr.f32.gmra.mrb[64].mxu1 %v328_v27 }
  0xcd   : > { %935 = vmatprep.mubr.f32.mxu1 %v333_v28  ;;  %v392_v28 = vld [vmem:[%s2665_s21 + $0x600] sm:$0xff] }
  0xce   : > { %1351 = vmatmul.mubr.f32.gmra.mrb[78].mxu0 %v358_v32 }
  0xcf   : > { %2120 = vmatprep.mubr.msk.f32.mxu0 %vm513_vm0, %v363_v33  ;;  %v396_v33 = vld [vmem:[%s2665_s21 + $0x620] sm:$0xff] }
  0xd0   : > { %936 = vmatmul.mubr.f32.gmra.mrb[66].mxu1 %v332_v3  ;;  %v418_v3 = vld [vmem:[%s2665_s21 + $0x6d0] sm:$0xff] }
  0xd1   : > { %940 = vmatprep.mubr.f32.mxu1 %v337_v31  ;;  %v423_v31 = vld [vmem:[%s2665_s21 + $0x6f8] sm:$0xff] }
  0xd2   : > { %1356 = vmatmul.mubr.f32.gmra.mrb[80].mxu0 %v362_v36  ;;  %v422_v36 = vld [vmem:[%s2665_s21 + $0x6f0] sm:$0xff] }
  0xd3   : > { %2121 = vmatprep.mubr.msk.f32.mxu0 %vm513_vm0, %v367_v37  ;;  %v427_v37 = vld [vmem:[%s2665_s21 + $0x718] sm:$0xff] }
  0xd4   : > { %941 = vmatmul.mubr.f32.gmra.mrb[68].mxu1 %v336_v34 }
  0xd5   : > { %945 = vmatprep.mubr.f32.mxu1 %v341_v35  ;;  %v401_v35 = vld [vmem:[%s2665_s21 + $0x648] sm:$0xff] }
  0xd6   : > { %1361 = vmatmul.mubr.f32.gmra.mrb[82].mxu0 %v366_v40 }
  0xd7   : > { %2122 = vmatprep.mubr.msk.f32.mxu0 %vm513_vm0, %v371_v41  ;;  %v405_v41 = vld [vmem:[%s2665_s21 + $0x668] sm:$0xff] }
  0xd8   : > { %946 = vmatmul.mubr.f32.gmra.mrb[70].mxu1 %v340_v38 }
  0xd9   : > { %950 = vmatprep.mubr.f32.mxu1 %v345_v39  ;;  %v400_v39 = vld [vmem:[%s2665_s21 + $0x640] sm:$0xff] }
  0xda   : > { %1366 = vmatmul.mubr.f32.gmra.mrb[84].mxu0 %v370_v44 }
  0xdb   : > { %2123 = vmatprep.mubr.msk.f32.mxu0 %vm513_vm0, %v375_v45  ;;  %v404_v45 = vld [vmem:[%s2665_s21 + $0x660] sm:$0xff] }
  0xdc   : > { %951 = vmatmul.mubr.f32.gmra.mrb[72].mxu1 %v344_v42  ;;  %v426_v42 = vld [vmem:[%s2665_s21 + $0x710] sm:$0xff] }
  0xdd   : > { %955 = vmatprep.mubr.f32.mxu1 %v349_v43  ;;  %v431_v43 = vld [vmem:[%s2665_s21 + $0x738] sm:$0xff] }
  0xde   : > { %1371 = vmatmul.mubr.f32.gmra.mrb[86].mxu0 %v374_v48  ;;  %v430_v48 = vld [vmem:[%s2665_s21 + $0x730] sm:$0xff] }
  0xdf   : > { %2124 = vmatprep.mubr.msk.f32.mxu0 %vm513_vm0, %v379_v49  ;;  %v435_v49 = vld [vmem:[%s2665_s21 + $0x758] sm:$0xff] }
  0xe0   : > { %956 = vmatmul.mubr.f32.gmra.mrb[74].mxu1 %v348_v46 }
  0xe1   : > { %960 = vmatprep.mubr.f32.mxu1 %v353_v47  ;;  %v409_v47 = vld [vmem:[%s2665_s21 + $0x688] sm:$0xff] }
  0xe2   : > { %1376 = vmatmul.mubr.f32.gmra.mrb[88].mxu0 %v378_v52 }
  0xe3   : > { %2125 = vmatprep.mubr.msk.f32.mxu0 %vm513_vm0, %v383_v53  ;;  %v413_v53 = vld [vmem:[%s2665_s21 + $0x6a8] sm:$0xff] }
  0xe4   : > { %961 = vmatmul.mubr.f32.gmra.mrb[76].mxu1 %v352_v50 }
  0xe5   : > { %965 = vmatprep.mubr.f32.mxu1 %v357_v51  ;;  %v408_v51 = vld [vmem:[%s2665_s21 + $0x680] sm:$0xff] }
  0xe6   : > { %1381 = vmatmul.mubr.f32.gmra.mrb[90].mxu0 %v382_v56 }
  0xe7   : > { %2126 = vmatprep.mubr.msk.f32.mxu0 %vm513_vm0, %v387_v57  ;;  %v3081_v57 = vld [vmem:[%s3479_s2] ss:$0 sm:$0xff] }
  0xe8   : > { %966 = vmatmul.mubr.f32.gmra.mrb[78].mxu1 %v356_v54  ;;  %v434_v54 = vld [vmem:[%s2665_s21 + $0x750] sm:$0xff] }
  0xe9   : > { %970 = vmatprep.mubr.f32.mxu1 %v361_v55  ;;  %v439_v55 = vld [vmem:[%s2665_s21 + $0x778] sm:$0xff] }
  0xea   : > { %1386 = vmatmul.mubr.f32.gmra.mrb[92].mxu0 %v386_v60  ;;  %v417_v60 = vld [vmem:[%s2665_s21 + $0x6c8] sm:$0xff] }
  0xeb   : > { %2127 = vmatprep.mubr.msk.f32.mxu0 %vm513_vm0, %v391_v61  ;;  %v438_v61 = vld [vmem:[%s2665_s21 + $0x770] sm:$0xff] }
  0xec   : > { %971 = vmatmul.mubr.f32.gmra.mrb[80].mxu1 %v360_v58  ;;  %v412_v58 = vld [vmem:[%s2665_s21 + $0x6a0] sm:$0xff] }
  0xed   : > { %975 = vmatprep.mubr.f32.mxu1 %v365_v59 }
  0xee   : > { %1391 = vmatmul.mubr.f32.gmra.mrb[94].mxu0 %v390_v0 }
  0xef   : > { %2128 = vmatprep.mubr.msk.f32.mxu0 %vm513_vm0, %v395_v1 }
  0xf0   : > { %976 = vmatmul.mubr.f32.gmra.mrb[82].mxu1 %v364_v62 }
  0xf1   : > { %980 = vmatprep.mubr.f32.mxu1 %v369_v63  ;;  %v443_v63 = vld [vmem:[%s2665_s21 + $0x798] sm:$0xff] }
  0xf2   : > { %1396 = vmatmul.mubr.f32.gmra.mrb[96].mxu0 %v394_v5 }
  0xf3   : > { %2129 = vmatprep.mubr.msk.f32.mxu0 %vm513_vm0, %v399_v6 }
  0xf4   : > { %981 = vmatmul.mubr.f32.gmra.mrb[84].mxu1 %v368_v2 }
  0xf5   : > { %985 = vmatprep.mubr.f32.mxu1 %v373_v4  ;;  %v416_v4 = vld [vmem:[%s2665_s21 + $0x6c0] sm:$0xff] }
  0xf6   : > { %1401 = vmatmul.mubr.f32.gmra.mrb[98].mxu0 %v398_v9 }
  0xf7   : > { %2130 = vmatprep.mubr.msk.f32.mxu0 %vm513_vm0, %v403_v10  ;;  %v447_v10 = vld [vmem:[%s2665_s21 + $0x7b8] sm:$0xff] }
  0xf8   : > { %986 = vmatmul.mubr.f32.gmra.mrb[86].mxu1 %v372_v7  ;;  %v421_v7 = vld [vmem:[%s2665_s21 + $0x6e8] sm:$0xff] }
  0xf9   : > { %990 = vmatprep.mubr.f32.mxu1 %v377_v8  ;;  %v442_v8 = vld [vmem:[%s2665_s21 + $0x790] sm:$0xff] }
  0xfa   : > { %1406 = vmatmul.mubr.f32.gmra.mrb[100].mxu0 %v402_v13 }
  0xfb   : > { %2131 = vmatprep.mubr.msk.f32.mxu0 %vm513_vm0, %v407_v14 }
  0xfc   : > { %991 = vmatmul.mubr.f32.gmra.mrb[88].mxu1 %v376_v11 }
  0xfd   : > { %995 = vmatprep.mubr.f32.mxu1 %v381_v12 }
  0xfe   : > { %1411 = vmatmul.mubr.f32.gmra.mrb[102].mxu0 %v406_v17 }
  0xff   : > { %2132 = vmatprep.mubr.msk.f32.mxu0 %vm513_vm0, %v411_v18  ;;  %v425_v18 = vld [vmem:[%s2665_s21 + $0x708] sm:$0xff] }
 0x100   : > { %996 = vmatmul.mubr.f32.gmra.mrb[90].mxu1 %v380_v15  ;;  %v420_v15 = vld [vmem:[%s2665_s21 + $0x6e0] sm:$0xff] }
 0x101   : > { %1000 = vmatprep.mubr.f32.mxu1 %v385_v16 }
 0x102   : > { %1416 = vmatmul.mubr.f32.gmra.mrb[104].mxu0 %v410_v21  ;;  %v451_v21 = vld [vmem:[%s2665_s21 + $0x7d8] sm:$0xff] }
 0x103   : > { %2133 = vmatprep.mubr.msk.f32.mxu0 %vm513_vm0, %v415_v22 }
 0x104   : > { %1001 = vmatmul.mubr.f32.gmra.mrb[92].mxu1 %v384_v19  ;;  %v446_v19 = vld [vmem:[%s2665_s21 + $0x7b0] sm:$0xff] }
 0x105   : > { %1005 = vmatprep.mubr.f32.mxu1 %v389_v20  ;;  %v3041_v27 = vpop.f32.mrb[0].mxu0 }
 0x106   : > { %v1159_v29 = vpop.f32.mrb[1].mxu0  ;;  %1421 = vmatmul.mubr.f32.gmra.mrb[106].mxu0 %v414_v25 }
 0x107   : > { %2134 = vmatprep.mubr.msk.f32.mxu0 %vm513_vm0, %v419_v26  ;;  %v424_v26 = vld [vmem:[%s2665_s21 + $0x700] sm:$0xff]  ;;  %v429_v29 = vld [vmem:[%s2665_s21 + $0x728] sm:$0xff] }
 0x108   : > { %1006 = vmatmul.mubr.f32.gmra.mrb[94].mxu1 %v388_v23 }
 0x109   : > { %1010 = vmatprep.mubr.f32.mxu1 %v393_v24  ;;  %v3048_v32 = vpop.f32.mrb[2].mxu0 }
 0x10a   : > { %v1164_v34 = vpop.f32.mrb[3].mxu0  ;;  %1426 = vmatmul.mubr.f32.gmra.mrb[108].mxu0 %v418_v3 }
 0x10b   : > { %2135 = vmatprep.mubr.msk.f32.mxu0 %vm513_vm0, %v423_v31  ;;  %v455_v31 = vld [vmem:[%s2665_s21 + $0x7f8] sm:$0xff] }
 0x10c   : > { %1011 = vmatmul.mubr.f32.gmra.mrb[96].mxu1 %v392_v28 }
 0x10d   : > { %1015 = vmatprep.mubr.f32.mxu1 %v397_v30  ;;  %v3055_v38 = vpop.f32.mrb[4].mxu0  ;;  %v450_v30 = vld [vmem:[%s2665_s21 + $0x7d0] sm:$0xff] }
 0x10e   : > { %v1169_v40 = vpop.f32.mrb[5].mxu0  ;;  %1431 = vmatmul.mubr.f32.gmra.mrb[110].mxu0 %v422_v36  ;;  %v428_v36 = vld [vmem:[%s2665_s21 + $0x720] sm:$0xff] }
 0x10f   : > { %2136 = vmatprep.mubr.msk.f32.mxu0 %vm513_vm0, %v427_v37  ;;  %v454_v40 = vld [vmem:[%s2665_s21 + $0x7f0] sm:$0xff] }
 0x110   : > { %1016 = vmatmul.mubr.f32.gmra.mrb[98].mxu1 %v396_v33 }
 0x111   : > { %1020 = vmatprep.mubr.f32.mxu1 %v401_v35  ;;  %v3062_v44 = vpop.f32.mrb[6].mxu0 }
 0x112   : > { %v1174_v46 = vpop.f32.mrb[7].mxu0  ;;  %1436 = vmatmul.mubr.f32.gmra.mrb[112].mxu0 %v426_v42 }
 0x113   : > { %2137 = vmatprep.mubr.msk.f32.mxu0 %vm513_vm0, %v431_v43 }
 0x114   : > { %1021 = vmatmul.mubr.f32.gmra.mrb[100].mxu1 %v400_v39  ;;  %v433_v39 = vld [vmem:[%s2665_s21 + $0x748] sm:$0xff] }
 0x115   : > { %1025 = vmatprep.mubr.f32.mxu1 %v405_v41  ;;  %v3069_v50 = vpop.f32.mrb[8].mxu0 }
 0x116   : > { %v1179_v52 = vpop.f32.mrb[9].mxu0  ;;  %1441 = vmatmul.mubr.f32.gmra.mrb[114].mxu0 %v430_v48 }
 0x117   : > { %2138 = vmatprep.mubr.msk.f32.mxu0 %vm513_vm0, %v435_v49  ;;  %v437_v49 = vld [vmem:[%s2665_s21 + $0x768] sm:$0xff] }
 0x118   : > { %1026 = vmatmul.mubr.f32.gmra.mrb[102].mxu1 %v404_v45 }
 0x119   : > { %1030 = vmatprep.mubr.f32.mxu1 %v409_v47  ;;  %v3076_v56 = vpop.f32.mrb[10].mxu0  ;;  %v432_v47 = vld [vmem:[%s2665_s21 + $0x740] sm:$0xff] }
 0x11a   : > { %v1184_v59 = vpop.f32.mrb[11].mxu0  ;;  %1446 = vmatmul.mubr.f32.gmra.mrb[116].mxu0 %v434_v54 }
 0x11b   : > { %2139 = vmatprep.mubr.msk.f32.mxu0 %vm513_vm0, %v439_v55 }
 0x11c   : > { %1031 = vmatmul.mubr.f32.gmra.mrb[104].mxu1 %v408_v51 }
 0x11d   : > { %1035 = vmatprep.mubr.f32.mxu1 %v413_v53  ;;  %v3090_v2 = vpop.f32.mrb[12].mxu0 }
 0x11e   : > { %v1189_v5 = vpop.f32.mrb[13].mxu0  ;;  %1451 = vmatmul.mubr.f32.gmra.mrb[118].mxu0 %v438_v61  ;;  %v441_v61 = vld [vmem:[%s2665_s21 + $0x788] sm:$0xff] }
 0x11f   : > { %v772_v62 = vpop.f32.mrb[0].mxu1  ;;  %2140 = vmatprep.mubr.msk.f32.mxu0 %vm513_vm0, %v443_v63 }
 0x120   : > { %v773_v0 = vadd.f32 %v3081_v57, %v772_v62  ;;  %v774_v1 = vpop.f32.mrb[1].mxu1  ;;  %1036 = vmatmul.mubr.f32.gmra.mrb[106].mxu1 %v412_v58  ;;  %v436_v58 = vld [vmem:[%s2665_s21 + $0x760] sm:$0xff] }
 0x121   : > { %1040 = vmatprep.mubr.f32.mxu1 %v417_v60  ;;  %v3099_v14 = vpop.f32.mrb[14].mxu0 }
 0x122   : > { %v1158_v6 = vadd.f32 %v3041_v27, %v773_v0  ;;  %v1194_v16 = vpop.f32.mrb[15].mxu0  ;;  %1456 = vmatmul.mubr.f32.gmra.mrb[120].mxu0 %v442_v8 }
 0x123   : > { %v777_v9 = vpop.f32.mrb[2].mxu1  ;;  %2141 = vmatprep.mubr.msk.f32.mxu0 %vm513_vm0, %v447_v10  ;;  %v449_v16 = vld [vmem:[%s2665_s21 + $0x7c8] sm:$0xff] }
 0x124   : > { %v1476_v11 = vmax.f32 %v1158_v6, 0.0  ;;  %v778_v12 = vadd.f32 %v3081_v57, %v777_v9  ;;  %v779_v13 = vpop.f32.mrb[3].mxu1  ;;  %1041 = vmatmul.mubr.f32.gmra.mrb[108].mxu1 %v416_v4  ;;  %v440_v4 = vld [vmem:[%s2665_s21 + $0x780] sm:$0xff] }
 0x125   : > { %1045 = vmatprep.mubr.f32.mxu1 %v421_v7  ;;  %v3111_v25 = vpop.f32.mrb[16].mxu0  ;;  %v445_v7 = vld [vmem:[%s2665_s21 + $0x7a8] sm:$0xff] }
 0x126   : > { %1540 = vst [vmem:[%s3102_s12] sm:$0xff] %v1476_v11  ;;  %v1163_v17 = vadd.f32 %v3048_v32, %v778_v12  ;;  %v1199_v27 = vpop.f32.mrb[17].mxu0  ;;  %1461 = vmatmul.mubr.f32.gmra.mrb[122].mxu0 %v446_v19  ;;  %v444_v12 = vld [vmem:[%s2665_s21 + $0x7a0] sm:$0xff] }
 0x127   : > { %v782_v20 = vpop.f32.mrb[4].mxu1  ;;  %2142 = vmatprep.mubr.msk.f32.mxu0 %vm513_vm0, %v451_v21  ;;  %v448_v21 = vld [vmem:[%s2665_s21 + $0x7c0] sm:$0xff] }
 0x128   : > { %v1477_v22 = vmax.f32 %v1163_v17, 0.0  ;;  %v783_v23 = vadd.f32 %v3081_v57, %v782_v20  ;;  %v784_v24 = vpop.f32.mrb[5].mxu1  ;;  %1046 = vmatmul.mubr.f32.gmra.mrb[110].mxu1 %v420_v15 }
 0x129   : > { %1050 = vmatprep.mubr.f32.mxu1 %v425_v18  ;;  %v3121_v35 = vpop.f32.mrb[18].mxu0  ;;  %v453_v24 = vld [vmem:[%s2665_s21 + $0x7e8] sm:$0xff] }
 0x12a   : > { %1541 = vst [vmem:[%s3102_s12 + $0x8] sm:$0xff] %v1477_v22  ;;  %v1168_v28 = vadd.f32 %v3055_v38, %v783_v23  ;;  %v1204_v37 = vpop.f32.mrb[19].mxu0  ;;  %1466 = vmatmul.mubr.f32.gmra.mrb[124].mxu0 %v450_v30  ;;  %v452_v30 = vld [vmem:[%s2665_s21 + $0x7e0] sm:$0xff] }
 0x12b   : > { %v787_v3 = vpop.f32.mrb[6].mxu1  ;;  %2143 = vmatprep.mubr.msk.f32.mxu0 %vm513_vm0, %v455_v31 }
 0x12c   : > { %v1478_v32 = vmax.f32 %v1168_v28, 0.0  ;;  %v788_v33 = vadd.f32 %v3081_v57, %v787_v3  ;;  %v789_v34 = vpop.f32.mrb[7].mxu1  ;;  %1051 = vmatmul.mubr.f32.gmra.mrb[112].mxu1 %v424_v26 }
 0x12d   : > { %1055 = vmatprep.mubr.f32.mxu1 %v429_v29  ;;  %v3130_v46 = vpop.f32.mrb[20].mxu0 }
 0x12e   : > { %1542 = vst [vmem:[%s3102_s12 + $0x10] sm:$0xff] %v1478_v32  ;;  %v1173_v38 = vadd.f32 %v3062_v44, %v788_v33  ;;  %v1209_v48 = vpop.f32.mrb[21].mxu0  ;;  %1471 = vmatmul.mubr.f32.gmra.mrb[126].mxu0 %v454_v40 }
 0x12f   : > { %v792_v41 = vpop.f32.mrb[8].mxu1 }
 0x130   : > { %v1479_v42 = vmax.f32 %v1173_v38, 0.0  ;;  %v793_v43 = vadd.f32 %v3081_v57, %v792_v41  ;;  %v794_v45 = vpop.f32.mrb[9].mxu1  ;;  %1056 = vmatmul.mubr.f32.gmra.mrb[114].mxu1 %v428_v36 }
 0x131   : > { %1060 = vmatprep.mubr.f32.mxu1 %v433_v39  ;;  %v3137_v55 = vpop.f32.mrb[22].mxu0 }
 0x132   : > { %1543 = vst [vmem:[%s3102_s12 + $0x18] sm:$0xff] %v1479_v42  ;;  %v1178_v44 = vadd.f32 %v3069_v50, %v793_v43  ;;  %v1214_v59 = vpop.f32.mrb[23].mxu0 }
 0x133   : > { %v797_v51 = vpop.f32.mrb[10].mxu1 }
 0x134   : > { %v1480_v52 = vmax.f32 %v1178_v44, 0.0  ;;  %v798_v53 = vadd.f32 %v3081_v57, %v797_v51  ;;  %v799_v54 = vpop.f32.mrb[11].mxu1  ;;  %1061 = vmatmul.mubr.f32.gmra.mrb[116].mxu1 %v432_v47 }
 0x135   : > { %1065 = vmatprep.mubr.f32.mxu1 %v437_v49  ;;  %v3144_v1 = vpop.f32.mrb[24].mxu0 }
 0x136   : > { %1544 = vst [vmem:[%s3102_s12 + $0x20] sm:$0xff] %v1480_v52  ;;  %v1183_v60 = vadd.f32 %v3076_v56, %v798_v53  ;;  %v1219_v5 = vpop.f32.mrb[25].mxu0 }
 0x137   : > { %v802_v50 = vpop.f32.mrb[12].mxu1 }
 0x138   : > { %v1481_v62 = vmax.f32 %v1183_v60, 0.0  ;;  %v803_v63 = vadd.f32 %v3081_v57, %v802_v50  ;;  %v804_v0 = vpop.f32.mrb[13].mxu1  ;;  %1066 = vmatmul.mubr.f32.gmra.mrb[118].mxu1 %v436_v58 }
 0x139   : > { %1070 = vmatprep.mubr.f32.mxu1 %v441_v61  ;;  %v1222_v11 = vpop.f32.mrb[26].mxu0 }
 0x13a   : > { %1545 = vst [vmem:[%s3102_s12 + $0x28] sm:$0xff] %v1481_v62  ;;  %v1188_v6 = vadd.f32 %v3090_v2, %v803_v63  ;;  %v1224_v13 = vpop.f32.mrb[27].mxu0 }
 0x13b   : > { %v807_v56 = vpop.f32.mrb[14].mxu1 }
 0x13c   : > { %v1482_v8 = vmax.f32 %v1188_v6, 0.0  ;;  %v808_v9 = vadd.f32 %v3081_v57, %v807_v56  ;;  %v809_v10 = vpop.f32.mrb[15].mxu1  ;;  %1071 = vmatmul.mubr.f32.gmra.mrb[120].mxu1 %v440_v4 }
 0x13d   : > { %1075 = vmatprep.mubr.f32.mxu1 %v445_v7  ;;  %v1227_v20 = vpop.f32.mrb[28].mxu0 }
 0x13e   : > { %1546 = vst [vmem:[%s3102_s12 + $0x30] sm:$0xff] %v1482_v8  ;;  %v1193_v15 = vadd.f32 %v3099_v14, %v808_v9  ;;  %v1229_v22 = vpop.f32.mrb[29].mxu0 }
 0x13f   : > { %v812_v17 = vpop.f32.mrb[16].mxu1 }
 0x140   : > { %v1483_v2 = vmax.f32 %v1193_v15, 0.0  ;;  %v813_v18 = vadd.f32 %v3081_v57, %v812_v17  ;;  %v814_v19 = vpop.f32.mrb[17].mxu1  ;;  %1076 = vmatmul.mubr.f32.gmra.mrb[122].mxu1 %v444_v12 }
 0x141   : > { %1080 = vmatprep.mubr.f32.mxu1 %v449_v16  ;;  %v1232_v29 = vpop.f32.mrb[30].mxu0 }
 0x142   : > { %1547 = vst [vmem:[%s3102_s12 + $0x38] sm:$0xff] %v1483_v2  ;;  %v1198_v23 = vadd.f32 %v3111_v25, %v813_v18  ;;  %v1234_v3 = vpop.f32.mrb[31].mxu0 }
 0x143   : > { %v817_v26 = vpop.f32.mrb[18].mxu1 }
 0x144   : > { %v1484_v27 = vmax.f32 %v1198_v23, 0.0  ;;  %v818_v14 = vadd.f32 %v3081_v57, %v817_v26  ;;  %v819_v28 = vpop.f32.mrb[19].mxu1  ;;  %1081 = vmatmul.mubr.f32.gmra.mrb[124].mxu1 %v448_v21 }
 0x145   : > { %1085 = vmatprep.mubr.f32.mxu1 %v453_v24  ;;  %v1237_v36 = vpop.f32.mrb[32].mxu0 }
 0x146   : > { %1548 = vst [vmem:[%s3102_s12 + $0x40] sm:$0xff] %v1484_v27  ;;  %v1203_v31 = vadd.f32 %v3121_v35, %v818_v14  ;;  %v1239_v37 = vpop.f32.mrb[33].mxu0 }
 0x147   : > { %v822_v32 = vpop.f32.mrb[20].mxu1 }
 0x148   : > { %v1485_v33 = vmax.f32 %v1203_v31, 0.0  ;;  %v823_v25 = vadd.f32 %v3081_v57, %v822_v32  ;;  %v824_v34 = vpop.f32.mrb[21].mxu1  ;;  %1086 = vmatmul.mubr.f32.gmra.mrb[126].mxu1 %v452_v30 }
 0x149   : > { %v1242_v43 = vpop.f32.mrb[34].mxu0 }
 0x14a   : > { %1549 = vst [vmem:[%s3102_s12 + $0x48] sm:$0xff] %v1485_v33  ;;  %v1208_v38 = vadd.f32 %v3130_v46, %v823_v25  ;;  %v1244_v35 = vpop.f32.mrb[35].mxu0 }
 0x14b   : > { %v827_v39 = vpop.f32.mrb[22].mxu1 }
 0x14c   : > { %v1486_v40 = vmax.f32 %v1208_v38, 0.0  ;;  %v828_v41 = vadd.f32 %v3081_v57, %v827_v39  ;;  %v829_v42 = vpop.f32.mrb[23].mxu1 }
 0x14d   : > { %v1247_v51 = vpop.f32.mrb[36].mxu0 }
 0x14e   : > { %1550 = vst [vmem:[%s3102_s12 + $0x50] sm:$0xff] %v1486_v40  ;;  %v1213_v45 = vadd.f32 %v3137_v55, %v828_v41  ;;  %v1249_v52 = vpop.f32.mrb[37].mxu0 }
 0x14f   : > { %v832_v47 = vpop.f32.mrb[24].mxu1 }
 0x150   : > { %v1487_v48 = vmax.f32 %v1213_v45, 0.0  ;;  %v833_v44 = vadd.f32 %v3081_v57, %v832_v47  ;;  %v834_v49 = vpop.f32.mrb[25].mxu1 }
 0x151   : > { %v1252_v60 = vpop.f32.mrb[38].mxu0 }
 0x152   : > { %1551 = vst [vmem:[%s3102_s12 + $0x58] sm:$0xff] %v1487_v48  ;;  %v1218_v46 = vadd.f32 %v3144_v1, %v833_v44  ;;  %v1254_v61 = vpop.f32.mrb[39].mxu0 }
 0x153   : > { %v837_v53 = vpop.f32.mrb[26].mxu1 }
 0x154   : > { %v1488_v54 = vmax.f32 %v1218_v46, 0.0  ;;  %v838_v58 = vadd.f32 %v3081_v57, %v837_v53  ;;  %v839_v59 = vpop.f32.mrb[27].mxu1 }
 0x155   : > { %v1257_v4 = vpop.f32.mrb[40].mxu0 }
 0x156   : > { %1552 = vst [vmem:[%s3102_s12 + $0x60] sm:$0xff] %v1488_v54  ;;  %v1223_v55 = vadd.f32 %v1222_v11, %v838_v58  ;;  %v1259_v5 = vpop.f32.mrb[41].mxu0 }
 0x157   : > { %v842_v50 = vpop.f32.mrb[28].mxu1 }
 0x158   : > { %v1489_v62 = vmax.f32 %v1223_v55, 0.0  ;;  %v843_v63 = vadd.f32 %v3081_v57, %v842_v50  ;;  %v844_v0 = vpop.f32.mrb[29].mxu1 }
 0x159   : > { %v1262_v9 = vpop.f32.mrb[42].mxu0 }
 0x15a   : > { %1553 = vst [vmem:[%s3102_s12 + $0x68] sm:$0xff] %v1489_v62  ;;  %v1228_v1 = vadd.f32 %v1227_v20, %v843_v63  ;;  %v1264_v10 = vpop.f32.mrb[43].mxu0 }
 0x15b   : > { %v847_v6 = vpop.f32.mrb[30].mxu1 }
 0x15c   : > { %v1490_v7 = vmax.f32 %v1228_v1, 0.0  ;;  %v848_v56 = vadd.f32 %v3081_v57, %v847_v6  ;;  %v849_v8 = vpop.f32.mrb[31].mxu1 }
 0x15d   : > { %v1267_v17 = vpop.f32.mrb[44].mxu0 }
 0x15e   : > { %1554 = vst [vmem:[%s3102_s12 + $0x70] sm:$0xff] %v1490_v7  ;;  %v1233_v11 = vadd.f32 %v1232_v29, %v848_v56  ;;  %v1269_v2 = vpop.f32.mrb[45].mxu0 }
 0x15f   : > { %v852_v12 = vpop.f32.mrb[32].mxu1 }
 0x160   : > { %v1491_v13 = vmax.f32 %v1233_v11, 0.0  ;;  %v853_v15 = vadd.f32 %v3081_v57, %v852_v12  ;;  %v854_v16 = vpop.f32.mrb[33].mxu1 }
 0x161   : > { %v1272_v23 = vpop.f32.mrb[46].mxu0 }
 0x162   : > { %1555 = vst [vmem:[%s3102_s12 + $0x78] sm:$0xff] %v1491_v13  ;;  %v1238_v18 = vadd.f32 %v1237_v36, %v853_v15  ;;  %v1274_v24 = vpop.f32.mrb[47].mxu0 }
 0x163   : > { %v857_v19 = vpop.f32.mrb[34].mxu1 }
 0x164   : > { %v1492_v20 = vmax.f32 %v1238_v18, 0.0  ;;  %v858_v21 = vadd.f32 %v3081_v57, %v857_v19  ;;  %v859_v22 = vpop.f32.mrb[35].mxu1 }
 0x165   : > { %v1277_v30 = vpop.f32.mrb[48].mxu0 }
 0x166   : > { %1556 = vst [vmem:[%s3102_s12 + $0x80] sm:$0xff] %v1492_v20  ;;  %v1243_v26 = vadd.f32 %v1242_v43, %v858_v21  ;;  %v1279_v3 = vpop.f32.mrb[49].mxu0 }
 0x167   : > { %v862_v27 = vpop.f32.mrb[36].mxu1 }
 0x168   : > { %v1493_v14 = vmax.f32 %v1243_v26, 0.0  ;;  %v863_v28 = vadd.f32 %v3081_v57, %v862_v27  ;;  %v864_v29 = vpop.f32.mrb[37].mxu1 }
 0x169   : > { %v1282_v36 = vpop.f32.mrb[50].mxu0 }
 0x16a   : > { %1557 = vst [vmem:[%s3102_s12 + $0x88] sm:$0xff] %v1493_v14  ;;  %v1248_v31 = vadd.f32 %v1247_v51, %v863_v28  ;;  %v1284_v37 = vpop.f32.mrb[51].mxu0 }
 0x16b   : > { %v867_v32 = vpop.f32.mrb[38].mxu1 }
 0x16c   : > { %v1494_v33 = vmax.f32 %v1248_v31, 0.0  ;;  %v868_v25 = vadd.f32 %v3081_v57, %v867_v32  ;;  %v869_v34 = vpop.f32.mrb[39].mxu1 }
 0x16d   : > { %v1287_v43 = vpop.f32.mrb[52].mxu0 }
 0x16e   : > { %1558 = vst [vmem:[%s3102_s12 + $0x90] sm:$0xff] %v1494_v33  ;;  %v1253_v38 = vadd.f32 %v1252_v60, %v868_v25  ;;  %v1289_v35 = vpop.f32.mrb[53].mxu0 }
 0x16f   : > { %v872_v39 = vpop.f32.mrb[40].mxu1 }
 0x170   : > { %v1495_v40 = vmax.f32 %v1253_v38, 0.0  ;;  %v873_v41 = vadd.f32 %v3081_v57, %v872_v39  ;;  %v874_v42 = vpop.f32.mrb[41].mxu1 }
 0x171   : > { %v1292_v51 = vpop.f32.mrb[54].mxu0 }
 0x172   : > { %1559 = vst [vmem:[%s3102_s12 + $0x98] sm:$0xff] %v1495_v40  ;;  %v1258_v45 = vadd.f32 %v1257_v4, %v873_v41  ;;  %v1294_v52 = vpop.f32.mrb[55].mxu0 }
 0x173   : > { %v877_v47 = vpop.f32.mrb[42].mxu1 }
 0x174   : > { %v1496_v48 = vmax.f32 %v1258_v45, 0.0  ;;  %v878_v44 = vadd.f32 %v3081_v57, %v877_v47  ;;  %v879_v49 = vpop.f32.mrb[43].mxu1 }
 0x175   : > { %v1297_v60 = vpop.f32.mrb[56].mxu0 }
 0x176   : > { %1560 = vst [vmem:[%s3102_s12 + $0xa0] sm:$0xff] %v1496_v48  ;;  %v1263_v46 = vadd.f32 %v1262_v9, %v878_v44  ;;  %v1299_v61 = vpop.f32.mrb[57].mxu0 }
 0x177   : > { %v882_v53 = vpop.f32.mrb[44].mxu1 }
 0x178   : > { %v1497_v54 = vmax.f32 %v1263_v46, 0.0  ;;  %v883_v58 = vadd.f32 %v3081_v57, %v882_v53  ;;  %v884_v59 = vpop.f32.mrb[45].mxu1 }
 0x179   : > { %v1302_v4 = vpop.f32.mrb[58].mxu0 }
 0x17a   : > { %1561 = vst [vmem:[%s3102_s12 + $0xa8] sm:$0xff] %v1497_v54  ;;  %v1268_v55 = vadd.f32 %v1267_v17, %v883_v58  ;;  %v1304_v5 = vpop.f32.mrb[59].mxu0 }
 0x17b   : > { %v887_v50 = vpop.f32.mrb[46].mxu1 }
 0x17c   : > { %v1498_v62 = vmax.f32 %v1268_v55, 0.0  ;;  %v888_v63 = vadd.f32 %v3081_v57, %v887_v50  ;;  %v889_v0 = vpop.f32.mrb[47].mxu1 }
 0x17d   : > { %v1307_v9 = vpop.f32.mrb[60].mxu0 }
 0x17e   : > { %1562 = vst [vmem:[%s3102_s12 + $0xb0] sm:$0xff] %v1498_v62  ;;  %v1273_v1 = vadd.f32 %v1272_v23, %v888_v63  ;;  %v1309_v10 = vpop.f32.mrb[61].mxu0 }
 0x17f   : > { %v892_v6 = vpop.f32.mrb[48].mxu1 }
 0x180   : > { %v1499_v7 = vmax.f32 %v1273_v1, 0.0  ;;  %v893_v56 = vadd.f32 %v3081_v57, %v892_v6  ;;  %v894_v8 = vpop.f32.mrb[49].mxu1 }
 0x181   : > { %v1312_v17 = vpop.f32.mrb[62].mxu0 }
 0x182   : > { %1563 = vst [vmem:[%s3102_s12 + $0xb8] sm:$0xff] %v1499_v7  ;;  %v1278_v11 = vadd.f32 %v1277_v30, %v893_v56  ;;  %v1314_v2 = vpop.f32.mrb[63].mxu0 }
 0x183   : > { %v897_v12 = vpop.f32.mrb[50].mxu1 }
 0x184   : > { %v1500_v13 = vmax.f32 %v1278_v11, 0.0  ;;  %v898_v15 = vadd.f32 %v3081_v57, %v897_v12  ;;  %v899_v16 = vpop.f32.mrb[51].mxu1 }
 0x185   : > { %v1317_v23 = vpop.f32.mrb[64].mxu0 }
 0x186   : > { %1564 = vst [vmem:[%s3102_s12 + $0xc0] sm:$0xff] %v1500_v13  ;;  %v1283_v18 = vadd.f32 %v1282_v36, %v898_v15  ;;  %v1319_v24 = vpop.f32.mrb[65].mxu0 }
 0x187   : > { %v902_v19 = vpop.f32.mrb[52].mxu1 }
 0x188   : > { %v1501_v20 = vmax.f32 %v1283_v18, 0.0  ;;  %v903_v21 = vadd.f32 %v3081_v57, %v902_v19  ;;  %v904_v22 = vpop.f32.mrb[53].mxu1 }
 0x189   : > { %v1322_v30 = vpop.f32.mrb[66].mxu0 }
 0x18a   : > { %1565 = vst [vmem:[%s3102_s12 + $0xc8] sm:$0xff] %v1501_v20  ;;  %v1288_v26 = vadd.f32 %v1287_v43, %v903_v21  ;;  %v1324_v3 = vpop.f32.mrb[67].mxu0 }
 0x18b   : > { %v907_v27 = vpop.f32.mrb[54].mxu1 }
 0x18c   : > { %v1502_v14 = vmax.f32 %v1288_v26, 0.0  ;;  %v908_v28 = vadd.f32 %v3081_v57, %v907_v27  ;;  %v909_v29 = vpop.f32.mrb[55].mxu1 }
 0x18d   : > { %v1327_v36 = vpop.f32.mrb[68].mxu0 }
 0x18e   : > { %1566 = vst [vmem:[%s3102_s12 + $0xd0] sm:$0xff] %v1502_v14  ;;  %v1293_v31 = vadd.f32 %v1292_v51, %v908_v28  ;;  %v1329_v37 = vpop.f32.mrb[69].mxu0 }
 0x18f   : > { %v912_v32 = vpop.f32.mrb[56].mxu1 }
 0x190   : > { %v1503_v33 = vmax.f32 %v1293_v31, 0.0  ;;  %v913_v25 = vadd.f32 %v3081_v57, %v912_v32  ;;  %v914_v34 = vpop.f32.mrb[57].mxu1 }
 0x191   : > { %v1332_v43 = vpop.f32.mrb[70].mxu0 }
 0x192   : > { %1567 = vst [vmem:[%s3102_s12 + $0xd8] sm:$0xff] %v1503_v33  ;;  %v1298_v38 = vadd.f32 %v1297_v60, %v913_v25  ;;  %v1334_v35 = vpop.f32.mrb[71].mxu0 }
 0x193   : > { %v917_v39 = vpop.f32.mrb[58].mxu1 }
 0x194   : > { %v1504_v40 = vmax.f32 %v1298_v38, 0.0  ;;  %v918_v41 = vadd.f32 %v3081_v57, %v917_v39  ;;  %v919_v42 = vpop.f32.mrb[59].mxu1 }
 0x195   : > { %v1337_v51 = vpop.f32.mrb[72].mxu0 }
 0x196   : > { %1568 = vst [vmem:[%s3102_s12 + $0xe0] sm:$0xff] %v1504_v40  ;;  %v1303_v45 = vadd.f32 %v1302_v4, %v918_v41  ;;  %v1339_v52 = vpop.f32.mrb[73].mxu0 }
 0x197   : > { %v922_v47 = vpop.f32.mrb[60].mxu1 }
 0x198   : > { %v1505_v48 = vmax.f32 %v1303_v45, 0.0  ;;  %v923_v44 = vadd.f32 %v3081_v57, %v922_v47  ;;  %v924_v49 = vpop.f32.mrb[61].mxu1 }
 0x199   : > { %v1342_v60 = vpop.f32.mrb[74].mxu0 }
 0x19a   : > { %1569 = vst [vmem:[%s3102_s12 + $0xe8] sm:$0xff] %v1505_v48  ;;  %v1308_v46 = vadd.f32 %v1307_v9, %v923_v44  ;;  %v1344_v61 = vpop.f32.mrb[75].mxu0 }
 0x19b   : > { %v927_v53 = vpop.f32.mrb[62].mxu1 }
 0x19c   : > { %v1506_v54 = vmax.f32 %v1308_v46, 0.0  ;;  %v928_v58 = vadd.f32 %v3081_v57, %v927_v53  ;;  %v929_v59 = vpop.f32.mrb[63].mxu1 }
 0x19d   : > { %v1347_v4 = vpop.f32.mrb[76].mxu0 }
 0x19e   : > { %1570 = vst [vmem:[%s3102_s12 + $0xf0] sm:$0xff] %v1506_v54  ;;  %v1313_v55 = vadd.f32 %v1312_v17, %v928_v58  ;;  %v1349_v5 = vpop.f32.mrb[77].mxu0 }
 0x19f   : > { %v932_v50 = vpop.f32.mrb[64].mxu1 }
 0x1a0   : > { %v1507_v62 = vmax.f32 %v1313_v55, 0.0  ;;  %v933_v63 = vadd.f32 %v3081_v57, %v932_v50  ;;  %v934_v0 = vpop.f32.mrb[65].mxu1 }
 0x1a1   : > { %v1352_v9 = vpop.f32.mrb[78].mxu0 }
 0x1a2   : > { %1571 = vst [vmem:[%s3102_s12 + $0xf8] sm:$0xff] %v1507_v62  ;;  %v1318_v1 = vadd.f32 %v1317_v23, %v933_v63  ;;  %v1354_v10 = vpop.f32.mrb[79].mxu0 }
 0x1a3   : > { %v937_v6 = vpop.f32.mrb[66].mxu1 }
 0x1a4   : > { %v1508_v7 = vmax.f32 %v1318_v1, 0.0  ;;  %v938_v56 = vadd.f32 %v3081_v57, %v937_v6  ;;  %v939_v8 = vpop.f32.mrb[67].mxu1 }
 0x1a5   : > { %v1357_v17 = vpop.f32.mrb[80].mxu0 }
 0x1a6   : > { %1572 = vst [vmem:[%s3102_s12 + $0x100] sm:$0xff] %v1508_v7  ;;  %v1323_v11 = vadd.f32 %v1322_v30, %v938_v56  ;;  %v1359_v2 = vpop.f32.mrb[81].mxu0 }
 0x1a7   : > { %v942_v12 = vpop.f32.mrb[68].mxu1 }
 0x1a8   : > { %v1509_v13 = vmax.f32 %v1323_v11, 0.0  ;;  %v943_v15 = vadd.f32 %v3081_v57, %v942_v12  ;;  %v944_v16 = vpop.f32.mrb[69].mxu1 }
 0x1a9   : > { %v1362_v23 = vpop.f32.mrb[82].mxu0 }
 0x1aa   : > { %1573 = vst [vmem:[%s3102_s12 + $0x108] sm:$0xff] %v1509_v13  ;;  %v1328_v18 = vadd.f32 %v1327_v36, %v943_v15  ;;  %v1364_v24 = vpop.f32.mrb[83].mxu0 }
 0x1ab   : > { %v947_v19 = vpop.f32.mrb[70].mxu1 }
 0x1ac   : > { %v1510_v20 = vmax.f32 %v1328_v18, 0.0  ;;  %v948_v21 = vadd.f32 %v3081_v57, %v947_v19  ;;  %v949_v22 = vpop.f32.mrb[71].mxu1 }
 0x1ad   : > { %v1367_v30 = vpop.f32.mrb[84].mxu0 }
 0x1ae   : > { %1574 = vst [vmem:[%s3102_s12 + $0x110] sm:$0xff] %v1510_v20  ;;  %v1333_v26 = vadd.f32 %v1332_v43, %v948_v21  ;;  %v1369_v3 = vpop.f32.mrb[85].mxu0 }
 0x1af   : > { %v952_v27 = vpop.f32.mrb[72].mxu1 }
 0x1b0   : > { %v1511_v14 = vmax.f32 %v1333_v26, 0.0  ;;  %v953_v28 = vadd.f32 %v3081_v57, %v952_v27  ;;  %v954_v29 = vpop.f32.mrb[73].mxu1 }
 0x1b1   : > { %v1372_v36 = vpop.f32.mrb[86].mxu0 }
 0x1b2   : > { %1575 = vst [vmem:[%s3102_s12 + $0x118] sm:$0xff] %v1511_v14  ;;  %v1338_v31 = vadd.f32 %v1337_v51, %v953_v28  ;;  %v1374_v37 = vpop.f32.mrb[87].mxu0 }
 0x1b3   : > { %v957_v32 = vpop.f32.mrb[74].mxu1 }
 0x1b4   : > { %v1512_v33 = vmax.f32 %v1338_v31, 0.0  ;;  %v958_v25 = vadd.f32 %v3081_v57, %v957_v32  ;;  %v959_v34 = vpop.f32.mrb[75].mxu1 }
 0x1b5   : > { %v1377_v43 = vpop.f32.mrb[88].mxu0 }
 0x1b6   : > { %1576 = vst [vmem:[%s3102_s12 + $0x120] sm:$0xff] %v1512_v33  ;;  %v1343_v38 = vadd.f32 %v1342_v60, %v958_v25  ;;  %v1379_v35 = vpop.f32.mrb[89].mxu0 }
 0x1b7   : > { %v962_v39 = vpop.f32.mrb[76].mxu1 }
 0x1b8   : > { %v1513_v40 = vmax.f32 %v1343_v38, 0.0  ;;  %v963_v41 = vadd.f32 %v3081_v57, %v962_v39  ;;  %v964_v42 = vpop.f32.mrb[77].mxu1 }
 0x1b9   : > { %v1382_v51 = vpop.f32.mrb[90].mxu0 }
 0x1ba   : > { %1577 = vst [vmem:[%s3102_s12 + $0x128] sm:$0xff] %v1513_v40  ;;  %v1348_v45 = vadd.f32 %v1347_v4, %v963_v41  ;;  %v1384_v52 = vpop.f32.mrb[91].mxu0 }
 0x1bb   : > { %v967_v47 = vpop.f32.mrb[78].mxu1 }
 0x1bc   : > { %v1514_v48 = vmax.f32 %v1348_v45, 0.0  ;;  %v968_v44 = vadd.f32 %v3081_v57, %v967_v47  ;;  %v969_v49 = vpop.f32.mrb[79].mxu1 }
 0x1bd   : > { %v1387_v60 = vpop.f32.mrb[92].mxu0 }
 0x1be   : > { %1578 = vst [vmem:[%s3102_s12 + $0x130] sm:$0xff] %v1514_v48  ;;  %v1353_v46 = vadd.f32 %v1352_v9, %v968_v44  ;;  %v1389_v61 = vpop.f32.mrb[93].mxu0 }
 0x1bf   : > { %v972_v53 = vpop.f32.mrb[80].mxu1 }
 0x1c0   : > { %v1515_v54 = vmax.f32 %v1353_v46, 0.0  ;;  %v973_v58 = vadd.f32 %v3081_v57, %v972_v53  ;;  %v974_v59 = vpop.f32.mrb[81].mxu1 }
 0x1c1   : > { %v1392_v4 = vpop.f32.mrb[94].mxu0 }
 0x1c2   : > { %1579 = vst [vmem:[%s3102_s12 + $0x138] sm:$0xff] %v1515_v54  ;;  %v1358_v55 = vadd.f32 %v1357_v17, %v973_v58  ;;  %v1394_v5 = vpop.f32.mrb[95].mxu0 }
 0x1c3   : > { %v977_v50 = vpop.f32.mrb[82].mxu1 }
 0x1c4   : > { %v1516_v62 = vmax.f32 %v1358_v55, 0.0  ;;  %v978_v63 = vadd.f32 %v3081_v57, %v977_v50  ;;  %v979_v0 = vpop.f32.mrb[83].mxu1 }
 0x1c5   : > { %v1397_v9 = vpop.f32.mrb[96].mxu0 }
 0x1c6   : > { %1580 = vst [vmem:[%s3102_s12 + $0x140] sm:$0xff] %v1516_v62  ;;  %v1363_v1 = vadd.f32 %v1362_v23, %v978_v63  ;;  %v1399_v10 = vpop.f32.mrb[97].mxu0 }
 0x1c7   : > { %v982_v6 = vpop.f32.mrb[84].mxu1 }
 0x1c8   : > { %v1517_v7 = vmax.f32 %v1363_v1, 0.0  ;;  %v983_v56 = vadd.f32 %v3081_v57, %v982_v6  ;;  %v984_v8 = vpop.f32.mrb[85].mxu1 }
 0x1c9   : > { %v1402_v17 = vpop.f32.mrb[98].mxu0 }
 0x1ca   : > { %1581 = vst [vmem:[%s3102_s12 + $0x148] sm:$0xff] %v1517_v7  ;;  %v1368_v11 = vadd.f32 %v1367_v30, %v983_v56  ;;  %v1404_v2 = vpop.f32.mrb[99].mxu0 }
 0x1cb   : > { %v987_v12 = vpop.f32.mrb[86].mxu1 }
 0x1cc   : > { %v1518_v13 = vmax.f32 %v1368_v11, 0.0  ;;  %v988_v15 = vadd.f32 %v3081_v57, %v987_v12  ;;  %v989_v16 = vpop.f32.mrb[87].mxu1 }
 0x1cd   : > { %v1407_v23 = vpop.f32.mrb[100].mxu0 }
 0x1ce   : > { %1582 = vst [vmem:[%s3102_s12 + $0x150] sm:$0xff] %v1518_v13  ;;  %v1373_v18 = vadd.f32 %v1372_v36, %v988_v15  ;;  %v1409_v24 = vpop.f32.mrb[101].mxu0 }
 0x1cf   : > { %v992_v19 = vpop.f32.mrb[88].mxu1 }
 0x1d0   : > { %v1519_v20 = vmax.f32 %v1373_v18, 0.0  ;;  %v993_v21 = vadd.f32 %v3081_v57, %v992_v19  ;;  %v994_v22 = vpop.f32.mrb[89].mxu1 }
 0x1d1   : > { %v1412_v30 = vpop.f32.mrb[102].mxu0 }
 0x1d2   : > { %1583 = vst [vmem:[%s3102_s12 + $0x158] sm:$0xff] %v1519_v20  ;;  %v1378_v26 = vadd.f32 %v1377_v43, %v993_v21  ;;  %v1414_v3 = vpop.f32.mrb[103].mxu0 }
 0x1d3   : > { %v997_v27 = vpop.f32.mrb[90].mxu1 }
 0x1d4   : > { %v1520_v14 = vmax.f32 %v1378_v26, 0.0  ;;  %v998_v28 = vadd.f32 %v3081_v57, %v997_v27  ;;  %v999_v29 = vpop.f32.mrb[91].mxu1 }
 0x1d5   : > { %v1417_v36 = vpop.f32.mrb[104].mxu0 }
 0x1d6   : > { %1584 = vst [vmem:[%s3102_s12 + $0x160] sm:$0xff] %v1520_v14  ;;  %v1383_v31 = vadd.f32 %v1382_v51, %v998_v28  ;;  %v1419_v37 = vpop.f32.mrb[105].mxu0 }
 0x1d7   : > { %v1002_v32 = vpop.f32.mrb[92].mxu1 }
 0x1d8   : > { %v1521_v33 = vmax.f32 %v1383_v31, 0.0  ;;  %v1003_v25 = vadd.f32 %v3081_v57, %v1002_v32  ;;  %v1004_v34 = vpop.f32.mrb[93].mxu1 }
 0x1d9   : > { %v1422_v43 = vpop.f32.mrb[106].mxu0 }
 0x1da   : > { %1585 = vst [vmem:[%s3102_s12 + $0x168] sm:$0xff] %v1521_v33  ;;  %v1388_v38 = vadd.f32 %v1387_v60, %v1003_v25  ;;  %v1424_v35 = vpop.f32.mrb[107].mxu0 }
 0x1db   : > { %v1007_v39 = vpop.f32.mrb[94].mxu1 }
 0x1dc   : > { %v1522_v40 = vmax.f32 %v1388_v38, 0.0  ;;  %v1008_v41 = vadd.f32 %v3081_v57, %v1007_v39  ;;  %v1009_v42 = vpop.f32.mrb[95].mxu1 }
 0x1dd   : > { %v1427_v51 = vpop.f32.mrb[108].mxu0 }
 0x1de   : > { %1586 = vst [vmem:[%s3102_s12 + $0x170] sm:$0xff] %v1522_v40  ;;  %v1393_v45 = vadd.f32 %v1392_v4, %v1008_v41  ;;  %v1429_v52 = vpop.f32.mrb[109].mxu0  ;;  %v2457_v41 = vld [vmem:[%s3479_s2] ss:$0 sm:$0xff] }
 0x1df   : > { %v1012_v47 = vpop.f32.mrb[96].mxu1 }
 0x1e0   : > { %v1523_v48 = vmax.f32 %v1393_v45, 0.0  ;;  %v1013_v44 = vadd.f32 %v3081_v57, %v1012_v47  ;;  %v1014_v49 = vpop.f32.mrb[97].mxu1 }
 0x1e1   : > { %v1432_v60 = vpop.f32.mrb[110].mxu0 }
 0x1e2   : > { %1587 = vst [vmem:[%s3102_s12 + $0x178] sm:$0xff] %v1523_v48  ;;  %v1398_v46 = vadd.f32 %v1397_v9, %v1013_v44  ;;  %v1434_v61 = vpop.f32.mrb[111].mxu0 }
 0x1e3   : > { %v1017_v53 = vpop.f32.mrb[98].mxu1 }
 0x1e4   : > { %v1524_v54 = vmax.f32 %v1398_v46, 0.0  ;;  %v1018_v58 = vadd.f32 %v3081_v57, %v1017_v53  ;;  %v1019_v59 = vpop.f32.mrb[99].mxu1 }
 0x1e5   : > { %v1437_v4 = vpop.f32.mrb[112].mxu0 }
 0x1e6   : > { %1588 = vst [vmem:[%s3102_s12 + $0x180] sm:$0xff] %v1524_v54  ;;  %v1403_v55 = vadd.f32 %v1402_v17, %v1018_v58  ;;  %v1439_v5 = vpop.f32.mrb[113].mxu0 }
 0x1e7   : > { %v1022_v50 = vpop.f32.mrb[100].mxu1 }
 0x1e8   : > { %v1525_v62 = vmax.f32 %v1403_v55, 0.0  ;;  %v1023_v63 = vadd.f32 %v3081_v57, %v1022_v50  ;;  %v1024_v0 = vpop.f32.mrb[101].mxu1 }
 0x1e9   : > { %v1442_v9 = vpop.f32.mrb[114].mxu0 }
 0x1ea   : > { %1589 = vst [vmem:[%s3102_s12 + $0x188] sm:$0xff] %v1525_v62  ;;  %v1408_v1 = vadd.f32 %v1407_v23, %v1023_v63  ;;  %v1444_v10 = vpop.f32.mrb[115].mxu0 }
 0x1eb   : > { %v1027_v6 = vpop.f32.mrb[102].mxu1 }
 0x1ec   : > { %v1526_v7 = vmax.f32 %v1408_v1, 0.0  ;;  %v1028_v56 = vadd.f32 %v3081_v57, %v1027_v6  ;;  %v1029_v8 = vpop.f32.mrb[103].mxu1 }
 0x1ed   : > { %v1447_v17 = vpop.f32.mrb[116].mxu0 }
 0x1ee   : > { %1590 = vst [vmem:[%s3102_s12 + $0x190] sm:$0xff] %v1526_v7  ;;  %v1413_v11 = vadd.f32 %v1412_v30, %v1028_v56  ;;  %v1449_v2 = vpop.f32.mrb[117].mxu0 }
 0x1ef   : > { %v1032_v12 = vpop.f32.mrb[104].mxu1 }
 0x1f0   : > { %v1527_v13 = vmax.f32 %v1413_v11, 0.0  ;;  %v1033_v15 = vadd.f32 %v3081_v57, %v1032_v12  ;;  %v1034_v16 = vpop.f32.mrb[105].mxu1 }
 0x1f1   : > { %v1452_v23 = vpop.f32.mrb[118].mxu0 }
 0x1f2   : > { %1591 = vst [vmem:[%s3102_s12 + $0x198] sm:$0xff] %v1527_v13  ;;  %v1418_v18 = vadd.f32 %v1417_v36, %v1033_v15  ;;  %v1454_v24 = vpop.f32.mrb[119].mxu0 }
 0x1f3   : > { %v1037_v19 = vpop.f32.mrb[106].mxu1 }
 0x1f4   : > { %v1528_v20 = vmax.f32 %v1418_v18, 0.0  ;;  %v1038_v21 = vadd.f32 %v3081_v57, %v1037_v19  ;;  %v1039_v22 = vpop.f32.mrb[107].mxu1 }
 0x1f5   : > { %v1457_v30 = vpop.f32.mrb[120].mxu0 }
 0x1f6   : > { %1592 = vst [vmem:[%s3102_s12 + $0x1a0] sm:$0xff] %v1528_v20  ;;  %v1423_v26 = vadd.f32 %v1422_v43, %v1038_v21  ;;  %v1459_v3 = vpop.f32.mrb[121].mxu0 }
 0x1f7   : > { %v1042_v27 = vpop.f32.mrb[108].mxu1 }
 0x1f8   : > { %v1529_v14 = vmax.f32 %v1423_v26, 0.0  ;;  %v1043_v28 = vadd.f32 %v3081_v57, %v1042_v27  ;;  %v1044_v29 = vpop.f32.mrb[109].mxu1 }
 0x1f9   : > { %v1462_v36 = vpop.f32.mrb[122].mxu0 }
 0x1fa   : > { %1593 = vst [vmem:[%s3102_s12 + $0x1a8] sm:$0xff] %v1529_v14  ;;  %v1428_v31 = vadd.f32 %v1427_v51, %v1043_v28  ;;  %v1464_v37 = vpop.f32.mrb[123].mxu0 }
 0x1fb   : > { %v1047_v32 = vpop.f32.mrb[110].mxu1 }
 0x1fc   : > { %v1530_v33 = vmax.f32 %v1428_v31, 0.0  ;;  %v1048_v25 = vadd.f32 %v3081_v57, %v1047_v32  ;;  %v1049_v34 = vpop.f32.mrb[111].mxu1 }
 0x1fd   : > { %v1467_v35 = vpop.f32.mrb[124].mxu0 }
 0x1fe   : > { %1594 = vst [vmem:[%s3102_s12 + $0x1b0] sm:$0xff] %v1530_v33  ;;  %v1433_v38 = vadd.f32 %v1432_v60, %v1048_v25  ;;  %v1469_v45 = vpop.f32.mrb[125].mxu0 }
 0x1ff   : > { %v1052_v39 = vpop.f32.mrb[112].mxu1 }
 0x200   : > { %v1531_v40 = vmax.f32 %v1433_v38, 0.0  ;;  %v1053_v42 = vadd.f32 %v2457_v41, %v1052_v39  ;;  %v1054_v43 = vpop.f32.mrb[113].mxu1 }
 0x201   : > { %v1472_v51 = vpop.f32.mrb[126].mxu0 }
 0x202   : > { %1595 = vst [vmem:[%s3102_s12 + $0x1b8] sm:$0xff] %v1531_v40  ;;  %v1438_v47 = vadd.f32 %v1437_v4, %v1053_v42  ;;  %v1474_v52 = vpop.f32.mrb[127].mxu0 }
 0x203   : > { %v1057_v57 = vpop.f32.mrb[114].mxu1 }
 0x204   : > { %v1532_v48 = vmax.f32 %v1438_v47, 0.0  ;;  %v1058_v44 = vadd.f32 %v2457_v41, %v1057_v57  ;;  %v1059_v49 = vpop.f32.mrb[115].mxu1 }
 0x206   : > { %1596 = vst [vmem:[%s3102_s12 + $0x1c0] sm:$0xff] %v1532_v48  ;;  %v1443_v46 = vadd.f32 %v1442_v9, %v1058_v44 }
 0x207   : > { %v1062_v53 = vpop.f32.mrb[116].mxu1 }
 0x208   : > { %v1533_v54 = vmax.f32 %v1443_v46, 0.0  ;;  %v1063_v58 = vadd.f32 %v2457_v41, %v1062_v53  ;;  %v1064_v59 = vpop.f32.mrb[117].mxu1 }
 0x20a   : > { %1597 = vst [vmem:[%s3102_s12 + $0x1c8] sm:$0xff] %v1533_v54  ;;  %v1448_v60 = vadd.f32 %v1447_v17, %v1063_v58 }
 0x20b   : > { %v1067_v61 = vpop.f32.mrb[118].mxu1 }
 0x20c   : > { %v1534_v55 = vmax.f32 %v1448_v60, 0.0  ;;  %v1068_v50 = vadd.f32 %v2457_v41, %v1067_v61  ;;  %v1069_v62 = vpop.f32.mrb[119].mxu1 }
 0x20e   : > { %1598 = vst [vmem:[%s3102_s12 + $0x1d0] sm:$0xff] %v1534_v55  ;;  %v1453_v63 = vadd.f32 %v1452_v23, %v1068_v50 }
 0x20f   : > { %v1072_v0 = vpop.f32.mrb[120].mxu1 }
 0x210   : > { %v1535_v4 = vmax.f32 %v1453_v63, 0.0  ;;  %v1073_v5 = vadd.f32 %v2457_v41, %v1072_v0  ;;  %v1074_v1 = vpop.f32.mrb[121].mxu1 }
 0x212   : > { %1599 = vst [vmem:[%s3102_s12 + $0x1d8] sm:$0xff] %v1535_v4  ;;  %v1458_v6 = vadd.f32 %v1457_v30, %v1073_v5 }
 0x213   : > { %v1077_v7 = vpop.f32.mrb[122].mxu1 }
 0x214   : > { %v1536_v56 = vmax.f32 %v1458_v6, 0.0  ;;  %v1078_v8 = vadd.f32 %v2457_v41, %v1077_v7  ;;  %v1079_v9 = vpop.f32.mrb[123].mxu1 }
 0x216   : > { %1600 = vst [vmem:[%s3102_s12 + $0x1e0] sm:$0xff] %v1536_v56  ;;  %v1463_v10 = vadd.f32 %v1462_v36, %v1078_v8 }
 0x217   : > { %v1082_v11 = vpop.f32.mrb[124].mxu1 }
 0x218   : > { %v1537_v12 = vmax.f32 %v1463_v10, 0.0  ;;  %v1083_v13 = vadd.f32 %v2457_v41, %v1082_v11  ;;  %v1084_v15 = vpop.f32.mrb[125].mxu1 }
 0x21a   : > { %1601 = vst [vmem:[%s3102_s12 + $0x1e8] sm:$0xff] %v1537_v12  ;;  %v1468_v16 = vadd.f32 %v1467_v35, %v1083_v13 }
 0x21b   : > { %v1087_v17 = vpop.f32.mrb[126].mxu1 }
 0x21c   : > { %v1538_v2 = vmax.f32 %v1468_v16, 0.0  ;;  %v1088_v18 = vadd.f32 %v2457_v41, %v1087_v17  ;;  %v1089_v19 = vpop.f32.mrb[127].mxu1  ;;  %1610 = sbr.rel (!%p2592_p4) target bundleno = 619 (0x26b), region = 36 }
 0x21e   : > { %1602 = vst [vmem:[%s3102_s12 + $0x1f0] sm:$0xff] %v1538_v2  ;;  %v1473_v20 = vadd.f32 %v1472_v51, %v1088_v18 }
 0x220   : > { %v1539_v21 = vmax.f32 %v1473_v20, 0.0 }
 0x222   : > { %1603 = vst [vmem:[%s3102_s12 + $0x1f8] sm:$0xff] %v1539_v21 }
 0x223   : > { %s3491_s8 = smov (!%p1613_p8, %s1612_s8), 64 }
 0x224   : > { %s2146_s17 = sshll.u32 %s3491_s8, 7 }
 0x225   : > { %p2149_p9 = scmp.eq.s32.totalorder %s2146_s17, 0 }
 0x226   : > { %s3284_s18 = sshrl.u32 (!%p2149_p9), %s3491_s8, 6 }
 0x227   : > { %1621 = sbr.rel (%p2149_p9) target bundleno = 619 (0x26b), region = 40  ;;  %p2150_p10 = scmp.le.s32.totalorder (!%p2149_p9), %s3284_s18, 0 }
 0x22e   : > { %2027 = sbr.rel (%p2150_p10) target bundleno = 598 (0x256), region = 116  ;;  %s3482_s15 = smov (!%p2150_p10), %s3278_s14 }
 0x22f   : > { %s3483_s20 = smov (!%p2150_p10), %s3102_s12  ;;  %s3293_s27 = smov (!%p2150_p10), 0  }
 0x230   : > { %s3295_s22 = smov (!%p2150_p10), 0  }
 0x235 LB: >> { %v1809_v22 = vld [vmem:[%s2520_s20] sm:$0xff]  ;;  %v1811_v23 = vld [vmem:[%s2520_s20 + $0x8] sm:$0xff]  ;;  %v1813_v24 = vld [vmem:[%s2520_s20 + $0x10] sm:$0xff]  ;;  %s1937_s23 = sadd.s32 1, %s2524_s27  ;;  %s1803_s22 = sadd.s32 1, %s2528_s22   ;;  %s2528_s22 = sphi %s3295_s22, %s1803_s22   ;;  %s2524_s27 = sphi %s3293_s27, %s3486_s27   ;;  %s2520_s20 = sphi %s3483_s20, %s3485_s20   ;;  %s2516_s15 = sphi %s3482_s15, %s3484_s15  }
 0x236   : >> { %1810 = vst [vmem:[%s2516_s15] sm:$0xff] %v1809_v22  ;;  %1812 = vst [vmem:[%s2516_s15 + $0x8] sm:$0xff] %v1811_v23  ;;  %v1815_v26 = vld [vmem:[%s2520_s20 + $0x18] sm:$0xff]  ;;  %v1817_v27 = vld [vmem:[%s2520_s20 + $0x20] sm:$0xff]  ;;  %p1938_p11 = scmp.ge.s32.totalorder %s1937_s23, %s3284_s18  ;;  %p1802_p12 = scmp.ge.s32.totalorder %s1803_s22, %s3284_s18 }
 0x237   : >> { %1814 = vst [vmem:[%s2516_s15 + $0x10] sm:$0xff] %v1813_v24  ;;  %v1819_v14 = vld [vmem:[%s2520_s20 + $0x28] sm:$0xff]  ;;  %1816 = vst [vmem:[%s2516_s15 + $0x18] sm:$0xff] %v1815_v26  ;;  %v1821_v28 = vld [vmem:[%s2520_s20 + $0x30] sm:$0xff] }
 0x238   : >> { %1818 = vst [vmem:[%s2516_s15 + $0x20] sm:$0xff] %v1817_v27  ;;  %1820 = vst [vmem:[%s2516_s15 + $0x28] sm:$0xff] %v1819_v14  ;;  %v1823_v29 = vld [vmem:[%s2520_s20 + $0x38] sm:$0xff]  ;;  %v1825_v30 = vld [vmem:[%s2520_s20 + $0x40] sm:$0xff]  ;;  %s3493_s23 = smov (%p1938_p11, %s1937_s23), 0 }
 0x239   : >> { %1822 = vst [vmem:[%s2516_s15 + $0x30] sm:$0xff] %v1821_v28  ;;  %1824 = vst [vmem:[%s2516_s15 + $0x38] sm:$0xff] %v1823_v29  ;;  %v1827_v3 = vld [vmem:[%s2520_s20 + $0x48] sm:$0xff]  ;;  %v1829_v31 = vld [vmem:[%s2520_s20 + $0x50] sm:$0xff]  ;;  %s2151_s24 = sshll.u32 %s3493_s23, 9  ;;  %s3486_s27 = smov %s3493_s23 }
 0x23a   : >> { %1826 = vst [vmem:[%s2516_s15 + $0x40] sm:$0xff] %v1825_v30  ;;  %v1831_v32 = vld [vmem:[%s2520_s20 + $0x58] sm:$0xff]  ;;  %1828 = vst [vmem:[%s2516_s15 + $0x48] sm:$0xff] %v1827_v3  ;;  %v1833_v33 = vld [vmem:[%s2520_s20 + $0x60] sm:$0xff]  ;;  %s3351_s25 = scalar_lea.vmem %s3102_s12, %s2151_s24 [#allocation2]   ;;  %s3354_s26 = scalar_lea.vmem %s3278_s14, %s2151_s24  }
 0x23b   : >> { %1830 = vst [vmem:[%s2516_s15 + $0x50] sm:$0xff] %v1829_v31  ;;  %1832 = vst [vmem:[%s2516_s15 + $0x58] sm:$0xff] %v1831_v32  ;;  %v1835_v25 = vld [vmem:[%s2520_s20 + $0x68] sm:$0xff]  ;;  %v1837_v34 = vld [vmem:[%s2520_s20 + $0x70] sm:$0xff] }
 0x23c   : >> { %1834 = vst [vmem:[%s2516_s15 + $0x60] sm:$0xff] %v1833_v33  ;;  %1836 = vst [vmem:[%s2516_s15 + $0x68] sm:$0xff] %v1835_v25  ;;  %v1839_v36 = vld [vmem:[%s2520_s20 + $0x78] sm:$0xff]  ;;  %v1841_v37 = vld [vmem:[%s2520_s20 + $0x80] sm:$0xff] }
 0x23d   : >> { %1838 = vst [vmem:[%s2516_s15 + $0x70] sm:$0xff] %v1837_v34  ;;  %v1843_v38 = vld [vmem:[%s2520_s20 + $0x88] sm:$0xff]  ;;  %1840 = vst [vmem:[%s2516_s15 + $0x78] sm:$0xff] %v1839_v36  ;;  %v1845_v39 = vld [vmem:[%s2520_s20 + $0x90] sm:$0xff] }
 0x23e   : >> { %1842 = vst [vmem:[%s2516_s15 + $0x80] sm:$0xff] %v1841_v37  ;;  %1844 = vst [vmem:[%s2516_s15 + $0x88] sm:$0xff] %v1843_v38  ;;  %v1847_v40 = vld [vmem:[%s2520_s20 + $0x98] sm:$0xff]  ;;  %v1849_v41 = vld [vmem:[%s2520_s20 + $0xa0] sm:$0xff] }
 0x23f   : >> { %1846 = vst [vmem:[%s2516_s15 + $0x90] sm:$0xff] %v1845_v39  ;;  %1848 = vst [vmem:[%s2516_s15 + $0x98] sm:$0xff] %v1847_v40  ;;  %v1851_v42 = vld [vmem:[%s2520_s20 + $0xa8] sm:$0xff]  ;;  %v1853_v43 = vld [vmem:[%s2520_s20 + $0xb0] sm:$0xff] }
 0x240   : >> { %1850 = vst [vmem:[%s2516_s15 + $0xa0] sm:$0xff] %v1849_v41  ;;  %v1855_v35 = vld [vmem:[%s2520_s20 + $0xb8] sm:$0xff]  ;;  %1852 = vst [vmem:[%s2516_s15 + $0xa8] sm:$0xff] %v1851_v42  ;;  %v1857_v45 = vld [vmem:[%s2520_s20 + $0xc0] sm:$0xff] }
 0x241   : >> { %1854 = vst [vmem:[%s2516_s15 + $0xb0] sm:$0xff] %v1853_v43  ;;  %1856 = vst [vmem:[%s2516_s15 + $0xb8] sm:$0xff] %v1855_v35  ;;  %v1859_v47 = vld [vmem:[%s2520_s20 + $0xc8] sm:$0xff]  ;;  %v1861_v57 = vld [vmem:[%s2520_s20 + $0xd0] sm:$0xff] }
 0x242   : >> { %1858 = vst [vmem:[%s2516_s15 + $0xc0] sm:$0xff] %v1857_v45  ;;  %1860 = vst [vmem:[%s2516_s15 + $0xc8] sm:$0xff] %v1859_v47  ;;  %v1863_v48 = vld [vmem:[%s2520_s20 + $0xd8] sm:$0xff]  ;;  %v1865_v44 = vld [vmem:[%s2520_s20 + $0xe0] sm:$0xff] }
 0x243   : >> { %1862 = vst [vmem:[%s2516_s15 + $0xd0] sm:$0xff] %v1861_v57  ;;  %v1867_v49 = vld [vmem:[%s2520_s20 + $0xe8] sm:$0xff]  ;;  %1864 = vst [vmem:[%s2516_s15 + $0xd8] sm:$0xff] %v1863_v48  ;;  %v1869_v51 = vld [vmem:[%s2520_s20 + $0xf0] sm:$0xff] }
 0x244   : >> { %1866 = vst [vmem:[%s2516_s15 + $0xe0] sm:$0xff] %v1865_v44  ;;  %1868 = vst [vmem:[%s2516_s15 + $0xe8] sm:$0xff] %v1867_v49  ;;  %v1871_v52 = vld [vmem:[%s2520_s20 + $0xf8] sm:$0xff]  ;;  %v1873_v46 = vld [vmem:[%s2520_s20 + $0x100] sm:$0xff] }
 0x245   : >> { %1870 = vst [vmem:[%s2516_s15 + $0xf0] sm:$0xff] %v1869_v51  ;;  %1872 = vst [vmem:[%s2516_s15 + $0xf8] sm:$0xff] %v1871_v52  ;;  %v1875_v53 = vld [vmem:[%s2520_s20 + $0x108] sm:$0xff]  ;;  %v1877_v54 = vld [vmem:[%s2520_s20 + $0x110] sm:$0xff] }
 0x246   : >> { %1874 = vst [vmem:[%s2516_s15 + $0x100] sm:$0xff] %v1873_v46  ;;  %v1879_v58 = vld [vmem:[%s2520_s20 + $0x118] sm:$0xff]  ;;  %1876 = vst [vmem:[%s2516_s15 + $0x108] sm:$0xff] %v1875_v53  ;;  %v1881_v59 = vld [vmem:[%s2520_s20 + $0x120] sm:$0xff] }
 0x247   : >> { %1878 = vst [vmem:[%s2516_s15 + $0x110] sm:$0xff] %v1877_v54  ;;  %1880 = vst [vmem:[%s2516_s15 + $0x118] sm:$0xff] %v1879_v58  ;;  %v1883_v60 = vld [vmem:[%s2520_s20 + $0x128] sm:$0xff]  ;;  %v1885_v61 = vld [vmem:[%s2520_s20 + $0x130] sm:$0xff] }
 0x248   : >> { %1882 = vst [vmem:[%s2516_s15 + $0x120] sm:$0xff] %v1881_v59  ;;  %1884 = vst [vmem:[%s2516_s15 + $0x128] sm:$0xff] %v1883_v60  ;;  %v1887_v55 = vld [vmem:[%s2520_s20 + $0x138] sm:$0xff]  ;;  %v1889_v50 = vld [vmem:[%s2520_s20 + $0x140] sm:$0xff] }
 0x249   : >> { %1886 = vst [vmem:[%s2516_s15 + $0x130] sm:$0xff] %v1885_v61  ;;  %v1891_v62 = vld [vmem:[%s2520_s20 + $0x148] sm:$0xff]  ;;  %1888 = vst [vmem:[%s2516_s15 + $0x138] sm:$0xff] %v1887_v55  ;;  %v1893_v63 = vld [vmem:[%s2520_s20 + $0x150] sm:$0xff] }
 0x24a   : >> { %1890 = vst [vmem:[%s2516_s15 + $0x140] sm:$0xff] %v1889_v50  ;;  %1892 = vst [vmem:[%s2516_s15 + $0x148] sm:$0xff] %v1891_v62  ;;  %v1895_v0 = vld [vmem:[%s2520_s20 + $0x158] sm:$0xff]  ;;  %v1897_v4 = vld [vmem:[%s2520_s20 + $0x160] sm:$0xff] }
 0x24b   : >> { %1894 = vst [vmem:[%s2516_s15 + $0x150] sm:$0xff] %v1893_v63  ;;  %1896 = vst [vmem:[%s2516_s15 + $0x158] sm:$0xff] %v1895_v0  ;;  %v1899_v5 = vld [vmem:[%s2520_s20 + $0x168] sm:$0xff]  ;;  %v1901_v1 = vld [vmem:[%s2520_s20 + $0x170] sm:$0xff] }
 0x24c   : >> { %1898 = vst [vmem:[%s2516_s15 + $0x160] sm:$0xff] %v1897_v4  ;;  %v1903_v6 = vld [vmem:[%s2520_s20 + $0x178] sm:$0xff]  ;;  %1900 = vst [vmem:[%s2516_s15 + $0x168] sm:$0xff] %v1899_v5  ;;  %v1905_v7 = vld [vmem:[%s2520_s20 + $0x180] sm:$0xff] }
 0x24d   : >> { %1902 = vst [vmem:[%s2516_s15 + $0x170] sm:$0xff] %v1901_v1  ;;  %1904 = vst [vmem:[%s2516_s15 + $0x178] sm:$0xff] %v1903_v6  ;;  %v1907_v56 = vld [vmem:[%s2520_s20 + $0x188] sm:$0xff]  ;;  %v1909_v8 = vld [vmem:[%s2520_s20 + $0x190] sm:$0xff] }
 0x24e   : >> { %1906 = vst [vmem:[%s2516_s15 + $0x180] sm:$0xff] %v1905_v7  ;;  %1908 = vst [vmem:[%s2516_s15 + $0x188] sm:$0xff] %v1907_v56  ;;  %v1911_v9 = vld [vmem:[%s2520_s20 + $0x198] sm:$0xff]  ;;  %v1913_v10 = vld [vmem:[%s2520_s20 + $0x1a0] sm:$0xff] }
 0x24f   : >> { %1910 = vst [vmem:[%s2516_s15 + $0x190] sm:$0xff] %v1909_v8  ;;  %v1915_v11 = vld [vmem:[%s2520_s20 + $0x1a8] sm:$0xff]  ;;  %1912 = vst [vmem:[%s2516_s15 + $0x198] sm:$0xff] %v1911_v9  ;;  %v1917_v12 = vld [vmem:[%s2520_s20 + $0x1b0] sm:$0xff]  ;;  %1805 = sbr.rel (!%p1802_p12) target bundleno = 565 (0x235), region = 122 }
 0x250   : >> { %1914 = vst [vmem:[%s2516_s15 + $0x1a0] sm:$0xff] %v1913_v10  ;;  %1916 = vst [vmem:[%s2516_s15 + $0x1a8] sm:$0xff] %v1915_v11  ;;  %v1919_v13 = vld [vmem:[%s2520_s20 + $0x1b8] sm:$0xff]  ;;  %v1921_v15 = vld [vmem:[%s2520_s20 + $0x1c0] sm:$0xff] }
 0x251   : >> { %1918 = vst [vmem:[%s2516_s15 + $0x1b0] sm:$0xff] %v1917_v12  ;;  %1920 = vst [vmem:[%s2516_s15 + $0x1b8] sm:$0xff] %v1919_v13  ;;  %v1923_v16 = vld [vmem:[%s2520_s20 + $0x1c8] sm:$0xff]  ;;  %v1925_v17 = vld [vmem:[%s2520_s20 + $0x1d0] sm:$0xff] }
 0x252   : >> { %1922 = vst [vmem:[%s2516_s15 + $0x1c0] sm:$0xff] %v1921_v15  ;;  %v1927_v2 = vld [vmem:[%s2520_s20 + $0x1d8] sm:$0xff]  ;;  %1924 = vst [vmem:[%s2516_s15 + $0x1c8] sm:$0xff] %v1923_v16  ;;  %v1929_v18 = vld [vmem:[%s2520_s20 + $0x1e0] sm:$0xff] }
 0x253   : >> { %1926 = vst [vmem:[%s2516_s15 + $0x1d0] sm:$0xff] %v1925_v17  ;;  %1928 = vst [vmem:[%s2516_s15 + $0x1d8] sm:$0xff] %v1927_v2  ;;  %v1931_v19 = vld [vmem:[%s2520_s20 + $0x1e8] sm:$0xff]  ;;  %v1933_v20 = vld [vmem:[%s2520_s20 + $0x1f0] sm:$0xff] }
 0x254   : >> { %1930 = vst [vmem:[%s2516_s15 + $0x1e0] sm:$0xff] %v1929_v18  ;;  %1932 = vst [vmem:[%s2516_s15 + $0x1e8] sm:$0xff] %v1931_v19  ;;  %v1935_v21 = vld [vmem:[%s2520_s20 + $0x1f8] sm:$0xff]  ;;  %s3485_s20 = smov %s3351_s25 }
 0x255   : >> { %1934 = vst [vmem:[%s2516_s15 + $0x1f0] sm:$0xff] %v1933_v20  ;;  %1936 = vst [vmem:[%s2516_s15 + $0x1f8] sm:$0xff] %v1935_v21  ;;  %s3484_s15 = smov %s3354_s26 }
 0x256 PF: > { %s3459_s28 = sand.u32 63, %s3491_s8   ;;  %s2163_s29 = sshll.u32 %s3284_s18, 9 }
 0x257   : > { %s1948_s30 = scalar_lea.vmem %s3102_s12, %s2163_s29 [#allocation2]   ;;  %s1950_s4 = scalar_lea.vmem %s3278_s14, %s2163_s29  }
 0x258   : > { %p2156_p13 = scmp.le.s32.totalorder %s3459_s28, 0 }
 0x259   : > { %s2530_s5 = smov (!%p2156_p13), %s1950_s4   ;;  %s2534_s6 = smov (!%p2156_p13), %s1948_s30  }
 0x25a   : > { %2041 = sbr.rel (%p2156_p13) target bundleno = 619 (0x26b), region = 127  ;;  %s2538_s21 = smov (!%p2156_p13), 0  }
 0x25b   : > { %s2542_s7 = smov (!%p2156_p13), 0  }
 0x261 LB: >> { %v1960_v22 = vld [vmem:[%s2536_s6] sm:$0xff]  ;;  %s1962_s8 = sadd.s32 1, %s2540_s21  ;;  %s1954_s7 = sadd.s32 1, %s2544_s7   ;;  %s2544_s7 = sphi %s2542_s7, %s1954_s7   ;;  %s2540_s21 = sphi %s2538_s21, %s2539_s21   ;;  %s2536_s6 = sphi %s2534_s6, %s1967_s6   ;;  %s2532_s5 = sphi %s2530_s5, %s1968_s5  }
 0x262   : >> { %1961 = vst [vmem:[%s2532_s5] sm:$0xff] %v1960_v22  ;;  %p1963_p0 = scmp.ge.s32.totalorder %s1962_s8, %s3459_s28  ;;  %p1953_p1 = scmp.ge.s32.totalorder %s1954_s7, %s3459_s28 }
 0x264   : >> { %s3495_s8 = smov (%p1963_p0, %s1962_s8), 0  ;;  %1956 = sbr.rel (!%p1953_p1) target bundleno = 609 (0x261), region = 133 }
 0x265   : >> { %s2157_s12 = sshll.u32 %s3495_s8, 3  ;;  %s2539_s21 = smov %s3495_s8  }
 0x266   : >> { %s1967_s6 = scalar_lea.vmem %s1948_s30, %s2157_s12 [#allocation2]   ;;  %s1968_s5 = scalar_lea.vmem %s1950_s4, %s2157_s12  }
 0x26b PF: > { %p10_p2 = scmp.ge.s32.totalorder %s2582_s16, 4   ;;  %s3487_s12 = smov %s2508_s13 }
 0x26c   : > { %s3488_s13 = smov %s2590_s19  ;;  %s3489_s14 = smov %s2582_s16 }
 0x26d   :  { %12 = sbr.rel (!%p10_p2) target bundleno = 2 (0x2), region = 144 }

// kernel: lane_net_forward.6
= control target key start
LH: loop header
LB: loop body
LE: loop exit
PB: predicated region body
PF: predicated region fallthrough
CT: control target
= control target key end

     0   :  { %s2008_s12 = smov 0   ;;  %s2010_s13 = smov 0   ;;  %s2672_s0 = inlined_call_operand.vmem [shape: f32[200,800], index: 0, kind: input, shape index: {}]   ;;  %s2673_s1 = inlined_call_operand.vmem [shape: f32[800,128], index: 1, kind: input, shape index: {}]   ;;  %s2674_s2 = inlined_call_operand.vmem [shape: f32[1,128], index: 2, kind: input, shape index: {}]   ;;  %s2675_s3 = inlined_call_operand.vmem [shape: f32[200,128], index: 3, kind: output, shape index: {}]  }
   0x1   :  { %s2012_s14 = smov 0  }
   0x2 LB: > { %s2021_s15 = sadd.s32 4294967295, %s1954_s14   ;;  %s2023_s16 = sadd.s32 1, %s1954_s14   ;;  %s1954_s14 = sphi %s2012_s14, %s2682_s14   ;;  %s1950_s13 = sphi %s2010_s13, %s2681_s13   ;;  %s1946_s12 = sphi %s2008_s12, %s2680_s12  }
   0x3   : > { %s85_s17 = ssub.s32 %s1954_s14, %s2023_s16  ;;  %s88_s18 = sadd.s32 1, %s1950_s13 }
   0x4   : > { %p86_p0 = scmp.eq.s32.totalorder %s85_s17, 0  ;;  %p98_p1 = scmp.ne.s32.totalorder %s1950_s13, %s1946_s12 }
   0x5   : > { %p99_p2 = scmp.eq.s32.totalorder %s2021_s15, 1  ;;  %p1358_p3 = scmp.ge.s32.totalorder %s1954_s14, 1 }
   0x6   : > { %s2031_s19 = scalar_select %p86_p0, %s1950_s13, %s88_s18  }
   0x7   : > { %p2033_p4 = por %p99_p2, %p98_p1  ;;  %p149_p5 = scmp.lt.s32.totalorder %s1954_s14, 3 }
   0x9   : > { %p150_p6 = pnand %p1358_p3, %p149_p5 }
   0xa   : > { %v328_v0 = vld [vmem:[%s2673_s1 + $0x80] sm:$0xff] (!%p150_p6)  ;;  %v329_v1 = vld [vmem:[%s2673_s1 + $0x88] sm:$0xff] (!%p150_p6)  ;;  %v330_v11 = vld [vmem:[%s2673_s1 + $0x90] sm:$0xff] (!%p150_p6)  ;;  %s2074_s24 = sshll.u32 (!%p150_p6), %s2021_s15, 4  ;;  %vm419_vm0 = vcmask (!%p150_p6), 261120  }
   0xb   : > { %153 = sbr.rel (%p150_p6) target bundleno = 425 (0x1a9), region = 32  ;;  %v360_v2 = vld [vmem:[%s2673_s1 + $0x180] sm:$0xff] (!%p150_p6)  ;;  %v1691_v3 = vpack.c.bf16 (!%p150_p6), %v329_v1, %v328_v0  ;;  %v361_v4 = vld [vmem:[%s2673_s1 + $0x188] sm:$0xff] (!%p150_p6)  ;;  %v331_v13 = vld [vmem:[%s2673_s1 + $0x98] sm:$0xff] (!%p150_p6)  ;;  %p184_p7 = scmp.lt.s32.totalorder (!%p150_p6), %s2074_s24, 24 }
   0xc   : > { %v312_v5 = vld [vmem:[%s2673_s1] sm:$0xff] (!%p150_p6)  ;;  %v313_v6 = vld [vmem:[%s2673_s1 + $0x8] sm:$0xff] (!%p150_p6)  ;;  %v1723_v7 = vpack.c.bf16 (!%p150_p6), %v361_v4, %v360_v2  ;;  %v362_v14 = vld [vmem:[%s2673_s1 + $0x190] sm:$0xff] (!%p150_p6)  ;;  %v1695_v16 = vpack.c.bf16 (!%p150_p6), %v331_v13, %v330_v11 }
   0xd   : > { %v1693_v8 = vpack.c.bf16 (!%p150_p6), %v313_v6, %v312_v5  ;;  %v344_v9 = vld [vmem:[%s2673_s1 + $0x100] sm:$0xff] (!%p150_p6)  ;;  %v345_v10 = vld [vmem:[%s2673_s1 + $0x108] sm:$0xff] (!%p150_p6)  ;;  %1692 = vmatprep.subr.bf16.mxu0 (!%p150_p6), %v1691_v3  ;;  %v363_v15 = vld [vmem:[%s2673_s1 + $0x198] sm:$0xff] (!%p150_p6) }
   0xe   : > { %v1725_v12 = vpack.c.bf16 (!%p150_p6), %v345_v10, %v344_v9  ;;  %1724 = vmatprep.subr.bf16.mxu1 (!%p150_p6), %v1723_v7  ;;  %v1727_v17 = vpack.c.bf16 (!%p150_p6), %v363_v15, %v362_v14  ;;  %v314_v18 = vld [vmem:[%s2673_s1 + $0x10] sm:$0xff] (!%p150_p6)  ;;  %v315_v19 = vld [vmem:[%s2673_s1 + $0x18] sm:$0xff] (!%p150_p6)  ;;  %v332_v23 = vld [vmem:[%s2673_s1 + $0xa0] sm:$0xff] (!%p150_p6) }
   0xf   : > { %1694 = vmatpush3.bf16.msra.mxu0 (!%p150_p6), %v1693_v8  ;;  %v346_v20 = vld [vmem:[%s2673_s1 + $0x110] sm:$0xff] (!%p150_p6)  ;;  %v1697_v21 = vpack.c.bf16 (!%p150_p6), %v315_v19, %v314_v18  ;;  %v347_v22 = vld [vmem:[%s2673_s1 + $0x118] sm:$0xff] (!%p150_p6)  ;;  %v333_v24 = vld [vmem:[%s2673_s1 + $0xa8] sm:$0xff] (!%p150_p6) }
  0x10   : > { %1726 = vmatpush3.bf16.msra.mxu1 (!%p150_p6), %v1725_v12  ;;  %1696 = vmatprep.subr.bf16.mxu0 (!%p150_p6), %v1695_v16  ;;  %v1729_v25 = vpack.c.bf16 (!%p150_p6), %v347_v22, %v346_v20  ;;  %v1699_v26 = vpack.c.bf16 (!%p150_p6), %v333_v24, %v332_v23  ;;  %v364_v27 = vld [vmem:[%s2673_s1 + $0x1a0] sm:$0xff] (!%p150_p6)  ;;  %v365_v28 = vld [vmem:[%s2673_s1 + $0x1a8] sm:$0xff] (!%p150_p6)  ;;  %v334_v35 = vld [vmem:[%s2673_s1 + $0xb0] sm:$0xff] (!%p150_p6) }
  0x11   : > { %1728 = vmatprep.subr.bf16.mxu1 (!%p150_p6), %v1727_v17  ;;  %v316_v29 = vld [vmem:[%s2673_s1 + $0x20] sm:$0xff] (!%p150_p6)  ;;  %v1731_v30 = vpack.c.bf16 (!%p150_p6), %v365_v28, %v364_v27  ;;  %v317_v31 = vld [vmem:[%s2673_s1 + $0x28] sm:$0xff] (!%p150_p6)  ;;  %v335_v36 = vld [vmem:[%s2673_s1 + $0xb8] sm:$0xff] (!%p150_p6) }
  0x12   : > { %v348_v32 = vld [vmem:[%s2673_s1 + $0x120] sm:$0xff]  ;;  %v349_v33 = vld [vmem:[%s2673_s1 + $0x128] sm:$0xff]  ;;  %v1701_v34 = vpack.c.bf16 %v317_v31, %v316_v29  ;;  %v366_v37 = vld [vmem:[%s2673_s1 + $0x1b0] sm:$0xff]  ;;  %v1703_v39 = vpack.c.bf16 %v335_v36, %v334_v35  ;;  %s2143_s27 = scalar_select %p184_p7, %s2074_s24, 24 }
  0x13   : > { %1698 = vmatpush3.bf16.msra.mxu0 %v1697_v21  ;;  %v1733_v38 = vpack.c.bf16 %v349_v33, %v348_v32  ;;  %v367_v40 = vld [vmem:[%s2673_s1 + $0x1b8] sm:$0xff]  ;;  %v318_v41 = vld [vmem:[%s2673_s1 + $0x30] sm:$0xff]  ;;  %v336_v46 = vld [vmem:[%s2673_s1 + $0xc0] sm:$0xff]  ;;  %s1396_s8 = sshll.u32 (%p2033_p4), %s2021_s15, 7 }
  0x14   : > { %1730 = vmatpush3.bf16.msra.mxu1 %v1729_v25  ;;  %1700 = vmatprep.subr.bf16.mxu0 %v1699_v26  ;;  %v319_v42 = vld [vmem:[%s2673_s1 + $0x38] sm:$0xff]  ;;  %v1735_v43 = vpack.c.bf16 %v367_v40, %v366_v37  ;;  %v350_v44 = vld [vmem:[%s2673_s1 + $0x130] sm:$0xff]  ;;  %v337_v47 = vld [vmem:[%s2673_s1 + $0xc8] sm:$0xff]  ;;  %s1811_s26 = smul.u32 56, %s2143_s27  ;;  %s2579_s11 = scalar_lea.vmem (%p2033_p4), %s2675_s3, %s1396_s8  }
  0x15   : > { %1732 = vmatprep.subr.bf16.mxu1 %v1731_v30  ;;  %v351_v45 = vld [vmem:[%s2673_s1 + $0x138] sm:$0xff]  ;;  %v368_v48 = vld [vmem:[%s2673_s1 + $0x1c0] sm:$0xff]  ;;  %v369_v49 = vld [vmem:[%s2673_s1 + $0x1c8] sm:$0xff]  ;;  %v1705_v50 = vpack.c.bf16 %v319_v42, %v318_v41  ;;  %v1707_v52 = vpack.c.bf16 %v337_v47, %v336_v46 }
  0x16   : > { %v1737_v51 = vpack.c.bf16 %v351_v45, %v350_v44  ;;  %v320_v53 = vld [vmem:[%s2673_s1 + $0x40] sm:$0xff]  ;;  %v321_v54 = vld [vmem:[%s2673_s1 + $0x48] sm:$0xff]  ;;  %v1739_v56 = vpack.c.bf16 %v369_v49, %v368_v48  ;;  %v338_v58 = vld [vmem:[%s2673_s1 + $0xd0] sm:$0xff]  ;;  %s2200_s25 = scalar_lea.vmem %s2672_s0, %s1811_s26  ;;  %s1088_s26 = ssub.s32 (%p2033_p4), 25, %s2074_s24 }
  0x17   : > { %1702 = vmatpush3.bf16.msra.mxu0 %v1701_v34  ;;  %v352_v55 = vld [vmem:[%s2673_s1 + $0x140] sm:$0xff]  ;;  %v353_v57 = vld [vmem:[%s2673_s1 + $0x148] sm:$0xff]  ;;  %v339_v59 = vld [vmem:[%s2673_s1 + $0xd8] sm:$0xff]  ;;  %v1709_v62 = vpack.c.bf16 %v321_v54, %v320_v53  ;;  %p1089_p8 = scmp.lt.s32.totalorder (%p2033_p4), %s1088_s26, 16 }
  0x18   : > { %1734 = vmatpush3.bf16.msra.mxu1 %v1733_v38  ;;  %1704 = vmatprep.subr.bf16.mxu0 %v1703_v39  ;;  %v370_v60 = vld [vmem:[%s2673_s1 + $0x1d0] sm:$0xff]  ;;  %v371_v61 = vld [vmem:[%s2673_s1 + $0x1d8] sm:$0xff]  ;;  %v1741_v63 = vpack.c.bf16 %v353_v57, %v352_v55  ;;  %v1711_v0 = vpack.c.bf16 %v339_v59, %v338_v58  ;;  %v340_v6 = vld [vmem:[%s2673_s1 + $0xe0] sm:$0xff] }
  0x19   : > { %1736 = vmatprep.subr.bf16.mxu1 %v1735_v43  ;;  %v322_v1 = vld [vmem:[%s2673_s1 + $0x50] sm:$0xff]  ;;  %v323_v2 = vld [vmem:[%s2673_s1 + $0x58] sm:$0xff]  ;;  %v1743_v4 = vpack.c.bf16 %v371_v61, %v370_v60  ;;  %v341_v7 = vld [vmem:[%s2673_s1 + $0xe8] sm:$0xff] }
  0x1a   : > { %v354_v3 = vld [vmem:[%s2673_s1 + $0x150] sm:$0xff]  ;;  %v355_v5 = vld [vmem:[%s2673_s1 + $0x158] sm:$0xff]  ;;  %v372_v8 = vld [vmem:[%s2673_s1 + $0x1e0] sm:$0xff]  ;;  %v1713_v10 = vpack.c.bf16 %v323_v2, %v322_v1  ;;  %v1715_v14 = vpack.c.bf16 %v341_v7, %v340_v6 }
  0x1b   : > { %1706 = vmatpush3.bf16.msra.mxu0 %v1705_v50  ;;  %v373_v9 = vld [vmem:[%s2673_s1 + $0x1e8] sm:$0xff]  ;;  %v324_v11 = vld [vmem:[%s2673_s1 + $0x60] sm:$0xff]  ;;  %v1745_v13 = vpack.c.bf16 %v355_v5, %v354_v3  ;;  %v203_v17 = vld [vmem:[%s2200_s25 + $0x18] sm:$0xff] }
  0x1c   : > { %1738 = vmatpush3.bf16.msra.mxu1 %v1737_v51  ;;  %1708 = vmatprep.subr.bf16.mxu0 %v1707_v52  ;;  %v325_v12 = vld [vmem:[%s2673_s1 + $0x68] sm:$0xff]  ;;  %v356_v15 = vld [vmem:[%s2673_s1 + $0x160] sm:$0xff]  ;;  %v1747_v18 = vpack.c.bf16 %v373_v9, %v372_v8  ;;  %v342_v20 = vld [vmem:[%s2673_s1 + $0xf0] sm:$0xff] }
  0x1d   : > { %1740 = vmatprep.subr.bf16.mxu1 %v1739_v56  ;;  %v201_v16 = vld [vmem:[%s2200_s25 + $0x8] sm:$0xff]  ;;  %v343_v21 = vld [vmem:[%s2673_s1 + $0xf8] sm:$0xff]  ;;  %v374_v22 = vld [vmem:[%s2673_s1 + $0x1f0] sm:$0xff]  ;;  %677 = vmatprep.mubr.f32.mxu1 %v203_v17  ;;  %v1717_v24 = vpack.c.bf16 %v325_v12, %v324_v11 }
  0x1e   : > { %v357_v19 = vld [vmem:[%s2673_s1 + $0x168] sm:$0xff]  ;;  %532 = vmatprep.mubr.f32.mxu0 %v201_v16  ;;  %v375_v23 = vld [vmem:[%s2673_s1 + $0x1f8] sm:$0xff]  ;;  %v1719_v26 = vpack.c.bf16 %v343_v21, %v342_v20  ;;  %v326_v27 = vld [vmem:[%s2673_s1 + $0x70] sm:$0xff] }
  0x1f   : > { %1710 = vmatpush3.bf16.msra.mxu0 %v1709_v62  ;;  %v1749_v25 = vpack.c.bf16 %v357_v19, %v356_v15  ;;  %v327_v28 = vld [vmem:[%s2673_s1 + $0x78] sm:$0xff]  ;;  %v358_v29 = vld [vmem:[%s2673_s1 + $0x170] sm:$0xff]  ;;  %v1751_v30 = vpack.c.bf16 %v375_v23, %v374_v22  ;;  %v392_v32 = vld [vmem:[%s2673_s1 + $0x280] sm:$0xff] }
  0x20   : > { %1742 = vmatpush3.bf16.msra.mxu1 %v1741_v63  ;;  %1712 = vmatprep.subr.bf16.mxu0 %v1711_v0  ;;  %v359_v31 = vld [vmem:[%s2673_s1 + $0x178] sm:$0xff]  ;;  %v393_v33 = vld [vmem:[%s2673_s1 + $0x288] sm:$0xff]  ;;  %v1721_v34 = vpack.c.bf16 %v327_v28, %v326_v27  ;;  %v376_v37 = vld [vmem:[%s2673_s1 + $0x200] sm:$0xff] }
  0x21   : > { %1744 = vmatprep.subr.bf16.mxu1 %v1743_v4  ;;  %v1753_v35 = vpack.c.bf16 %v359_v31, %v358_v29  ;;  %v1755_v36 = vpack.c.bf16 %v393_v33, %v392_v32  ;;  %v377_v38 = vld [vmem:[%s2673_s1 + $0x208] sm:$0xff]  ;;  %v394_v39 = vld [vmem:[%s2673_s1 + $0x290] sm:$0xff]  ;;  %v395_v40 = vld [vmem:[%s2673_s1 + $0x298] sm:$0xff] }
  0x22   : > { %v200_v41 = vld [vmem:[%s2200_s25] sm:$0xff]  ;;  %v1757_v42 = vpack.c.bf16 %v377_v38, %v376_v37  ;;  %v202_v43 = vld [vmem:[%s2200_s25 + $0x10] sm:$0xff]  ;;  %v1759_v46 = vpack.c.bf16 %v395_v40, %v394_v39  ;;  %v379_v48 = vld [vmem:[%s2673_s1 + $0x218] sm:$0xff] }
  0x23   : > { %1714 = vmatpush3.bf16.msra.mxu0 %v1713_v10  ;;  %v208_v44 = vld [vmem:[%s2200_s25 + $0x40] sm:$0xff]  ;;  %v210_v45 = vld [vmem:[%s2200_s25 + $0x50] sm:$0xff]  ;;  %v397_v50 = vld [vmem:[%s2673_s1 + $0x2a8] sm:$0xff] }
  0x24   : > { %1746 = vmatpush3.bf16.msra.mxu1 %v1745_v13  ;;  %1716 = vmatprep.subr.bf16.mxu0 %v1715_v14  ;;  %v378_v47 = vld [vmem:[%s2673_s1 + $0x210] sm:$0xff]  ;;  %v396_v49 = vld [vmem:[%s2673_s1 + $0x2a0] sm:$0xff]  ;;  %v207_v51 = vld [vmem:[%s2200_s25 + $0x38] sm:$0xff] }
  0x25   : > { %1748 = vmatprep.subr.bf16.mxu1 %v1747_v18  ;;  %v209_v52 = vld [vmem:[%s2200_s25 + $0x48] sm:$0xff]  ;;  %v215_v53 = vld [vmem:[%s2200_s25 + $0x78] sm:$0xff]  ;;  %v1761_v54 = vpack.c.bf16 %v379_v48, %v378_v47  ;;  %v1763_v56 = vpack.c.bf16 %v397_v50, %v396_v49  ;;  %v380_v57 = vld [vmem:[%s2673_s1 + $0x220] sm:$0xff] }
  0x26   : > { %v217_v55 = vld [vmem:[%s2200_s25 + $0x88] sm:$0xff]  ;;  %v398_v59 = vld [vmem:[%s2673_s1 + $0x2b0] sm:$0xff]  ;;  %v399_v60 = vld [vmem:[%s2673_s1 + $0x2b8] sm:$0xff] }
  0x27   : > { %1718 = vmatpush3.bf16.msra.mxu0 %v1717_v24  ;;  %v381_v58 = vld [vmem:[%s2673_s1 + $0x228] sm:$0xff]  ;;  %v214_v61 = vld [vmem:[%s2200_s25 + $0x70] sm:$0xff]  ;;  %v216_v62 = vld [vmem:[%s2200_s25 + $0x80] sm:$0xff]  ;;  %v1767_v2 = vpack.c.bf16 %v399_v60, %v398_v59 }
  0x28   : > { %1750 = vmatpush3.bf16.msra.mxu1 %v1749_v25  ;;  %1720 = vmatprep.subr.bf16.mxu0 %v1719_v26  ;;  %v222_v63 = vld [vmem:[%s2200_s25 + $0xb0] sm:$0xff]  ;;  %v1765_v0 = vpack.c.bf16 %v381_v58, %v380_v57  ;;  %v224_v1 = vld [vmem:[%s2200_s25 + $0xc0] sm:$0xff]  ;;  %v383_v4 = vld [vmem:[%s2673_s1 + $0x238] sm:$0xff] }
  0x29   : > { %1752 = vmatprep.subr.bf16.mxu1 %v1751_v30  ;;  %v382_v3 = vld [vmem:[%s2673_s1 + $0x230] sm:$0xff]  ;;  %v400_v5 = vld [vmem:[%s2673_s1 + $0x2c0] sm:$0xff]  ;;  %v401_v6 = vld [vmem:[%s2673_s1 + $0x2c8] sm:$0xff] }
  0x2a   : > { %v221_v7 = vld [vmem:[%s2200_s25 + $0xa8] sm:$0xff]  ;;  %v223_v8 = vld [vmem:[%s2200_s25 + $0xb8] sm:$0xff]  ;;  %v1769_v10 = vpack.c.bf16 %v383_v4, %v382_v3  ;;  %v1771_v12 = vpack.c.bf16 %v401_v6, %v400_v5  ;;  %v384_v13 = vld [vmem:[%s2673_s1 + $0x240] sm:$0xff] }
  0x2b   : > { %1722 = vmatpush3.bf16.msra.mxu0 %v1721_v34  ;;  %v229_v9 = vld [vmem:[%s2200_s25 + $0xe8] sm:$0xff]  ;;  %v231_v11 = vld [vmem:[%s2200_s25 + $0xf8] sm:$0xff]  ;;  %v402_v15 = vld [vmem:[%s2673_s1 + $0x2d0] sm:$0xff] }
  0x2c   : > { %1754 = vmatpush3.bf16.msra.mxu1 %v1753_v35  ;;  %1756 = vmatprep.subr.bf16.mxu0 %v1755_v36  ;;  %v385_v14 = vld [vmem:[%s2673_s1 + $0x248] sm:$0xff]  ;;  %v403_v16 = vld [vmem:[%s2673_s1 + $0x2d8] sm:$0xff]  ;;  %v228_v17 = vld [vmem:[%s2200_s25 + $0xe0] sm:$0xff] }
  0x2d   : > { %1795 = vmatprep.subr.bf16.mxu1 %v1755_v36  ;;  %v230_v18 = vld [vmem:[%s2200_s25 + $0xf0] sm:$0xff]  ;;  %v236_v19 = vld [vmem:[%s2200_s25 + $0x120] sm:$0xff]  ;;  %v1773_v20 = vpack.c.bf16 %v385_v14, %v384_v13  ;;  %v1775_v22 = vpack.c.bf16 %v403_v16, %v402_v15  ;;  %v387_v24 = vld [vmem:[%s2673_s1 + $0x258] sm:$0xff] }
  0x2e   : > { %533 = vmatmul.mubr.f32.vlgmr.msra.gmra.mrb[0].mxu0 %v200_v41  ;;  %v238_v21 = vld [vmem:[%s2200_s25 + $0x130] sm:$0xff]  ;;  %v404_v25 = vld [vmem:[%s2673_s1 + $0x2e0] sm:$0xff]  ;;  %v405_v26 = vld [vmem:[%s2673_s1 + $0x2e8] sm:$0xff] }
  0x2f   : > { %678 = vmatmul.mubr.f32.vlgmr.msra.gmra.mrb[0].mxu1 %v202_v43  ;;  %1758 = vmatpush3.bf16.msra.mxu0 %v1757_v42  ;;  %v386_v23 = vld [vmem:[%s2673_s1 + $0x250] sm:$0xff]  ;;  %v235_v27 = vld [vmem:[%s2200_s25 + $0x118] sm:$0xff]  ;;  %v237_v28 = vld [vmem:[%s2200_s25 + $0x128] sm:$0xff]  ;;  %v1779_v32 = vpack.c.bf16 %v405_v26, %v404_v25 }
  0x30   : > { %537 = vmatprep.mubr.f32.mxu0 %v208_v44  ;;  %682 = vmatprep.mubr.f32.mxu1 %v210_v45  ;;  %v243_v29 = vld [vmem:[%s2200_s25 + $0x158] sm:$0xff]  ;;  %v1777_v30 = vpack.c.bf16 %v387_v24, %v386_v23  ;;  %v245_v31 = vld [vmem:[%s2200_s25 + $0x168] sm:$0xff]  ;;  %v388_v33 = vld [vmem:[%s2673_s1 + $0x260] sm:$0xff] }
  0x31   : > { %1803 = vmatpush3.bf16.msra.mxu1 %v1757_v42  ;;  %1760 = vmatprep.subr.bf16.mxu0 %v1759_v46  ;;  %v389_v34 = vld [vmem:[%s2673_s1 + $0x268] sm:$0xff]  ;;  %v406_v35 = vld [vmem:[%s2673_s1 + $0x2f0] sm:$0xff]  ;;  %v407_v36 = vld [vmem:[%s2673_s1 + $0x2f8] sm:$0xff] }
  0x32   : > { %538 = vmatmul.mubr.f32.gmra.mrb[2].mxu0 %v207_v51  ;;  %1796 = vmatprep.subr.bf16.mxu1 %v1759_v46  ;;  %v242_v37 = vld [vmem:[%s2200_s25 + $0x150] sm:$0xff]  ;;  %v244_v38 = vld [vmem:[%s2200_s25 + $0x160] sm:$0xff]  ;;  %v1781_v40 = vpack.c.bf16 %v389_v34, %v388_v33  ;;  %v1783_v42 = vpack.c.bf16 %v407_v36, %v406_v35  ;;  %v391_v44 = vld [vmem:[%s2673_s1 + $0x278] sm:$0xff] }
  0x33   : > { %683 = vmatmul.mubr.f32.gmra.mrb[2].mxu1 %v209_v52  ;;  %542 = vmatprep.mubr.f32.mxu0 %v215_v53  ;;  %v250_v39 = vld [vmem:[%s2200_s25 + $0x190] sm:$0xff]  ;;  %v252_v41 = vld [vmem:[%s2200_s25 + $0x1a0] sm:$0xff]  ;;  %v249_v45 = vld [vmem:[%s2200_s25 + $0x188] sm:$0xff] }
  0x34   : > { %687 = vmatprep.mubr.f32.mxu1 %v217_v55  ;;  %1762 = vmatpush3.bf16.msra.mxu0 %v1761_v54  ;;  %v390_v43 = vld [vmem:[%s2673_s1 + $0x270] sm:$0xff]  ;;  %v408_v46 = vld [vmem:[%s2673_s1 + $0x300] sm:$0xff]  ;;  %v409_v47 = vld [vmem:[%s2673_s1 + $0x308] sm:$0xff] }
  0x35   : > { %1804 = vmatpush3.bf16.msra.mxu1 %v1761_v54  ;;  %1764 = vmatprep.subr.bf16.mxu0 %v1763_v56  ;;  %v251_v48 = vld [vmem:[%s2200_s25 + $0x198] sm:$0xff]  ;;  %v257_v49 = vld [vmem:[%s2200_s25 + $0x1c8] sm:$0xff]  ;;  %v1785_v50 = vpack.c.bf16 %v391_v44, %v390_v43  ;;  %v2380_v52 = vpack.c.bf16 %v409_v47, %v408_v46  ;;  %v256_v53 = vld [vmem:[%s2200_s25 + $0x1c0] sm:$0xff] }
  0x36   : > { %543 = vmatmul.mubr.f32.gmra.mrb[4].mxu0 %v214_v61  ;;  %1797 = vmatprep.subr.bf16.mxu1 %v1763_v56  ;;  %v259_v51 = vld [vmem:[%s2200_s25 + $0x1d8] sm:$0xff]  ;;  %v258_v54 = vld [vmem:[%s2200_s25 + $0x1d0] sm:$0xff]  ;;  %v264_v55 = vld [vmem:[%s2200_s25 + $0x200] sm:$0xff] }
  0x37   : > { %688 = vmatmul.mubr.f32.gmra.mrb[4].mxu1 %v216_v62  ;;  %547 = vmatprep.mubr.f32.mxu0 %v222_v63  ;;  %v266_v56 = vld [vmem:[%s2200_s25 + $0x210] sm:$0xff]  ;;  %v263_v57 = vld [vmem:[%s2200_s25 + $0x1f8] sm:$0xff]  ;;  %v265_v58 = vld [vmem:[%s2200_s25 + $0x208] sm:$0xff] }
  0x38   : > { %692 = vmatprep.mubr.f32.mxu1 %v224_v1  ;;  %1766 = vmatpush3.bf16.msra.mxu0 %v1765_v0  ;;  %v271_v59 = vld [vmem:[%s2200_s25 + $0x238] sm:$0xff]  ;;  %v273_v60 = vld [vmem:[%s2200_s25 + $0x248] sm:$0xff]  ;;  %v270_v61 = vld [vmem:[%s2200_s25 + $0x230] sm:$0xff] }
  0x39   : > { %1805 = vmatpush3.bf16.msra.mxu1 %v1765_v0  ;;  %1768 = vmatprep.subr.bf16.mxu0 %v1767_v2  ;;  %v272_v62 = vld [vmem:[%s2200_s25 + $0x240] sm:$0xff]  ;;  %v278_v63 = vld [vmem:[%s2200_s25 + $0x270] sm:$0xff]  ;;  %v277_v1 = vld [vmem:[%s2200_s25 + $0x268] sm:$0xff] }
  0x3a   : > { %548 = vmatmul.mubr.f32.gmra.mrb[6].mxu0 %v221_v7  ;;  %1798 = vmatprep.subr.bf16.mxu1 %v1767_v2  ;;  %v280_v0 = vld [vmem:[%s2200_s25 + $0x280] sm:$0xff]  ;;  %v279_v2 = vld [vmem:[%s2200_s25 + $0x278] sm:$0xff]  ;;  %v285_v3 = vld [vmem:[%s2200_s25 + $0x2a8] sm:$0xff] }
  0x3b   : > { %693 = vmatmul.mubr.f32.gmra.mrb[6].mxu1 %v223_v8  ;;  %552 = vmatprep.mubr.f32.mxu0 %v229_v9  ;;  %v287_v4 = vld [vmem:[%s2200_s25 + $0x2b8] sm:$0xff]  ;;  %v284_v5 = vld [vmem:[%s2200_s25 + $0x2a0] sm:$0xff]  ;;  %v286_v6 = vld [vmem:[%s2200_s25 + $0x2b0] sm:$0xff] }
  0x3c   : > { %697 = vmatprep.mubr.f32.mxu1 %v231_v11  ;;  %1770 = vmatpush3.bf16.msra.mxu0 %v1769_v10  ;;  %v292_v7 = vld [vmem:[%s2200_s25 + $0x2e0] sm:$0xff]  ;;  %v294_v8 = vld [vmem:[%s2200_s25 + $0x2f0] sm:$0xff]  ;;  %v291_v9 = vld [vmem:[%s2200_s25 + $0x2d8] sm:$0xff] }
  0x3d   : > { %1806 = vmatpush3.bf16.msra.mxu1 %v1769_v10  ;;  %1772 = vmatprep.subr.bf16.mxu0 %v1771_v12  ;;  %v293_v10 = vld [vmem:[%s2200_s25 + $0x2e8] sm:$0xff]  ;;  %v299_v11 = vld [vmem:[%s2200_s25 + $0x318] sm:$0xff]  ;;  %v298_v13 = vld [vmem:[%s2200_s25 + $0x310] sm:$0xff] }
  0x3e   : > { %553 = vmatmul.mubr.f32.gmra.mrb[8].mxu0 %v228_v17  ;;  %1799 = vmatprep.subr.bf16.mxu1 %v1771_v12  ;;  %v301_v12 = vld [vmem:[%s2200_s25 + $0x328] sm:$0xff]  ;;  %v300_v14 = vld [vmem:[%s2200_s25 + $0x320] sm:$0xff]  ;;  %v306_v15 = vld [vmem:[%s2200_s25 + $0x350] sm:$0xff] }
  0x3f   : > { %698 = vmatmul.mubr.f32.gmra.mrb[8].mxu1 %v230_v18  ;;  %557 = vmatprep.mubr.f32.mxu0 %v236_v19  ;;  %v308_v16 = vld [vmem:[%s2200_s25 + $0x360] sm:$0xff]  ;;  %v305_v17 = vld [vmem:[%s2200_s25 + $0x348] sm:$0xff]  ;;  %v307_v18 = vld [vmem:[%s2200_s25 + $0x358] sm:$0xff] }
  0x40   : > { %702 = vmatprep.mubr.f32.mxu1 %v238_v21  ;;  %1774 = vmatpush3.bf16.msra.mxu0 %v1773_v20  ;;  %v205_v19 = vld [vmem:[%s2200_s25 + $0x28] sm:$0xff]  ;;  %v410_v21 = vld [vmem:[%s2673_s1 + $0x310] sm:$0xff]  ;;  %v204_v23 = vld [vmem:[%s2200_s25 + $0x20] sm:$0xff] }
  0x41   : > { %1807 = vmatpush3.bf16.msra.mxu1 %v1773_v20  ;;  %1776 = vmatprep.subr.bf16.mxu0 %v1775_v22  ;;  %v289_v20 = vld [vmem:[%s2200_s25 + $0x2c8] sm:$0xff]  ;;  %v288_v24 = vld [vmem:[%s2200_s25 + $0x2c0] sm:$0xff]  ;;  %v302_v33 = vld [vmem:[%s2200_s25 + $0x330] sm:$0xff] }
  0x42   : > { %558 = vmatmul.mubr.f32.gmra.mrb[10].mxu0 %v235_v27  ;;  %1800 = vmatprep.subr.bf16.mxu1 %v1775_v22  ;;  %v411_v22 = vld [vmem:[%s2673_s1 + $0x318] sm:$0xff]  ;;  %v212_v25 = vld [vmem:[%s2200_s25 + $0x60] sm:$0xff]  ;;  %v226_v34 = vld [vmem:[%s2200_s25 + $0xd0] sm:$0xff] }
  0x43   : > { %703 = vmatmul.mubr.f32.gmra.mrb[10].mxu1 %v237_v28  ;;  %562 = vmatprep.mubr.f32.mxu0 %v243_v29  ;;  %v296_v26 = vld [vmem:[%s2200_s25 + $0x300] sm:$0xff]  ;;  %v1791_v27 = vpack.c.bf16 %v411_v22, %v410_v21  ;;  %v211_v28 = vld [vmem:[%s2200_s25 + $0x58] sm:$0xff]  ;;  %v310_v35 = vld [vmem:[%s2200_s25 + $0x370] sm:$0xff] }
  0x44   : > { %707 = vmatprep.mubr.f32.mxu1 %v245_v31  ;;  %1778 = vmatpush3.bf16.msra.mxu0 %v1777_v30  ;;  %v295_v29 = vld [vmem:[%s2200_s25 + $0x2f8] sm:$0xff]  ;;  %v225_v36 = vld [vmem:[%s2200_s25 + $0xc8] sm:$0xff]  ;;  %v220_v43 = vld [vmem:[%s2200_s25 + $0xa0] sm:$0xff] }
  0x45   : > { %1808 = vmatpush3.bf16.msra.mxu1 %v1777_v30  ;;  %1780 = vmatprep.subr.bf16.mxu0 %v1779_v32  ;;  %v219_v30 = vld [vmem:[%s2200_s25 + $0x98] sm:$0xff]  ;;  %v234_v47 = vld [vmem:[%s2200_s25 + $0x110] sm:$0xff] }
  0x46   : > { %563 = vmatmul.mubr.f32.gmra.mrb[12].mxu0 %v242_v37  ;;  %1801 = vmatprep.subr.bf16.mxu1 %v1779_v32  ;;  %v303_v31 = vld [vmem:[%s2200_s25 + $0x338] sm:$0xff]  ;;  %v218_v32 = vld [vmem:[%s2200_s25 + $0x90] sm:$0xff]  ;;  %v309_v37 = vld [vmem:[%s2200_s25 + $0x368] sm:$0xff] }
  0x47   : > { %708 = vmatmul.mubr.f32.gmra.mrb[12].mxu1 %v244_v38  ;;  %567 = vmatprep.mubr.f32.mxu0 %v250_v39  ;;  %v233_v38 = vld [vmem:[%s2200_s25 + $0x108] sm:$0xff]  ;;  %v206_v39 = vld [vmem:[%s2200_s25 + $0x30] sm:$0xff]  ;;  %v239_v44 = vld [vmem:[%s2200_s25 + $0x138] sm:$0xff] }
  0x48   : > { %712 = vmatprep.mubr.f32.mxu1 %v252_v41  ;;  %1782 = vmatpush3.bf16.msra.mxu0 %v1781_v40  ;;  %v213_v41 = vld [vmem:[%s2200_s25 + $0x68] sm:$0xff]  ;;  %v247_v46 = vld [vmem:[%s2200_s25 + $0x178] sm:$0xff] }
  0x49   : > { %1809 = vmatpush3.bf16.msra.mxu1 %v1781_v40  ;;  %1784 = vmatprep.subr.bf16.mxu0 %v1783_v42  ;;  %v232_v40 = vld [vmem:[%s2200_s25 + $0x100] sm:$0xff] }
  0x4a   : > { %568 = vmatmul.mubr.f32.gmra.mrb[14].mxu0 %v249_v45  ;;  %1802 = vmatprep.subr.bf16.mxu1 %v1783_v42  ;;  %v240_v42 = vld [vmem:[%s2200_s25 + $0x140] sm:$0xff]  ;;  %v227_v45 = vld [vmem:[%s2200_s25 + $0xd8] sm:$0xff] }
  0x4b   : > { %713 = vmatmul.mubr.f32.gmra.mrb[14].mxu1 %v251_v48  ;;  %572 = vmatprep.mubr.f32.mxu0 %v257_v49  ;;  %v246_v48 = vld [vmem:[%s2200_s25 + $0x170] sm:$0xff]  ;;  %v241_v49 = vld [vmem:[%s2200_s25 + $0x148] sm:$0xff] }
  0x4c   : > { %717 = vmatprep.mubr.f32.mxu1 %v259_v51  ;;  %1786 = vmatpush3.bf16.msra.mxu0 %v1785_v50  ;;  %v248_v51 = vld [vmem:[%s2200_s25 + $0x180] sm:$0xff] }
  0x4d   : > { %1810 = vmatpush3.bf16.msra.mxu1 %v1785_v50  ;;  %v254_v50 = vld [vmem:[%s2200_s25 + $0x1b0] sm:$0xff] }
  0x4e   : > { %573 = vmatmul.mubr.f32.gmra.mrb[16].mxu0 %v256_v53  ;;  %1788 = vmatprep.subr.bf16.mxu1 %v2380_v52  ;;  %v255_v53 = vld [vmem:[%s2200_s25 + $0x1b8] sm:$0xff] }
  0x4f   : > { %718 = vmatmul.mubr.f32.gmra.mrb[16].mxu1 %v258_v54  ;;  %577 = vmatprep.mubr.f32.mxu0 %v264_v55  ;;  %v261_v54 = vld [vmem:[%s2200_s25 + $0x1e8] sm:$0xff]  ;;  %v262_v55 = vld [vmem:[%s2200_s25 + $0x1f0] sm:$0xff] }
  0x50   : > { %722 = vmatprep.mubr.f32.mxu1 %v266_v56  ;;  %v260_v56 = vld [vmem:[%s2200_s25 + $0x1e0] sm:$0xff] }
  0x52   : > { %578 = vmatmul.mubr.f32.gmra.mrb[18].mxu0 %v263_v57  ;;  %v269_v57 = vld [vmem:[%s2200_s25 + $0x228] sm:$0xff] }
  0x53   : > { %723 = vmatmul.mubr.f32.gmra.mrb[18].mxu1 %v265_v58  ;;  %582 = vmatprep.mubr.f32.mxu0 %v271_v59  ;;  %v268_v58 = vld [vmem:[%s2200_s25 + $0x220] sm:$0xff] }
  0x54   : > { %727 = vmatprep.mubr.f32.mxu1 %v273_v60  ;;  %v276_v59 = vld [vmem:[%s2200_s25 + $0x260] sm:$0xff]  ;;  %v267_v60 = vld [vmem:[%s2200_s25 + $0x218] sm:$0xff] }
  0x56   : > { %583 = vmatmul.mubr.f32.gmra.mrb[20].mxu0 %v270_v61  ;;  %v283_v61 = vld [vmem:[%s2200_s25 + $0x298] sm:$0xff] }
  0x57   : > { %728 = vmatmul.mubr.f32.gmra.mrb[20].mxu1 %v272_v62  ;;  %587 = vmatprep.mubr.f32.mxu0 %v278_v63  ;;  %v275_v62 = vld [vmem:[%s2200_s25 + $0x258] sm:$0xff]  ;;  %v290_v63 = vld [vmem:[%s2200_s25 + $0x2d0] sm:$0xff] }
  0x58   : > { %732 = vmatprep.mubr.f32.mxu1 %v280_v0  ;;  %v274_v0 = vld [vmem:[%s2200_s25 + $0x250] sm:$0xff] }
  0x5a   : > { %588 = vmatmul.mubr.f32.gmra.mrb[22].mxu0 %v277_v1  ;;  %v297_v1 = vld [vmem:[%s2200_s25 + $0x308] sm:$0xff] }
  0x5b   : > { %733 = vmatmul.mubr.f32.gmra.mrb[22].mxu1 %v279_v2  ;;  %592 = vmatprep.mubr.f32.mxu0 %v285_v3  ;;  %v282_v2 = vld [vmem:[%s2200_s25 + $0x290] sm:$0xff]  ;;  %v304_v3 = vld [vmem:[%s2200_s25 + $0x340] sm:$0xff] }
  0x5c   : > { %737 = vmatprep.mubr.f32.mxu1 %v287_v4  ;;  %v281_v4 = vld [vmem:[%s2200_s25 + $0x288] sm:$0xff] }
  0x5e   : > { %593 = vmatmul.mubr.f32.gmra.mrb[24].mxu0 %v284_v5  ;;  %v311_v5 = vld [vmem:[%s2200_s25 + $0x378] sm:$0xff] }
  0x5f   : > { %738 = vmatmul.mubr.f32.gmra.mrb[24].mxu1 %v286_v6  ;;  %597 = vmatprep.mubr.f32.mxu0 %v292_v7  ;;  %v2487_v7 = vld [vmem:[%s2674_s2] ss:$0 sm:$0xff] }
  0x60   : > { %742 = vmatprep.mubr.f32.mxu1 %v294_v8 }
  0x62   : > { %598 = vmatmul.mubr.f32.gmra.mrb[26].mxu0 %v291_v9 }
  0x63   : > { %743 = vmatmul.mubr.f32.gmra.mrb[26].mxu1 %v293_v10  ;;  %602 = vmatprep.mubr.f32.mxu0 %v299_v11 }
  0x64   : > { %747 = vmatprep.mubr.f32.mxu1 %v301_v12 }
  0x66   : > { %603 = vmatmul.mubr.f32.gmra.mrb[28].mxu0 %v298_v13 }
  0x67   : > { %748 = vmatmul.mubr.f32.gmra.mrb[28].mxu1 %v300_v14  ;;  %607 = vmatprep.mubr.f32.mxu0 %v306_v15 }
  0x68   : > { %752 = vmatprep.mubr.f32.mxu1 %v308_v16 }
  0x6a   : > { %608 = vmatmul.mubr.f32.gmra.mrb[30].mxu0 %v305_v17 }
  0x6b   : > { %753 = vmatmul.mubr.f32.gmra.mrb[30].mxu1 %v307_v18  ;;  %822 = vmatprep.mubr.f32.mxu0 %v205_v19 }
  0x6c   : > { %882 = vmatprep.mubr.f32.mxu1 %v289_v20 }
  0x6e   : > { %823 = vmatmul.mubr.f32.vlgmr.msra.gmra.mrb[32].mxu0 %v204_v23 }
  0x6f   : > { %883 = vmatmul.mubr.f32.vlgmr.msra.gmra.mrb[32].mxu1 %v288_v24  ;;  %827 = vmatprep.mubr.f32.mxu0 %v212_v25 }
  0x70   : > { %887 = vmatprep.mubr.f32.mxu1 %v296_v26  ;;  %1790 = vmatpush3.bf16.msra.mxu1 %v2380_v52  ;;  %v253_v52 = vld [vmem:[%s2200_s25 + $0x1a8] sm:$0xff]  ;;  %s175_s25 = sand.u32 1, %s1946_s12  }
  0x71   : > { %1792 = vmatprep.subr.bf16.mxu1 %v1791_v27  ;;  %s1359_s27 = sshll.u32 %s175_s25, 7 }
  0x72   : > { %828 = vmatmul.mubr.f32.gmra.mrb[34].mxu0 %v211_v28  ;;  %s2543_s12 = scalar_lea.vmem [#allocation2], %s1359_s27  }
  0x73   : > { %888 = vmatmul.mubr.f32.gmra.mrb[34].mxu1 %v295_v29  ;;  %832 = vmatprep.mubr.f32.mxu0 %v219_v30 }
  0x74   : > { %892 = vmatprep.mubr.f32.mxu1 %v303_v31  ;;  %1794 = vmatpush3.bf16.msra.mxu1 %v1791_v27 }
  0x76   : > { %833 = vmatmul.mubr.f32.gmra.mrb[36].mxu0 %v218_v32 }
  0x77   : > { %893 = vmatmul.mubr.f32.gmra.mrb[36].mxu1 %v302_v33  ;;  %837 = vmatprep.mubr.f32.mxu0 %v226_v34 }
  0x78   : > { %897 = vmatprep.mubr.f32.mxu1 %v310_v35 }
  0x7a   : > { %838 = vmatmul.mubr.f32.gmra.mrb[38].mxu0 %v225_v36 }
  0x7b   : > { %898 = vmatmul.mubr.f32.gmra.mrb[38].mxu1 %v309_v37  ;;  %842 = vmatprep.mubr.f32.mxu0 %v233_v38 }
  0x7c   : > { %1667 = vmatprep.mubr.msk.f32.mxu1 %vm419_vm0, %v206_v39 }
  0x7e   : > { %843 = vmatmul.mubr.f32.gmra.mrb[40].mxu0 %v232_v40 }
  0x7f   : > { %1668 = vmatmul.mubr.msk.f32.vlgmr.msra.gmra.mrb[40].mxu1 %vm419_vm0, %v213_v41  ;;  %847 = vmatprep.mubr.f32.mxu0 %v240_v42 }
  0x80   : > { %1670 = vmatprep.mubr.msk.f32.mxu1 %vm419_vm0, %v220_v43 }
  0x82   : > { %848 = vmatmul.mubr.f32.gmra.mrb[42].mxu0 %v239_v44 }
  0x83   : > { %1671 = vmatmul.mubr.msk.f32.gmra.mrb[42].mxu1 %vm419_vm0, %v227_v45  ;;  %852 = vmatprep.mubr.f32.mxu0 %v247_v46 }
  0x84   : > { %1673 = vmatprep.mubr.msk.f32.mxu1 %vm419_vm0, %v234_v47 }
  0x86   : > { %853 = vmatmul.mubr.f32.gmra.mrb[44].mxu0 %v246_v48 }
  0x87   : > { %1674 = vmatmul.mubr.msk.f32.gmra.mrb[44].mxu1 %vm419_vm0, %v241_v49  ;;  %857 = vmatprep.mubr.f32.mxu0 %v254_v50 }
  0x88   : > { %1676 = vmatprep.mubr.msk.f32.mxu1 %vm419_vm0, %v248_v51 }
  0x8a   : > { %858 = vmatmul.mubr.f32.gmra.mrb[46].mxu0 %v253_v52 }
  0x8b   : > { %1677 = vmatmul.mubr.msk.f32.gmra.mrb[46].mxu1 %vm419_vm0, %v255_v53  ;;  %862 = vmatprep.mubr.f32.mxu0 %v261_v54 }
  0x8c   : > { %1679 = vmatprep.mubr.msk.f32.mxu1 %vm419_vm0, %v262_v55 }
  0x8e   : > { %863 = vmatmul.mubr.f32.gmra.mrb[48].mxu0 %v260_v56 }
  0x8f   : > { %1680 = vmatmul.mubr.msk.f32.gmra.mrb[48].mxu1 %vm419_vm0, %v269_v57  ;;  %867 = vmatprep.mubr.f32.mxu0 %v268_v58 }
  0x90   : > { %1682 = vmatprep.mubr.msk.f32.mxu1 %vm419_vm0, %v276_v59 }
  0x92   : > { %868 = vmatmul.mubr.f32.gmra.mrb[50].mxu0 %v267_v60 }
  0x93   : > { %1683 = vmatmul.mubr.msk.f32.gmra.mrb[50].mxu1 %vm419_vm0, %v283_v61  ;;  %872 = vmatprep.mubr.f32.mxu0 %v275_v62 }
  0x94   : > { %1685 = vmatprep.mubr.msk.f32.mxu1 %vm419_vm0, %v290_v63 }
  0x96   : > { %873 = vmatmul.mubr.f32.gmra.mrb[52].mxu0 %v274_v0 }
  0x97   : > { %1686 = vmatmul.mubr.msk.f32.gmra.mrb[52].mxu1 %vm419_vm0, %v297_v1  ;;  %877 = vmatprep.mubr.f32.mxu0 %v282_v2 }
  0x98   : > { %1688 = vmatprep.mubr.msk.f32.mxu1 %vm419_vm0, %v304_v3 }
  0x9a   : > { %878 = vmatmul.mubr.f32.gmra.mrb[54].mxu0 %v281_v4 }
  0x9b   : > { %1689 = vmatmul.mubr.msk.f32.gmra.mrb[54].mxu1 %vm419_vm0, %v311_v5 }
 0x101   : > { %v1431_v6 = vpop.f32.mrb[0].mxu0 }
 0x102   : > { %v1432_v8 = vpop.f32.mrb[1].mxu0  ;;  %v1511_v9 = vpop.f32.mrb[0].mxu1 }
 0x103   : > { %v1433_v10 = vadd.f32 %v1432_v8, %v1431_v6  ;;  %v1512_v11 = vpop.f32.mrb[1].mxu1 }
 0x104   : > { %v1513_v12 = vadd.f32 %v1512_v11, %v1511_v9 }
 0x105   : > { %v535_v13 = vadd.f32 %v1433_v10, %v2487_v7  ;;  %v1434_v14 = vpop.f32.mrb[2].mxu0 }
 0x106   : > { %v1435_v15 = vpop.f32.mrb[3].mxu0  ;;  %v1514_v16 = vpop.f32.mrb[2].mxu1 }
 0x107   : > { %v2490_v17 = vadd.f32 %v1513_v12, %v535_v13  ;;  %v1436_v18 = vadd.f32 %v1435_v15, %v1434_v14  ;;  %v1515_v19 = vpop.f32.mrb[3].mxu1 }
 0x108   : > { %v1516_v20 = vadd.f32 %v1515_v19, %v1514_v16 }
 0x109   : > { %v540_v21 = vadd.f32 %v1436_v18, %v2487_v7  ;;  %v1437_v22 = vpop.f32.mrb[4].mxu0 }
 0x10a   : > { %v1438_v23 = vpop.f32.mrb[5].mxu0  ;;  %v1517_v24 = vpop.f32.mrb[4].mxu1 }
 0x10b   : > { %v2493_v25 = vadd.f32 %v1516_v20, %v540_v21  ;;  %v1439_v26 = vadd.f32 %v1438_v23, %v1437_v22  ;;  %v1518_v27 = vpop.f32.mrb[5].mxu1 }
 0x10c   : > { %v1519_v28 = vadd.f32 %v1518_v27, %v1517_v24 }
 0x10d   : > { %v545_v29 = vadd.f32 %v1439_v26, %v2487_v7  ;;  %v1440_v30 = vpop.f32.mrb[6].mxu0 }
 0x10e   : > { %v1441_v31 = vpop.f32.mrb[7].mxu0  ;;  %v1520_v32 = vpop.f32.mrb[6].mxu1 }
 0x10f   : > { %v2496_v33 = vadd.f32 %v1519_v28, %v545_v29  ;;  %v1442_v34 = vadd.f32 %v1441_v31, %v1440_v30  ;;  %v1521_v35 = vpop.f32.mrb[7].mxu1 }
 0x110   : > { %v1522_v36 = vadd.f32 %v1521_v35, %v1520_v32 }
 0x111   : > { %v550_v37 = vadd.f32 %v1442_v34, %v2487_v7  ;;  %v1443_v38 = vpop.f32.mrb[8].mxu0 }
 0x112   : > { %v1444_v39 = vpop.f32.mrb[9].mxu0  ;;  %v1523_v40 = vpop.f32.mrb[8].mxu1 }
 0x113   : > { %v2499_v41 = vadd.f32 %v1522_v36, %v550_v37  ;;  %v1445_v42 = vadd.f32 %v1444_v39, %v1443_v38  ;;  %v1524_v43 = vpop.f32.mrb[9].mxu1 }
 0x114   : > { %v1525_v44 = vadd.f32 %v1524_v43, %v1523_v40 }
 0x115   : > { %v555_v45 = vadd.f32 %v1445_v42, %v2487_v7  ;;  %v1446_v46 = vpop.f32.mrb[10].mxu0 }
 0x116   : > { %v1447_v47 = vpop.f32.mrb[11].mxu0  ;;  %v1526_v48 = vpop.f32.mrb[10].mxu1 }
 0x117   : > { %v2502_v49 = vadd.f32 %v1525_v44, %v555_v45  ;;  %v1448_v50 = vadd.f32 %v1447_v47, %v1446_v46  ;;  %v1527_v51 = vpop.f32.mrb[11].mxu1 }
 0x118   : > { %v1528_v52 = vadd.f32 %v1527_v51, %v1526_v48 }
 0x119   : > { %v560_v53 = vadd.f32 %v1448_v50, %v2487_v7  ;;  %v1449_v54 = vpop.f32.mrb[12].mxu0 }
 0x11a   : > { %v1450_v55 = vpop.f32.mrb[13].mxu0  ;;  %v1529_v56 = vpop.f32.mrb[12].mxu1 }
 0x11b   : > { %v2505_v57 = vadd.f32 %v1528_v52, %v560_v53  ;;  %v1451_v58 = vadd.f32 %v1450_v55, %v1449_v54  ;;  %v1530_v59 = vpop.f32.mrb[13].mxu1 }
 0x11c   : > { %v1531_v60 = vadd.f32 %v1530_v59, %v1529_v56 }
 0x11d   : > { %v565_v61 = vadd.f32 %v1451_v58, %v2487_v7  ;;  %v1452_v62 = vpop.f32.mrb[14].mxu0 }
 0x11e   : > { %v1453_v63 = vpop.f32.mrb[15].mxu0  ;;  %v1532_v0 = vpop.f32.mrb[14].mxu1 }
 0x11f   : > { %v2508_v1 = vadd.f32 %v1531_v60, %v565_v61  ;;  %v1454_v2 = vadd.f32 %v1453_v63, %v1452_v62  ;;  %v1533_v3 = vpop.f32.mrb[15].mxu1 }
 0x120   : > { %v1534_v4 = vadd.f32 %v1533_v3, %v1532_v0 }
 0x121   : > { %v570_v5 = vadd.f32 %v1454_v2, %v2487_v7  ;;  %v1455_v6 = vpop.f32.mrb[16].mxu0 }
 0x122   : > { %v1456_v8 = vpop.f32.mrb[17].mxu0  ;;  %v1535_v9 = vpop.f32.mrb[16].mxu1 }
 0x123   : > { %v2511_v10 = vadd.f32 %v1534_v4, %v570_v5  ;;  %v1457_v11 = vadd.f32 %v1456_v8, %v1455_v6  ;;  %v1536_v12 = vpop.f32.mrb[17].mxu1 }
 0x124   : > { %v1537_v13 = vadd.f32 %v1536_v12, %v1535_v9 }
 0x125   : > { %v575_v14 = vadd.f32 %v1457_v11, %v2487_v7  ;;  %v1458_v15 = vpop.f32.mrb[18].mxu0 }
 0x126   : > { %v1459_v16 = vpop.f32.mrb[19].mxu0  ;;  %v1538_v18 = vpop.f32.mrb[18].mxu1 }
 0x127   : > { %v2514_v19 = vadd.f32 %v1537_v13, %v575_v14  ;;  %v1460_v20 = vadd.f32 %v1459_v16, %v1458_v15  ;;  %v1539_v21 = vpop.f32.mrb[19].mxu1 }
 0x128   : > { %v1540_v22 = vadd.f32 %v1539_v21, %v1538_v18 }
 0x129   : > { %v580_v23 = vadd.f32 %v1460_v20, %v2487_v7  ;;  %v1461_v24 = vpop.f32.mrb[20].mxu0 }
 0x12a   : > { %v1462_v26 = vpop.f32.mrb[21].mxu0  ;;  %v1541_v27 = vpop.f32.mrb[20].mxu1 }
 0x12b   : > { %v2517_v28 = vadd.f32 %v1540_v22, %v580_v23  ;;  %v1463_v29 = vadd.f32 %v1462_v26, %v1461_v24  ;;  %v1542_v30 = vpop.f32.mrb[21].mxu1 }
 0x12c   : > { %v1543_v31 = vadd.f32 %v1542_v30, %v1541_v27 }
 0x12d   : > { %v585_v32 = vadd.f32 %v1463_v29, %v2487_v7  ;;  %v1464_v34 = vpop.f32.mrb[22].mxu0 }
 0x12e   : > { %v1465_v35 = vpop.f32.mrb[23].mxu0  ;;  %v1544_v36 = vpop.f32.mrb[22].mxu1 }
 0x12f   : > { %v2520_v37 = vadd.f32 %v1543_v31, %v585_v32  ;;  %v1466_v38 = vadd.f32 %v1465_v35, %v1464_v34  ;;  %v1545_v39 = vpop.f32.mrb[23].mxu1 }
 0x130   : > { %v1546_v40 = vadd.f32 %v1545_v39, %v1544_v36 }
 0x131   : > { %v590_v42 = vadd.f32 %v1466_v38, %v2487_v7  ;;  %v1467_v43 = vpop.f32.mrb[24].mxu0 }
 0x132   : > { %v1468_v44 = vpop.f32.mrb[25].mxu0  ;;  %v1547_v45 = vpop.f32.mrb[24].mxu1 }
 0x133   : > { %v2523_v46 = vadd.f32 %v1546_v40, %v590_v42  ;;  %v1469_v47 = vadd.f32 %v1468_v44, %v1467_v43  ;;  %v1548_v48 = vpop.f32.mrb[25].mxu1 }
 0x134   : > { %v1549_v50 = vadd.f32 %v1548_v48, %v1547_v45 }
 0x135   : > { %v595_v51 = vadd.f32 %v1469_v47, %v2487_v7  ;;  %v1470_v52 = vpop.f32.mrb[26].mxu0 }
 0x136   : > { %v1471_v53 = vpop.f32.mrb[27].mxu0  ;;  %v1550_v54 = vpop.f32.mrb[26].mxu1 }
 0x137   : > { %v740_v55 = vadd.f32 %v1549_v50, %v595_v51  ;;  %v1472_v56 = vadd.f32 %v1471_v53, %v1470_v52  ;;  %v1551_v58 = vpop.f32.mrb[27].mxu1 }
 0x138   : > { %v1552_v59 = vadd.f32 %v1551_v58, %v1550_v54 }
 0x139   : > { %v600_v60 = vadd.f32 %v1472_v56, %v2487_v7  ;;  %v1473_v61 = vpop.f32.mrb[28].mxu0 }
 0x13a   : > { %v1474_v62 = vpop.f32.mrb[29].mxu0  ;;  %v1553_v63 = vpop.f32.mrb[28].mxu1 }
 0x13b   : > { %v745_v0 = vadd.f32 %v1552_v59, %v600_v60  ;;  %v1475_v2 = vadd.f32 %v1474_v62, %v1473_v61  ;;  %v1554_v3 = vpop.f32.mrb[29].mxu1 }
 0x13c   : > { %v1555_v4 = vadd.f32 %v1554_v3, %v1553_v63 }
 0x13d   : > { %v605_v5 = vadd.f32 %v1475_v2, %v2487_v7  ;;  %v1476_v6 = vpop.f32.mrb[30].mxu0 }
 0x13e   : > { %v1477_v8 = vpop.f32.mrb[31].mxu0  ;;  %v1556_v9 = vpop.f32.mrb[30].mxu1 }
 0x13f   : > { %v750_v11 = vadd.f32 %v1555_v4, %v605_v5  ;;  %v1478_v12 = vadd.f32 %v1477_v8, %v1476_v6  ;;  %v1557_v13 = vpop.f32.mrb[31].mxu1 }
 0x140   : > { %v1558_v14 = vadd.f32 %v1557_v13, %v1556_v9 }
 0x141   : > { %v610_v15 = vadd.f32 %v1478_v12, %v2487_v7  ;;  %v1591_v16 = vpop.f32.mrb[32].mxu0 }
 0x142   : > { %v1627_v18 = vpop.f32.mrb[32].mxu1  ;;  %v1592_v20 = vpop.f32.mrb[33].mxu0 }
 0x143   : > { %v755_v21 = vadd.f32 %v1558_v14, %v610_v15  ;;  %v1593_v22 = vadd.f32 %v1592_v20, %v1591_v16  ;;  %v1628_v23 = vpop.f32.mrb[33].mxu1 }
 0x144   : > { %v1629_v24 = vadd.f32 %v1628_v23, %v1627_v18 }
 0x145   : > { %v1594_v26 = vpop.f32.mrb[34].mxu0  ;;  %v825_v27 = vadd.f32 %v1593_v22, %v2490_v17 }
 0x146   : > { %v1630_v29 = vpop.f32.mrb[34].mxu1  ;;  %v1595_v30 = vpop.f32.mrb[35].mxu0  ;;  %v2530_v31 = vadd.f32 %v1629_v24, %v740_v55 }
 0x147   : > { %v1596_v32 = vadd.f32 %v1595_v30, %v1594_v26  ;;  %v1631_v34 = vpop.f32.mrb[35].mxu1 }
 0x148   : > { %v1632_v35 = vadd.f32 %v1631_v34, %v1630_v29 }
 0x149   : > { %v1597_v36 = vpop.f32.mrb[36].mxu0  ;;  %v830_v7 = vadd.f32 %v1596_v32, %v2493_v25 }
 0x14a   : > { %v1633_v38 = vpop.f32.mrb[36].mxu1  ;;  %v1598_v39 = vpop.f32.mrb[37].mxu0  ;;  %v2533_v40 = vadd.f32 %v1632_v35, %v745_v0 }
 0x14b   : > { %v1599_v42 = vadd.f32 %v1598_v39, %v1597_v36  ;;  %v1634_v43 = vpop.f32.mrb[37].mxu1 }
 0x14c   : > { %v1635_v44 = vadd.f32 %v1634_v43, %v1633_v38 }
 0x14d   : > { %v1600_v45 = vpop.f32.mrb[38].mxu0  ;;  %v835_v17 = vadd.f32 %v1599_v42, %v2496_v33 }
 0x14e   : > { %v1636_v47 = vpop.f32.mrb[38].mxu1  ;;  %v1601_v48 = vpop.f32.mrb[39].mxu0  ;;  %v2537_v50 = vadd.f32 %v1635_v44, %v750_v11 }
 0x14f   : > { %v1602_v51 = vadd.f32 %v1601_v48, %v1600_v45  ;;  %v1637_v52 = vpop.f32.mrb[39].mxu1 }
 0x150   : > { %v1638_v53 = vadd.f32 %v1637_v52, %v1636_v47 }
 0x151   : > { %v1603_v54 = vpop.f32.mrb[40].mxu0  ;;  %v840_v25 = vadd.f32 %v1602_v51, %v2499_v41 }
 0x152   : > { %v1669_v55 = vpop.f32.mrb[40].mxu1  ;;  %v1604_v56 = vpop.f32.mrb[41].mxu0  ;;  %v2540_v58 = vadd.f32 %v1638_v53, %v755_v21 }
 0x153   : > { %v975_v59 = vadd.f32 %v1669_v55, %v830_v7  ;;  %v1605_v60 = vadd.f32 %v1604_v56, %v1603_v54  ;;  %v969_v61 = vpop.f32.mrb[41].mxu1 }
 0x154   : > { %v970_v33 = vadd.f32 %v969_v61, %v825_v27 }
 0x155   : > { %v1049_v62 = vmax.f32 %v975_v59, 0.0  ;;  %v1606_v63 = vpop.f32.mrb[42].mxu0  ;;  %v845_v0 = vadd.f32 %v1605_v60, %v2502_v49 }
 0x156   : > { %v1048_v2 = vmax.f32 %v970_v33, 0.0  ;;  %v1672_v3 = vpop.f32.mrb[42].mxu1  ;;  %v1607_v4 = vpop.f32.mrb[43].mxu0 }
 0x157   : > { %1065 = vst [vmem:[%s2543_s12 + $0x8] sm:$0xff] %v1049_v62  ;;  %v985_v41 = vadd.f32 %v1672_v3, %v840_v25  ;;  %v1608_v5 = vadd.f32 %v1607_v4, %v1606_v63  ;;  %v979_v6 = vpop.f32.mrb[43].mxu1 }
 0x158   : > { %1064 = vst [vmem:[%s2543_s12] sm:$0xff] %v1048_v2  ;;  %v980_v8 = vadd.f32 %v979_v6, %v835_v17 }
 0x159   : > { %v1051_v9 = vmax.f32 %v985_v41, 0.0  ;;  %v1609_v11 = vpop.f32.mrb[44].mxu0  ;;  %v850_v12 = vadd.f32 %v1608_v5, %v2505_v57 }
 0x15a   : > { %v1050_v49 = vmax.f32 %v980_v8, 0.0  ;;  %v1675_v13 = vpop.f32.mrb[44].mxu1  ;;  %v1610_v14 = vpop.f32.mrb[45].mxu0 }
 0x15b   : > { %1067 = vst [vmem:[%s2543_s12 + $0x18] sm:$0xff] %v1051_v9  ;;  %v995_v15 = vadd.f32 %v1675_v13, %v850_v12  ;;  %v1611_v16 = vadd.f32 %v1610_v14, %v1609_v11  ;;  %v989_v18 = vpop.f32.mrb[45].mxu1 }
 0x15c   : > { %1066 = vst [vmem:[%s2543_s12 + $0x10] sm:$0xff] %v1050_v49  ;;  %v990_v20 = vadd.f32 %v989_v18, %v845_v0 }
 0x15d   : > { %v1053_v21 = vmax.f32 %v995_v15, 0.0  ;;  %v1612_v22 = vpop.f32.mrb[46].mxu0  ;;  %v855_v23 = vadd.f32 %v1611_v16, %v2508_v1 }
 0x15e   : > { %v1052_v24 = vmax.f32 %v990_v20, 0.0  ;;  %v1678_v26 = vpop.f32.mrb[46].mxu1  ;;  %v1613_v27 = vpop.f32.mrb[47].mxu0 }
 0x15f   : > { %1069 = vst [vmem:[%s2543_s12 + $0x28] sm:$0xff] %v1053_v21  ;;  %v1614_v57 = vadd.f32 %v1613_v27, %v1612_v22  ;;  %v999_v29 = vpop.f32.mrb[47].mxu1 }
 0x160   : > { %1068 = vst [vmem:[%s2543_s12 + $0x20] sm:$0xff] %v1052_v24  ;;  %v1000_v30 = vadd.f32 %v999_v29, %v855_v23 }
 0x161   : > { %v860_v32 = vadd.f32 %v1614_v57, %v2511_v10  ;;  %v1615_v34 = vpop.f32.mrb[48].mxu0 }
 0x162   : > { %v1054_v35 = vmax.f32 %v1000_v30, 0.0  ;;  %v1616_v36 = vpop.f32.mrb[49].mxu0  ;;  %v1681_v7 = vpop.f32.mrb[48].mxu1 }
 0x163   : > { %v1005_v38 = vadd.f32 %v1678_v26, %v860_v32  ;;  %v1617_v39 = vadd.f32 %v1616_v36, %v1615_v34  ;;  %v1009_v42 = vpop.f32.mrb[49].mxu1 }
 0x164   : > { %1070 = vst [vmem:[%s2543_s12 + $0x30] sm:$0xff] %v1054_v35 }
 0x165   : > { %v1055_v1 = vmax.f32 %v1005_v38, 0.0  ;;  %v1618_v43 = vpop.f32.mrb[50].mxu0  ;;  %v865_v44 = vadd.f32 %v1617_v39, %v2514_v19 }
 0x166   : > { %v1619_v45 = vpop.f32.mrb[51].mxu0  ;;  %v1684_v17 = vpop.f32.mrb[50].mxu1 }
 0x167   : > { %1071 = vst [vmem:[%s2543_s12 + $0x38] sm:$0xff] %v1055_v1  ;;  %v1620_v47 = vadd.f32 %v1619_v45, %v1618_v43  ;;  %v1010_v48 = vadd.f32 %v1009_v42, %v865_v44  ;;  %v1019_v51 = vpop.f32.mrb[51].mxu1 }
 0x169   : > { %v870_v10 = vadd.f32 %v1620_v47, %v2517_v28  ;;  %v1056_v52 = vmax.f32 %v1010_v48, 0.0  ;;  %v1621_v53 = vpop.f32.mrb[52].mxu0 }
 0x16a   : > { %v1687_v54 = vpop.f32.mrb[52].mxu1  ;;  %v1622_v25 = vpop.f32.mrb[53].mxu0 }
 0x16b   : > { %v1015_v55 = vadd.f32 %v1681_v7, %v870_v10  ;;  %1072 = vst [vmem:[%s2543_s12 + $0x40] sm:$0xff] %v1056_v52  ;;  %v1035_v56 = vadd.f32 %v1687_v54, %v2533_v40  ;;  %v1623_v59 = vadd.f32 %v1622_v25, %v1621_v53  ;;  %v1029_v19 = vpop.f32.mrb[53].mxu1 }
 0x16c   : > { %v1030_v60 = vadd.f32 %v1029_v19, %v2530_v31 }
 0x16d   : > { %v1057_v61 = vmax.f32 %v1015_v55, 0.0  ;;  %v1061_v33 = vmax.f32 %v1035_v56, 0.0  ;;  %v875_v62 = vadd.f32 %v1623_v59, %v2520_v37  ;;  %v1624_v28 = vpop.f32.mrb[54].mxu0 }
 0x16e   : > { %v1060_v63 = vmax.f32 %v1030_v60, 0.0  ;;  %v1690_v0 = vpop.f32.mrb[54].mxu1  ;;  %v1625_v2 = vpop.f32.mrb[55].mxu0 }
 0x16f   : > { %1073 = vst [vmem:[%s2543_s12 + $0x48] sm:$0xff] %v1057_v61  ;;  %1077 = vst [vmem:[%s2543_s12 + $0x68] sm:$0xff] %v1061_v33  ;;  %v1020_v40 = vadd.f32 %v1019_v51, %v875_v62  ;;  %v1045_v3 = vadd.f32 %v1690_v0, %v2540_v58  ;;  %v1626_v4 = vadd.f32 %v1625_v2, %v1624_v28  ;;  %v1039_v41 = vpop.f32.mrb[55].mxu1 }
 0x170   : > { %1076 = vst [vmem:[%s2543_s12 + $0x60] sm:$0xff] %v1060_v63  ;;  %v1040_v31 = vadd.f32 %v1039_v41, %v2537_v50 }
 0x171   : > { %v1058_v5 = vmax.f32 %v1020_v40, 0.0  ;;  %v1063_v37 = vmax.f32 %v1045_v3, 0.0  ;;  %v880_v6 = vadd.f32 %v1626_v4, %v2523_v46  ;;  %1086 = sbr.rel (!%p2033_p4) target bundleno = 425 (0x1a9), region = 36 }
 0x172   : > { %v1062_v8 = vmax.f32 %v1040_v31, 0.0 }
 0x173   : > { %1074 = vst [vmem:[%s2543_s12 + $0x50] sm:$0xff] %v1058_v5  ;;  %1079 = vst [vmem:[%s2543_s12 + $0x78] sm:$0xff] %v1063_v37  ;;  %v1025_v9 = vadd.f32 %v1684_v17, %v880_v6 }
 0x174   : > { %1078 = vst [vmem:[%s2543_s12 + $0x70] sm:$0xff] %v1062_v8 }
 0x175   : > { %v1059_v11 = vmax.f32 %v1025_v9, 0.0 }
 0x177   : > { %1075 = vst [vmem:[%s2543_s12 + $0x58] sm:$0xff] %v1059_v11 }
 0x178   : > { %s2684_s26 = smov (!%p1089_p8, %s1088_s26), 16 }
 0x179   : > { %s1381_s14 = sshll.u32 %s2684_s26, 7 }
 0x17a   : > { %p1384_p9 = scmp.eq.s32.totalorder %s1381_s14, 0 }
 0x17b   : > { %s2585_s17 = sshrl.u32 (!%p1384_p9), %s2684_s26, 4 }
 0x17c   : > { %1097 = sbr.rel (%p1384_p9) target bundleno = 425 (0x1a9), region = 40  ;;  %p1385_p10 = scmp.le.s32.totalorder (!%p1384_p9), %s2585_s17, 0 }
 0x183   : > { %1311 = sbr.rel (%p1385_p10) target bundleno = 404 (0x194), region = 116  ;;  %s2677_s15 = smov (!%p1385_p10), %s2579_s11 }
 0x184   : > { %s2678_s20 = smov (!%p1385_p10), %s2543_s12  ;;  %s2594_s24 = smov (!%p1385_p10), 0  }
 0x185   : > { %s2596_s18 = smov (!%p1385_p10), 0  }
 0x18a LB: >> { %v1189_v46 = vld [vmem:[%s1962_s20] sm:$0xff]  ;;  %v1191_v50 = vld [vmem:[%s1962_s20 + $0x8] sm:$0xff]  ;;  %v1193_v58 = vld [vmem:[%s1962_s20 + $0x10] sm:$0xff]  ;;  %s1221_s21 = sadd.s32 1, %s1966_s24  ;;  %s1183_s18 = sadd.s32 1, %s1970_s18   ;;  %s1970_s18 = sphi %s2596_s18, %s1183_s18   ;;  %s1966_s24 = sphi %s2594_s24, %s2679_s24   ;;  %s1962_s20 = sphi %s2678_s20, %s1226_s20   ;;  %s1958_s15 = sphi %s2677_s15, %s1227_s15  }
 0x18b   : >> { %1190 = vst [vmem:[%s1958_s15] sm:$0xff] %v1189_v46  ;;  %1192 = vst [vmem:[%s1958_s15 + $0x8] sm:$0xff] %v1191_v50  ;;  %v1195_v12 = vld [vmem:[%s1962_s20 + $0x18] sm:$0xff]  ;;  %v1197_v49 = vld [vmem:[%s1962_s20 + $0x20] sm:$0xff]  ;;  %p1222_p11 = scmp.ge.s32.totalorder %s1221_s21, %s2585_s17  ;;  %p1182_p12 = scmp.ge.s32.totalorder %s1183_s18, %s2585_s17 }
 0x18c   : >> { %1194 = vst [vmem:[%s1958_s15 + $0x10] sm:$0xff] %v1193_v58  ;;  %v1199_v13 = vld [vmem:[%s1962_s20 + $0x28] sm:$0xff]  ;;  %1196 = vst [vmem:[%s1958_s15 + $0x18] sm:$0xff] %v1195_v12  ;;  %v1201_v14 = vld [vmem:[%s1962_s20 + $0x30] sm:$0xff] }
 0x18d   : >> { %1198 = vst [vmem:[%s1958_s15 + $0x20] sm:$0xff] %v1197_v49  ;;  %1200 = vst [vmem:[%s1958_s15 + $0x28] sm:$0xff] %v1199_v13  ;;  %v1203_v15 = vld [vmem:[%s1962_s20 + $0x38] sm:$0xff]  ;;  %v1205_v16 = vld [vmem:[%s1962_s20 + $0x40] sm:$0xff]  ;;  %s2686_s21 = smov (%p1222_p11, %s1221_s21), 0  ;;  %1185 = sbr.rel (!%p1182_p12) target bundleno = 394 (0x18a), region = 122 }
 0x18e   : >> { %1202 = vst [vmem:[%s1958_s15 + $0x30] sm:$0xff] %v1201_v14  ;;  %1204 = vst [vmem:[%s1958_s15 + $0x38] sm:$0xff] %v1203_v15  ;;  %v1207_v18 = vld [vmem:[%s1962_s20 + $0x48] sm:$0xff]  ;;  %v1209_v20 = vld [vmem:[%s1962_s20 + $0x50] sm:$0xff]  ;;  %s1386_s22 = sshll.u32 %s2686_s21, 7  ;;  %s2679_s24 = smov %s2686_s21 }
 0x18f   : >> { %1206 = vst [vmem:[%s1958_s15 + $0x40] sm:$0xff] %v1205_v16  ;;  %v1211_v21 = vld [vmem:[%s1962_s20 + $0x58] sm:$0xff]  ;;  %1208 = vst [vmem:[%s1958_s15 + $0x48] sm:$0xff] %v1207_v18  ;;  %v1213_v22 = vld [vmem:[%s1962_s20 + $0x60] sm:$0xff] }
 0x190   : >> { %1210 = vst [vmem:[%s1958_s15 + $0x50] sm:$0xff] %v1209_v20  ;;  %1212 = vst [vmem:[%s1958_s15 + $0x58] sm:$0xff] %v1211_v21  ;;  %v1215_v23 = vld [vmem:[%s1962_s20 + $0x68] sm:$0xff]  ;;  %v1217_v24 = vld [vmem:[%s1962_s20 + $0x70] sm:$0xff] }
 0x191   : >> { %1214 = vst [vmem:[%s1958_s15 + $0x60] sm:$0xff] %v1213_v22  ;;  %1216 = vst [vmem:[%s1958_s15 + $0x68] sm:$0xff] %v1215_v23  ;;  %v1219_v26 = vld [vmem:[%s1962_s20 + $0x78] sm:$0xff]  ;;  %s1226_s20 = scalar_lea.vmem %s2543_s12, %s1386_s22 [#allocation2]  }
 0x192   : >> { %1218 = vst [vmem:[%s1958_s15 + $0x70] sm:$0xff] %v1217_v24  ;;  %1220 = vst [vmem:[%s1958_s15 + $0x78] sm:$0xff] %v1219_v26  ;;  %s1227_s15 = scalar_lea.vmem %s2579_s11, %s1386_s22  }
 0x194 PF: > { %s2654_s23 = sand.u32 15, %s2684_s26   ;;  %s1397_s28 = sshll.u32 %s2585_s17, 7 }
 0x195   : > { %s1232_s29 = scalar_lea.vmem %s2543_s12, %s1397_s28 [#allocation2]   ;;  %s1234_s30 = scalar_lea.vmem %s2579_s11, %s1397_s28  }
 0x196   : > { %p1391_p13 = scmp.le.s32.totalorder %s2654_s23, 0 }
 0x197   : > { %s1972_s4 = smov (!%p1391_p13), %s1234_s30   ;;  %s1976_s5 = smov (!%p1391_p13), %s1232_s29  }
 0x198   : > { %1325 = sbr.rel (%p1391_p13) target bundleno = 425 (0x1a9), region = 127  ;;  %s1980_s6 = smov (!%p1391_p13), 0  }
 0x199   : > { %s1984_s7 = smov (!%p1391_p13), 0  }
 0x19f LB: >> { %v1244_v27 = vld [vmem:[%s1978_s5] sm:$0xff]  ;;  %s1246_s25 = sadd.s32 1, %s1982_s6  ;;  %s1238_s7 = sadd.s32 1, %s1986_s7   ;;  %s1986_s7 = sphi %s1984_s7, %s1238_s7   ;;  %s1982_s6 = sphi %s1980_s6, %s1981_s6   ;;  %s1978_s5 = sphi %s1976_s5, %s1251_s5   ;;  %s1974_s4 = sphi %s1972_s4, %s1252_s4  }
 0x1a0   : >> { %1245 = vst [vmem:[%s1974_s4] sm:$0xff] %v1244_v27  ;;  %p1247_p0 = scmp.ge.s32.totalorder %s1246_s25, %s2654_s23  ;;  %p1237_p1 = scmp.ge.s32.totalorder %s1238_s7, %s2654_s23 }
 0x1a2   : >> { %s2688_s25 = smov (%p1247_p0, %s1246_s25), 0  ;;  %1240 = sbr.rel (!%p1237_p1) target bundleno = 415 (0x19f), region = 133 }
 0x1a3   : >> { %s1392_s27 = sshll.u32 %s2688_s25, 3  ;;  %s1981_s6 = smov %s2688_s25  }
 0x1a4   : >> { %s1251_s5 = scalar_lea.vmem %s1232_s29, %s1392_s27 [#allocation2]   ;;  %s1252_s4 = scalar_lea.vmem %s1234_s30, %s1392_s27  }
 0x1a9 PF: > { %p10_p2 = scmp.ge.s32.totalorder %s2023_s16, 4   ;;  %s2680_s12 = smov %s1950_s13 }
 0x1aa   : > { %s2681_s13 = smov %s2031_s19  ;;  %s2682_s14 = smov %s2023_s16 }
 0x1ab   :  { %12 = sbr.rel (!%p10_p2) target bundleno = 2 (0x2), region = 144 }

// kernel: lane_net_forward.7
= control target key start
LH: loop header
LB: loop body
LE: loop exit
PB: predicated region body
PF: predicated region fallthrough
CT: control target
= control target key end

     0   :  { %vm4880_vm0 = vmmov 0   ;;  %vm2808_vm1 = vcmask 523264   ;;  %vm3054_vm2 = vcmask 654336   ;;  %s7713_s1 = inlined_call_operand.vmem [shape: f32[6400,128], index: 1, kind: input, shape index: {}]   ;;  %s7714_s0 = inlined_call_operand.vmem [shape: f32[8,6400], index: 0, kind: input, shape index: {}]   ;;  %s7715_s2 = inlined_call_operand.vmem [shape: f32[1,128], index: 2, kind: input, shape index: {}]   ;;  %s7716_s3 = inlined_call_operand.vmem [shape: f32[128,64], index: 3, kind: input, shape index: {}]   ;;  %s7717_s5 = inlined_call_operand.vmem [shape: f32[64,720], index: 5, kind: input, shape index: {}]   ;;  %s7718_s4 = inlined_call_operand.vmem [shape: f32[1,64], index: 4, kind: input, shape index: {}]   ;;  %s7719_s6 = inlined_call_operand.vmem [shape: f32[1,720], index: 6, kind: input, shape index: {}]   ;;  %s7720_s7 = inlined_call_operand.vmem [shape: f32[8,720], index: 7, kind: output, shape index: {}]  }
   0x1   :  { %v92_v0 = vld [vmem:[%s7713_s1 + $0x80] sm:$0xff]  ;;  %v93_v1 = vld [vmem:[%s7713_s1 + $0x88] sm:$0xff]  ;;  %v94_v11 = vld [vmem:[%s7713_s1 + $0x90] sm:$0xff] }
   0x2   :  { %v76_v2 = vld [vmem:[%s7713_s1] sm:$0xff]  ;;  %v3992_v3 = vpack.c.bf16 %v93_v1, %v92_v0  ;;  %v77_v4 = vld [vmem:[%s7713_s1 + $0x8] sm:$0xff]  ;;  %v95_v13 = vld [vmem:[%s7713_s1 + $0x98] sm:$0xff] }
   0x3   :  { %v124_v5 = vld [vmem:[%s7713_s1 + $0x180] sm:$0xff]  ;;  %v125_v6 = vld [vmem:[%s7713_s1 + $0x188] sm:$0xff]  ;;  %v3994_v7 = vpack.c.bf16 %v77_v4, %v76_v2  ;;  %v78_v14 = vld [vmem:[%s7713_s1 + $0x10] sm:$0xff]  ;;  %v3996_v16 = vpack.c.bf16 %v95_v13, %v94_v11 }
   0x4   :  { %v4024_v8 = vpack.c.bf16 %v125_v6, %v124_v5  ;;  %v108_v9 = vld [vmem:[%s7713_s1 + $0x100] sm:$0xff]  ;;  %v109_v10 = vld [vmem:[%s7713_s1 + $0x108] sm:$0xff]  ;;  %3993 = vmatprep.subr.bf16.mxu0 %v3992_v3  ;;  %v79_v15 = vld [vmem:[%s7713_s1 + $0x18] sm:$0xff] }
   0x5   :  { %v4026_v12 = vpack.c.bf16 %v109_v10, %v108_v9  ;;  %3995 = vmatpush3.bf16.msra.mxu0 %v3994_v7  ;;  %v3998_v17 = vpack.c.bf16 %v79_v15, %v78_v14  ;;  %v126_v18 = vld [vmem:[%s7713_s1 + $0x190] sm:$0xff]  ;;  %v127_v19 = vld [vmem:[%s7713_s1 + $0x198] sm:$0xff]  ;;  %v96_v23 = vld [vmem:[%s7713_s1 + $0xa0] sm:$0xff] }
   0x6   :  { %4025 = vmatprep.subr.bf16.mxu1 %v4024_v8  ;;  %v110_v20 = vld [vmem:[%s7713_s1 + $0x110] sm:$0xff]  ;;  %v4028_v21 = vpack.c.bf16 %v127_v19, %v126_v18  ;;  %v111_v22 = vld [vmem:[%s7713_s1 + $0x118] sm:$0xff]  ;;  %v97_v24 = vld [vmem:[%s7713_s1 + $0xa8] sm:$0xff]  ;;  %3997 = vmatprep.subr.bf16.mxu0 %v3996_v16 }
   0x7   :  { %4027 = vmatpush3.bf16.msra.mxu1 %v4026_v12  ;;  %v4030_v25 = vpack.c.bf16 %v111_v22, %v110_v20  ;;  %v4000_v26 = vpack.c.bf16 %v97_v24, %v96_v23  ;;  %v80_v27 = vld [vmem:[%s7713_s1 + $0x20] sm:$0xff]  ;;  %v81_v28 = vld [vmem:[%s7713_s1 + $0x28] sm:$0xff]  ;;  %v98_v35 = vld [vmem:[%s7713_s1 + $0xb0] sm:$0xff] }
   0x8   :  { %v128_v29 = vld [vmem:[%s7713_s1 + $0x1a0] sm:$0xff]  ;;  %4029 = vmatprep.subr.bf16.mxu1 %v4028_v21  ;;  %v129_v30 = vld [vmem:[%s7713_s1 + $0x1a8] sm:$0xff]  ;;  %v4002_v33 = vpack.c.bf16 %v81_v28, %v80_v27  ;;  %v99_v36 = vld [vmem:[%s7713_s1 + $0xb8] sm:$0xff] }
   0x9   :  { %v112_v31 = vld [vmem:[%s7713_s1 + $0x120] sm:$0xff]  ;;  %v113_v32 = vld [vmem:[%s7713_s1 + $0x128] sm:$0xff]  ;;  %3999 = vmatpush3.bf16.msra.mxu0 %v3998_v17  ;;  %v4032_v34 = vpack.c.bf16 %v129_v30, %v128_v29  ;;  %v82_v37 = vld [vmem:[%s7713_s1 + $0x30] sm:$0xff]  ;;  %v4004_v39 = vpack.c.bf16 %v99_v36, %v98_v35 }
   0xa   :  { %4001 = vmatprep.subr.bf16.mxu0 %v4000_v26  ;;  %v4034_v38 = vpack.c.bf16 %v113_v32, %v112_v31  ;;  %v83_v40 = vld [vmem:[%s7713_s1 + $0x38] sm:$0xff]  ;;  %v130_v41 = vld [vmem:[%s7713_s1 + $0x1b0] sm:$0xff]  ;;  %v100_v46 = vld [vmem:[%s7713_s1 + $0xc0] sm:$0xff] }
   0xb   :  { %4031 = vmatpush3.bf16.msra.mxu1 %v4030_v25  ;;  %v131_v42 = vld [vmem:[%s7713_s1 + $0x1b8] sm:$0xff]  ;;  %v114_v44 = vld [vmem:[%s7713_s1 + $0x130] sm:$0xff]  ;;  %v101_v47 = vld [vmem:[%s7713_s1 + $0xc8] sm:$0xff]  ;;  %v4006_v48 = vpack.c.bf16 %v83_v40, %v82_v37 }
   0xc   :  { %4033 = vmatprep.subr.bf16.mxu1 %v4032_v34  ;;  %v4036_v43 = vpack.c.bf16 %v131_v42, %v130_v41  ;;  %v115_v45 = vld [vmem:[%s7713_s1 + $0x138] sm:$0xff]  ;;  %v132_v49 = vld [vmem:[%s7713_s1 + $0x1c0] sm:$0xff]  ;;  %v133_v50 = vld [vmem:[%s7713_s1 + $0x1c8] sm:$0xff]  ;;  %v4008_v52 = vpack.c.bf16 %v101_v47, %v100_v46 }
   0xd   :  { %4003 = vmatpush3.bf16.msra.mxu0 %v4002_v33  ;;  %v4038_v51 = vpack.c.bf16 %v115_v45, %v114_v44  ;;  %v84_v53 = vld [vmem:[%s7713_s1 + $0x40] sm:$0xff]  ;;  %v85_v54 = vld [vmem:[%s7713_s1 + $0x48] sm:$0xff]  ;;  %v4040_v56 = vpack.c.bf16 %v133_v50, %v132_v49  ;;  %v102_v58 = vld [vmem:[%s7713_s1 + $0xd0] sm:$0xff] }
   0xe   :  { %4005 = vmatprep.subr.bf16.mxu0 %v4004_v39  ;;  %v116_v55 = vld [vmem:[%s7713_s1 + $0x140] sm:$0xff]  ;;  %v117_v57 = vld [vmem:[%s7713_s1 + $0x148] sm:$0xff]  ;;  %v103_v59 = vld [vmem:[%s7713_s1 + $0xd8] sm:$0xff]  ;;  %v4010_v62 = vpack.c.bf16 %v85_v54, %v84_v53 }
   0xf   :  { %4035 = vmatpush3.bf16.msra.mxu1 %v4034_v38  ;;  %v134_v60 = vld [vmem:[%s7713_s1 + $0x1d0] sm:$0xff]  ;;  %v135_v61 = vld [vmem:[%s7713_s1 + $0x1d8] sm:$0xff]  ;;  %v4042_v63 = vpack.c.bf16 %v117_v57, %v116_v55  ;;  %v4012_v0 = vpack.c.bf16 %v103_v59, %v102_v58  ;;  %v104_v6 = vld [vmem:[%s7713_s1 + $0xe0] sm:$0xff] }
  0x10   :  { %4037 = vmatprep.subr.bf16.mxu1 %v4036_v43  ;;  %v86_v1 = vld [vmem:[%s7713_s1 + $0x50] sm:$0xff]  ;;  %v87_v2 = vld [vmem:[%s7713_s1 + $0x58] sm:$0xff]  ;;  %v4044_v4 = vpack.c.bf16 %v135_v61, %v134_v60  ;;  %v105_v7 = vld [vmem:[%s7713_s1 + $0xe8] sm:$0xff] }
  0x11   :  { %4007 = vmatpush3.bf16.msra.mxu0 %v4006_v48  ;;  %v118_v3 = vld [vmem:[%s7713_s1 + $0x150] sm:$0xff]  ;;  %v119_v5 = vld [vmem:[%s7713_s1 + $0x158] sm:$0xff]  ;;  %v136_v8 = vld [vmem:[%s7713_s1 + $0x1e0] sm:$0xff]  ;;  %v4014_v10 = vpack.c.bf16 %v87_v2, %v86_v1  ;;  %v4016_v14 = vpack.c.bf16 %v105_v7, %v104_v6 }
  0x12   :  { %4009 = vmatprep.subr.bf16.mxu0 %v4008_v52  ;;  %v137_v9 = vld [vmem:[%s7713_s1 + $0x1e8] sm:$0xff]  ;;  %v88_v11 = vld [vmem:[%s7713_s1 + $0x60] sm:$0xff]  ;;  %v4046_v13 = vpack.c.bf16 %v119_v5, %v118_v3  ;;  %v106_v19 = vld [vmem:[%s7713_s1 + $0xf0] sm:$0xff] }
  0x13   :  { %4039 = vmatpush3.bf16.msra.mxu1 %v4038_v51  ;;  %v27_v12 = vld [vmem:[%s7714_s0 + $0x8] sm:$0xff]  ;;  %v120_v16 = vld [vmem:[%s7713_s1 + $0x160] sm:$0xff]  ;;  %v4048_v18 = vpack.c.bf16 %v137_v9, %v136_v8  ;;  %v107_v20 = vld [vmem:[%s7713_s1 + $0xf8] sm:$0xff] }
  0x14   :  { %4041 = vmatprep.subr.bf16.mxu1 %v4040_v56  ;;  %v89_v15 = vld [vmem:[%s7713_s1 + $0x68] sm:$0xff]  ;;  %947 = vmatprep.mubr.f32.mxu0 %v27_v12  ;;  %v29_v21 = vld [vmem:[%s7714_s0 + $0x18] sm:$0xff]  ;;  %v138_v22 = vld [vmem:[%s7713_s1 + $0x1f0] sm:$0xff]  ;;  %v4020_v26 = vpack.c.bf16 %v107_v20, %v106_v19 }
  0x15   :  { %4011 = vmatpush3.bf16.msra.mxu0 %v4010_v62  ;;  %v121_v17 = vld [vmem:[%s7713_s1 + $0x168] sm:$0xff]  ;;  %v139_v23 = vld [vmem:[%s7713_s1 + $0x1f8] sm:$0xff]  ;;  %1017 = vmatprep.mubr.f32.mxu1 %v29_v21  ;;  %v4018_v24 = vpack.c.bf16 %v89_v15, %v88_v11  ;;  %v90_v27 = vld [vmem:[%s7713_s1 + $0x70] sm:$0xff] }
  0x16   :  { %4013 = vmatprep.subr.bf16.mxu0 %v4012_v0  ;;  %v4050_v25 = vpack.c.bf16 %v121_v17, %v120_v16  ;;  %v91_v28 = vld [vmem:[%s7713_s1 + $0x78] sm:$0xff]  ;;  %v122_v29 = vld [vmem:[%s7713_s1 + $0x170] sm:$0xff]  ;;  %v4052_v30 = vpack.c.bf16 %v139_v23, %v138_v22  ;;  %v156_v32 = vld [vmem:[%s7713_s1 + $0x280] sm:$0xff] }
  0x17   :  { %4043 = vmatpush3.bf16.msra.mxu1 %v4042_v63  ;;  %v123_v31 = vld [vmem:[%s7713_s1 + $0x178] sm:$0xff]  ;;  %v157_v33 = vld [vmem:[%s7713_s1 + $0x288] sm:$0xff]  ;;  %v188_v34 = vld [vmem:[%s7713_s1 + $0x380] sm:$0xff]  ;;  %v4022_v36 = vpack.c.bf16 %v91_v28, %v90_v27 }
  0x18   :  { %4045 = vmatprep.subr.bf16.mxu1 %v4044_v4  ;;  %v189_v35 = vld [vmem:[%s7713_s1 + $0x388] sm:$0xff]  ;;  %v4054_v37 = vpack.c.bf16 %v123_v31, %v122_v29  ;;  %v4056_v38 = vpack.c.bf16 %v157_v33, %v156_v32  ;;  %v140_v39 = vld [vmem:[%s7713_s1 + $0x200] sm:$0xff]  ;;  %v158_v44 = vld [vmem:[%s7713_s1 + $0x290] sm:$0xff] }
  0x19   :  { %4015 = vmatpush3.bf16.msra.mxu0 %v4014_v10  ;;  %v141_v40 = vld [vmem:[%s7713_s1 + $0x208] sm:$0xff]  ;;  %v172_v41 = vld [vmem:[%s7713_s1 + $0x300] sm:$0xff]  ;;  %v4088_v42 = vpack.c.bf16 %v189_v35, %v188_v34  ;;  %v159_v45 = vld [vmem:[%s7713_s1 + $0x298] sm:$0xff] }
  0x1a   :  { %4017 = vmatprep.subr.bf16.mxu0 %v4016_v14  ;;  %v173_v43 = vld [vmem:[%s7713_s1 + $0x308] sm:$0xff]  ;;  %v190_v46 = vld [vmem:[%s7713_s1 + $0x390] sm:$0xff]  ;;  %v191_v47 = vld [vmem:[%s7713_s1 + $0x398] sm:$0xff]  ;;  %v4058_v49 = vpack.c.bf16 %v141_v40, %v140_v39  ;;  %v4060_v52 = vpack.c.bf16 %v159_v45, %v158_v44 }
  0x1b   :  { %4047 = vmatpush3.bf16.msra.mxu1 %v4046_v13  ;;  %v26_v48 = vld [vmem:[%s7714_s0] sm:$0xff]  ;;  %v28_v50 = vld [vmem:[%s7714_s0 + $0x10] sm:$0xff]  ;;  %v4090_v51 = vpack.c.bf16 %v173_v43, %v172_v41  ;;  %v143_v54 = vld [vmem:[%s7713_s1 + $0x218] sm:$0xff]  ;;  %v4092_v56 = vpack.c.bf16 %v191_v47, %v190_v46 }
  0x1c   :  { %4049 = vmatprep.subr.bf16.mxu1 %v4048_v18  ;;  %v142_v53 = vld [vmem:[%s7713_s1 + $0x210] sm:$0xff]  ;;  %v175_v57 = vld [vmem:[%s7713_s1 + $0x318] sm:$0xff]  ;;  %v160_v58 = vld [vmem:[%s7713_s1 + $0x2a0] sm:$0xff] }
  0x1d   :  { %4019 = vmatpush3.bf16.msra.mxu0 %v4018_v24  ;;  %v174_v55 = vld [vmem:[%s7713_s1 + $0x310] sm:$0xff]  ;;  %v161_v59 = vld [vmem:[%s7713_s1 + $0x2a8] sm:$0xff]  ;;  %v192_v60 = vld [vmem:[%s7713_s1 + $0x3a0] sm:$0xff]  ;;  %v4062_v62 = vpack.c.bf16 %v143_v54, %v142_v53 }
  0x1e   :  { %4021 = vmatprep.subr.bf16.mxu0 %v4020_v26  ;;  %v193_v61 = vld [vmem:[%s7713_s1 + $0x3a8] sm:$0xff]  ;;  %v4094_v63 = vpack.c.bf16 %v175_v57, %v174_v55  ;;  %v4064_v0 = vpack.c.bf16 %v161_v59, %v160_v58  ;;  %v144_v1 = vld [vmem:[%s7713_s1 + $0x220] sm:$0xff]  ;;  %v162_v6 = vld [vmem:[%s7713_s1 + $0x2b0] sm:$0xff] }
  0x1f   :  { %4051 = vmatpush3.bf16.msra.mxu1 %v4050_v25  ;;  %v145_v2 = vld [vmem:[%s7713_s1 + $0x228] sm:$0xff]  ;;  %v176_v3 = vld [vmem:[%s7713_s1 + $0x320] sm:$0xff]  ;;  %v4096_v4 = vpack.c.bf16 %v193_v61, %v192_v60  ;;  %v163_v7 = vld [vmem:[%s7713_s1 + $0x2b8] sm:$0xff] }
  0x20   :  { %4053 = vmatprep.subr.bf16.mxu1 %v4052_v30  ;;  %v177_v5 = vld [vmem:[%s7713_s1 + $0x328] sm:$0xff]  ;;  %v194_v8 = vld [vmem:[%s7713_s1 + $0x3b0] sm:$0xff]  ;;  %v195_v9 = vld [vmem:[%s7713_s1 + $0x3b8] sm:$0xff]  ;;  %v4066_v10 = vpack.c.bf16 %v145_v2, %v144_v1  ;;  %v4068_v12 = vpack.c.bf16 %v163_v7, %v162_v6 }
  0x21   :  { %4023 = vmatpush3.bf16.msra.mxu0 %v4022_v36  ;;  %v4098_v11 = vpack.c.bf16 %v177_v5, %v176_v3  ;;  %v146_v13 = vld [vmem:[%s7713_s1 + $0x230] sm:$0xff]  ;;  %v147_v14 = vld [vmem:[%s7713_s1 + $0x238] sm:$0xff]  ;;  %v4100_v16 = vpack.c.bf16 %v195_v9, %v194_v8  ;;  %v164_v18 = vld [vmem:[%s7713_s1 + $0x2c0] sm:$0xff] }
  0x22   :  { %4057 = vmatprep.subr.bf16.mxu0 %v4056_v38  ;;  %v178_v15 = vld [vmem:[%s7713_s1 + $0x330] sm:$0xff]  ;;  %v179_v17 = vld [vmem:[%s7713_s1 + $0x338] sm:$0xff]  ;;  %v165_v19 = vld [vmem:[%s7713_s1 + $0x2c8] sm:$0xff]  ;;  %v4070_v23 = vpack.c.bf16 %v147_v14, %v146_v13 }
  0x23   :  { %4055 = vmatpush3.bf16.msra.mxu1 %v4054_v37  ;;  %v196_v20 = vld [vmem:[%s7713_s1 + $0x3c0] sm:$0xff]  ;;  %v197_v21 = vld [vmem:[%s7713_s1 + $0x3c8] sm:$0xff]  ;;  %v4102_v25 = vpack.c.bf16 %v179_v17, %v178_v15  ;;  %v4072_v26 = vpack.c.bf16 %v165_v19, %v164_v18  ;;  %v33_v29 = vld [vmem:[%s7714_s0 + $0x38] sm:$0xff] }
  0x24   :  { %4089 = vmatprep.subr.bf16.mxu1 %v4088_v42  ;;  %948 = vmatmul.mubr.f32.vlgmr.msra.gmra.mrb[0].mxu0 %v26_v48  ;;  %v31_v22 = vld [vmem:[%s7714_s0 + $0x28] sm:$0xff]  ;;  %v148_v24 = vld [vmem:[%s7713_s1 + $0x240] sm:$0xff]  ;;  %v4104_v30 = vpack.c.bf16 %v197_v21, %v196_v20  ;;  %v166_v32 = vld [vmem:[%s7713_s1 + $0x2d0] sm:$0xff] }
  0x25   :  { %4059 = vmatpush3.bf16.msra.mxu0 %v4058_v49  ;;  %1087 = vmatprep.mubr.f32.mxu0 %v31_v22  ;;  %v149_v27 = vld [vmem:[%s7713_s1 + $0x248] sm:$0xff]  ;;  %v180_v28 = vld [vmem:[%s7713_s1 + $0x340] sm:$0xff]  ;;  %v167_v33 = vld [vmem:[%s7713_s1 + $0x2d8] sm:$0xff] }
  0x26   :  { %1018 = vmatmul.mubr.f32.vlgmr.msra.gmra.mrb[0].mxu1 %v28_v50  ;;  %4061 = vmatprep.subr.bf16.mxu0 %v4060_v52  ;;  %v181_v31 = vld [vmem:[%s7713_s1 + $0x348] sm:$0xff]  ;;  %v198_v34 = vld [vmem:[%s7713_s1 + $0x3d0] sm:$0xff]  ;;  %v199_v35 = vld [vmem:[%s7713_s1 + $0x3d8] sm:$0xff]  ;;  %v4074_v36 = vpack.c.bf16 %v149_v27, %v148_v24  ;;  %v4076_v38 = vpack.c.bf16 %v167_v33, %v166_v32 }
  0x27   :  { %4091 = vmatpush3.bf16.msra.mxu1 %v4090_v51  ;;  %1157 = vmatprep.mubr.f32.mxu1 %v33_v29  ;;  %v4106_v37 = vpack.c.bf16 %v181_v31, %v180_v28  ;;  %v150_v39 = vld [vmem:[%s7713_s1 + $0x250] sm:$0xff]  ;;  %v151_v40 = vld [vmem:[%s7713_s1 + $0x258] sm:$0xff]  ;;  %v4108_v42 = vpack.c.bf16 %v199_v35, %v198_v34  ;;  %v168_v44 = vld [vmem:[%s7713_s1 + $0x2e0] sm:$0xff] }
  0x28   :  { %4093 = vmatprep.subr.bf16.mxu1 %v4092_v56  ;;  %v182_v41 = vld [vmem:[%s7713_s1 + $0x350] sm:$0xff]  ;;  %v183_v43 = vld [vmem:[%s7713_s1 + $0x358] sm:$0xff]  ;;  %v169_v45 = vld [vmem:[%s7713_s1 + $0x2e8] sm:$0xff]  ;;  %v4078_v48 = vpack.c.bf16 %v151_v40, %v150_v39 }
  0x29   :  { %4063 = vmatpush3.bf16.msra.mxu0 %v4062_v62  ;;  %v200_v46 = vld [vmem:[%s7713_s1 + $0x3e0] sm:$0xff]  ;;  %v201_v47 = vld [vmem:[%s7713_s1 + $0x3e8] sm:$0xff]  ;;  %v4110_v49 = vpack.c.bf16 %v183_v43, %v182_v41  ;;  %v4080_v50 = vpack.c.bf16 %v169_v45, %v168_v44  ;;  %v170_v56 = vld [vmem:[%s7713_s1 + $0x2f0] sm:$0xff] }
  0x2a   :  { %4065 = vmatprep.subr.bf16.mxu0 %v4064_v0  ;;  %v152_v51 = vld [vmem:[%s7713_s1 + $0x260] sm:$0xff]  ;;  %v153_v52 = vld [vmem:[%s7713_s1 + $0x268] sm:$0xff]  ;;  %v4112_v54 = vpack.c.bf16 %v201_v47, %v200_v46  ;;  %v171_v57 = vld [vmem:[%s7713_s1 + $0x2f8] sm:$0xff] }
  0x2b   :  { %4095 = vmatpush3.bf16.msra.mxu1 %v4094_v63  ;;  %v184_v53 = vld [vmem:[%s7713_s1 + $0x360] sm:$0xff]  ;;  %v185_v55 = vld [vmem:[%s7713_s1 + $0x368] sm:$0xff]  ;;  %v202_v58 = vld [vmem:[%s7713_s1 + $0x3f0] sm:$0xff]  ;;  %v4082_v60 = vpack.c.bf16 %v153_v52, %v152_v51  ;;  %v4084_v62 = vpack.c.bf16 %v171_v57, %v170_v56 }
  0x2c   :  { %4097 = vmatprep.subr.bf16.mxu1 %v4096_v4  ;;  %v203_v59 = vld [vmem:[%s7713_s1 + $0x3f8] sm:$0xff]  ;;  %v4114_v61 = vpack.c.bf16 %v185_v55, %v184_v53  ;;  %v154_v63 = vld [vmem:[%s7713_s1 + $0x270] sm:$0xff]  ;;  %v220_v4 = vld [vmem:[%s7713_s1 + $0x480] sm:$0xff] }
  0x2d   :  { %4067 = vmatpush3.bf16.msra.mxu0 %v4066_v10  ;;  %v155_v0 = vld [vmem:[%s7713_s1 + $0x278] sm:$0xff]  ;;  %v186_v1 = vld [vmem:[%s7713_s1 + $0x370] sm:$0xff]  ;;  %v4116_v2 = vpack.c.bf16 %v203_v59, %v202_v58  ;;  %v221_v5 = vld [vmem:[%s7713_s1 + $0x488] sm:$0xff] }
  0x2e   :  { %4069 = vmatprep.subr.bf16.mxu0 %v4068_v12  ;;  %v187_v3 = vld [vmem:[%s7713_s1 + $0x378] sm:$0xff]  ;;  %v252_v6 = vld [vmem:[%s7713_s1 + $0x580] sm:$0xff]  ;;  %v253_v7 = vld [vmem:[%s7713_s1 + $0x588] sm:$0xff]  ;;  %v4086_v8 = vpack.c.bf16 %v155_v0, %v154_v63  ;;  %v4120_v10 = vpack.c.bf16 %v221_v5, %v220_v4 }
  0x2f   :  { %4099 = vmatpush3.bf16.msra.mxu1 %v4098_v11  ;;  %v4118_v9 = vpack.c.bf16 %v187_v3, %v186_v1  ;;  %v204_v11 = vld [vmem:[%s7713_s1 + $0x400] sm:$0xff]  ;;  %v205_v12 = vld [vmem:[%s7713_s1 + $0x408] sm:$0xff]  ;;  %v4152_v14 = vpack.c.bf16 %v253_v7, %v252_v6  ;;  %v223_v17 = vld [vmem:[%s7713_s1 + $0x498] sm:$0xff] }
  0x30   :  { %4101 = vmatprep.subr.bf16.mxu1 %v4100_v16  ;;  %v236_v13 = vld [vmem:[%s7713_s1 + $0x500] sm:$0xff]  ;;  %v237_v15 = vld [vmem:[%s7713_s1 + $0x508] sm:$0xff]  ;;  %v222_v16 = vld [vmem:[%s7713_s1 + $0x490] sm:$0xff]  ;;  %v4122_v21 = vpack.c.bf16 %v205_v12, %v204_v11 }
  0x31   :  { %4071 = vmatpush3.bf16.msra.mxu0 %v4070_v23  ;;  %v254_v18 = vld [vmem:[%s7713_s1 + $0x590] sm:$0xff]  ;;  %v255_v19 = vld [vmem:[%s7713_s1 + $0x598] sm:$0xff]  ;;  %v30_v20 = vld [vmem:[%s7714_s0 + $0x20] sm:$0xff]  ;;  %v4154_v23 = vpack.c.bf16 %v237_v15, %v236_v13  ;;  %v4124_v24 = vpack.c.bf16 %v223_v17, %v222_v16 }
  0x32   :  { %4073 = vmatprep.subr.bf16.mxu0 %v4072_v26  ;;  %v32_v22 = vld [vmem:[%s7714_s0 + $0x30] sm:$0xff]  ;;  %v207_v26 = vld [vmem:[%s7713_s1 + $0x418] sm:$0xff]  ;;  %v4156_v28 = vpack.c.bf16 %v255_v19, %v254_v18  ;;  %v225_v31 = vld [vmem:[%s7713_s1 + $0x4a8] sm:$0xff] }
  0x33   :  { %4103 = vmatpush3.bf16.msra.mxu1 %v4102_v25  ;;  %v206_v25 = vld [vmem:[%s7713_s1 + $0x410] sm:$0xff]  ;;  %v239_v29 = vld [vmem:[%s7713_s1 + $0x518] sm:$0xff]  ;;  %v256_v32 = vld [vmem:[%s7713_s1 + $0x5a0] sm:$0xff] }
  0x34   :  { %4105 = vmatprep.subr.bf16.mxu1 %v4104_v30  ;;  %v238_v27 = vld [vmem:[%s7713_s1 + $0x510] sm:$0xff]  ;;  %v224_v30 = vld [vmem:[%s7713_s1 + $0x4a0] sm:$0xff]  ;;  %v257_v33 = vld [vmem:[%s7713_s1 + $0x5a8] sm:$0xff]  ;;  %v4126_v35 = vpack.c.bf16 %v207_v26, %v206_v25 }
  0x35   :  { %4075 = vmatpush3.bf16.msra.mxu0 %v4074_v36  ;;  %v35_v34 = vld [vmem:[%s7714_s0 + $0x48] sm:$0xff]  ;;  %v37_v36 = vld [vmem:[%s7714_s0 + $0x58] sm:$0xff]  ;;  %v208_v39 = vld [vmem:[%s7713_s1 + $0x420] sm:$0xff] }
  0x36   :  { %4077 = vmatprep.subr.bf16.mxu0 %v4076_v38  ;;  %v4128_v38 = vpack.c.bf16 %v225_v31, %v224_v30  ;;  %v209_v40 = vld [vmem:[%s7713_s1 + $0x428] sm:$0xff]  ;;  %v240_v41 = vld [vmem:[%s7713_s1 + $0x520] sm:$0xff]  ;;  %v226_v44 = vld [vmem:[%s7713_s1 + $0x4b0] sm:$0xff] }
  0x37   :  { %4107 = vmatpush3.bf16.msra.mxu1 %v4106_v37  ;;  %v4158_v37 = vpack.c.bf16 %v239_v29, %v238_v27  ;;  %v241_v43 = vld [vmem:[%s7713_s1 + $0x528] sm:$0xff]  ;;  %v227_v45 = vld [vmem:[%s7713_s1 + $0x4b8] sm:$0xff]  ;;  %v258_v46 = vld [vmem:[%s7713_s1 + $0x5b0] sm:$0xff] }
  0x38   :  { %4109 = vmatprep.subr.bf16.mxu1 %v4108_v42  ;;  %v4160_v42 = vpack.c.bf16 %v257_v33, %v256_v32  ;;  %v259_v47 = vld [vmem:[%s7713_s1 + $0x5b8] sm:$0xff]  ;;  %v210_v51 = vld [vmem:[%s7713_s1 + $0x430] sm:$0xff]  ;;  %v228_v56 = vld [vmem:[%s7713_s1 + $0x4c0] sm:$0xff] }
  0x39   :  { %4079 = vmatpush3.bf16.msra.mxu0 %v4078_v48  ;;  %v4130_v48 = vpack.c.bf16 %v209_v40, %v208_v39  ;;  %v211_v52 = vld [vmem:[%s7713_s1 + $0x438] sm:$0xff]  ;;  %v242_v53 = vld [vmem:[%s7713_s1 + $0x530] sm:$0xff]  ;;  %v229_v57 = vld [vmem:[%s7713_s1 + $0x4c8] sm:$0xff] }
  0x3a   :  { %4081 = vmatprep.subr.bf16.mxu0 %v4080_v50  ;;  %v4132_v50 = vpack.c.bf16 %v227_v45, %v226_v44  ;;  %v243_v55 = vld [vmem:[%s7713_s1 + $0x538] sm:$0xff]  ;;  %v260_v58 = vld [vmem:[%s7713_s1 + $0x5c0] sm:$0xff]  ;;  %v261_v59 = vld [vmem:[%s7713_s1 + $0x5c8] sm:$0xff] }
  0x3b   :  { %4111 = vmatpush3.bf16.msra.mxu1 %v4110_v49  ;;  %v4162_v49 = vpack.c.bf16 %v241_v43, %v240_v41  ;;  %v212_v63 = vld [vmem:[%s7713_s1 + $0x440] sm:$0xff]  ;;  %v213_v0 = vld [vmem:[%s7713_s1 + $0x448] sm:$0xff]  ;;  %v230_v4 = vld [vmem:[%s7713_s1 + $0x4d0] sm:$0xff] }
  0x3c   :  { %4113 = vmatprep.subr.bf16.mxu1 %v4112_v54  ;;  %v4164_v54 = vpack.c.bf16 %v259_v47, %v258_v46  ;;  %v244_v1 = vld [vmem:[%s7713_s1 + $0x540] sm:$0xff]  ;;  %v245_v3 = vld [vmem:[%s7713_s1 + $0x548] sm:$0xff]  ;;  %v231_v5 = vld [vmem:[%s7713_s1 + $0x4d8] sm:$0xff] }
  0x3d   :  { %4083 = vmatpush3.bf16.msra.mxu0 %v4082_v60  ;;  %v4134_v60 = vpack.c.bf16 %v211_v52, %v210_v51  ;;  %v262_v6 = vld [vmem:[%s7713_s1 + $0x5d0] sm:$0xff]  ;;  %v263_v7 = vld [vmem:[%s7713_s1 + $0x5d8] sm:$0xff]  ;;  %v232_v16 = vld [vmem:[%s7713_s1 + $0x4e0] sm:$0xff] }
  0x3e   :  { %4085 = vmatprep.subr.bf16.mxu0 %v4084_v62  ;;  %v4136_v62 = vpack.c.bf16 %v229_v57, %v228_v56  ;;  %v214_v11 = vld [vmem:[%s7713_s1 + $0x450] sm:$0xff]  ;;  %v215_v12 = vld [vmem:[%s7713_s1 + $0x458] sm:$0xff]  ;;  %v233_v17 = vld [vmem:[%s7713_s1 + $0x4e8] sm:$0xff] }
  0x3f   :  { %4115 = vmatpush3.bf16.msra.mxu1 %v4114_v61  ;;  %v4166_v61 = vpack.c.bf16 %v243_v55, %v242_v53  ;;  %v246_v13 = vld [vmem:[%s7713_s1 + $0x550] sm:$0xff]  ;;  %v247_v15 = vld [vmem:[%s7713_s1 + $0x558] sm:$0xff]  ;;  %v264_v18 = vld [vmem:[%s7713_s1 + $0x5e0] sm:$0xff] }
  0x40   :  { %4117 = vmatprep.subr.bf16.mxu1 %v4116_v2  ;;  %v4168_v2 = vpack.c.bf16 %v261_v59, %v260_v58  ;;  %v265_v19 = vld [vmem:[%s7713_s1 + $0x5e8] sm:$0xff]  ;;  %v248_v25 = vld [vmem:[%s7713_s1 + $0x560] sm:$0xff]  ;;  %v235_v29 = vld [vmem:[%s7713_s1 + $0x4f8] sm:$0xff] }
  0x41   :  { %4087 = vmatpush3.bf16.msra.mxu0 %v4086_v8  ;;  %v4138_v8 = vpack.c.bf16 %v213_v0, %v212_v63  ;;  %v4176_v26 = vpack.c.bf16 %v265_v19, %v264_v18  ;;  %v249_v27 = vld [vmem:[%s7713_s1 + $0x568] sm:$0xff]  ;;  %v266_v30 = vld [vmem:[%s7713_s1 + $0x5f0] sm:$0xff]  ;;  %v267_v31 = vld [vmem:[%s7713_s1 + $0x5f8] sm:$0xff] }
  0x42   :  { %4121 = vmatprep.subr.bf16.mxu0 %v4120_v10  ;;  %v4140_v10 = vpack.c.bf16 %v231_v5, %v230_v4  ;;  %v4178_v33 = vpack.c.bf16 %v249_v27, %v248_v25  ;;  %v251_v39 = vld [vmem:[%s7713_s1 + $0x578] sm:$0xff]  ;;  %v284_v40 = vld [vmem:[%s7713_s1 + $0x680] sm:$0xff]  ;;  %v285_v41 = vld [vmem:[%s7713_s1 + $0x688] sm:$0xff] }
  0x43   :  { %4119 = vmatpush3.bf16.msra.mxu1 %v4118_v9  ;;  %v4170_v9 = vpack.c.bf16 %v245_v3, %v244_v1  ;;  %v317_v43 = vld [vmem:[%s7713_s1 + $0x788] sm:$0xff]  ;;  %v4184_v46 = vpack.c.bf16 %v285_v41, %v284_v40  ;;  %v268_v47 = vld [vmem:[%s7713_s1 + $0x600] sm:$0xff]  ;;  %v286_v52 = vld [vmem:[%s7713_s1 + $0x690] sm:$0xff] }
  0x44   :  { %4153 = vmatprep.subr.bf16.mxu1 %v4152_v14  ;;  %1088 = vmatmul.mubr.f32.vlgmr.msra.gmra.mrb[2].mxu0 %v30_v20  ;;  %v4172_v14 = vpack.c.bf16 %v263_v7, %v262_v6  ;;  %v4142_v20 = vpack.c.bf16 %v215_v12, %v214_v11  ;;  %v301_v51 = vld [vmem:[%s7713_s1 + $0x708] sm:$0xff]  ;;  %v287_v53 = vld [vmem:[%s7713_s1 + $0x698] sm:$0xff]  ;;  %v34_v56 = vld [vmem:[%s7714_s0 + $0x40] sm:$0xff] }
  0x45   :  { %4123 = vmatpush3.bf16.msra.mxu0 %v4122_v21  ;;  %1227 = vmatprep.mubr.f32.mxu0 %v35_v34  ;;  %v4174_v21 = vpack.c.bf16 %v247_v15, %v246_v13  ;;  %v319_v55 = vld [vmem:[%s7713_s1 + $0x798] sm:$0xff]  ;;  %v36_v58 = vld [vmem:[%s7714_s0 + $0x50] sm:$0xff]  ;;  %v289_v3 = vld [vmem:[%s7713_s1 + $0x6a8] sm:$0xff] }
  0x46   :  { %1158 = vmatmul.mubr.f32.vlgmr.msra.gmra.mrb[2].mxu1 %v32_v22  ;;  %4125 = vmatprep.subr.bf16.mxu0 %v4124_v24  ;;  %v4144_v22 = vpack.c.bf16 %v233_v17, %v232_v16  ;;  %v217_v24 = vld [vmem:[%s7713_s1 + $0x468] sm:$0xff]  ;;  %v302_v63 = vld [vmem:[%s7713_s1 + $0x710] sm:$0xff]  ;;  %v303_v1 = vld [vmem:[%s7713_s1 + $0x718] sm:$0xff] }
  0x47   :  { %4155 = vmatpush3.bf16.msra.mxu1 %v4154_v23  ;;  %1297 = vmatprep.mubr.f32.mxu1 %v37_v36  ;;  %v216_v23 = vld [vmem:[%s7713_s1 + $0x460] sm:$0xff]  ;;  %v219_v36 = vld [vmem:[%s7713_s1 + $0x478] sm:$0xff]  ;;  %v321_v5 = vld [vmem:[%s7713_s1 + $0x7a8] sm:$0xff] }
  0x48   :  { %4157 = vmatprep.subr.bf16.mxu1 %v4156_v28  ;;  %v234_v28 = vld [vmem:[%s7713_s1 + $0x4f0] sm:$0xff]  ;;  %v4146_v32 = vpack.c.bf16 %v217_v24, %v216_v23  ;;  %v320_v4 = vld [vmem:[%s7713_s1 + $0x7a0] sm:$0xff]  ;;  %v39_v6 = vld [vmem:[%s7714_s0 + $0x68] sm:$0xff] }
  0x49   :  { %4127 = vmatpush3.bf16.msra.mxu0 %v4126_v35  ;;  %v4148_v34 = vpack.c.bf16 %v235_v29, %v234_v28  ;;  %v218_v35 = vld [vmem:[%s7713_s1 + $0x470] sm:$0xff]  ;;  %v272_v11 = vld [vmem:[%s7713_s1 + $0x620] sm:$0xff]  ;;  %v273_v12 = vld [vmem:[%s7713_s1 + $0x628] sm:$0xff] }
  0x4a   :  { %4129 = vmatprep.subr.bf16.mxu0 %v4128_v38  ;;  %v4180_v38 = vpack.c.bf16 %v267_v31, %v266_v30  ;;  %v4150_v44 = vpack.c.bf16 %v219_v36, %v218_v35  ;;  %v304_v13 = vld [vmem:[%s7713_s1 + $0x720] sm:$0xff]  ;;  %v305_v15 = vld [vmem:[%s7713_s1 + $0x728] sm:$0xff]  ;;  %v290_v16 = vld [vmem:[%s7713_s1 + $0x6b0] sm:$0xff] }
  0x4b   :  { %4159 = vmatpush3.bf16.msra.mxu1 %v4158_v37  ;;  %v250_v37 = vld [vmem:[%s7713_s1 + $0x570] sm:$0xff]  ;;  %v291_v17 = vld [vmem:[%s7713_s1 + $0x6b8] sm:$0xff]  ;;  %v292_v28 = vld [vmem:[%s7713_s1 + $0x6c0] sm:$0xff] }
  0x4c   :  { %4161 = vmatprep.subr.bf16.mxu1 %v4160_v42  ;;  %v316_v42 = vld [vmem:[%s7713_s1 + $0x780] sm:$0xff]  ;;  %v4182_v45 = vpack.c.bf16 %v251_v39, %v250_v37  ;;  %v322_v18 = vld [vmem:[%s7713_s1 + $0x7b0] sm:$0xff]  ;;  %v323_v19 = vld [vmem:[%s7713_s1 + $0x7b8] sm:$0xff] }
  0x4d   :  { %4131 = vmatpush3.bf16.msra.mxu0 %v4130_v48  ;;  %v269_v48 = vld [vmem:[%s7713_s1 + $0x608] sm:$0xff]  ;;  %v274_v23 = vld [vmem:[%s7713_s1 + $0x630] sm:$0xff]  ;;  %v275_v24 = vld [vmem:[%s7713_s1 + $0x638] sm:$0xff] }
  0x4e   :  { %4133 = vmatprep.subr.bf16.mxu0 %v4132_v50  ;;  %v4216_v50 = vpack.c.bf16 %v317_v43, %v316_v42  ;;  %v4186_v57 = vpack.c.bf16 %v269_v48, %v268_v47  ;;  %v306_v25 = vld [vmem:[%s7713_s1 + $0x730] sm:$0xff]  ;;  %v307_v27 = vld [vmem:[%s7713_s1 + $0x738] sm:$0xff]  ;;  %v293_v29 = vld [vmem:[%s7713_s1 + $0x6c8] sm:$0xff] }
  0x4f   :  { %4163 = vmatpush3.bf16.msra.mxu1 %v4162_v49  ;;  %v300_v49 = vld [vmem:[%s7713_s1 + $0x700] sm:$0xff]  ;;  %v325_v31 = vld [vmem:[%s7713_s1 + $0x7c8] sm:$0xff]  ;;  %v294_v40 = vld [vmem:[%s7713_s1 + $0x6d0] sm:$0xff] }
  0x50   :  { %4165 = vmatprep.subr.bf16.mxu1 %v4164_v54  ;;  %v318_v54 = vld [vmem:[%s7713_s1 + $0x790] sm:$0xff]  ;;  %v4218_v59 = vpack.c.bf16 %v301_v51, %v300_v49  ;;  %v324_v30 = vld [vmem:[%s7713_s1 + $0x7c0] sm:$0xff]  ;;  %v277_v36 = vld [vmem:[%s7713_s1 + $0x648] sm:$0xff] }
  0x51   :  { %4135 = vmatpush3.bf16.msra.mxu0 %v4134_v60  ;;  %v4188_v60 = vpack.c.bf16 %v287_v53, %v286_v52  ;;  %v4220_v0 = vpack.c.bf16 %v319_v55, %v318_v54  ;;  %v276_v35 = vld [vmem:[%s7713_s1 + $0x640] sm:$0xff]  ;;  %v309_v39 = vld [vmem:[%s7713_s1 + $0x748] sm:$0xff]  ;;  %v295_v41 = vld [vmem:[%s7713_s1 + $0x6d8] sm:$0xff] }
  0x52   :  { %4137 = vmatprep.subr.bf16.mxu0 %v4136_v62  ;;  %v271_v62 = vld [vmem:[%s7713_s1 + $0x618] sm:$0xff]  ;;  %v308_v37 = vld [vmem:[%s7713_s1 + $0x740] sm:$0xff]  ;;  %v326_v42 = vld [vmem:[%s7713_s1 + $0x7d0] sm:$0xff] }
  0x53   :  { %4167 = vmatpush3.bf16.msra.mxu1 %v4166_v61  ;;  %v270_v61 = vld [vmem:[%s7713_s1 + $0x610] sm:$0xff]  ;;  %v327_v43 = vld [vmem:[%s7713_s1 + $0x7d8] sm:$0xff]  ;;  %v296_v52 = vld [vmem:[%s7713_s1 + $0x6e0] sm:$0xff] }
  0x54   :  { %4169 = vmatprep.subr.bf16.mxu1 %v4168_v2  ;;  %v288_v2 = vld [vmem:[%s7713_s1 + $0x6a0] sm:$0xff]  ;;  %v4190_v7 = vpack.c.bf16 %v271_v62, %v270_v61  ;;  %v278_v47 = vld [vmem:[%s7713_s1 + $0x650] sm:$0xff]  ;;  %v279_v48 = vld [vmem:[%s7713_s1 + $0x658] sm:$0xff] }
  0x55   :  { %4139 = vmatpush3.bf16.msra.mxu0 %v4138_v8  ;;  %v41_v8 = vld [vmem:[%s7714_s0 + $0x78] sm:$0xff]  ;;  %v310_v49 = vld [vmem:[%s7713_s1 + $0x750] sm:$0xff]  ;;  %v297_v53 = vld [vmem:[%s7713_s1 + $0x6e8] sm:$0xff] }
  0x56   :  { %4141 = vmatprep.subr.bf16.mxu0 %v4140_v10  ;;  %v4192_v10 = vpack.c.bf16 %v289_v3, %v288_v2  ;;  %v311_v51 = vld [vmem:[%s7713_s1 + $0x758] sm:$0xff]  ;;  %v328_v54 = vld [vmem:[%s7713_s1 + $0x7e0] sm:$0xff]  ;;  %v329_v55 = vld [vmem:[%s7713_s1 + $0x7e8] sm:$0xff] }
  0x57   :  { %4171 = vmatpush3.bf16.msra.mxu1 %v4170_v9  ;;  %v4222_v9 = vpack.c.bf16 %v303_v1, %v302_v63  ;;  %v312_v61 = vld [vmem:[%s7713_s1 + $0x760] sm:$0xff]  ;;  %v4240_v62 = vpack.c.bf16 %v329_v55, %v328_v54  ;;  %v313_v63 = vld [vmem:[%s7713_s1 + $0x768] sm:$0xff]  ;;  %v299_v1 = vld [vmem:[%s7713_s1 + $0x6f8] sm:$0xff] }
  0x58   :  { %4173 = vmatprep.subr.bf16.mxu1 %v4172_v14  ;;  %v4224_v14 = vpack.c.bf16 %v321_v5, %v320_v4  ;;  %v330_v2 = vld [vmem:[%s7713_s1 + $0x7f0] sm:$0xff]  ;;  %v331_v3 = vld [vmem:[%s7713_s1 + $0x7f8] sm:$0xff]  ;;  %v4242_v5 = vpack.c.bf16 %v313_v63, %v312_v61 }
  0x59   :  { %4143 = vmatpush3.bf16.msra.mxu0 %v4142_v20  ;;  %v4194_v20 = vpack.c.bf16 %v273_v12, %v272_v11  ;;  %v315_v11 = vld [vmem:[%s7713_s1 + $0x778] sm:$0xff]  ;;  %v348_v12 = vld [vmem:[%s7713_s1 + $0x880] sm:$0xff]  ;;  %v386_v54 = vld [vmem:[%s7713_s1 + $0x9b0] sm:$0xff] }
  0x5a   :  { %4145 = vmatprep.subr.bf16.mxu0 %v4144_v22  ;;  %v4196_v22 = vpack.c.bf16 %v291_v17, %v290_v16  ;;  %v387_v55 = vld [vmem:[%s7713_s1 + $0x9b8] sm:$0xff]  ;;  %v370_v61 = vld [vmem:[%s7713_s1 + $0x930] sm:$0xff] }
  0x5b   :  { %4175 = vmatpush3.bf16.msra.mxu1 %v4174_v21  ;;  %v4226_v21 = vpack.c.bf16 %v305_v15, %v304_v13  ;;  %v349_v13 = vld [vmem:[%s7713_s1 + $0x888] sm:$0xff]  ;;  %v371_v63 = vld [vmem:[%s7713_s1 + $0x938] sm:$0xff] }
  0x5c   :  { %4177 = vmatprep.subr.bf16.mxu1 %v4176_v26  ;;  %v4228_v26 = vpack.c.bf16 %v323_v19, %v322_v18  ;;  %v381_v15 = vld [vmem:[%s7713_s1 + $0x988] sm:$0xff]  ;;  %v4248_v18 = vpack.c.bf16 %v349_v13, %v348_v12  ;;  %v332_v19 = vld [vmem:[%s7713_s1 + $0x800] sm:$0xff]  ;;  %v358_v12 = vld [vmem:[%s7713_s1 + $0x8d0] sm:$0xff] }
  0x5d   :  { %4147 = vmatpush3.bf16.msra.mxu0 %v4146_v32  ;;  %v4198_v32 = vpack.c.bf16 %v275_v24, %v274_v23  ;;  %v365_v23 = vld [vmem:[%s7713_s1 + $0x908] sm:$0xff]  ;;  %v350_v24 = vld [vmem:[%s7713_s1 + $0x890] sm:$0xff]  ;;  %v359_v13 = vld [vmem:[%s7713_s1 + $0x8d8] sm:$0xff] }
  0x5e   :  { %4149 = vmatprep.subr.bf16.mxu0 %v4148_v34  ;;  %v4200_v34 = vpack.c.bf16 %v293_v29, %v292_v28  ;;  %v38_v28 = vld [vmem:[%s7714_s0 + $0x60] sm:$0xff] }
  0x5f   :  { %4179 = vmatpush3.bf16.msra.mxu1 %v4178_v33  ;;  %v4230_v33 = vpack.c.bf16 %v307_v27, %v306_v25  ;;  %v351_v25 = vld [vmem:[%s7713_s1 + $0x898] sm:$0xff] }
  0x60   :  { %4181 = vmatprep.subr.bf16.mxu1 %v4180_v38  ;;  %v4232_v38 = vpack.c.bf16 %v325_v31, %v324_v30  ;;  %v383_v27 = vld [vmem:[%s7713_s1 + $0x998] sm:$0xff]  ;;  %v40_v30 = vld [vmem:[%s7714_s0 + $0x70] sm:$0xff] }
  0x61   :  { %4151 = vmatpush3.bf16.msra.mxu0 %v4150_v44  ;;  %v4202_v44 = vpack.c.bf16 %v277_v36, %v276_v35  ;;  %v366_v35 = vld [vmem:[%s7713_s1 + $0x910] sm:$0xff] }
  0x62   :  { %4185 = vmatprep.subr.bf16.mxu0 %v4184_v46  ;;  %v4204_v46 = vpack.c.bf16 %v295_v41, %v294_v40  ;;  %v384_v40 = vld [vmem:[%s7713_s1 + $0x9a0] sm:$0xff]  ;;  %v385_v41 = vld [vmem:[%s7713_s1 + $0x9a8] sm:$0xff] }
  0x63   :  { %4183 = vmatpush3.bf16.msra.mxu1 %v4182_v45  ;;  %v4234_v45 = vpack.c.bf16 %v309_v39, %v308_v37  ;;  %v367_v37 = vld [vmem:[%s7713_s1 + $0x918] sm:$0xff]  ;;  %v353_v39 = vld [vmem:[%s7713_s1 + $0x8a8] sm:$0xff] }
  0x64   :  { %4217 = vmatprep.subr.bf16.mxu1 %v4216_v50  ;;  %1228 = vmatmul.mubr.f32.vlgmr.msra.gmra.mrb[4].mxu0 %v34_v56  ;;  %v4236_v50 = vpack.c.bf16 %v327_v43, %v326_v42  ;;  %v4206_v56 = vpack.c.bf16 %v279_v48, %v278_v47  ;;  %v43_v42 = vld [vmem:[%s7714_s0 + $0x88] sm:$0xff]  ;;  %v336_v47 = vld [vmem:[%s7713_s1 + $0x820] sm:$0xff] }
  0x65   :  { %4187 = vmatpush3.bf16.msra.mxu0 %v4186_v57  ;;  %1367 = vmatprep.mubr.f32.mxu0 %v39_v6  ;;  %v4238_v57 = vpack.c.bf16 %v311_v51, %v310_v49  ;;  %v337_v48 = vld [vmem:[%s7713_s1 + $0x828] sm:$0xff]  ;;  %v368_v49 = vld [vmem:[%s7713_s1 + $0x920] sm:$0xff] }
  0x66   :  { %1298 = vmatmul.mubr.f32.vlgmr.msra.gmra.mrb[4].mxu1 %v36_v58  ;;  %4189 = vmatprep.subr.bf16.mxu0 %v4188_v60  ;;  %v4208_v58 = vpack.c.bf16 %v297_v53, %v296_v52  ;;  %v281_v60 = vld [vmem:[%s7713_s1 + $0x668] sm:$0xff]  ;;  %v354_v52 = vld [vmem:[%s7713_s1 + $0x8b0] sm:$0xff]  ;;  %v355_v53 = vld [vmem:[%s7713_s1 + $0x8b8] sm:$0xff] }
  0x67   :  { %4219 = vmatpush3.bf16.msra.mxu1 %v4218_v59  ;;  %1437 = vmatprep.mubr.f32.mxu1 %v41_v8  ;;  %v280_v59 = vld [vmem:[%s7713_s1 + $0x660] sm:$0xff]  ;;  %v283_v8 = vld [vmem:[%s7713_s1 + $0x678] sm:$0xff]  ;;  %v369_v51 = vld [vmem:[%s7713_s1 + $0x928] sm:$0xff] }
  0x68   :  { %4221 = vmatprep.subr.bf16.mxu1 %v4220_v0  ;;  %v298_v0 = vld [vmem:[%s7713_s1 + $0x6f0] sm:$0xff]  ;;  %v4210_v4 = vpack.c.bf16 %v281_v60, %v280_v59  ;;  %v339_v60 = vld [vmem:[%s7713_s1 + $0x838] sm:$0xff] }
  0x69   :  { %4191 = vmatpush3.bf16.msra.mxu0 %v4190_v7  ;;  %v4212_v6 = vpack.c.bf16 %v299_v1, %v298_v0  ;;  %v282_v7 = vld [vmem:[%s7713_s1 + $0x670] sm:$0xff]  ;;  %v356_v0 = vld [vmem:[%s7713_s1 + $0x8c0] sm:$0xff]  ;;  %v357_v1 = vld [vmem:[%s7713_s1 + $0x8c8] sm:$0xff] }
  0x6a   :  { %4193 = vmatprep.subr.bf16.mxu0 %v4192_v10  ;;  %v4244_v10 = vpack.c.bf16 %v331_v3, %v330_v2  ;;  %v4214_v16 = vpack.c.bf16 %v283_v8, %v282_v7  ;;  %v338_v59 = vld [vmem:[%s7713_s1 + $0x830] sm:$0xff]  ;;  %v388_v2 = vld [vmem:[%s7713_s1 + $0x9c0] sm:$0xff]  ;;  %v389_v3 = vld [vmem:[%s7713_s1 + $0x9c8] sm:$0xff] }
  0x6b   :  { %4223 = vmatpush3.bf16.msra.mxu1 %v4222_v9  ;;  %v314_v9 = vld [vmem:[%s7713_s1 + $0x770] sm:$0xff]  ;;  %v340_v7 = vld [vmem:[%s7713_s1 + $0x840] sm:$0xff]  ;;  %v341_v8 = vld [vmem:[%s7713_s1 + $0x848] sm:$0xff] }
  0x6c   :  { %4225 = vmatprep.subr.bf16.mxu1 %v4224_v14  ;;  %v380_v14 = vld [vmem:[%s7713_s1 + $0x980] sm:$0xff]  ;;  %v4246_v17 = vpack.c.bf16 %v315_v11, %v314_v9  ;;  %v373_v11 = vld [vmem:[%s7713_s1 + $0x948] sm:$0xff] }
  0x6d   :  { %4195 = vmatpush3.bf16.msra.mxu0 %v4194_v20  ;;  %v333_v20 = vld [vmem:[%s7713_s1 + $0x808] sm:$0xff]  ;;  %v372_v9 = vld [vmem:[%s7713_s1 + $0x940] sm:$0xff] }
  0x6e   :  { %4197 = vmatprep.subr.bf16.mxu0 %v4196_v22  ;;  %v4280_v22 = vpack.c.bf16 %v381_v15, %v380_v14  ;;  %v4250_v29 = vpack.c.bf16 %v333_v20, %v332_v19  ;;  %v390_v14 = vld [vmem:[%s7713_s1 + $0x9d0] sm:$0xff]  ;;  %v391_v15 = vld [vmem:[%s7713_s1 + $0x9d8] sm:$0xff] }
  0x6f   :  { %4227 = vmatpush3.bf16.msra.mxu1 %v4226_v21  ;;  %v364_v21 = vld [vmem:[%s7713_s1 + $0x900] sm:$0xff]  ;;  %v342_v19 = vld [vmem:[%s7713_s1 + $0x850] sm:$0xff]  ;;  %v343_v20 = vld [vmem:[%s7713_s1 + $0x858] sm:$0xff] }
  0x70   :  { %4229 = vmatprep.subr.bf16.mxu1 %v4228_v26  ;;  %v382_v26 = vld [vmem:[%s7713_s1 + $0x990] sm:$0xff]  ;;  %v4282_v31 = vpack.c.bf16 %v365_v23, %v364_v21  ;;  %v375_v23 = vld [vmem:[%s7713_s1 + $0x958] sm:$0xff] }
  0x71   :  { %4199 = vmatpush3.bf16.msra.mxu0 %v4198_v32  ;;  %v4252_v32 = vpack.c.bf16 %v351_v25, %v350_v24  ;;  %v4284_v36 = vpack.c.bf16 %v383_v27, %v382_v26  ;;  %v374_v21 = vld [vmem:[%s7713_s1 + $0x950] sm:$0xff]  ;;  %v360_v24 = vld [vmem:[%s7713_s1 + $0x8e0] sm:$0xff]  ;;  %v361_v25 = vld [vmem:[%s7713_s1 + $0x8e8] sm:$0xff] }
  0x72   :  { %4201 = vmatprep.subr.bf16.mxu0 %v4200_v34  ;;  %v335_v34 = vld [vmem:[%s7713_s1 + $0x818] sm:$0xff]  ;;  %v392_v26 = vld [vmem:[%s7713_s1 + $0x9e0] sm:$0xff]  ;;  %v393_v27 = vld [vmem:[%s7713_s1 + $0x9e8] sm:$0xff] }
  0x73   :  { %4231 = vmatpush3.bf16.msra.mxu1 %v4230_v33  ;;  %v334_v33 = vld [vmem:[%s7713_s1 + $0x810] sm:$0xff] }
  0x74   :  { %4233 = vmatprep.subr.bf16.mxu1 %v4232_v38  ;;  %v352_v38 = vld [vmem:[%s7713_s1 + $0x8a0] sm:$0xff]  ;;  %v4254_v43 = vpack.c.bf16 %v335_v34, %v334_v33  ;;  %v4304_v34 = vpack.c.bf16 %v393_v27, %v392_v26  ;;  %v450_v26 = vld [vmem:[%s7713_s1 + $0xbb0] sm:$0xff]  ;;  %v451_v27 = vld [vmem:[%s7713_s1 + $0xbb8] sm:$0xff] }
  0x75   :  { %4203 = vmatpush3.bf16.msra.mxu0 %v4202_v44  ;;  %v45_v44 = vld [vmem:[%s7714_s0 + $0x98] sm:$0xff]  ;;  %v376_v33 = vld [vmem:[%s7713_s1 + $0x960] sm:$0xff] }
  0x76   :  { %4205 = vmatprep.subr.bf16.mxu0 %v4204_v46  ;;  %v4256_v46 = vpack.c.bf16 %v353_v39, %v352_v38  ;;  %v394_v38 = vld [vmem:[%s7713_s1 + $0x9f0] sm:$0xff]  ;;  %v395_v39 = vld [vmem:[%s7713_s1 + $0x9f8] sm:$0xff] }
  0x77   :  { %4235 = vmatpush3.bf16.msra.mxu1 %v4234_v45  ;;  %v4286_v45 = vpack.c.bf16 %v367_v37, %v366_v35  ;;  %v377_v35 = vld [vmem:[%s7713_s1 + $0x968] sm:$0xff]  ;;  %v363_v37 = vld [vmem:[%s7713_s1 + $0x8f8] sm:$0xff] }
  0x78   :  { %4237 = vmatprep.subr.bf16.mxu1 %v4236_v50  ;;  %v4288_v50 = vpack.c.bf16 %v385_v41, %v384_v40  ;;  %v4306_v41 = vpack.c.bf16 %v377_v35, %v376_v33  ;;  %v434_v33 = vld [vmem:[%s7713_s1 + $0xb30] sm:$0xff]  ;;  %v435_v35 = vld [vmem:[%s7713_s1 + $0xb38] sm:$0xff] }
  0x79   :  { %4207 = vmatpush3.bf16.msra.mxu0 %v4206_v56  ;;  %v4258_v56 = vpack.c.bf16 %v337_v48, %v336_v47  ;;  %v379_v47 = vld [vmem:[%s7713_s1 + $0x978] sm:$0xff]  ;;  %v412_v48 = vld [vmem:[%s7713_s1 + $0xa80] sm:$0xff] }
  0x7a   :  { %4209 = vmatprep.subr.bf16.mxu0 %v4208_v58  ;;  %v4260_v58 = vpack.c.bf16 %v355_v53, %v354_v52 }
  0x7b   :  { %4239 = vmatpush3.bf16.msra.mxu1 %v4238_v57  ;;  %v4290_v57 = vpack.c.bf16 %v369_v51, %v368_v49  ;;  %v413_v49 = vld [vmem:[%s7713_s1 + $0xa88] sm:$0xff] }
  0x7c   :  { %4241 = vmatprep.subr.bf16.mxu1 %v4240_v62  ;;  %v4292_v62 = vpack.c.bf16 %v387_v55, %v386_v54  ;;  %v445_v51 = vld [vmem:[%s7713_s1 + $0xb88] sm:$0xff]  ;;  %v4312_v54 = vpack.c.bf16 %v413_v49, %v412_v48  ;;  %v396_v55 = vld [vmem:[%s7713_s1 + $0xa00] sm:$0xff]  ;;  %v422_v48 = vld [vmem:[%s7713_s1 + $0xad0] sm:$0xff] }
  0x7d   :  { %4211 = vmatpush3.bf16.msra.mxu0 %v4210_v4  ;;  %v4262_v4 = vpack.c.bf16 %v339_v60, %v338_v59  ;;  %v429_v59 = vld [vmem:[%s7713_s1 + $0xb08] sm:$0xff]  ;;  %v414_v60 = vld [vmem:[%s7713_s1 + $0xa90] sm:$0xff]  ;;  %v423_v49 = vld [vmem:[%s7713_s1 + $0xad8] sm:$0xff] }
  0x7e   :  { %4213 = vmatprep.subr.bf16.mxu0 %v4212_v6  ;;  %v4264_v6 = vpack.c.bf16 %v357_v1, %v356_v0  ;;  %v42_v0 = vld [vmem:[%s7714_s0 + $0x80] sm:$0xff] }
  0x7f   :  { %4243 = vmatpush3.bf16.msra.mxu1 %v4242_v5  ;;  %v4294_v5 = vpack.c.bf16 %v371_v63, %v370_v61  ;;  %v415_v61 = vld [vmem:[%s7713_s1 + $0xa98] sm:$0xff] }
  0x80   :  { %4245 = vmatprep.subr.bf16.mxu1 %v4244_v10  ;;  %v4296_v10 = vpack.c.bf16 %v389_v3, %v388_v2  ;;  %v447_v63 = vld [vmem:[%s7713_s1 + $0xb98] sm:$0xff]  ;;  %v44_v2 = vld [vmem:[%s7714_s0 + $0x90] sm:$0xff] }
  0x81   :  { %4215 = vmatpush3.bf16.msra.mxu0 %v4214_v16  ;;  %v4266_v16 = vpack.c.bf16 %v341_v8, %v340_v7  ;;  %v430_v7 = vld [vmem:[%s7713_s1 + $0xb10] sm:$0xff] }
  0x82   :  { %4249 = vmatprep.subr.bf16.mxu0 %v4248_v18  ;;  %v4268_v18 = vpack.c.bf16 %v359_v13, %v358_v12  ;;  %v448_v12 = vld [vmem:[%s7713_s1 + $0xba0] sm:$0xff]  ;;  %v449_v13 = vld [vmem:[%s7713_s1 + $0xba8] sm:$0xff] }
  0x83   :  { %4247 = vmatpush3.bf16.msra.mxu1 %v4246_v17  ;;  %v4298_v17 = vpack.c.bf16 %v373_v11, %v372_v9  ;;  %v431_v9 = vld [vmem:[%s7713_s1 + $0xb18] sm:$0xff]  ;;  %v417_v11 = vld [vmem:[%s7713_s1 + $0xaa8] sm:$0xff] }
  0x84   :  { %4281 = vmatprep.subr.bf16.mxu1 %v4280_v22  ;;  %1368 = vmatmul.mubr.f32.vlgmr.msra.gmra.mrb[6].mxu0 %v38_v28  ;;  %v4300_v22 = vpack.c.bf16 %v391_v15, %v390_v14  ;;  %v4270_v28 = vpack.c.bf16 %v343_v20, %v342_v19  ;;  %v47_v14 = vld [vmem:[%s7714_s0 + $0xa8] sm:$0xff]  ;;  %v400_v19 = vld [vmem:[%s7713_s1 + $0xa20] sm:$0xff] }
  0x85   :  { %4251 = vmatpush3.bf16.msra.mxu0 %v4250_v29  ;;  %1507 = vmatprep.mubr.f32.mxu0 %v43_v42  ;;  %v4302_v29 = vpack.c.bf16 %v375_v23, %v374_v21  ;;  %v401_v20 = vld [vmem:[%s7713_s1 + $0xa28] sm:$0xff]  ;;  %v432_v21 = vld [vmem:[%s7713_s1 + $0xb20] sm:$0xff] }
  0x86   :  { %1438 = vmatmul.mubr.f32.vlgmr.msra.gmra.mrb[6].mxu1 %v40_v30  ;;  %4253 = vmatprep.subr.bf16.mxu0 %v4252_v32  ;;  %v4272_v30 = vpack.c.bf16 %v361_v25, %v360_v24  ;;  %v345_v32 = vld [vmem:[%s7713_s1 + $0x868] sm:$0xff]  ;;  %v418_v24 = vld [vmem:[%s7713_s1 + $0xab0] sm:$0xff]  ;;  %v419_v25 = vld [vmem:[%s7713_s1 + $0xab8] sm:$0xff] }
  0x87   :  { %4283 = vmatpush3.bf16.msra.mxu1 %v4282_v31  ;;  %1577 = vmatprep.mubr.f32.mxu1 %v45_v44  ;;  %v344_v31 = vld [vmem:[%s7713_s1 + $0x860] sm:$0xff]  ;;  %v347_v44 = vld [vmem:[%s7713_s1 + $0x878] sm:$0xff]  ;;  %v433_v23 = vld [vmem:[%s7713_s1 + $0xb28] sm:$0xff] }
  0x88   :  { %4285 = vmatprep.subr.bf16.mxu1 %v4284_v36  ;;  %v362_v36 = vld [vmem:[%s7713_s1 + $0x8f0] sm:$0xff]  ;;  %v4274_v40 = vpack.c.bf16 %v345_v32, %v344_v31  ;;  %v403_v32 = vld [vmem:[%s7713_s1 + $0xa38] sm:$0xff] }
  0x89   :  { %4255 = vmatpush3.bf16.msra.mxu0 %v4254_v43  ;;  %v4276_v42 = vpack.c.bf16 %v363_v37, %v362_v36  ;;  %v346_v43 = vld [vmem:[%s7713_s1 + $0x870] sm:$0xff]  ;;  %v420_v36 = vld [vmem:[%s7713_s1 + $0xac0] sm:$0xff]  ;;  %v421_v37 = vld [vmem:[%s7713_s1 + $0xac8] sm:$0xff] }
  0x8a   :  { %4257 = vmatprep.subr.bf16.mxu0 %v4256_v46  ;;  %v4308_v46 = vpack.c.bf16 %v395_v39, %v394_v38  ;;  %v4278_v52 = vpack.c.bf16 %v347_v44, %v346_v43  ;;  %v402_v31 = vld [vmem:[%s7713_s1 + $0xa30] sm:$0xff]  ;;  %v452_v38 = vld [vmem:[%s7713_s1 + $0xbc0] sm:$0xff]  ;;  %v453_v39 = vld [vmem:[%s7713_s1 + $0xbc8] sm:$0xff] }
  0x8b   :  { %4287 = vmatpush3.bf16.msra.mxu1 %v4286_v45  ;;  %v378_v45 = vld [vmem:[%s7713_s1 + $0x970] sm:$0xff]  ;;  %v404_v43 = vld [vmem:[%s7713_s1 + $0xa40] sm:$0xff]  ;;  %v405_v44 = vld [vmem:[%s7713_s1 + $0xa48] sm:$0xff] }
  0x8c   :  { %4289 = vmatprep.subr.bf16.mxu1 %v4288_v50  ;;  %v444_v50 = vld [vmem:[%s7713_s1 + $0xb80] sm:$0xff]  ;;  %v4310_v53 = vpack.c.bf16 %v379_v47, %v378_v45  ;;  %v437_v47 = vld [vmem:[%s7713_s1 + $0xb48] sm:$0xff] }
  0x8d   :  { %4259 = vmatpush3.bf16.msra.mxu0 %v4258_v56  ;;  %v397_v56 = vld [vmem:[%s7713_s1 + $0xa08] sm:$0xff]  ;;  %v436_v45 = vld [vmem:[%s7713_s1 + $0xb40] sm:$0xff] }
  0x8e   :  { %4261 = vmatprep.subr.bf16.mxu0 %v4260_v58  ;;  %v4344_v58 = vpack.c.bf16 %v445_v51, %v444_v50  ;;  %v4314_v1 = vpack.c.bf16 %v397_v56, %v396_v55  ;;  %v454_v50 = vld [vmem:[%s7713_s1 + $0xbd0] sm:$0xff]  ;;  %v455_v51 = vld [vmem:[%s7713_s1 + $0xbd8] sm:$0xff] }
  0x8f   :  { %4291 = vmatpush3.bf16.msra.mxu1 %v4290_v57  ;;  %v428_v57 = vld [vmem:[%s7713_s1 + $0xb00] sm:$0xff]  ;;  %v406_v55 = vld [vmem:[%s7713_s1 + $0xa50] sm:$0xff]  ;;  %v407_v56 = vld [vmem:[%s7713_s1 + $0xa58] sm:$0xff] }
  0x90   :  { %4293 = vmatprep.subr.bf16.mxu1 %v4292_v62  ;;  %v446_v62 = vld [vmem:[%s7713_s1 + $0xb90] sm:$0xff]  ;;  %v4346_v3 = vpack.c.bf16 %v429_v59, %v428_v57  ;;  %v439_v59 = vld [vmem:[%s7713_s1 + $0xb58] sm:$0xff] }
  0x91   :  { %4263 = vmatpush3.bf16.msra.mxu0 %v4262_v4  ;;  %v4316_v4 = vpack.c.bf16 %v415_v61, %v414_v60  ;;  %v4348_v8 = vpack.c.bf16 %v447_v63, %v446_v62  ;;  %v438_v57 = vld [vmem:[%s7713_s1 + $0xb50] sm:$0xff]  ;;  %v424_v60 = vld [vmem:[%s7713_s1 + $0xae0] sm:$0xff]  ;;  %v425_v61 = vld [vmem:[%s7713_s1 + $0xae8] sm:$0xff] }
  0x92   :  { %4265 = vmatprep.subr.bf16.mxu0 %v4264_v6  ;;  %v399_v6 = vld [vmem:[%s7713_s1 + $0xa18] sm:$0xff]  ;;  %v456_v62 = vld [vmem:[%s7713_s1 + $0xbe0] sm:$0xff]  ;;  %v457_v63 = vld [vmem:[%s7713_s1 + $0xbe8] sm:$0xff] }
  0x93   :  { %4295 = vmatpush3.bf16.msra.mxu1 %v4294_v5  ;;  %v398_v5 = vld [vmem:[%s7713_s1 + $0xa10] sm:$0xff] }
  0x94   :  { %4297 = vmatprep.subr.bf16.mxu1 %v4296_v10  ;;  %v416_v10 = vld [vmem:[%s7713_s1 + $0xaa0] sm:$0xff]  ;;  %v4318_v15 = vpack.c.bf16 %v399_v6, %v398_v5  ;;  %v4368_v6 = vpack.c.bf16 %v457_v63, %v456_v62  ;;  %v514_v62 = vld [vmem:[%s7713_s1 + $0xdb0] sm:$0xff]  ;;  %v515_v63 = vld [vmem:[%s7713_s1 + $0xdb8] sm:$0xff] }
  0x95   :  { %4267 = vmatpush3.bf16.msra.mxu0 %v4266_v16  ;;  %v49_v16 = vld [vmem:[%s7714_s0 + $0xb8] sm:$0xff]  ;;  %v440_v5 = vld [vmem:[%s7713_s1 + $0xb60] sm:$0xff] }
  0x96   :  { %4269 = vmatprep.subr.bf16.mxu0 %v4268_v18  ;;  %v4320_v18 = vpack.c.bf16 %v417_v11, %v416_v10  ;;  %v458_v10 = vld [vmem:[%s7713_s1 + $0xbf0] sm:$0xff]  ;;  %v459_v11 = vld [vmem:[%s7713_s1 + $0xbf8] sm:$0xff] }
  0x97   :  { %4299 = vmatpush3.bf16.msra.mxu1 %v4298_v17  ;;  %v4350_v17 = vpack.c.bf16 %v431_v9, %v430_v7  ;;  %v441_v7 = vld [vmem:[%s7713_s1 + $0xb68] sm:$0xff]  ;;  %v427_v9 = vld [vmem:[%s7713_s1 + $0xaf8] sm:$0xff] }
  0x98   :  { %4301 = vmatprep.subr.bf16.mxu1 %v4300_v22  ;;  %v4352_v22 = vpack.c.bf16 %v449_v13, %v448_v12  ;;  %v4370_v13 = vpack.c.bf16 %v441_v7, %v440_v5  ;;  %v498_v5 = vld [vmem:[%s7713_s1 + $0xd30] sm:$0xff]  ;;  %v499_v7 = vld [vmem:[%s7713_s1 + $0xd38] sm:$0xff] }
  0x99   :  { %4271 = vmatpush3.bf16.msra.mxu0 %v4270_v28  ;;  %v4322_v28 = vpack.c.bf16 %v401_v20, %v400_v19  ;;  %v443_v19 = vld [vmem:[%s7713_s1 + $0xb78] sm:$0xff]  ;;  %v476_v20 = vld [vmem:[%s7713_s1 + $0xc80] sm:$0xff] }
  0x9a   :  { %4273 = vmatprep.subr.bf16.mxu0 %v4272_v30  ;;  %v4324_v30 = vpack.c.bf16 %v419_v25, %v418_v24 }
  0x9b   :  { %4303 = vmatpush3.bf16.msra.mxu1 %v4302_v29  ;;  %v4354_v29 = vpack.c.bf16 %v433_v23, %v432_v21  ;;  %v477_v21 = vld [vmem:[%s7713_s1 + $0xc88] sm:$0xff] }
  0x9c   :  { %4305 = vmatprep.subr.bf16.mxu1 %v4304_v34  ;;  %v4356_v34 = vpack.c.bf16 %v451_v27, %v450_v26  ;;  %v509_v23 = vld [vmem:[%s7713_s1 + $0xd88] sm:$0xff]  ;;  %v4376_v26 = vpack.c.bf16 %v477_v21, %v476_v20  ;;  %v460_v27 = vld [vmem:[%s7713_s1 + $0xc00] sm:$0xff]  ;;  %v486_v20 = vld [vmem:[%s7713_s1 + $0xcd0] sm:$0xff] }
  0x9d   :  { %4275 = vmatpush3.bf16.msra.mxu0 %v4274_v40  ;;  %v4326_v40 = vpack.c.bf16 %v403_v32, %v402_v31  ;;  %v493_v31 = vld [vmem:[%s7713_s1 + $0xd08] sm:$0xff]  ;;  %v478_v32 = vld [vmem:[%s7713_s1 + $0xc90] sm:$0xff]  ;;  %v487_v21 = vld [vmem:[%s7713_s1 + $0xcd8] sm:$0xff] }
  0x9e   :  { %4277 = vmatprep.subr.bf16.mxu0 %v4276_v42  ;;  %v4328_v42 = vpack.c.bf16 %v421_v37, %v420_v36  ;;  %v46_v36 = vld [vmem:[%s7714_s0 + $0xa0] sm:$0xff] }
  0x9f   :  { %4307 = vmatpush3.bf16.msra.mxu1 %v4306_v41  ;;  %v4358_v41 = vpack.c.bf16 %v435_v35, %v434_v33  ;;  %v479_v33 = vld [vmem:[%s7713_s1 + $0xc98] sm:$0xff] }
  0xa0   :  { %4309 = vmatprep.subr.bf16.mxu1 %v4308_v46  ;;  %v4360_v46 = vpack.c.bf16 %v453_v39, %v452_v38  ;;  %v511_v35 = vld [vmem:[%s7713_s1 + $0xd98] sm:$0xff]  ;;  %v48_v38 = vld [vmem:[%s7714_s0 + $0xb0] sm:$0xff] }
  0xa1   :  { %4279 = vmatpush3.bf16.msra.mxu0 %v4278_v52  ;;  %v4330_v52 = vpack.c.bf16 %v405_v44, %v404_v43  ;;  %v494_v43 = vld [vmem:[%s7713_s1 + $0xd10] sm:$0xff] }
  0xa2   :  { %4313 = vmatprep.subr.bf16.mxu0 %v4312_v54  ;;  %v4332_v54 = vpack.c.bf16 %v423_v49, %v422_v48  ;;  %v512_v48 = vld [vmem:[%s7713_s1 + $0xda0] sm:$0xff]  ;;  %v513_v49 = vld [vmem:[%s7713_s1 + $0xda8] sm:$0xff] }
  0xa3   :  { %4311 = vmatpush3.bf16.msra.mxu1 %v4310_v53  ;;  %v4362_v53 = vpack.c.bf16 %v437_v47, %v436_v45  ;;  %v495_v45 = vld [vmem:[%s7713_s1 + $0xd18] sm:$0xff]  ;;  %v481_v47 = vld [vmem:[%s7713_s1 + $0xca8] sm:$0xff] }
  0xa4   :  { %4345 = vmatprep.subr.bf16.mxu1 %v4344_v58  ;;  %1508 = vmatmul.mubr.f32.vlgmr.msra.gmra.mrb[8].mxu0 %v42_v0  ;;  %v4364_v58 = vpack.c.bf16 %v455_v51, %v454_v50  ;;  %v4334_v0 = vpack.c.bf16 %v407_v56, %v406_v55  ;;  %v51_v50 = vld [vmem:[%s7714_s0 + $0xc8] sm:$0xff]  ;;  %v464_v55 = vld [vmem:[%s7713_s1 + $0xc20] sm:$0xff] }
  0xa5   :  { %4315 = vmatpush3.bf16.msra.mxu0 %v4314_v1  ;;  %1647 = vmatprep.mubr.f32.mxu0 %v47_v14  ;;  %v4366_v1 = vpack.c.bf16 %v439_v59, %v438_v57  ;;  %v465_v56 = vld [vmem:[%s7713_s1 + $0xc28] sm:$0xff]  ;;  %v496_v57 = vld [vmem:[%s7713_s1 + $0xd20] sm:$0xff] }
  0xa6   :  { %1578 = vmatmul.mubr.f32.vlgmr.msra.gmra.mrb[8].mxu1 %v44_v2  ;;  %4317 = vmatprep.subr.bf16.mxu0 %v4316_v4  ;;  %v4336_v2 = vpack.c.bf16 %v425_v61, %v424_v60  ;;  %v409_v4 = vld [vmem:[%s7713_s1 + $0xa68] sm:$0xff]  ;;  %v482_v60 = vld [vmem:[%s7713_s1 + $0xcb0] sm:$0xff]  ;;  %v483_v61 = vld [vmem:[%s7713_s1 + $0xcb8] sm:$0xff] }
  0xa7   :  { %4347 = vmatpush3.bf16.msra.mxu1 %v4346_v3  ;;  %1717 = vmatprep.mubr.f32.mxu1 %v49_v16  ;;  %v408_v3 = vld [vmem:[%s7713_s1 + $0xa60] sm:$0xff]  ;;  %v411_v16 = vld [vmem:[%s7713_s1 + $0xa78] sm:$0xff]  ;;  %v497_v59 = vld [vmem:[%s7713_s1 + $0xd28] sm:$0xff] }
  0xa8   :  { %4349 = vmatprep.subr.bf16.mxu1 %v4348_v8  ;;  %v426_v8 = vld [vmem:[%s7713_s1 + $0xaf0] sm:$0xff]  ;;  %v4338_v12 = vpack.c.bf16 %v409_v4, %v408_v3  ;;  %v467_v4 = vld [vmem:[%s7713_s1 + $0xc38] sm:$0xff] }
  0xa9   :  { %4319 = vmatpush3.bf16.msra.mxu0 %v4318_v15  ;;  %v4340_v14 = vpack.c.bf16 %v427_v9, %v426_v8  ;;  %v410_v15 = vld [vmem:[%s7713_s1 + $0xa70] sm:$0xff]  ;;  %v484_v8 = vld [vmem:[%s7713_s1 + $0xcc0] sm:$0xff]  ;;  %v485_v9 = vld [vmem:[%s7713_s1 + $0xcc8] sm:$0xff] }
  0xaa   :  { %4321 = vmatprep.subr.bf16.mxu0 %v4320_v18  ;;  %v4372_v18 = vpack.c.bf16 %v459_v11, %v458_v10  ;;  %v4342_v24 = vpack.c.bf16 %v411_v16, %v410_v15  ;;  %v466_v3 = vld [vmem:[%s7713_s1 + $0xc30] sm:$0xff]  ;;  %v516_v10 = vld [vmem:[%s7713_s1 + $0xdc0] sm:$0xff]  ;;  %v517_v11 = vld [vmem:[%s7713_s1 + $0xdc8] sm:$0xff] }
  0xab   :  { %4351 = vmatpush3.bf16.msra.mxu1 %v4350_v17  ;;  %v442_v17 = vld [vmem:[%s7713_s1 + $0xb70] sm:$0xff]  ;;  %v468_v15 = vld [vmem:[%s7713_s1 + $0xc40] sm:$0xff]  ;;  %v469_v16 = vld [vmem:[%s7713_s1 + $0xc48] sm:$0xff] }
  0xac   :  { %4353 = vmatprep.subr.bf16.mxu1 %v4352_v22  ;;  %v508_v22 = vld [vmem:[%s7713_s1 + $0xd80] sm:$0xff]  ;;  %v4374_v25 = vpack.c.bf16 %v443_v19, %v442_v17  ;;  %v501_v19 = vld [vmem:[%s7713_s1 + $0xd48] sm:$0xff] }
  0xad   :  { %4323 = vmatpush3.bf16.msra.mxu0 %v4322_v28  ;;  %v461_v28 = vld [vmem:[%s7713_s1 + $0xc08] sm:$0xff]  ;;  %v500_v17 = vld [vmem:[%s7713_s1 + $0xd40] sm:$0xff] }
  0xae   :  { %4325 = vmatprep.subr.bf16.mxu0 %v4324_v30  ;;  %v4408_v30 = vpack.c.bf16 %v509_v23, %v508_v22  ;;  %v4378_v37 = vpack.c.bf16 %v461_v28, %v460_v27  ;;  %v518_v22 = vld [vmem:[%s7713_s1 + $0xdd0] sm:$0xff]  ;;  %v519_v23 = vld [vmem:[%s7713_s1 + $0xdd8] sm:$0xff] }
  0xaf   :  { %4355 = vmatpush3.bf16.msra.mxu1 %v4354_v29  ;;  %v492_v29 = vld [vmem:[%s7713_s1 + $0xd00] sm:$0xff]  ;;  %v470_v27 = vld [vmem:[%s7713_s1 + $0xc50] sm:$0xff]  ;;  %v471_v28 = vld [vmem:[%s7713_s1 + $0xc58] sm:$0xff] }
  0xb0   :  { %4357 = vmatprep.subr.bf16.mxu1 %v4356_v34  ;;  %v510_v34 = vld [vmem:[%s7713_s1 + $0xd90] sm:$0xff]  ;;  %v4410_v39 = vpack.c.bf16 %v493_v31, %v492_v29  ;;  %v503_v31 = vld [vmem:[%s7713_s1 + $0xd58] sm:$0xff] }
  0xb1   :  { %4327 = vmatpush3.bf16.msra.mxu0 %v4326_v40  ;;  %v4380_v40 = vpack.c.bf16 %v479_v33, %v478_v32  ;;  %v4412_v44 = vpack.c.bf16 %v511_v35, %v510_v34  ;;  %v502_v29 = vld [vmem:[%s7713_s1 + $0xd50] sm:$0xff]  ;;  %v488_v32 = vld [vmem:[%s7713_s1 + $0xce0] sm:$0xff]  ;;  %v489_v33 = vld [vmem:[%s7713_s1 + $0xce8] sm:$0xff] }
  0xb2   :  { %4329 = vmatprep.subr.bf16.mxu0 %v4328_v42  ;;  %v463_v42 = vld [vmem:[%s7713_s1 + $0xc18] sm:$0xff]  ;;  %v520_v34 = vld [vmem:[%s7713_s1 + $0xde0] sm:$0xff]  ;;  %v521_v35 = vld [vmem:[%s7713_s1 + $0xde8] sm:$0xff] }
  0xb3   :  { %4359 = vmatpush3.bf16.msra.mxu1 %v4358_v41  ;;  %v462_v41 = vld [vmem:[%s7713_s1 + $0xc10] sm:$0xff] }
  0xb4   :  { %4361 = vmatprep.subr.bf16.mxu1 %v4360_v46  ;;  %v480_v46 = vld [vmem:[%s7713_s1 + $0xca0] sm:$0xff]  ;;  %v4382_v51 = vpack.c.bf16 %v463_v42, %v462_v41  ;;  %v4432_v42 = vpack.c.bf16 %v521_v35, %v520_v34  ;;  %v578_v34 = vld [vmem:[%s7713_s1 + $0xfb0] sm:$0xff]  ;;  %v579_v35 = vld [vmem:[%s7713_s1 + $0xfb8] sm:$0xff] }
  0xb5   :  { %4331 = vmatpush3.bf16.msra.mxu0 %v4330_v52  ;;  %v53_v52 = vld [vmem:[%s7714_s0 + $0xd8] sm:$0xff]  ;;  %v504_v41 = vld [vmem:[%s7713_s1 + $0xd60] sm:$0xff] }
  0xb6   :  { %4333 = vmatprep.subr.bf16.mxu0 %v4332_v54  ;;  %v4384_v54 = vpack.c.bf16 %v481_v47, %v480_v46  ;;  %v522_v46 = vld [vmem:[%s7713_s1 + $0xdf0] sm:$0xff]  ;;  %v523_v47 = vld [vmem:[%s7713_s1 + $0xdf8] sm:$0xff] }
  0xb7   :  { %4363 = vmatpush3.bf16.msra.mxu1 %v4362_v53  ;;  %v4414_v53 = vpack.c.bf16 %v495_v45, %v494_v43  ;;  %v505_v43 = vld [vmem:[%s7713_s1 + $0xd68] sm:$0xff]  ;;  %v491_v45 = vld [vmem:[%s7713_s1 + $0xcf8] sm:$0xff] }
  0xb8   :  { %4365 = vmatprep.subr.bf16.mxu1 %v4364_v58  ;;  %v4416_v58 = vpack.c.bf16 %v513_v49, %v512_v48  ;;  %v4434_v49 = vpack.c.bf16 %v505_v43, %v504_v41  ;;  %v562_v41 = vld [vmem:[%s7713_s1 + $0xf30] sm:$0xff]  ;;  %v563_v43 = vld [vmem:[%s7713_s1 + $0xf38] sm:$0xff] }
  0xb9   :  { %4335 = vmatpush3.bf16.msra.mxu0 %v4334_v0  ;;  %v4386_v0 = vpack.c.bf16 %v465_v56, %v464_v55  ;;  %v507_v55 = vld [vmem:[%s7713_s1 + $0xd78] sm:$0xff]  ;;  %v540_v56 = vld [vmem:[%s7713_s1 + $0xe80] sm:$0xff] }
  0xba   :  { %4337 = vmatprep.subr.bf16.mxu0 %v4336_v2  ;;  %v4388_v2 = vpack.c.bf16 %v483_v61, %v482_v60 }
  0xbb   :  { %4367 = vmatpush3.bf16.msra.mxu1 %v4366_v1  ;;  %v4418_v1 = vpack.c.bf16 %v497_v59, %v496_v57  ;;  %v541_v57 = vld [vmem:[%s7713_s1 + $0xe88] sm:$0xff] }
  0xbc   :  { %4369 = vmatprep.subr.bf16.mxu1 %v4368_v6  ;;  %v4420_v6 = vpack.c.bf16 %v515_v63, %v514_v62  ;;  %v573_v59 = vld [vmem:[%s7713_s1 + $0xf88] sm:$0xff]  ;;  %v4440_v62 = vpack.c.bf16 %v541_v57, %v540_v56  ;;  %v524_v63 = vld [vmem:[%s7713_s1 + $0xe00] sm:$0xff]  ;;  %v550_v56 = vld [vmem:[%s7713_s1 + $0xed0] sm:$0xff] }
  0xbd   :  { %4339 = vmatpush3.bf16.msra.mxu0 %v4338_v12  ;;  %v4390_v12 = vpack.c.bf16 %v467_v4, %v466_v3  ;;  %v557_v3 = vld [vmem:[%s7713_s1 + $0xf08] sm:$0xff]  ;;  %v542_v4 = vld [vmem:[%s7713_s1 + $0xe90] sm:$0xff]  ;;  %v551_v57 = vld [vmem:[%s7713_s1 + $0xed8] sm:$0xff] }
  0xbe   :  { %4341 = vmatprep.subr.bf16.mxu0 %v4340_v14  ;;  %v4392_v14 = vpack.c.bf16 %v485_v9, %v484_v8  ;;  %v50_v8 = vld [vmem:[%s7714_s0 + $0xc0] sm:$0xff] }
  0xbf   :  { %4371 = vmatpush3.bf16.msra.mxu1 %v4370_v13  ;;  %v4422_v13 = vpack.c.bf16 %v499_v7, %v498_v5  ;;  %v543_v5 = vld [vmem:[%s7713_s1 + $0xe98] sm:$0xff] }
  0xc0   :  { %4373 = vmatprep.subr.bf16.mxu1 %v4372_v18  ;;  %v4424_v18 = vpack.c.bf16 %v517_v11, %v516_v10  ;;  %v575_v7 = vld [vmem:[%s7713_s1 + $0xf98] sm:$0xff]  ;;  %v52_v10 = vld [vmem:[%s7714_s0 + $0xd0] sm:$0xff] }
  0xc1   :  { %4343 = vmatpush3.bf16.msra.mxu0 %v4342_v24  ;;  %v4394_v24 = vpack.c.bf16 %v469_v16, %v468_v15  ;;  %v558_v15 = vld [vmem:[%s7713_s1 + $0xf10] sm:$0xff] }
  0xc2   :  { %4377 = vmatprep.subr.bf16.mxu0 %v4376_v26  ;;  %v4396_v26 = vpack.c.bf16 %v487_v21, %v486_v20  ;;  %v576_v20 = vld [vmem:[%s7713_s1 + $0xfa0] sm:$0xff]  ;;  %v577_v21 = vld [vmem:[%s7713_s1 + $0xfa8] sm:$0xff] }
  0xc3   :  { %4375 = vmatpush3.bf16.msra.mxu1 %v4374_v25  ;;  %v4426_v25 = vpack.c.bf16 %v501_v19, %v500_v17  ;;  %v559_v17 = vld [vmem:[%s7713_s1 + $0xf18] sm:$0xff]  ;;  %v545_v19 = vld [vmem:[%s7713_s1 + $0xea8] sm:$0xff] }
  0xc4   :  { %4409 = vmatprep.subr.bf16.mxu1 %v4408_v30  ;;  %1648 = vmatmul.mubr.f32.vlgmr.msra.gmra.mrb[10].mxu0 %v46_v36  ;;  %v4428_v30 = vpack.c.bf16 %v519_v23, %v518_v22  ;;  %v4398_v36 = vpack.c.bf16 %v471_v28, %v470_v27  ;;  %v55_v22 = vld [vmem:[%s7714_s0 + $0xe8] sm:$0xff]  ;;  %v528_v27 = vld [vmem:[%s7713_s1 + $0xe20] sm:$0xff] }
  0xc5   :  { %4379 = vmatpush3.bf16.msra.mxu0 %v4378_v37  ;;  %1787 = vmatprep.mubr.f32.mxu0 %v51_v50  ;;  %v4430_v37 = vpack.c.bf16 %v503_v31, %v502_v29  ;;  %v529_v28 = vld [vmem:[%s7713_s1 + $0xe28] sm:$0xff]  ;;  %v560_v29 = vld [vmem:[%s7713_s1 + $0xf20] sm:$0xff] }
  0xc6   :  { %1718 = vmatmul.mubr.f32.vlgmr.msra.gmra.mrb[10].mxu1 %v48_v38  ;;  %4381 = vmatprep.subr.bf16.mxu0 %v4380_v40  ;;  %v4400_v38 = vpack.c.bf16 %v489_v33, %v488_v32  ;;  %v473_v40 = vld [vmem:[%s7713_s1 + $0xc68] sm:$0xff]  ;;  %v546_v32 = vld [vmem:[%s7713_s1 + $0xeb0] sm:$0xff]  ;;  %v547_v33 = vld [vmem:[%s7713_s1 + $0xeb8] sm:$0xff] }
  0xc7   :  { %4411 = vmatpush3.bf16.msra.mxu1 %v4410_v39  ;;  %1857 = vmatprep.mubr.f32.mxu1 %v53_v52  ;;  %v472_v39 = vld [vmem:[%s7713_s1 + $0xc60] sm:$0xff]  ;;  %v475_v52 = vld [vmem:[%s7713_s1 + $0xc78] sm:$0xff]  ;;  %v561_v31 = vld [vmem:[%s7713_s1 + $0xf28] sm:$0xff] }
  0xc8   :  { %4413 = vmatprep.subr.bf16.mxu1 %v4412_v44  ;;  %v490_v44 = vld [vmem:[%s7713_s1 + $0xcf0] sm:$0xff]  ;;  %v4402_v48 = vpack.c.bf16 %v473_v40, %v472_v39  ;;  %v531_v40 = vld [vmem:[%s7713_s1 + $0xe38] sm:$0xff] }
  0xc9   :  { %4383 = vmatpush3.bf16.msra.mxu0 %v4382_v51  ;;  %v4404_v50 = vpack.c.bf16 %v491_v45, %v490_v44  ;;  %v474_v51 = vld [vmem:[%s7713_s1 + $0xc70] sm:$0xff]  ;;  %v548_v44 = vld [vmem:[%s7713_s1 + $0xec0] sm:$0xff]  ;;  %v549_v45 = vld [vmem:[%s7713_s1 + $0xec8] sm:$0xff] }
  0xca   :  { %4385 = vmatprep.subr.bf16.mxu0 %v4384_v54  ;;  %v4436_v54 = vpack.c.bf16 %v523_v47, %v522_v46  ;;  %v4406_v60 = vpack.c.bf16 %v475_v52, %v474_v51  ;;  %v530_v39 = vld [vmem:[%s7713_s1 + $0xe30] sm:$0xff]  ;;  %v580_v46 = vld [vmem:[%s7713_s1 + $0xfc0] sm:$0xff]  ;;  %v581_v47 = vld [vmem:[%s7713_s1 + $0xfc8] sm:$0xff] }
  0xcb   :  { %4415 = vmatpush3.bf16.msra.mxu1 %v4414_v53  ;;  %v506_v53 = vld [vmem:[%s7713_s1 + $0xd70] sm:$0xff]  ;;  %v532_v51 = vld [vmem:[%s7713_s1 + $0xe40] sm:$0xff]  ;;  %v533_v52 = vld [vmem:[%s7713_s1 + $0xe48] sm:$0xff] }
  0xcc   :  { %4417 = vmatprep.subr.bf16.mxu1 %v4416_v58  ;;  %v572_v58 = vld [vmem:[%s7713_s1 + $0xf80] sm:$0xff]  ;;  %v4438_v61 = vpack.c.bf16 %v507_v55, %v506_v53  ;;  %v565_v55 = vld [vmem:[%s7713_s1 + $0xf48] sm:$0xff] }
  0xcd   :  { %4387 = vmatpush3.bf16.msra.mxu0 %v4386_v0  ;;  %v525_v0 = vld [vmem:[%s7713_s1 + $0xe08] sm:$0xff]  ;;  %v564_v53 = vld [vmem:[%s7713_s1 + $0xf40] sm:$0xff] }
  0xce   :  { %4389 = vmatprep.subr.bf16.mxu0 %v4388_v2  ;;  %v4472_v2 = vpack.c.bf16 %v573_v59, %v572_v58  ;;  %v4442_v9 = vpack.c.bf16 %v525_v0, %v524_v63  ;;  %v582_v58 = vld [vmem:[%s7713_s1 + $0xfd0] sm:$0xff]  ;;  %v583_v59 = vld [vmem:[%s7713_s1 + $0xfd8] sm:$0xff] }
  0xcf   :  { %4419 = vmatpush3.bf16.msra.mxu1 %v4418_v1  ;;  %v556_v1 = vld [vmem:[%s7713_s1 + $0xf00] sm:$0xff]  ;;  %v534_v63 = vld [vmem:[%s7713_s1 + $0xe50] sm:$0xff]  ;;  %v535_v0 = vld [vmem:[%s7713_s1 + $0xe58] sm:$0xff] }
  0xd0   :  { %4421 = vmatprep.subr.bf16.mxu1 %v4420_v6  ;;  %v574_v6 = vld [vmem:[%s7713_s1 + $0xf90] sm:$0xff]  ;;  %v4474_v11 = vpack.c.bf16 %v557_v3, %v556_v1  ;;  %v567_v3 = vld [vmem:[%s7713_s1 + $0xf58] sm:$0xff] }
  0xd1   :  { %4391 = vmatpush3.bf16.msra.mxu0 %v4390_v12  ;;  %v4444_v12 = vpack.c.bf16 %v543_v5, %v542_v4  ;;  %v4476_v16 = vpack.c.bf16 %v575_v7, %v574_v6  ;;  %v566_v1 = vld [vmem:[%s7713_s1 + $0xf50] sm:$0xff]  ;;  %v552_v4 = vld [vmem:[%s7713_s1 + $0xee0] sm:$0xff]  ;;  %v553_v5 = vld [vmem:[%s7713_s1 + $0xee8] sm:$0xff] }
  0xd2   :  { %4393 = vmatprep.subr.bf16.mxu0 %v4392_v14  ;;  %v527_v14 = vld [vmem:[%s7713_s1 + $0xe18] sm:$0xff]  ;;  %v584_v6 = vld [vmem:[%s7713_s1 + $0xfe0] sm:$0xff]  ;;  %v585_v7 = vld [vmem:[%s7713_s1 + $0xfe8] sm:$0xff] }
  0xd3   :  { %4423 = vmatpush3.bf16.msra.mxu1 %v4422_v13  ;;  %v526_v13 = vld [vmem:[%s7713_s1 + $0xe10] sm:$0xff] }
  0xd4   :  { %4425 = vmatprep.subr.bf16.mxu1 %v4424_v18  ;;  %v544_v18 = vld [vmem:[%s7713_s1 + $0xea0] sm:$0xff]  ;;  %v4446_v23 = vpack.c.bf16 %v527_v14, %v526_v13 }
  0xd5   :  { %4395 = vmatpush3.bf16.msra.mxu0 %v4394_v24  ;;  %v57_v24 = vld [vmem:[%s7714_s0 + $0xf8] sm:$0xff]  ;;  %v568_v13 = vld [vmem:[%s7713_s1 + $0xf60] sm:$0xff] }
  0xd6   :  { %4397 = vmatprep.subr.bf16.mxu0 %v4396_v26  ;;  %v4448_v26 = vpack.c.bf16 %v545_v19, %v544_v18  ;;  %v555_v18 = vld [vmem:[%s7713_s1 + $0xef8] sm:$0xff]  ;;  %v3060_v19 = vld [vmem:[%s7715_s2] ss:$0 sm:$0xff] }
  0xd7   :  { %4427 = vmatpush3.bf16.msra.mxu1 %v4426_v25  ;;  %v4478_v25 = vpack.c.bf16 %v559_v17, %v558_v15  ;;  %v4496_v15 = vpack.c.bf16 %v585_v7, %v584_v6  ;;  %v554_v17 = vld [vmem:[%s7713_s1 + $0xef0] sm:$0xff] }
  0xd8   :  { %4429 = vmatprep.subr.bf16.mxu1 %v4428_v30  ;;  %v4480_v30 = vpack.c.bf16 %v577_v21, %v576_v20 }
  0xd9   :  { %4399 = vmatpush3.bf16.msra.mxu0 %v4398_v36  ;;  %v4450_v36 = vpack.c.bf16 %v529_v28, %v528_v27 }
  0xda   :  { %4401 = vmatprep.subr.bf16.mxu0 %v4400_v38  ;;  %v4452_v38 = vpack.c.bf16 %v547_v33, %v546_v32  ;;  %v570_v32 = vld [vmem:[%s7713_s1 + $0xf70] sm:$0xff] }
  0xdb   :  { %4431 = vmatpush3.bf16.msra.mxu1 %v4430_v37  ;;  %v4482_v37 = vpack.c.bf16 %v561_v31, %v560_v29  ;;  %v4468_v29 = vpack.c.bf16 %v555_v18, %v554_v17  ;;  %v539_v31 = vld [vmem:[%s7713_s1 + $0xe78] sm:$0xff] }
  0xdc   :  { %4433 = vmatprep.subr.bf16.mxu1 %v4432_v42  ;;  %v4484_v42 = vpack.c.bf16 %v579_v35, %v578_v34  ;;  %v571_v35 = vld [vmem:[%s7713_s1 + $0xf78] sm:$0xff] }
  0xdd   :  { %4403 = vmatpush3.bf16.msra.mxu0 %v4402_v48  ;;  %v4454_v48 = vpack.c.bf16 %v531_v40, %v530_v39  ;;  %v637_v39 = vld [vmem:[%s7713_s1 + $0x1188] sm:$0xff] }
  0xde   :  { %4405 = vmatprep.subr.bf16.mxu0 %v4404_v50  ;;  %v4456_v50 = vpack.c.bf16 %v549_v45, %v548_v44  ;;  %v588_v44 = vld [vmem:[%s7713_s1 + $0x1000] sm:$0xff]  ;;  %v589_v45 = vld [vmem:[%s7713_s1 + $0x1008] sm:$0xff] }
  0xdf   :  { %4435 = vmatpush3.bf16.msra.mxu1 %v4434_v49  ;;  %v4486_v49 = vpack.c.bf16 %v563_v43, %v562_v41 }
  0xe0   :  { %4437 = vmatprep.subr.bf16.mxu1 %v4436_v54  ;;  %v4488_v54 = vpack.c.bf16 %v581_v47, %v580_v46  ;;  %v620_v46 = vld [vmem:[%s7713_s1 + $0x1100] sm:$0xff] }
  0xe1   :  { %4407 = vmatpush3.bf16.msra.mxu0 %v4406_v60  ;;  %v4458_v60 = vpack.c.bf16 %v533_v52, %v532_v51  ;;  %v638_v51 = vld [vmem:[%s7713_s1 + $0x1190] sm:$0xff]  ;;  %v639_v52 = vld [vmem:[%s7713_s1 + $0x1198] sm:$0xff] }
  0xe2   :  { %4441 = vmatprep.subr.bf16.mxu0 %v4440_v62  ;;  %v4460_v62 = vpack.c.bf16 %v551_v57, %v550_v56 }
  0xe3   :  { %4439 = vmatpush3.bf16.msra.mxu1 %v4438_v61  ;;  %v4490_v61 = vpack.c.bf16 %v565_v55, %v564_v53  ;;  %v54_v53 = vld [vmem:[%s7714_s0 + $0xe0] sm:$0xff]  ;;  %v56_v55 = vld [vmem:[%s7714_s0 + $0xf0] sm:$0xff] }
  0xe4   :  { %4473 = vmatprep.subr.bf16.mxu1 %v4472_v2  ;;  %1788 = vmatmul.mubr.f32.vlgmr.msra.gmra.mrb[12].mxu0 %v50_v8  ;;  %v4492_v2 = vpack.c.bf16 %v583_v59, %v582_v58  ;;  %v4462_v8 = vpack.c.bf16 %v535_v0, %v534_v63  ;;  %v590_v58 = vld [vmem:[%s7713_s1 + $0x1010] sm:$0xff]  ;;  %v591_v59 = vld [vmem:[%s7713_s1 + $0x1018] sm:$0xff]  ;;  %v608_v63 = vld [vmem:[%s7713_s1 + $0x10a0] sm:$0xff] }
  0xe5   :  { %4443 = vmatpush3.bf16.msra.mxu0 %v4442_v9  ;;  %1927 = vmatprep.mubr.f32.mxu0 %v55_v22  ;;  %v4494_v9 = vpack.c.bf16 %v567_v3, %v566_v1  ;;  %v586_v22 = vld [vmem:[%s7713_s1 + $0xff0] sm:$0xff]  ;;  %v609_v0 = vld [vmem:[%s7713_s1 + $0x10a8] sm:$0xff]  ;;  %v640_v1 = vld [vmem:[%s7713_s1 + $0x11a0] sm:$0xff] }
  0xe6   :  { %1858 = vmatmul.mubr.f32.vlgmr.msra.gmra.mrb[12].mxu1 %v52_v10  ;;  %4445 = vmatprep.subr.bf16.mxu0 %v4444_v12  ;;  %v4464_v10 = vpack.c.bf16 %v553_v5, %v552_v4  ;;  %v537_v12 = vld [vmem:[%s7713_s1 + $0xe68] sm:$0xff]  ;;  %v4510_v4 = vpack.c.bf16 %v591_v59, %v590_v58  ;;  %v61_v5 = vld [vmem:[%s7714_s0 + $0x118] sm:$0xff]  ;;  %v4512_v7 = vpack.c.bf16 %v609_v0, %v608_v63  ;;  %v632_v59 = vld [vmem:[%s7713_s1 + $0x1160] sm:$0xff] }
  0xe7   :  { %4475 = vmatpush3.bf16.msra.mxu1 %v4474_v11  ;;  %1997 = vmatprep.mubr.f32.mxu1 %v57_v24  ;;  %v536_v11 = vld [vmem:[%s7713_s1 + $0xe60] sm:$0xff]  ;;  %v59_v3 = vld [vmem:[%s7714_s0 + $0x108] sm:$0xff]  ;;  %v618_v63 = vld [vmem:[%s7713_s1 + $0x10f0] sm:$0xff] }
  0xe8   :  { %4477 = vmatprep.subr.bf16.mxu1 %v4476_v16  ;;  %v569_v16 = vld [vmem:[%s7713_s1 + $0xf68] sm:$0xff]  ;;  %v619_v0 = vld [vmem:[%s7713_s1 + $0x10f8] sm:$0xff] }
  0xe9   :  { %4447 = vmatpush3.bf16.msra.mxu0 %v4446_v23  ;;  %v587_v23 = vld [vmem:[%s7713_s1 + $0xff8] sm:$0xff]  ;;  %v4498_v28 = vpack.c.bf16 %v569_v16, %v568_v13  ;;  %v610_v13 = vld [vmem:[%s7713_s1 + $0x10b0] sm:$0xff]  ;;  %v601_v58 = vld [vmem:[%s7713_s1 + $0x1068] sm:$0xff] }
  0xea   :  { %4449 = vmatprep.subr.bf16.mxu0 %v4448_v26  ;;  %v4466_v26 = vpack.c.bf16 %v537_v12, %v536_v11  ;;  %v4500_v34 = vpack.c.bf16 %v587_v23, %v586_v22  ;;  %v625_v12 = vld [vmem:[%s7713_s1 + $0x1128] sm:$0xff]  ;;  %v643_v16 = vld [vmem:[%s7713_s1 + $0x11b8] sm:$0xff]  ;;  %v626_v22 = vld [vmem:[%s7713_s1 + $0x1130] sm:$0xff] }
  0xeb   :  { %4479 = vmatpush3.bf16.msra.mxu1 %v4478_v25 }
  0xec   :  { %4481 = vmatprep.subr.bf16.mxu1 %v4480_v30  ;;  %v538_v30 = vld [vmem:[%s7713_s1 + $0xe70] sm:$0xff] }
  0xed   :  { %4451 = vmatpush3.bf16.msra.mxu0 %v4450_v36  ;;  %v604_v36 = vld [vmem:[%s7713_s1 + $0x1080] sm:$0xff]  ;;  %v4470_v41 = vpack.c.bf16 %v539_v31, %v538_v30 }
  0xee   :  { %4453 = vmatprep.subr.bf16.mxu0 %v4452_v38  ;;  %v636_v38 = vld [vmem:[%s7713_s1 + $0x1180] sm:$0xff] }
  0xef   :  { %4483 = vmatpush3.bf16.msra.mxu1 %v4482_v37  ;;  %v605_v37 = vld [vmem:[%s7713_s1 + $0x1088] sm:$0xff]  ;;  %v4536_v47 = vpack.c.bf16 %v637_v39, %v636_v38  ;;  %v615_v38 = vld [vmem:[%s7713_s1 + $0x10d8] sm:$0xff]  ;;  %v646_v39 = vld [vmem:[%s7713_s1 + $0x11d0] sm:$0xff] }
  0xf0   :  { %4485 = vmatprep.subr.bf16.mxu1 %v4484_v42  ;;  %v4502_v42 = vpack.c.bf16 %v571_v35, %v570_v32  ;;  %v4504_v43 = vpack.c.bf16 %v605_v37, %v604_v36  ;;  %v596_v32 = vld [vmem:[%s7713_s1 + $0x1040] sm:$0xff]  ;;  %v629_v36 = vld [vmem:[%s7713_s1 + $0x1148] sm:$0xff]  ;;  %v614_v37 = vld [vmem:[%s7713_s1 + $0x10d0] sm:$0xff] }
  0xf1   :  { %4455 = vmatpush3.bf16.msra.mxu0 %v4454_v48  ;;  %v621_v48 = vld [vmem:[%s7713_s1 + $0x1108] sm:$0xff] }
  0xf2   :  { %4457 = vmatprep.subr.bf16.mxu0 %v4456_v50  ;;  %v607_v50 = vld [vmem:[%s7713_s1 + $0x1098] sm:$0xff]  ;;  %v4538_v56 = vpack.c.bf16 %v621_v48, %v620_v46 }
  0xf3   :  { %4487 = vmatpush3.bf16.msra.mxu1 %v4486_v49  ;;  %v606_v49 = vld [vmem:[%s7713_s1 + $0x1090] sm:$0xff]  ;;  %v599_v46 = vld [vmem:[%s7713_s1 + $0x1058] sm:$0xff] }
  0xf4   :  { %4489 = vmatprep.subr.bf16.mxu1 %v4488_v54  ;;  %v4506_v54 = vpack.c.bf16 %v589_v45, %v588_v44  ;;  %v4508_v57 = vpack.c.bf16 %v607_v50, %v606_v49  ;;  %v4524_v44 = vpack.c.bf16 %v615_v38, %v614_v37  ;;  %v598_v45 = vld [vmem:[%s7713_s1 + $0x1050] sm:$0xff]  ;;  %v631_v49 = vld [vmem:[%s7713_s1 + $0x1158] sm:$0xff]  ;;  %v616_v50 = vld [vmem:[%s7713_s1 + $0x10e0] sm:$0xff] }
  0xf5   :  { %4459 = vmatpush3.bf16.msra.mxu0 %v4458_v60  ;;  %v622_v60 = vld [vmem:[%s7713_s1 + $0x1110] sm:$0xff] }
  0xf6   :  { %4461 = vmatprep.subr.bf16.mxu0 %v4460_v62  ;;  %v623_v62 = vld [vmem:[%s7713_s1 + $0x1118] sm:$0xff]  ;;  %v654_v38 = vld [vmem:[%s7713_s1 + $0x1210] sm:$0xff] }
  0xf7   :  { %4491 = vmatpush3.bf16.msra.mxu1 %v4490_v61  ;;  %v3097_v14 = vpop.f32.mrb[0].mxu0  ;;  %v4540_v61 = vpack.c.bf16 %v639_v52, %v638_v51  ;;  %v4542_v6 = vpack.c.bf16 %v623_v62, %v622_v60  ;;  %v617_v51 = vld [vmem:[%s7713_s1 + $0x10e8] sm:$0xff]  ;;  %v648_v52 = vld [vmem:[%s7713_s1 + $0x11e0] sm:$0xff] }
  0xf8   :  { %4493 = vmatprep.subr.bf16.mxu1 %v4492_v2  ;;  %v3098_v20 = vpop.f32.mrb[1].mxu0  ;;  %v641_v2 = vld [vmem:[%s7713_s1 + $0x11a8] sm:$0xff] }
  0xf9   :  { %v3132_v21 = vpop.f32.mrb[0].mxu1  ;;  %v3099_v24 = vadd.f32 %v3098_v20, %v3097_v14  ;;  %4463 = vmatpush3.bf16.msra.mxu0 %v4462_v8  ;;  %v592_v8 = vld [vmem:[%s7713_s1 + $0x1020] sm:$0xff]  ;;  %v4544_v11 = vpack.c.bf16 %v641_v2, %v640_v1  ;;  %v611_v14 = vld [vmem:[%s7713_s1 + $0x10b8] sm:$0xff]  ;;  %v594_v20 = vld [vmem:[%s7713_s1 + $0x1030] sm:$0xff] }
  0xfa   :  { %v3133_v25 = vpop.f32.mrb[1].mxu1  ;;  %4465 = vmatprep.subr.bf16.mxu0 %v4464_v10  ;;  %v624_v10 = vld [vmem:[%s7713_s1 + $0x1120] sm:$0xff]  ;;  %v633_v62 = vld [vmem:[%s7713_s1 + $0x1168] sm:$0xff] }
  0xfb   :  { %v3134_v27 = vadd.f32 %v3133_v25, %v3132_v21  ;;  %4495 = vmatpush3.bf16.msra.mxu1 %v4494_v9  ;;  %v950_v33 = vadd.f32 %v3099_v24, %v3060_v19  ;;  %v593_v9 = vld [vmem:[%s7713_s1 + $0x1028] sm:$0xff]  ;;  %v4546_v18 = vpack.c.bf16 %v625_v12, %v624_v10  ;;  %v4516_v19 = vpack.c.bf16 %v611_v14, %v610_v13  ;;  %v595_v21 = vld [vmem:[%s7713_s1 + $0x1038] sm:$0xff]  ;;  %v612_v25 = vld [vmem:[%s7713_s1 + $0x10c0] sm:$0xff] }
  0xfc   :  { %4497 = vmatprep.subr.bf16.mxu1 %v4496_v15  ;;  %v642_v15 = vld [vmem:[%s7713_s1 + $0x11b0] sm:$0xff]  ;;  %v4514_v17 = vpack.c.bf16 %v593_v9, %v592_v8  ;;  %v627_v24 = vld [vmem:[%s7713_s1 + $0x1138] sm:$0xff]  ;;  %v4562_v9 = vpack.c.bf16 %v633_v62, %v632_v59  ;;  %v4532_v10 = vpack.c.bf16 %v619_v0, %v618_v63 }
  0xfd   :  { %v6563_v40 = vadd.f32 %v3134_v27, %v950_v33  ;;  %4467 = vmatpush3.bf16.msra.mxu0 %v4466_v26  ;;  %v4548_v23 = vpack.c.bf16 %v643_v16, %v642_v15  ;;  %v613_v26 = vld [vmem:[%s7713_s1 + $0x10c8] sm:$0xff]  ;;  %v644_v27 = vld [vmem:[%s7713_s1 + $0x11c0] sm:$0xff]  ;;  %v4550_v30 = vpack.c.bf16 %v627_v24, %v626_v22  ;;  %v603_v12 = vld [vmem:[%s7713_s1 + $0x1078] sm:$0xff] }
  0xfe   :  { %4469 = vmatprep.subr.bf16.mxu0 %v4468_v29  ;;  %v4518_v29 = vpack.c.bf16 %v595_v21, %v594_v20  ;;  %v4520_v31 = vpack.c.bf16 %v613_v26, %v612_v25  ;;  %v597_v33 = vld [vmem:[%s7713_s1 + $0x1048] sm:$0xff]  ;;  %v634_v13 = vld [vmem:[%s7713_s1 + $0x1170] sm:$0xff]  ;;  %v635_v16 = vld [vmem:[%s7713_s1 + $0x1178] sm:$0xff] }
  0xff   :  { %4499 = vmatpush3.bf16.msra.mxu1 %v4498_v28  ;;  %v645_v28 = vld [vmem:[%s7713_s1 + $0x11c8] sm:$0xff]  ;;  %v4566_v22 = vpack.c.bf16 %v635_v16, %v634_v13  ;;  %v652_v24 = vld [vmem:[%s7713_s1 + $0x1200] sm:$0xff]  ;;  %v675_v59 = vld [vmem:[%s7713_s1 + $0x12b8] sm:$0xff] }
 0x100   :  { %4501 = vmatprep.subr.bf16.mxu1 %v4500_v34  ;;  %v628_v34 = vld [vmem:[%s7713_s1 + $0x1140] sm:$0xff]  ;;  %v4552_v35 = vpack.c.bf16 %v645_v28, %v644_v27  ;;  %v653_v25 = vld [vmem:[%s7713_s1 + $0x1208] sm:$0xff] }
 0x101   :  { %4471 = vmatpush3.bf16.msra.mxu0 %v4470_v41  ;;  %v647_v41 = vld [vmem:[%s7713_s1 + $0x11d8] sm:$0xff]  ;;  %v684_v26 = vld [vmem:[%s7713_s1 + $0x1300] sm:$0xff]  ;;  %v685_v28 = vld [vmem:[%s7713_s1 + $0x1308] sm:$0xff] }
 0x102   :  { %4505 = vmatprep.subr.bf16.mxu0 %v4504_v43  ;;  %v4554_v43 = vpack.c.bf16 %v629_v36, %v628_v34  ;;  %v4556_v48 = vpack.c.bf16 %v647_v41, %v646_v39  ;;  %v4570_v34 = vpack.c.bf16 %v653_v25, %v652_v24  ;;  %v4602_v36 = vpack.c.bf16 %v685_v28, %v684_v26  ;;  %v655_v39 = vld [vmem:[%s7713_s1 + $0x1218] sm:$0xff]  ;;  %v686_v41 = vld [vmem:[%s7713_s1 + $0x1310] sm:$0xff]  ;;  %v660_v13 = vld [vmem:[%s7713_s1 + $0x1240] sm:$0xff] }
 0x103   :  { %4503 = vmatpush3.bf16.msra.mxu1 %v4502_v42  ;;  %v4522_v42 = vpack.c.bf16 %v597_v33, %v596_v32  ;;  %v703_v32 = vld [vmem:[%s7713_s1 + $0x1398] sm:$0xff]  ;;  %v58_v33 = vld [vmem:[%s7714_s0 + $0x100] sm:$0xff]  ;;  %v662_v25 = vld [vmem:[%s7713_s1 + $0x1250] sm:$0xff] }
 0x104   :  { %4537 = vmatprep.subr.bf16.mxu1 %v4536_v47  ;;  %1928 = vmatmul.mubr.f32.vlgmr.msra.gmra.mrb[14].mxu0 %v54_v53  ;;  %v630_v47 = vld [vmem:[%s7713_s1 + $0x1150] sm:$0xff]  ;;  %v649_v53 = vld [vmem:[%s7713_s1 + $0x11e8] sm:$0xff]  ;;  %v663_v26 = vld [vmem:[%s7713_s1 + $0x1258] sm:$0xff] }
 0x105   :  { %4507 = vmatpush3.bf16.msra.mxu0 %v4506_v54  ;;  %2067 = vmatprep.mubr.f32.mxu0 %v59_v3  ;;  %v4526_v54 = vpack.c.bf16 %v599_v46, %v598_v45  ;;  %v650_v3 = vld [vmem:[%s7713_s1 + $0x11f0] sm:$0xff]  ;;  %v673_v45 = vld [vmem:[%s7713_s1 + $0x12a8] sm:$0xff]  ;;  %v704_v46 = vld [vmem:[%s7713_s1 + $0x13a0] sm:$0xff] }
 0x106   :  { %1998 = vmatmul.mubr.f32.vlgmr.msra.gmra.mrb[14].mxu1 %v56_v55  ;;  %4509 = vmatprep.subr.bf16.mxu0 %v4508_v57  ;;  %v4558_v55 = vpack.c.bf16 %v631_v49, %v630_v47  ;;  %v600_v57 = vld [vmem:[%s7713_s1 + $0x1060] sm:$0xff]  ;;  %v705_v47 = vld [vmem:[%s7713_s1 + $0x13a8] sm:$0xff]  ;;  %v4574_v49 = vpack.c.bf16 %v655_v39, %v654_v38 }
 0x107   :  { %4539 = vmatpush3.bf16.msra.mxu1 %v4538_v56  ;;  %2137 = vmatprep.mubr.f32.mxu1 %v61_v5  ;;  %v4528_v56 = vpack.c.bf16 %v617_v51, %v616_v50  ;;  %v65_v50 = vld [vmem:[%s7714_s0 + $0x138] sm:$0xff]  ;;  %v665_v38 = vld [vmem:[%s7713_s1 + $0x1268] sm:$0xff]  ;;  %v696_v39 = vld [vmem:[%s7713_s1 + $0x1360] sm:$0xff] }
 0x108   :  { %4541 = vmatprep.subr.bf16.mxu1 %v4540_v61  ;;  %v4560_v61 = vpack.c.bf16 %v649_v53, %v648_v52  ;;  %v656_v53 = vld [vmem:[%s7713_s1 + $0x1220] sm:$0xff] }
 0x109   :  { %4511 = vmatpush3.bf16.msra.mxu0 %v4510_v4  ;;  %v651_v4 = vld [vmem:[%s7713_s1 + $0x11f8] sm:$0xff] }
 0x10a   :  { %4513 = vmatprep.subr.bf16.mxu0 %v4512_v7  ;;  %v4530_v7 = vpack.c.bf16 %v601_v58, %v600_v57  ;;  %v4564_v15 = vpack.c.bf16 %v651_v4, %v650_v3  ;;  %v689_v57 = vld [vmem:[%s7713_s1 + $0x1328] sm:$0xff]  ;;  %v674_v58 = vld [vmem:[%s7713_s1 + $0x12b0] sm:$0xff] }
 0x10b   :  { %4543 = vmatpush3.bf16.msra.mxu1 %v4542_v6  ;;  %v4580_v0 = vpack.c.bf16 %v675_v59, %v674_v58  ;;  %v690_v3 = vld [vmem:[%s7713_s1 + $0x1330] sm:$0xff] }
 0x10c   :  { %4545 = vmatprep.subr.bf16.mxu1 %v4544_v11  ;;  %v602_v11 = vld [vmem:[%s7713_s1 + $0x1070] sm:$0xff] }
 0x10d   :  { %4515 = vmatpush3.bf16.msra.mxu0 %v4514_v17  ;;  %v668_v17 = vld [vmem:[%s7713_s1 + $0x1280] sm:$0xff]  ;;  %v4534_v21 = vpack.c.bf16 %v603_v12, %v602_v11  ;;  %v698_v58 = vld [vmem:[%s7713_s1 + $0x1370] sm:$0xff] }
 0x10e   :  { %4517 = vmatprep.subr.bf16.mxu0 %v4516_v19  ;;  %v700_v19 = vld [vmem:[%s7713_s1 + $0x1380] sm:$0xff] }
 0x10f   :  { %4547 = vmatpush3.bf16.msra.mxu1 %v4546_v18  ;;  %v669_v18 = vld [vmem:[%s7713_s1 + $0x1288] sm:$0xff] }
 0x110   :  { %4549 = vmatprep.subr.bf16.mxu1 %v4548_v23  ;;  %v4568_v23 = vpack.c.bf16 %v669_v18, %v668_v17  ;;  %v693_v17 = vld [vmem:[%s7713_s1 + $0x1348] sm:$0xff]  ;;  %v678_v18 = vld [vmem:[%s7713_s1 + $0x12d0] sm:$0xff] }
 0x111   :  { %4519 = vmatpush3.bf16.msra.mxu0 %v4518_v29  ;;  %v670_v29 = vld [vmem:[%s7713_s1 + $0x1290] sm:$0xff] }
 0x112   :  { %4521 = vmatprep.subr.bf16.mxu0 %v4520_v31  ;;  %v702_v31 = vld [vmem:[%s7713_s1 + $0x1390] sm:$0xff] }
 0x113   :  { %4551 = vmatpush3.bf16.msra.mxu1 %v4550_v30  ;;  %v671_v30 = vld [vmem:[%s7713_s1 + $0x1298] sm:$0xff] }
 0x114   :  { %4553 = vmatprep.subr.bf16.mxu1 %v4552_v35  ;;  %v60_v35 = vld [vmem:[%s7714_s0 + $0x110] sm:$0xff]  ;;  %v4572_v37 = vpack.c.bf16 %v671_v30, %v670_v29  ;;  %v695_v29 = vld [vmem:[%s7713_s1 + $0x1358] sm:$0xff]  ;;  %v680_v30 = vld [vmem:[%s7713_s1 + $0x12e0] sm:$0xff] }
 0x115   :  { %4523 = vmatpush3.bf16.msra.mxu0 %v4522_v42  ;;  %v4604_v42 = vpack.c.bf16 %v703_v32, %v702_v31  ;;  %v681_v31 = vld [vmem:[%s7713_s1 + $0x12e8] sm:$0xff]  ;;  %v712_v32 = vld [vmem:[%s7713_s1 + $0x13e0] sm:$0xff] }
 0x116   :  { %4525 = vmatprep.subr.bf16.mxu0 %v4524_v44  ;;  %v672_v44 = vld [vmem:[%s7713_s1 + $0x12a0] sm:$0xff] }
 0x117   :  { %4555 = vmatpush3.bf16.msra.mxu1 %v4554_v43  ;;  %v3167_v60 = vpop.f32.mrb[2].mxu0  ;;  %v687_v43 = vld [vmem:[%s7713_s1 + $0x1318] sm:$0xff]  ;;  %v4576_v52 = vpack.c.bf16 %v673_v45, %v672_v44  ;;  %v682_v44 = vld [vmem:[%s7713_s1 + $0x12f0] sm:$0xff] }
 0x118   :  { %4557 = vmatprep.subr.bf16.mxu1 %v4556_v48  ;;  %v3168_v1 = vpop.f32.mrb[3].mxu0  ;;  %v63_v48 = vld [vmem:[%s7714_s0 + $0x128] sm:$0xff]  ;;  %v4606_v51 = vpack.c.bf16 %v687_v43, %v686_v41  ;;  %v683_v45 = vld [vmem:[%s7713_s1 + $0x12f8] sm:$0xff] }
 0x119   :  { %v3202_v2 = vpop.f32.mrb[2].mxu1  ;;  %v3169_v5 = vadd.f32 %v3168_v1, %v3167_v60  ;;  %4527 = vmatpush3.bf16.msra.mxu0 %v4526_v54  ;;  %v657_v54 = vld [vmem:[%s7713_s1 + $0x1228] sm:$0xff]  ;;  %v706_v60 = vld [vmem:[%s7713_s1 + $0x13b0] sm:$0xff] }
 0x11a   :  { %v3203_v6 = vpop.f32.mrb[3].mxu1  ;;  %4529 = vmatprep.subr.bf16.mxu0 %v4528_v56  ;;  %v4608_v56 = vpack.c.bf16 %v705_v47, %v704_v46  ;;  %v4578_v62 = vpack.c.bf16 %v657_v54, %v656_v53  ;;  %v658_v1 = vld [vmem:[%s7713_s1 + $0x1230] sm:$0xff]  ;;  %v697_v43 = vld [vmem:[%s7713_s1 + $0x1368] sm:$0xff] }
 0x11b   :  { %v3204_v8 = vadd.f32 %v3203_v6, %v3202_v2  ;;  %4559 = vmatpush3.bf16.msra.mxu1 %v4558_v55  ;;  %v1090_v14 = vadd.f32 %v3169_v5, %v6563_v40  ;;  %v701_v40 = vld [vmem:[%s7713_s1 + $0x1388] sm:$0xff]  ;;  %v688_v55 = vld [vmem:[%s7713_s1 + $0x1320] sm:$0xff]  ;;  %v659_v2 = vld [vmem:[%s7713_s1 + $0x1238] sm:$0xff]  ;;  %v4626_v54 = vpack.c.bf16 %v697_v43, %v696_v39 }
 0x11c   :  { %4561 = vmatprep.subr.bf16.mxu1 %v4560_v61  ;;  %v4600_v27 = vpack.c.bf16 %v701_v40, %v700_v19  ;;  %v707_v61 = vld [vmem:[%s7713_s1 + $0x13b8] sm:$0xff]  ;;  %v4610_v63 = vpack.c.bf16 %v689_v57, %v688_v55  ;;  %v676_v6 = vld [vmem:[%s7713_s1 + $0x12c0] sm:$0xff]  ;;  %v710_v40 = vld [vmem:[%s7713_s1 + $0x13d0] sm:$0xff]  ;;  %v4596_v55 = vpack.c.bf16 %v683_v45, %v682_v44 }
 0x11d   :  { %v6770_v20 = vadd.f32 %v3204_v8, %v1090_v14  ;;  %4531 = vmatpush3.bf16.msra.mxu0 %v4530_v7  ;;  %v4612_v4 = vpack.c.bf16 %v707_v61, %v706_v60  ;;  %v691_v5 = vld [vmem:[%s7713_s1 + $0x1338] sm:$0xff]  ;;  %v677_v7 = vld [vmem:[%s7713_s1 + $0x12c8] sm:$0xff]  ;;  %v708_v8 = vld [vmem:[%s7713_s1 + $0x13c0] sm:$0xff] }
 0x11e   :  { %4533 = vmatprep.subr.bf16.mxu0 %v4532_v10  ;;  %v4582_v10 = vpack.c.bf16 %v659_v2, %v658_v1  ;;  %v4614_v11 = vpack.c.bf16 %v691_v5, %v690_v3  ;;  %v4584_v12 = vpack.c.bf16 %v677_v7, %v676_v6  ;;  %v661_v14 = vld [vmem:[%s7713_s1 + $0x1248] sm:$0xff]  ;;  %v679_v19 = vld [vmem:[%s7713_s1 + $0x12d8] sm:$0xff]  ;;  %v716_v5 = vld [vmem:[%s7713_s1 + $0x1400] sm:$0xff] }
 0x11f   :  { %4563 = vmatpush3.bf16.msra.mxu1 %v4562_v9  ;;  %v709_v9 = vld [vmem:[%s7713_s1 + $0x13c8] sm:$0xff]  ;;  %v4588_v24 = vpack.c.bf16 %v679_v19, %v678_v18  ;;  %v667_v57 = vld [vmem:[%s7713_s1 + $0x1278] sm:$0xff]  ;;  %v748_v7 = vld [vmem:[%s7713_s1 + $0x1500] sm:$0xff] }
 0x120   :  { %4565 = vmatprep.subr.bf16.mxu1 %v4564_v15  ;;  %v692_v15 = vld [vmem:[%s7713_s1 + $0x1340] sm:$0xff]  ;;  %v4616_v16 = vpack.c.bf16 %v709_v9, %v708_v8  ;;  %v699_v61 = vld [vmem:[%s7713_s1 + $0x1378] sm:$0xff]  ;;  %v717_v6 = vld [vmem:[%s7713_s1 + $0x1408] sm:$0xff] }
 0x121   :  { %4535 = vmatpush3.bf16.msra.mxu0 %v4534_v21  ;;  %v711_v21 = vld [vmem:[%s7713_s1 + $0x13d8] sm:$0xff]  ;;  %v4630_v3 = vpack.c.bf16 %v699_v61, %v698_v58  ;;  %v749_v9 = vld [vmem:[%s7713_s1 + $0x1508] sm:$0xff]  ;;  %v718_v19 = vld [vmem:[%s7713_s1 + $0x1410] sm:$0xff] }
 0x122   :  { %4569 = vmatprep.subr.bf16.mxu0 %v4568_v23  ;;  %v4618_v23 = vpack.c.bf16 %v693_v17, %v692_v15  ;;  %v4620_v28 = vpack.c.bf16 %v711_v21, %v710_v40  ;;  %v4634_v15 = vpack.c.bf16 %v717_v6, %v716_v5  ;;  %v4666_v17 = vpack.c.bf16 %v749_v9, %v748_v7  ;;  %v719_v40 = vld [vmem:[%s7713_s1 + $0x1418] sm:$0xff]  ;;  %v750_v21 = vld [vmem:[%s7713_s1 + $0x1510] sm:$0xff]  ;;  %v724_v58 = vld [vmem:[%s7713_s1 + $0x1440] sm:$0xff] }
 0x123   :  { %4567 = vmatpush3.bf16.msra.mxu1 %v4566_v22  ;;  %v4586_v22 = vpack.c.bf16 %v661_v14, %v660_v13  ;;  %v767_v13 = vld [vmem:[%s7713_s1 + $0x1598] sm:$0xff]  ;;  %v62_v14 = vld [vmem:[%s7714_s0 + $0x120] sm:$0xff]  ;;  %v726_v6 = vld [vmem:[%s7713_s1 + $0x1450] sm:$0xff] }
 0x124   :  { %4601 = vmatprep.subr.bf16.mxu1 %v4600_v27  ;;  %2068 = vmatmul.mubr.f32.vlgmr.msra.gmra.mrb[16].mxu0 %v58_v33  ;;  %v694_v27 = vld [vmem:[%s7713_s1 + $0x1350] sm:$0xff]  ;;  %v713_v33 = vld [vmem:[%s7713_s1 + $0x13e8] sm:$0xff]  ;;  %v739_v39 = vld [vmem:[%s7713_s1 + $0x14b8] sm:$0xff] }
 0x125   :  { %4571 = vmatpush3.bf16.msra.mxu0 %v4570_v34  ;;  %2207 = vmatprep.mubr.f32.mxu0 %v63_v48  ;;  %v4590_v34 = vpack.c.bf16 %v663_v26, %v662_v25  ;;  %v714_v48 = vld [vmem:[%s7713_s1 + $0x13f0] sm:$0xff]  ;;  %v737_v25 = vld [vmem:[%s7713_s1 + $0x14a8] sm:$0xff]  ;;  %v768_v26 = vld [vmem:[%s7713_s1 + $0x15a0] sm:$0xff] }
 0x126   :  { %2138 = vmatmul.mubr.f32.vlgmr.msra.gmra.mrb[16].mxu1 %v60_v35  ;;  %4573 = vmatprep.subr.bf16.mxu0 %v4572_v37  ;;  %v4622_v35 = vpack.c.bf16 %v695_v29, %v694_v27  ;;  %v664_v37 = vld [vmem:[%s7713_s1 + $0x1260] sm:$0xff]  ;;  %v769_v27 = vld [vmem:[%s7713_s1 + $0x15a8] sm:$0xff]  ;;  %v4638_v29 = vpack.c.bf16 %v719_v40, %v718_v19  ;;  %v727_v7 = vld [vmem:[%s7713_s1 + $0x1458] sm:$0xff] }
 0x127   :  { %4603 = vmatpush3.bf16.msra.mxu1 %v4602_v36  ;;  %2277 = vmatprep.mubr.f32.mxu1 %v65_v50  ;;  %v4592_v36 = vpack.c.bf16 %v681_v31, %v680_v30  ;;  %v69_v30 = vld [vmem:[%s7714_s0 + $0x158] sm:$0xff]  ;;  %v729_v19 = vld [vmem:[%s7713_s1 + $0x1468] sm:$0xff]  ;;  %v760_v40 = vld [vmem:[%s7713_s1 + $0x1560] sm:$0xff] }
 0x128   :  { %4605 = vmatprep.subr.bf16.mxu1 %v4604_v42  ;;  %v4624_v42 = vpack.c.bf16 %v713_v33, %v712_v32  ;;  %v720_v33 = vld [vmem:[%s7713_s1 + $0x1420] sm:$0xff] }
 0x129   :  { %4575 = vmatpush3.bf16.msra.mxu0 %v4574_v49  ;;  %v715_v49 = vld [vmem:[%s7713_s1 + $0x13f8] sm:$0xff] }
 0x12a   :  { %4577 = vmatprep.subr.bf16.mxu0 %v4576_v52  ;;  %v4594_v52 = vpack.c.bf16 %v665_v38, %v664_v37  ;;  %v4628_v60 = vpack.c.bf16 %v715_v49, %v714_v48  ;;  %v753_v37 = vld [vmem:[%s7713_s1 + $0x1528] sm:$0xff]  ;;  %v738_v38 = vld [vmem:[%s7713_s1 + $0x14b0] sm:$0xff] }
 0x12b   :  { %4607 = vmatpush3.bf16.msra.mxu1 %v4606_v51  ;;  %v4644_v45 = vpack.c.bf16 %v739_v39, %v738_v38  ;;  %v754_v48 = vld [vmem:[%s7713_s1 + $0x1530] sm:$0xff] }
 0x12c   :  { %4609 = vmatprep.subr.bf16.mxu1 %v4608_v56  ;;  %v666_v56 = vld [vmem:[%s7713_s1 + $0x1270] sm:$0xff] }
 0x12d   :  { %4579 = vmatpush3.bf16.msra.mxu0 %v4578_v62  ;;  %v732_v62 = vld [vmem:[%s7713_s1 + $0x1480] sm:$0xff]  ;;  %v4598_v2 = vpack.c.bf16 %v667_v57, %v666_v56  ;;  %v762_v38 = vld [vmem:[%s7713_s1 + $0x1570] sm:$0xff] }
 0x12e   :  { %4581 = vmatprep.subr.bf16.mxu0 %v4580_v0  ;;  %v764_v0 = vld [vmem:[%s7713_s1 + $0x1580] sm:$0xff] }
 0x12f   :  { %4611 = vmatpush3.bf16.msra.mxu1 %v4610_v63  ;;  %v733_v63 = vld [vmem:[%s7713_s1 + $0x1488] sm:$0xff] }
 0x130   :  { %4613 = vmatprep.subr.bf16.mxu1 %v4612_v4  ;;  %v4632_v4 = vpack.c.bf16 %v733_v63, %v732_v62  ;;  %v757_v62 = vld [vmem:[%s7713_s1 + $0x1548] sm:$0xff]  ;;  %v742_v63 = vld [vmem:[%s7713_s1 + $0x14d0] sm:$0xff] }
 0x131   :  { %4583 = vmatpush3.bf16.msra.mxu0 %v4582_v10  ;;  %v734_v10 = vld [vmem:[%s7713_s1 + $0x1490] sm:$0xff] }
 0x132   :  { %4585 = vmatprep.subr.bf16.mxu0 %v4584_v12  ;;  %v766_v12 = vld [vmem:[%s7713_s1 + $0x1590] sm:$0xff] }
 0x133   :  { %4615 = vmatpush3.bf16.msra.mxu1 %v4614_v11  ;;  %v735_v11 = vld [vmem:[%s7713_s1 + $0x1498] sm:$0xff] }
 0x134   :  { %4617 = vmatprep.subr.bf16.mxu1 %v4616_v16  ;;  %v64_v16 = vld [vmem:[%s7714_s0 + $0x130] sm:$0xff]  ;;  %v4636_v18 = vpack.c.bf16 %v735_v11, %v734_v10  ;;  %v759_v10 = vld [vmem:[%s7713_s1 + $0x1558] sm:$0xff]  ;;  %v744_v11 = vld [vmem:[%s7713_s1 + $0x14e0] sm:$0xff] }
 0x135   :  { %4587 = vmatpush3.bf16.msra.mxu0 %v4586_v22  ;;  %v4668_v22 = vpack.c.bf16 %v767_v13, %v766_v12  ;;  %v745_v12 = vld [vmem:[%s7713_s1 + $0x14e8] sm:$0xff]  ;;  %v776_v13 = vld [vmem:[%s7713_s1 + $0x15e0] sm:$0xff] }
 0x136   :  { %4589 = vmatprep.subr.bf16.mxu0 %v4588_v24  ;;  %v736_v24 = vld [vmem:[%s7713_s1 + $0x14a0] sm:$0xff] }
 0x137   :  { %4619 = vmatpush3.bf16.msra.mxu1 %v4618_v23  ;;  %v3237_v41 = vpop.f32.mrb[4].mxu0  ;;  %v751_v23 = vld [vmem:[%s7713_s1 + $0x1518] sm:$0xff]  ;;  %v4640_v32 = vpack.c.bf16 %v737_v25, %v736_v24  ;;  %v746_v24 = vld [vmem:[%s7713_s1 + $0x14f0] sm:$0xff] }
 0x138   :  { %4621 = vmatprep.subr.bf16.mxu1 %v4620_v28  ;;  %v3238_v46 = vpop.f32.mrb[5].mxu0  ;;  %v67_v28 = vld [vmem:[%s7714_s0 + $0x148] sm:$0xff]  ;;  %v4670_v31 = vpack.c.bf16 %v751_v23, %v750_v21  ;;  %v747_v25 = vld [vmem:[%s7713_s1 + $0x14f8] sm:$0xff] }
 0x139   :  { %v3272_v47 = vpop.f32.mrb[4].mxu1  ;;  %v3239_v50 = vadd.f32 %v3238_v46, %v3237_v41  ;;  %4591 = vmatpush3.bf16.msra.mxu0 %v4590_v34  ;;  %v721_v34 = vld [vmem:[%s7713_s1 + $0x1428] sm:$0xff]  ;;  %v770_v41 = vld [vmem:[%s7713_s1 + $0x15b0] sm:$0xff] }
 0x13a   :  { %v3273_v51 = vpop.f32.mrb[5].mxu1  ;;  %4593 = vmatprep.subr.bf16.mxu0 %v4592_v36  ;;  %v4672_v36 = vpack.c.bf16 %v769_v27, %v768_v26  ;;  %v4642_v43 = vpack.c.bf16 %v721_v34, %v720_v33  ;;  %v722_v46 = vld [vmem:[%s7713_s1 + $0x1430] sm:$0xff]  ;;  %v761_v23 = vld [vmem:[%s7713_s1 + $0x1568] sm:$0xff] }
 0x13b   :  { %v3274_v53 = vadd.f32 %v3273_v51, %v3272_v47  ;;  %4623 = vmatpush3.bf16.msra.mxu1 %v4622_v35  ;;  %v1230_v59 = vadd.f32 %v3239_v50, %v6770_v20  ;;  %v765_v20 = vld [vmem:[%s7713_s1 + $0x1588] sm:$0xff]  ;;  %v752_v35 = vld [vmem:[%s7713_s1 + $0x1520] sm:$0xff]  ;;  %v723_v47 = vld [vmem:[%s7713_s1 + $0x1438] sm:$0xff]  ;;  %v4690_v34 = vpack.c.bf16 %v761_v23, %v760_v40 }
 0x13c   :  { %4625 = vmatprep.subr.bf16.mxu1 %v4624_v42  ;;  %v4664_v8 = vpack.c.bf16 %v765_v20, %v764_v0  ;;  %v771_v42 = vld [vmem:[%s7713_s1 + $0x15b8] sm:$0xff]  ;;  %v4674_v44 = vpack.c.bf16 %v753_v37, %v752_v35  ;;  %v740_v51 = vld [vmem:[%s7713_s1 + $0x14c0] sm:$0xff]  ;;  %v774_v20 = vld [vmem:[%s7713_s1 + $0x15d0] sm:$0xff]  ;;  %v4660_v35 = vpack.c.bf16 %v747_v25, %v746_v24 }
 0x13d   :  { %v6977_v1 = vadd.f32 %v3274_v53, %v1230_v59  ;;  %4595 = vmatpush3.bf16.msra.mxu0 %v4594_v52  ;;  %v4676_v49 = vpack.c.bf16 %v771_v42, %v770_v41  ;;  %v755_v50 = vld [vmem:[%s7713_s1 + $0x1538] sm:$0xff]  ;;  %v741_v52 = vld [vmem:[%s7713_s1 + $0x14c8] sm:$0xff]  ;;  %v772_v53 = vld [vmem:[%s7713_s1 + $0x15c0] sm:$0xff] }
 0x13e   :  { %4597 = vmatprep.subr.bf16.mxu0 %v4596_v55  ;;  %v4646_v55 = vpack.c.bf16 %v723_v47, %v722_v46  ;;  %v4678_v56 = vpack.c.bf16 %v755_v50, %v754_v48  ;;  %v4648_v57 = vpack.c.bf16 %v741_v52, %v740_v51  ;;  %v725_v59 = vld [vmem:[%s7713_s1 + $0x1448] sm:$0xff]  ;;  %v743_v0 = vld [vmem:[%s7713_s1 + $0x14d8] sm:$0xff]  ;;  %v780_v50 = vld [vmem:[%s7713_s1 + $0x1600] sm:$0xff] }
 0x13f   :  { %4627 = vmatpush3.bf16.msra.mxu1 %v4626_v54  ;;  %v773_v54 = vld [vmem:[%s7713_s1 + $0x15c8] sm:$0xff]  ;;  %v4652_v5 = vpack.c.bf16 %v743_v0, %v742_v63  ;;  %v731_v37 = vld [vmem:[%s7713_s1 + $0x1478] sm:$0xff]  ;;  %v812_v52 = vld [vmem:[%s7713_s1 + $0x1700] sm:$0xff] }
 0x140   :  { %4629 = vmatprep.subr.bf16.mxu1 %v4628_v60  ;;  %v756_v60 = vld [vmem:[%s7713_s1 + $0x1540] sm:$0xff]  ;;  %v4680_v61 = vpack.c.bf16 %v773_v54, %v772_v53  ;;  %v763_v42 = vld [vmem:[%s7713_s1 + $0x1578] sm:$0xff]  ;;  %v781_v51 = vld [vmem:[%s7713_s1 + $0x1608] sm:$0xff] }
 0x141   :  { %4599 = vmatpush3.bf16.msra.mxu0 %v4598_v2  ;;  %v775_v2 = vld [vmem:[%s7713_s1 + $0x15d8] sm:$0xff]  ;;  %v4694_v48 = vpack.c.bf16 %v763_v42, %v762_v38  ;;  %v813_v54 = vld [vmem:[%s7713_s1 + $0x1708] sm:$0xff]  ;;  %v782_v0 = vld [vmem:[%s7713_s1 + $0x1610] sm:$0xff] }
 0x142   :  { %4633 = vmatprep.subr.bf16.mxu0 %v4632_v4  ;;  %v4682_v4 = vpack.c.bf16 %v757_v62, %v756_v60  ;;  %v4684_v9 = vpack.c.bf16 %v775_v2, %v774_v20  ;;  %v4698_v60 = vpack.c.bf16 %v781_v51, %v780_v50  ;;  %v4730_v62 = vpack.c.bf16 %v813_v54, %v812_v52  ;;  %v783_v20 = vld [vmem:[%s7713_s1 + $0x1618] sm:$0xff]  ;;  %v814_v2 = vld [vmem:[%s7713_s1 + $0x1710] sm:$0xff]  ;;  %v788_v38 = vld [vmem:[%s7713_s1 + $0x1640] sm:$0xff] }
 0x143   :  { %4631 = vmatpush3.bf16.msra.mxu1 %v4630_v3  ;;  %v4650_v3 = vpack.c.bf16 %v725_v59, %v724_v58  ;;  %v831_v58 = vld [vmem:[%s7713_s1 + $0x1798] sm:$0xff]  ;;  %v66_v59 = vld [vmem:[%s7714_s0 + $0x140] sm:$0xff]  ;;  %v790_v51 = vld [vmem:[%s7713_s1 + $0x1650] sm:$0xff] }
 0x144   :  { %4665 = vmatprep.subr.bf16.mxu1 %v4664_v8  ;;  %2208 = vmatmul.mubr.f32.vlgmr.msra.gmra.mrb[18].mxu0 %v62_v14  ;;  %v758_v8 = vld [vmem:[%s7713_s1 + $0x1550] sm:$0xff]  ;;  %v777_v14 = vld [vmem:[%s7713_s1 + $0x15e8] sm:$0xff]  ;;  %v803_v40 = vld [vmem:[%s7713_s1 + $0x16b8] sm:$0xff] }
 0x145   :  { %4635 = vmatpush3.bf16.msra.mxu0 %v4634_v15  ;;  %2347 = vmatprep.mubr.f32.mxu0 %v67_v28  ;;  %v4654_v15 = vpack.c.bf16 %v727_v7, %v726_v6  ;;  %v778_v28 = vld [vmem:[%s7713_s1 + $0x15f0] sm:$0xff]  ;;  %v801_v6 = vld [vmem:[%s7713_s1 + $0x16a8] sm:$0xff]  ;;  %v832_v7 = vld [vmem:[%s7713_s1 + $0x17a0] sm:$0xff] }
 0x146   :  { %2278 = vmatmul.mubr.f32.vlgmr.msra.gmra.mrb[18].mxu1 %v64_v16  ;;  %4637 = vmatprep.subr.bf16.mxu0 %v4636_v18  ;;  %v4686_v16 = vpack.c.bf16 %v759_v10, %v758_v8  ;;  %v728_v18 = vld [vmem:[%s7713_s1 + $0x1460] sm:$0xff]  ;;  %v833_v8 = vld [vmem:[%s7713_s1 + $0x17a8] sm:$0xff]  ;;  %v4702_v10 = vpack.c.bf16 %v783_v20, %v782_v0  ;;  %v791_v52 = vld [vmem:[%s7713_s1 + $0x1658] sm:$0xff] }
 0x147   :  { %4667 = vmatpush3.bf16.msra.mxu1 %v4666_v17  ;;  %2417 = vmatprep.mubr.f32.mxu1 %v69_v30  ;;  %v4656_v17 = vpack.c.bf16 %v745_v12, %v744_v11  ;;  %v73_v11 = vld [vmem:[%s7714_s0 + $0x178] sm:$0xff]  ;;  %v793_v0 = vld [vmem:[%s7713_s1 + $0x1668] sm:$0xff]  ;;  %v824_v20 = vld [vmem:[%s7713_s1 + $0x1760] sm:$0xff] }
 0x148   :  { %4669 = vmatprep.subr.bf16.mxu1 %v4668_v22  ;;  %v4688_v22 = vpack.c.bf16 %v777_v14, %v776_v13  ;;  %v784_v14 = vld [vmem:[%s7713_s1 + $0x1620] sm:$0xff] }
 0x149   :  { %4639 = vmatpush3.bf16.msra.mxu0 %v4638_v29  ;;  %v779_v29 = vld [vmem:[%s7713_s1 + $0x15f8] sm:$0xff] }
 0x14a   :  { %4641 = vmatprep.subr.bf16.mxu0 %v4640_v32  ;;  %v4658_v32 = vpack.c.bf16 %v729_v19, %v728_v18  ;;  %v4692_v41 = vpack.c.bf16 %v779_v29, %v778_v28  ;;  %v817_v18 = vld [vmem:[%s7713_s1 + $0x1728] sm:$0xff]  ;;  %v802_v19 = vld [vmem:[%s7713_s1 + $0x16b0] sm:$0xff] }
 0x14b   :  { %4671 = vmatpush3.bf16.msra.mxu1 %v4670_v31  ;;  %v4708_v25 = vpack.c.bf16 %v803_v40, %v802_v19  ;;  %v818_v28 = vld [vmem:[%s7713_s1 + $0x1730] sm:$0xff] }
 0x14c   :  { %4673 = vmatprep.subr.bf16.mxu1 %v4672_v36  ;;  %v730_v36 = vld [vmem:[%s7713_s1 + $0x1470] sm:$0xff] }
 0x14d   :  { %4643 = vmatpush3.bf16.msra.mxu0 %v4642_v43  ;;  %v796_v43 = vld [vmem:[%s7713_s1 + $0x1680] sm:$0xff]  ;;  %v4662_v47 = vpack.c.bf16 %v731_v37, %v730_v36  ;;  %v826_v19 = vld [vmem:[%s7713_s1 + $0x1770] sm:$0xff] }
 0x14e   :  { %4645 = vmatprep.subr.bf16.mxu0 %v4644_v45  ;;  %v828_v45 = vld [vmem:[%s7713_s1 + $0x1780] sm:$0xff] }
 0x14f   :  { %4675 = vmatpush3.bf16.msra.mxu1 %v4674_v44  ;;  %v797_v44 = vld [vmem:[%s7713_s1 + $0x1688] sm:$0xff] }
 0x150   :  { %4677 = vmatprep.subr.bf16.mxu1 %v4676_v49  ;;  %v4696_v49 = vpack.c.bf16 %v797_v44, %v796_v43  ;;  %v821_v43 = vld [vmem:[%s7713_s1 + $0x1748] sm:$0xff]  ;;  %v806_v44 = vld [vmem:[%s7713_s1 + $0x16d0] sm:$0xff] }
 0x151   :  { %4647 = vmatpush3.bf16.msra.mxu0 %v4646_v55  ;;  %v798_v55 = vld [vmem:[%s7713_s1 + $0x1690] sm:$0xff] }
 0x152   :  { %4649 = vmatprep.subr.bf16.mxu0 %v4648_v57  ;;  %v830_v57 = vld [vmem:[%s7713_s1 + $0x1790] sm:$0xff] }
 0x153   :  { %4679 = vmatpush3.bf16.msra.mxu1 %v4678_v56  ;;  %v799_v56 = vld [vmem:[%s7713_s1 + $0x1698] sm:$0xff] }
 0x154   :  { %4681 = vmatprep.subr.bf16.mxu1 %v4680_v61  ;;  %v68_v61 = vld [vmem:[%s7714_s0 + $0x150] sm:$0xff]  ;;  %v4700_v63 = vpack.c.bf16 %v799_v56, %v798_v55  ;;  %v823_v55 = vld [vmem:[%s7713_s1 + $0x1758] sm:$0xff]  ;;  %v808_v56 = vld [vmem:[%s7713_s1 + $0x16e0] sm:$0xff] }
 0x155   :  { %4651 = vmatpush3.bf16.msra.mxu0 %v4650_v3  ;;  %v4732_v3 = vpack.c.bf16 %v831_v58, %v830_v57  ;;  %v809_v57 = vld [vmem:[%s7713_s1 + $0x16e8] sm:$0xff]  ;;  %v840_v58 = vld [vmem:[%s7713_s1 + $0x17e0] sm:$0xff] }
 0x156   :  { %4653 = vmatprep.subr.bf16.mxu0 %v4652_v5  ;;  %v800_v5 = vld [vmem:[%s7713_s1 + $0x16a0] sm:$0xff] }
 0x157   :  { %4683 = vmatpush3.bf16.msra.mxu1 %v4682_v4  ;;  %v3307_v21 = vpop.f32.mrb[6].mxu0  ;;  %v815_v4 = vld [vmem:[%s7713_s1 + $0x1718] sm:$0xff]  ;;  %v4704_v13 = vpack.c.bf16 %v801_v6, %v800_v5  ;;  %v810_v5 = vld [vmem:[%s7713_s1 + $0x16f0] sm:$0xff] }
 0x158   :  { %4685 = vmatprep.subr.bf16.mxu1 %v4684_v9  ;;  %v3308_v26 = vpop.f32.mrb[7].mxu0  ;;  %v71_v9 = vld [vmem:[%s7714_s0 + $0x168] sm:$0xff]  ;;  %v4734_v12 = vpack.c.bf16 %v815_v4, %v814_v2  ;;  %v811_v6 = vld [vmem:[%s7713_s1 + $0x16f8] sm:$0xff] }
 0x159   :  { %v3342_v27 = vpop.f32.mrb[6].mxu1  ;;  %v3309_v30 = vadd.f32 %v3308_v26, %v3307_v21  ;;  %4655 = vmatpush3.bf16.msra.mxu0 %v4654_v15  ;;  %v785_v15 = vld [vmem:[%s7713_s1 + $0x1628] sm:$0xff]  ;;  %v834_v21 = vld [vmem:[%s7713_s1 + $0x17b0] sm:$0xff] }
 0x15a   :  { %v3343_v31 = vpop.f32.mrb[7].mxu1  ;;  %4657 = vmatprep.subr.bf16.mxu0 %v4656_v17  ;;  %v4736_v17 = vpack.c.bf16 %v833_v8, %v832_v7  ;;  %v4706_v23 = vpack.c.bf16 %v785_v15, %v784_v14  ;;  %v786_v26 = vld [vmem:[%s7713_s1 + $0x1630] sm:$0xff]  ;;  %v825_v4 = vld [vmem:[%s7713_s1 + $0x1768] sm:$0xff] }
 0x15b   :  { %v3344_v33 = vadd.f32 %v3343_v31, %v3342_v27  ;;  %4687 = vmatpush3.bf16.msra.mxu1 %v4686_v16  ;;  %v1370_v39 = vadd.f32 %v3309_v30, %v6977_v1  ;;  %v829_v1 = vld [vmem:[%s7713_s1 + $0x1788] sm:$0xff]  ;;  %v816_v16 = vld [vmem:[%s7713_s1 + $0x1720] sm:$0xff]  ;;  %v787_v27 = vld [vmem:[%s7713_s1 + $0x1638] sm:$0xff]  ;;  %v4754_v15 = vpack.c.bf16 %v825_v4, %v824_v20 }
 0x15c   :  { %4689 = vmatprep.subr.bf16.mxu1 %v4688_v22  ;;  %v4728_v53 = vpack.c.bf16 %v829_v1, %v828_v45  ;;  %v835_v22 = vld [vmem:[%s7713_s1 + $0x17b8] sm:$0xff]  ;;  %v4738_v24 = vpack.c.bf16 %v817_v18, %v816_v16  ;;  %v804_v31 = vld [vmem:[%s7713_s1 + $0x16c0] sm:$0xff]  ;;  %v838_v1 = vld [vmem:[%s7713_s1 + $0x17d0] sm:$0xff]  ;;  %v4724_v16 = vpack.c.bf16 %v811_v6, %v810_v5 }
 0x15d   :  { %v7184_v46 = vadd.f32 %v3344_v33, %v1370_v39  ;;  %4659 = vmatpush3.bf16.msra.mxu0 %v4658_v32  ;;  %v4740_v29 = vpack.c.bf16 %v835_v22, %v834_v21  ;;  %v819_v30 = vld [vmem:[%s7713_s1 + $0x1738] sm:$0xff]  ;;  %v805_v32 = vld [vmem:[%s7713_s1 + $0x16c8] sm:$0xff]  ;;  %v836_v33 = vld [vmem:[%s7713_s1 + $0x17c0] sm:$0xff] }
 0x15e   :  { %4661 = vmatprep.subr.bf16.mxu0 %v4660_v35  ;;  %v4710_v35 = vpack.c.bf16 %v787_v27, %v786_v26  ;;  %v4742_v36 = vpack.c.bf16 %v819_v30, %v818_v28  ;;  %v4712_v37 = vpack.c.bf16 %v805_v32, %v804_v31  ;;  %v789_v39 = vld [vmem:[%s7713_s1 + $0x1648] sm:$0xff]  ;;  %v807_v45 = vld [vmem:[%s7713_s1 + $0x16d8] sm:$0xff]  ;;  %v844_v28 = vld [vmem:[%s7713_s1 + $0x1800] sm:$0xff] }
 0x15f   :  { %4691 = vmatpush3.bf16.msra.mxu1 %v4690_v34  ;;  %v837_v34 = vld [vmem:[%s7713_s1 + $0x17c8] sm:$0xff]  ;;  %v4716_v50 = vpack.c.bf16 %v807_v45, %v806_v44  ;;  %v795_v18 = vld [vmem:[%s7713_s1 + $0x1678] sm:$0xff]  ;;  %v862_v30 = vld [vmem:[%s7713_s1 + $0x1890] sm:$0xff] }
 0x160   :  { %4693 = vmatprep.subr.bf16.mxu1 %v4692_v41  ;;  %v820_v41 = vld [vmem:[%s7713_s1 + $0x1740] sm:$0xff]  ;;  %v4744_v42 = vpack.c.bf16 %v837_v34, %v836_v33  ;;  %v827_v22 = vld [vmem:[%s7713_s1 + $0x1778] sm:$0xff]  ;;  %v72_v34 = vld [vmem:[%s7714_s0 + $0x170] sm:$0xff] }
 0x161   :  { %4663 = vmatpush3.bf16.msra.mxu0 %v4662_v47  ;;  %v839_v47 = vld [vmem:[%s7713_s1 + $0x17d8] sm:$0xff]  ;;  %v70_v32 = vld [vmem:[%s7714_s0 + $0x160] sm:$0xff]  ;;  %v849_v45 = vld [vmem:[%s7713_s1 + $0x1828] sm:$0xff] }
 0x162   :  { %4697 = vmatprep.subr.bf16.mxu0 %v4696_v49  ;;  %v4746_v49 = vpack.c.bf16 %v821_v43, %v820_v41  ;;  %v4748_v54 = vpack.c.bf16 %v839_v47, %v838_v1  ;;  %v863_v31 = vld [vmem:[%s7713_s1 + $0x1898] sm:$0xff]  ;;  %v75_v41 = vld [vmem:[%s7714_s0 + $0x188] sm:$0xff]  ;;  %v848_v44 = vld [vmem:[%s7713_s1 + $0x1820] sm:$0xff] }
 0x163   :  { %4695 = vmatpush3.bf16.msra.mxu1 %v4694_v48  ;;  %v4714_v48 = vpack.c.bf16 %v789_v39, %v788_v38  ;;  %v864_v38 = vld [vmem:[%s7713_s1 + $0x18a0] sm:$0xff]  ;;  %v865_v39 = vld [vmem:[%s7713_s1 + $0x18a8] sm:$0xff]  ;;  %v866_v1 = vld [vmem:[%s7713_s1 + $0x18b0] sm:$0xff] }
 0x164   :  { %4729 = vmatprep.subr.bf16.mxu1 %v4728_v53  ;;  %2348 = vmatmul.mubr.f32.vlgmr.msra.gmra.mrb[20].mxu0 %v66_v59  ;;  %v822_v53 = vld [vmem:[%s7713_s1 + $0x1750] sm:$0xff]  ;;  %v841_v59 = vld [vmem:[%s7713_s1 + $0x17e8] sm:$0xff]  ;;  %v4768_v43 = vpack.c.bf16 %v865_v39, %v864_v38  ;;  %v867_v47 = vld [vmem:[%s7713_s1 + $0x18b8] sm:$0xff] }
 0x165   :  { %4699 = vmatpush3.bf16.msra.mxu0 %v4698_v60  ;;  %2487 = vmatprep.mubr.f32.mxu0 %v71_v9  ;;  %v4718_v60 = vpack.c.bf16 %v791_v52, %v790_v51  ;;  %v842_v9 = vld [vmem:[%s7713_s1 + $0x17f0] sm:$0xff]  ;;  %v851_v51 = vld [vmem:[%s7713_s1 + $0x1838] sm:$0xff]  ;;  %v868_v52 = vld [vmem:[%s7713_s1 + $0x18c0] sm:$0xff] }
 0x166   :  { %2418 = vmatmul.mubr.f32.vlgmr.msra.gmra.mrb[20].mxu1 %v68_v61  ;;  %4701 = vmatprep.subr.bf16.mxu0 %v4700_v63  ;;  %v4750_v61 = vpack.c.bf16 %v823_v55, %v822_v53  ;;  %v792_v63 = vld [vmem:[%s7713_s1 + $0x1660] sm:$0xff]  ;;  %v869_v53 = vld [vmem:[%s7713_s1 + $0x18c8] sm:$0xff]  ;;  %v2636_v39 = vld [vmem:[%s7716_s3 + $0x10] sm:$0xff] }
 0x167   :  { %4731 = vmatpush3.bf16.msra.mxu1 %v4730_v62  ;;  %2557 = vmatprep.mubr.f32.mxu1 %v73_v11  ;;  %v4720_v62 = vpack.c.bf16 %v809_v57, %v808_v56  ;;  %v4776_v55 = vpack.c.bf16 %v869_v53, %v868_v52  ;;  %v852_v56 = vld [vmem:[%s7713_s1 + $0x1840] sm:$0xff]  ;;  %v853_v57 = vld [vmem:[%s7713_s1 + $0x1848] sm:$0xff] }
 0x168   :  { %4733 = vmatprep.subr.bf16.mxu1 %v4732_v3  ;;  %v4752_v3 = vpack.c.bf16 %v841_v59, %v840_v58  ;;  %v870_v58 = vld [vmem:[%s7713_s1 + $0x18d0] sm:$0xff]  ;;  %v871_v59 = vld [vmem:[%s7713_s1 + $0x18d8] sm:$0xff]  ;;  %v873_v20 = vld [vmem:[%s7713_s1 + $0x18e8] sm:$0xff] }
 0x169   :  { %4703 = vmatpush3.bf16.msra.mxu0 %v4702_v10  ;;  %v843_v10 = vld [vmem:[%s7713_s1 + $0x17f8] sm:$0xff]  ;;  %v856_v4 = vld [vmem:[%s7713_s1 + $0x1860] sm:$0xff]  ;;  %v857_v5 = vld [vmem:[%s7713_s1 + $0x1868] sm:$0xff] }
 0x16a   :  { %4705 = vmatprep.subr.bf16.mxu0 %v4704_v13  ;;  %v4722_v13 = vpack.c.bf16 %v793_v0, %v792_v63  ;;  %v4756_v21 = vpack.c.bf16 %v843_v10, %v842_v9  ;;  %v855_v63 = vld [vmem:[%s7713_s1 + $0x1858] sm:$0xff]  ;;  %v872_v0 = vld [vmem:[%s7713_s1 + $0x18e0] sm:$0xff]  ;;  %v2635_v38 = vld [vmem:[%s7716_s3 + $0x8] sm:$0xff] }
 0x16b   :  { %4735 = vmatpush3.bf16.msra.mxu1 %v4734_v12  ;;  %v2643_v52 = vld [vmem:[%s7716_s3 + $0x48] sm:$0xff] }
 0x16c   :  { %4737 = vmatprep.subr.bf16.mxu1 %v4736_v17  ;;  %v794_v17 = vld [vmem:[%s7713_s1 + $0x1670] sm:$0xff] }
 0x16d   :  { %4707 = vmatpush3.bf16.msra.mxu0 %v4706_v23  ;;  %v860_v23 = vld [vmem:[%s7713_s1 + $0x1880] sm:$0xff]  ;;  %v4726_v26 = vpack.c.bf16 %v795_v18, %v794_v17  ;;  %v859_v17 = vld [vmem:[%s7713_s1 + $0x1878] sm:$0xff] }
 0x16e   :  { %4709 = vmatprep.subr.bf16.mxu0 %v4708_v25 }
 0x16f   :  { %4739 = vmatpush3.bf16.msra.mxu1 %v4738_v24  ;;  %v861_v24 = vld [vmem:[%s7713_s1 + $0x1888] sm:$0xff] }
 0x170   :  { %4741 = vmatprep.subr.bf16.mxu1 %v4740_v29  ;;  %v4760_v27 = vpack.c.bf16 %v861_v24, %v860_v23  ;;  %v845_v29 = vld [vmem:[%s7713_s1 + $0x1808] sm:$0xff] }
 0x171   :  { %4711 = vmatpush3.bf16.msra.mxu0 %v4710_v35  ;;  %v4762_v33 = vpack.c.bf16 %v845_v29, %v844_v28  ;;  %v4764_v35 = vpack.c.bf16 %v863_v31, %v862_v30 }
 0x172   :  { %4713 = vmatprep.subr.bf16.mxu0 %v4712_v37  ;;  %v847_v37 = vld [vmem:[%s7713_s1 + $0x1818] sm:$0xff] }
 0x173   :  { %4743 = vmatpush3.bf16.msra.mxu1 %v4742_v36  ;;  %v846_v36 = vld [vmem:[%s7713_s1 + $0x1810] sm:$0xff] }
 0x174   :  { %4745 = vmatprep.subr.bf16.mxu1 %v4744_v42  ;;  %v4766_v42 = vpack.c.bf16 %v847_v37, %v846_v36  ;;  %v2634_v37 = vld [vmem:[%s7716_s3] sm:$0xff] }
 0x175   :  { %4715 = vmatpush3.bf16.msra.mxu0 %v4714_v48  ;;  %v4770_v48 = vpack.c.bf16 %v849_v45, %v848_v44  ;;  %v2638_v45 = vld [vmem:[%s7716_s3 + $0x20] sm:$0xff] }
 0x176   :  { %4717 = vmatprep.subr.bf16.mxu0 %v4716_v50  ;;  %v850_v50 = vld [vmem:[%s7713_s1 + $0x1830] sm:$0xff] }
 0x177   :  { %4747 = vmatpush3.bf16.msra.mxu1 %v4746_v49  ;;  %v3377_v2 = vpop.f32.mrb[8].mxu0  ;;  %v4772_v49 = vpack.c.bf16 %v867_v47, %v866_v1  ;;  %v2639_v1 = vld [vmem:[%s7716_s3 + $0x28] sm:$0xff] }
 0x178   :  { %4749 = vmatprep.subr.bf16.mxu1 %v4748_v54  ;;  %v3378_v7 = vpop.f32.mrb[9].mxu0  ;;  %v4774_v54 = vpack.c.bf16 %v851_v51, %v850_v50  ;;  %v4799_v47 = vpack.c.bf16 %v2639_v1, %v2638_v45  ;;  %v2642_v51 = vld [vmem:[%s7716_s3 + $0x40] sm:$0xff] }
 0x179   :  { %v3412_v8 = vpop.f32.mrb[8].mxu1  ;;  %v3379_v11 = vadd.f32 %v3378_v7, %v3377_v2  ;;  %4719 = vmatpush3.bf16.msra.mxu0 %v4718_v60  ;;  %v4778_v60 = vpack.c.bf16 %v853_v57, %v852_v56  ;;  %v874_v7 = vld [vmem:[%s7713_s1 + $0x18f0] sm:$0xff]  ;;  %v4805_v53 = vpack.c.bf16 %v2643_v52, %v2642_v51  ;;  %v2646_v57 = vld [vmem:[%s7716_s3 + $0x60] sm:$0xff] }
 0x17a   :  { %v3413_v12 = vpop.f32.mrb[9].mxu1  ;;  %4721 = vmatprep.subr.bf16.mxu0 %v4720_v62  ;;  %v854_v62 = vld [vmem:[%s7713_s1 + $0x1850] sm:$0xff] }
 0x17b   :  { %v3414_v14 = vadd.f32 %v3413_v12, %v3412_v8  ;;  %4751 = vmatpush3.bf16.msra.mxu1 %v4750_v61  ;;  %v1510_v40 = vadd.f32 %v3379_v11, %v7184_v46  ;;  %v4758_v46 = vpack.c.bf16 %v827_v22, %v826_v19  ;;  %v4780_v61 = vpack.c.bf16 %v871_v59, %v870_v58  ;;  %v875_v8 = vld [vmem:[%s7713_s1 + $0x18f8] sm:$0xff]  ;;  %v2647_v58 = vld [vmem:[%s7716_s3 + $0x68] sm:$0xff] }
 0x17c   :  { %4753 = vmatprep.subr.bf16.mxu1 %v4752_v3  ;;  %v4782_v2 = vpack.c.bf16 %v855_v63, %v854_v62  ;;  %v4784_v3 = vpack.c.bf16 %v873_v20, %v872_v0  ;;  %v4811_v59 = vpack.c.bf16 %v2647_v58, %v2646_v57  ;;  %v2648_v20 = vld [vmem:[%s7716_s3 + $0x70] sm:$0xff]  ;;  %v2736_v57 = vld [vmem:[%s7717_s5 + $0x40] sm:$0xff]  ;;  %v2743_v58 = vld [vmem:[%s7717_s5 + $0x78] sm:$0xff] }
 0x17d   :  { %v7385_v25 = vadd.f32 %v3414_v14, %v1510_v40  ;;  %4723 = vmatpush3.bf16.msra.mxu0 %v4722_v13  ;;  %v4786_v13 = vpack.c.bf16 %v857_v5, %v856_v4 }
 0x17e   :  { %4725 = vmatprep.subr.bf16.mxu0 %v4724_v16  ;;  %v858_v16 = vld [vmem:[%s7713_s1 + $0x1870] sm:$0xff] }
 0x17f   :  { %4755 = vmatpush3.bf16.msra.mxu1 %v4754_v15  ;;  %v4788_v15 = vpack.c.bf16 %v875_v8, %v874_v7  ;;  %v4790_v40 = vpack.c.bf16 %v859_v17, %v858_v16  ;;  %v4881_v7 = vmov 0.0   ;;  %v2729_v8 = vld [vmem:[%s7717_s5 + $0x8] sm:$0xff] }
 0x180   :  { %4757 = vmatprep.subr.bf16.mxu1 %v4756_v21  ;;  %v74_v21 = vld [vmem:[%s7714_s0 + $0x180] sm:$0xff]  ;;  %v2741_v17 = vld [vmem:[%s7717_s5 + $0x68] sm:$0xff] }
 0x181   :  { %4727 = vmatpush3.bf16.msra.mxu0 %v4726_v26 }
 0x182   :  { %4761 = vmatprep.subr.bf16.mxu0 %v4760_v27 }
 0x183   :  { %4759 = vmatpush3.bf16.msra.mxu1 %v4758_v46 }
 0x184   :  { %2488 = vmatmul.mubr.f32.vlgmr.msra.gmra.mrb[22].mxu0 %v70_v32 }
 0x185   :  { %4763 = vmatpush3.bf16.msra.mxu0 %v4762_v33  ;;  %2627 = vmatprep.mubr.f32.mxu0 %v75_v41  ;;  %v4879_v41 = vmov 0.0|0.0  }
 0x186   :  { %2558 = vmatmul.mubr.f32.vlgmr.msra.gmra.mrb[22].mxu1 %v72_v34  ;;  %4765 = vmatprep.subr.bf16.mxu0 %v4764_v35 }
 0x187   :  { %4792 = vmatprep.subr.bf16.mxu1 %v4879_v41  ;;  %3989 = vmatprep.mubr.msk.f32.mxu1 %vm4880_vm0, %v4881_v7 }
 0x189   :  { %4767 = vmatpush3.bf16.msra.mxu0 %v4766_v42  ;;  %v4793_v42 = vpack.c.bf16 %v2635_v38, %v2634_v37 }
 0x18a   :  { %4769 = vmatprep.subr.bf16.mxu0 %v4768_v43  ;;  %v2637_v43 = vld [vmem:[%s7716_s3 + $0x18] sm:$0xff] }
 0x18b   :  { %4794 = vmatpush3.bf16.msra.mxu1 %v4793_v42  ;;  %v4796_v44 = vpack.c.bf16 %v2637_v43, %v2636_v39 }
 0x18c   :  { %4795 = vmatprep.subr.bf16.mxu1 %v4879_v41 }
 0x18d   :  { %4771 = vmatpush3.bf16.msra.mxu0 %v4770_v48  ;;  %v2640_v48 = vld [vmem:[%s7716_s3 + $0x30] sm:$0xff] }
 0x18e   :  { %4773 = vmatprep.subr.bf16.mxu0 %v4772_v49  ;;  %v2641_v49 = vld [vmem:[%s7716_s3 + $0x38] sm:$0xff] }
 0x18f   :  { %4797 = vmatpush3.bf16.msra.mxu1 %v4796_v44  ;;  %v4802_v50 = vpack.c.bf16 %v2641_v49, %v2640_v48 }
 0x190   :  { %4798 = vmatprep.subr.bf16.mxu1 %v4879_v41 }
 0x191   :  { %4775 = vmatpush3.bf16.msra.mxu0 %v4774_v54  ;;  %v2644_v54 = vld [vmem:[%s7716_s3 + $0x50] sm:$0xff] }
 0x192   :  { %4777 = vmatprep.subr.bf16.mxu0 %v4776_v55  ;;  %v2645_v55 = vld [vmem:[%s7716_s3 + $0x58] sm:$0xff] }
 0x193   :  { %4800 = vmatpush3.bf16.msra.mxu1 %v4799_v47  ;;  %v4808_v56 = vpack.c.bf16 %v2645_v55, %v2644_v54 }
 0x194   :  { %4801 = vmatprep.subr.bf16.mxu1 %v4879_v41 }
 0x195   :  { %4779 = vmatpush3.bf16.msra.mxu0 %v4778_v60 }
 0x196   :  { %4781 = vmatprep.subr.bf16.mxu0 %v4780_v61 }
 0x197   :  { %v3447_v6 = vpop.f32.mrb[10].mxu0  ;;  %4803 = vmatpush3.bf16.msra.mxu1 %v4802_v50 }
 0x198   :  { %v3448_v9 = vpop.f32.mrb[11].mxu0  ;;  %4804 = vmatprep.subr.bf16.mxu1 %v4879_v41 }
 0x199   :  { %v3482_v10 = vpop.f32.mrb[10].mxu1  ;;  %v3449_v11 = vadd.f32 %v3448_v9, %v3447_v6  ;;  %4783 = vmatpush3.bf16.msra.mxu0 %v4782_v2  ;;  %v2649_v2 = vld [vmem:[%s7716_s3 + $0x78] sm:$0xff] }
 0x19a   :  { %v3483_v12 = vpop.f32.mrb[11].mxu1  ;;  %4785 = vmatprep.subr.bf16.mxu0 %v4784_v3  ;;  %v4814_v4 = vpack.c.bf16 %v2649_v2, %v2648_v20  ;;  %v2735_v9 = vld [vmem:[%s7717_s5 + $0x38] sm:$0xff]  ;;  %v2748_v20 = vld [vmem:[%s7717_s5 + $0xa0] sm:$0xff] }
 0x19b   :  { %v3484_v14 = vadd.f32 %v3483_v12, %v3482_v10  ;;  %v1650_v18 = vadd.f32 %v3449_v11, %v7385_v25  ;;  %4806 = vmatpush3.bf16.msra.mxu1 %v4805_v53  ;;  %v2728_v10 = vld [vmem:[%s7717_s5] sm:$0xff]  ;;  %v4816_v11 = vpack.c.bf16 %v2735_v9, %v2729_v8  ;;  %v2734_v12 = vld [vmem:[%s7717_s5 + $0x30] sm:$0xff]  ;;  %v2755_v2 = vld [vmem:[%s7717_s5 + $0xd8] sm:$0xff] }
 0x19c   :  { %4807 = vmatprep.subr.bf16.mxu1 %v4879_v41  ;;  %v2760_v8 = vld [vmem:[%s7717_s5 + $0x100] sm:$0xff] }
 0x19d   :  { %v1720_v19 = vadd.f32 %v3484_v14, %v1650_v18  ;;  %4787 = vmatpush3.bf16.msra.mxu0 %v4786_v13  ;;  %v2731_v13 = vld [vmem:[%s7717_s5 + $0x18] sm:$0xff]  ;;  %v2737_v14 = vld [vmem:[%s7717_s5 + $0x48] sm:$0xff] }
 0x19e   :  { %4789 = vmatprep.subr.bf16.mxu0 %v4788_v15  ;;  %v4818_v15 = vpack.c.bf16 %v2734_v12, %v2728_v10  ;;  %v4832_v16 = vpack.c.bf16 %v2737_v14, %v2731_v13  ;;  %v2747_v18 = vld [vmem:[%s7717_s5 + $0x98] sm:$0xff]  ;;  %v2765_v10 = vld [vmem:[%s7717_s5 + $0x128] sm:$0xff]  ;;  %v2764_v13 = vld [vmem:[%s7717_s5 + $0x120] sm:$0xff] }
 0x19f   :  { %4809 = vmatpush3.bf16.msra.mxu1 %v4808_v56  ;;  %v2730_v56 = vld [vmem:[%s7717_s5 + $0x10] sm:$0xff] }
 0x1a0   :  { %4810 = vmatprep.subr.bf16.mxu1 %v4879_v41  ;;  %v2770_v14 = vld [vmem:[%s7717_s5 + $0x150] sm:$0xff] }
 0x1a1   :  { %4791 = vmatpush3.bf16.msra.mxu0 %v4790_v40  ;;  %v2746_v40 = vld [vmem:[%s7717_s5 + $0x90] sm:$0xff] }
 0x1a2   :  { %4817 = vmatprep.subr.bf16.mxu0 %v4816_v11  ;;  %v2771_v11 = vld [vmem:[%s7717_s5 + $0x158] sm:$0xff] }
 0x1a3   :  { %4812 = vmatpush3.bf16.msra.mxu1 %v4811_v59  ;;  %v2749_v59 = vld [vmem:[%s7717_s5 + $0xa8] sm:$0xff]  ;;  %v4828_v12 = vpack.c.bf16 %v2771_v11, %v2765_v10 }
 0x1a4   :  { %2628 = vmatmul.mubr.f32.vlgmr.msra.gmra.mrb[24].mxu0 %v74_v21  ;;  %4813 = vmatprep.subr.bf16.mxu1 %v4879_v41  ;;  %v4820_v21 = vpack.c.bf16 %v2747_v18, %v2741_v17  ;;  %v2773_v17 = vld [vmem:[%s7717_s5 + $0x168] sm:$0xff]  ;;  %v2766_v18 = vld [vmem:[%s7717_s5 + $0x130] sm:$0xff] }
 0x1a5   :  { %2876 = vmatprep.mubr.f32.mxu0 %v4881_v7  ;;  %4819 = vmatpush1.bf16.msra.mxu0 %v4818_v15  ;;  %v2767_v15 = vld [vmem:[%s7717_s5 + $0x138] sm:$0xff] }
 0x1a6   :  { %4821 = vmatprep.subr.bf16.mxu0 %v4820_v21 }
 0x1a7   :  { %4815 = vmatpush3.bf16.msra.mxu1 %v4814_v4 }
 0x1a8   :  { %4833 = vmatprep.subr.bf16.mxu1 %v4832_v16  ;;  %v4830_v16 = vpack.c.bf16 %v2770_v14, %v2764_v13 }
 0x1b7   :  { %v3517_v22 = vpop.f32.mrb[12].mxu0 }
 0x1b8   :  { %v3518_v23 = vpop.f32.mrb[13].mxu0 }
 0x1b9   :  { %v3552_v24 = vpop.f32.mrb[12].mxu1  ;;  %v3519_v26 = vadd.f32 %v3518_v23, %v3517_v22  ;;  %v2753_v23 = vld [vmem:[%s7717_s5 + $0xc8] sm:$0xff] }
 0x1ba   :  { %v3553_v46 = vpop.f32.mrb[13].mxu1 }
 0x1bb   :  { %v3554_v27 = vadd.f32 %v3553_v46, %v3552_v24  ;;  %v1790_v28 = vadd.f32 %v3519_v26, %v1720_v19  ;;  %v2740_v19 = vld [vmem:[%s7717_s5 + $0x60] sm:$0xff]  ;;  %v2759_v24 = vld [vmem:[%s7717_s5 + $0xf8] sm:$0xff] }
 0x1bc   :  { %v4822_v22 = vpack.c.bf16 %v2746_v40, %v2740_v19  ;;  %v4824_v26 = vpack.c.bf16 %v2759_v24, %v2753_v23  ;;  %v2752_v46 = vld [vmem:[%s7717_s5 + $0xc0] sm:$0xff]  ;;  %v4844_v40 = vpack.c.bf16 %v2773_v17, %v2767_v15  ;;  %v2739_v23 = vld [vmem:[%s7717_s5 + $0x58] sm:$0xff] }
 0x1bd   :  { %v1860_v29 = vadd.f32 %v3554_v27, %v1790_v28  ;;  %v2758_v27 = vld [vmem:[%s7717_s5 + $0xf0] sm:$0xff]  ;;  %v2772_v19 = vld [vmem:[%s7717_s5 + $0x160] sm:$0xff] }
 0x1be   :  { %4823 = vmatpush1.bf16.msra.mxu0 %v4822_v22  ;;  %v4826_v28 = vpack.c.bf16 %v2758_v27, %v2752_v46  ;;  %v4846_v21 = vpack.c.bf16 %v2772_v19, %v2766_v18  ;;  %v2733_v22 = vld [vmem:[%s7717_s5 + $0x28] sm:$0xff]  ;;  %v2732_v46 = vld [vmem:[%s7717_s5 + $0x20] sm:$0xff]  ;;  %v2738_v27 = vld [vmem:[%s7717_s5 + $0x50] sm:$0xff] }
 0x1bf   :  { %4825 = vmatprep.subr.bf16.mxu0 %v4824_v26  ;;  %v4848_v24 = vpack.c.bf16 %v2739_v23, %v2733_v22  ;;  %v3061_v26 = vld [vmem:[%s7718_s4] ss:$0 sm:$0xff] }
 0x1c2   :  { %4827 = vmatpush1.bf16.msra.mxu0 %v4826_v28 }
 0x1c3   :  { %4829 = vmatprep.subr.bf16.mxu0 %v4828_v12 }
 0x1c6   :  { %4831 = vmatpush1.bf16.msra.mxu0 %v4830_v16 }
 0x1c7   :  { %4849 = vmatprep.subr.bf16.mxu0 %v4848_v24 }
 0x1d7   :  { %v3587_v30 = vpop.f32.mrb[14].mxu0 }
 0x1d8   :  { %v3588_v25 = vpop.f32.mrb[15].mxu0 }
 0x1d9   :  { %v3622_v31 = vpop.f32.mrb[14].mxu1  ;;  %v3589_v32 = vadd.f32 %v3588_v25, %v3587_v30 }
 0x1da   :  { %v3623_v33 = vpop.f32.mrb[15].mxu1 }
 0x1db   :  { %v3624_v34 = vadd.f32 %v3623_v33, %v3622_v31  ;;  %v1930_v35 = vadd.f32 %v3589_v32, %v1860_v29 }
 0x1dd   :  { %v2000_v36 = vadd.f32 %v3624_v34, %v1930_v35 }
 0x1f7   :  { %v3657_v60 = vpop.f32.mrb[16].mxu0 }
 0x1f8   :  { %v3658_v61 = vpop.f32.mrb[17].mxu0 }
 0x1f9   :  { %v3692_v62 = vpop.f32.mrb[16].mxu1  ;;  %v3659_v63 = vadd.f32 %v3658_v61, %v3657_v60  ;;  %v4834_v61 = vpack.c.bf16 %v2736_v57, %v2730_v56 }
 0x1fa   :  { %v3693_v0 = vpop.f32.mrb[17].mxu1 }
 0x1fb   :  { %v3694_v3 = vadd.f32 %v3693_v0, %v3692_v62  ;;  %v2070_v5 = vadd.f32 %v3659_v63, %v2000_v36  ;;  %v4836_v63 = vpack.c.bf16 %v2749_v59, %v2743_v58  ;;  %v2742_v0 = vld [vmem:[%s7717_s5 + $0x70] sm:$0xff] }
 0x1fc   :  { %v4838_v4 = vpack.c.bf16 %v2748_v20, %v2742_v0 }
 0x1fd   :  { %v2140_v6 = vadd.f32 %v3694_v3, %v2070_v5  ;;  %v2761_v3 = vld [vmem:[%s7717_s5 + $0x108] sm:$0xff] }
 0x1fe   :  { %v4840_v5 = vpack.c.bf16 %v2761_v3, %v2755_v2 }
 0x217   :  { %v3727_v29 = vpop.f32.mrb[18].mxu0 }
 0x218   :  { %v3728_v30 = vpop.f32.mrb[19].mxu0 }
 0x219   :  { %v3762_v25 = vpop.f32.mrb[18].mxu1  ;;  %v3729_v31 = vadd.f32 %v3728_v30, %v3727_v29  ;;  %v2745_v29 = vld [vmem:[%s7717_s5 + $0x88] sm:$0xff]  ;;  %v2751_v30 = vld [vmem:[%s7717_s5 + $0xb8] sm:$0xff] }
 0x21a   :  { %v3763_v32 = vpop.f32.mrb[19].mxu1 }
 0x21b   :  { %v3764_v33 = vadd.f32 %v3763_v32, %v3762_v25  ;;  %v2210_v34 = vadd.f32 %v3729_v31, %v2140_v6  ;;  %v2754_v6 = vld [vmem:[%s7717_s5 + $0xd0] sm:$0xff]  ;;  %v4850_v32 = vpack.c.bf16 %v2738_v27, %v2732_v46 }
 0x21c   :  { %v4842_v9 = vpack.c.bf16 %v2760_v8, %v2754_v6 }
 0x21d   :  { %v2280_v35 = vadd.f32 %v3764_v33, %v2210_v34  ;;  %v4852_v34 = vpack.c.bf16 %v2751_v30, %v2745_v29 }
 0x237   :  { %v3797_v36 = vpop.f32.mrb[20].mxu0 }
 0x238   :  { %v3798_v37 = vpop.f32.mrb[21].mxu0 }
 0x239   :  { %v3832_v38 = vpop.f32.mrb[20].mxu1  ;;  %v3799_v39 = vadd.f32 %v3798_v37, %v3797_v36  ;;  %v2750_v36 = vld [vmem:[%s7717_s5 + $0xb0] sm:$0xff]  ;;  %v2757_v37 = vld [vmem:[%s7717_s5 + $0xe8] sm:$0xff] }
 0x23a   :  { %v3833_v41 = vpop.f32.mrb[21].mxu1 }
 0x23b   :  { %v3834_v42 = vadd.f32 %v3833_v41, %v3832_v38  ;;  %v2350_v43 = vadd.f32 %v3799_v39, %v2280_v35  ;;  %v2744_v35 = vld [vmem:[%s7717_s5 + $0x80] sm:$0xff]  ;;  %v2763_v38 = vld [vmem:[%s7717_s5 + $0x118] sm:$0xff] }
 0x23c   :  { %v4854_v39 = vpack.c.bf16 %v2750_v36, %v2744_v35  ;;  %v4856_v41 = vpack.c.bf16 %v2763_v38, %v2757_v37 }
 0x23d   :  { %v2420_v44 = vadd.f32 %v3834_v42, %v2350_v43  ;;  %v2756_v42 = vld [vmem:[%s7717_s5 + $0xe0] sm:$0xff]  ;;  %v2762_v43 = vld [vmem:[%s7717_s5 + $0x110] sm:$0xff] }
 0x257   :  { %v3867_v45 = vpop.f32.mrb[22].mxu0 }
 0x258   :  { %v3868_v1 = vpop.f32.mrb[23].mxu0 }
 0x259   :  { %v3902_v47 = vpop.f32.mrb[22].mxu1  ;;  %v3869_v48 = vadd.f32 %v3868_v1, %v3867_v45  ;;  %v2775_v45 = vld [vmem:[%s7717_s5 + $0x178] sm:$0xff] }
 0x25a   :  { %v3903_v49 = vpop.f32.mrb[23].mxu1 }
 0x25b   :  { %v3904_v50 = vadd.f32 %v3903_v49, %v3902_v47  ;;  %v2490_v51 = vadd.f32 %v3869_v48, %v2420_v44  ;;  %v2769_v44 = vld [vmem:[%s7717_s5 + $0x148] sm:$0xff]  ;;  %v2768_v47 = vld [vmem:[%s7717_s5 + $0x140] sm:$0xff]  ;;  %v2774_v48 = vld [vmem:[%s7717_s5 + $0x170] sm:$0xff] }
 0x25c   :  { %v4860_v1 = vpack.c.bf16 %v2775_v45, %v2769_v44  ;;  %v4862_v49 = vpack.c.bf16 %v2774_v48, %v2768_v47 }
 0x25d   :  { %v2560_v52 = vadd.f32 %v3904_v50, %v2490_v51  ;;  %v2778_v50 = vlaneseq }
 0x25f   :  { %v2779_v51 = vshrl.u32 %v2778_v50, 7 }
 0x261   :  { %v2792_v56 = vsub.s32 3, %v2779_v51  ;;  %v2796_v10 = vsub.s32 4, %v2779_v51  ;;  %v2800_v11 = vsub.s32 5, %v2779_v51 }
 0x277   :  { %v3937_v53 = vpop.f32.mrb[24].mxu0 }
 0x278   :  { %v3938_v54 = vpop.f32.mrb[25].mxu0 }
 0x279   :  { %v3939_v55 = vadd.f32 %v3938_v54, %v3937_v53  ;;  %v2788_v53 = vsub.s32 2, %v2779_v51  ;;  %v2776_v54 = vld [vmem:[%s7719_s6] sm:$0x3f] }
 0x27a   :  { %v2797_v12 = vrot.slane %v2776_v54, %v2796_v10  ;;  %v2801_v13 = vrot.slane %v2776_v54, %v2800_v11 }
 0x27b   :  { %v2630_v60 = vadd.f32 %v3939_v55, %v2560_v52  ;;  %v2780_v52 = vsub.s32 0, %v2779_v51  ;;  %v2784_v55 = vsub.s32 1, %v2779_v51  ;;  %v2789_v58 = vrot.slane %v2776_v54, %v2788_v53 }
 0x27d   :  { %v2633_v62 = vmax.f32 %v2630_v60, 0.0  ;;  %v2781_v57 = vrot.slane %v2776_v54, %v2780_v52  ;;  %v2785_v59 = vrot.slane %v2776_v54, %v2784_v55  ;;  %v2793_v60 = vrot.slane %v2776_v54, %v2792_v56 }
 0x27f   :  { %3990 = vmatmul.mubr.f32.vlgmr.msra.gmra.mrb[24].mxu1 %v2633_v62 }
 0x280   :  { %4835 = vmatpush1.bf16.msra.mxu1 %v4834_v61  ;;  %2947 = vmatprep.mubr.f32.mxu1 %v4881_v7 }
 0x281   :  { %4837 = vmatprep.subr.bf16.mxu1 %v4836_v63 }
 0x284   :  { %4839 = vmatpush1.bf16.msra.mxu1 %v4838_v4 }
 0x285   :  { %4841 = vmatprep.subr.bf16.mxu1 %v4840_v5 }
 0x288   :  { %4843 = vmatpush1.bf16.msra.mxu1 %v4842_v9 }
 0x289   :  { %4845 = vmatprep.subr.bf16.mxu1 %v4844_v40 }
 0x28c   :  { %4847 = vmatpush1.bf16.msra.mxu1 %v4846_v21 }
 0x352   :  { %v2723_v28 = vpop.f32.mrb[24].mxu1 }
 0x353   :  { %v2724_v25 = vadd.f32 %v3061_v26, %v2723_v28  ;;  %v3991_v31 = vpop.f32.mrb[25].mxu1 }
 0x355   :  { %v2727_v33 = vmax.f32 %v2724_v25, 0.0 }
 0x357   :  { %3062 = vmatmul.mubr.msk.f32.vlgmr.msra.gmra.mrb[26].mxu0 %vm2808_vm1, %v2727_v33  ;;  %3063 = vmatmul.mubr.msk.f32.vlgmr.msra.gmra.mrb[26].mxu1 %vm2808_vm1, %v2727_v33 }
 0x358   :  { %4851 = vmatpush1.bf16.msra.mxu0 %v4850_v32  ;;  %3018 = vmatprep.mubr.f32.mxu0 %v4881_v7  ;;  %v4858_v7 = vpack.c.bf16 %v2762_v43, %v2756_v42 }
 0x359   :  { %4853 = vmatprep.subr.bf16.mxu0 %v4852_v34 }
 0x35c   :  { %4855 = vmatpush1.bf16.msra.mxu0 %v4854_v39 }
 0x35d   :  { %4857 = vmatprep.subr.bf16.mxu0 %v4856_v41 }
 0x360   :  { %4859 = vmatpush1.bf16.msra.mxu0 %v4858_v7 }
 0x361   :  { %4861 = vmatprep.subr.bf16.mxu0 %v4860_v1 }
 0x364   :  { %4863 = vmatpush1.bf16.msra.mxu0 %v4862_v49 }
 0x367   :  { %3064 = vmatmul.mubr.msk.f32.vlgmr.msra.gmra.mrb[28].mxu0 %vm2808_vm1, %v2727_v33 }
 0x42a   :  { %v2878_v61 = vpop.f32.mrb[26].mxu0  ;;  %v2949_v62 = vpop.f32.mrb[26].mxu1 }
 0x42b   :  { %v2879_v63 = vadd.f32 %v2878_v61, %v2781_v57  ;;  %v2950_v0 = vadd.f32 %v2949_v62, %v2789_v58  ;;  %v2880_v20 = vpop.f32.mrb[27].mxu0  ;;  %v2951_v2 = vpop.f32.mrb[27].mxu1 }
 0x42c   :  { %v2881_v3 = vadd.f32 %v2880_v20, %v2785_v59  ;;  %v2952_v4 = vadd.f32 %v2951_v2, %v2793_v60 }
 0x42d   :  { %v3025_v5 = vmul.f32 0.5, %v2879_v63  ;;  %v3027_v6 = vmul.f32 0.5, %v2950_v0 }
 0x42e   :  { %v3026_v8 = vmul.f32 0.5, %v2881_v3  ;;  %v3028_v9 = vmul.f32 0.5, %v2952_v4 }
 0x42f   :  { %4867 = vtanh.f32 %v3025_v5 }
 0x430   :  { %4869 = vtanh.f32 %v3027_v6 }
 0x431   :  { %4871 = vtanh.f32 %v3026_v8 }
 0x432   :  { %4873 = vtanh.f32 %v3028_v9 }
 0x439   :  { %v4868_v14 = vpop.eup %4867 }
 0x43a   :  { %v4870_v15 = vpop.eup %4869  ;;  %v3037_v16 = vadd.f32 1.0, %v4868_v14  ;;  %v3020_v17 = vpop.f32.mrb[28].mxu0 }
 0x43b   :  { %v4872_v18 = vpop.eup %4871  ;;  %v3039_v19 = vadd.f32 1.0, %v4870_v15  ;;  %v3021_v40 = vadd.f32 %v3020_v17, %v2797_v12  ;;  %v3022_v21 = vpop.f32.mrb[29].mxu0 }
 0x43c   :  { %v4874_v22 = vpop.eup %4873  ;;  %v3043_v23 = vmul.f32 0.5, %v3037_v16  ;;  %v3038_v24 = vadd.f32 1.0, %v4872_v18  ;;  %v3023_v26 = vadd.f32 %v3022_v21, %v2801_v13 }
 0x43d   :  { %v3045_v46 = vmul.f32 0.5, %v3039_v19  ;;  %v3040_v27 = vadd.f32 1.0, %v4874_v22  ;;  %v3029_v28 = vmul.f32 0.5, %v3021_v40 }
 0x43e   :  { %3049 = vst [vmem:[%s7720_s7] sm:$0xff] %v3043_v23  ;;  %v3044_v29 = vmul.f32 0.5, %v3038_v24  ;;  %v3030_v30 = vmul.f32 0.5, %v3023_v26 }
 0x43f   :  { %3051 = vst [vmem:[%s7720_s7 + $0x10] sm:$0xff] %v3045_v46  ;;  %v3046_v25 = vmul.f32 0.5, %v3040_v27  ;;  %4875 = vtanh.f32 %v3029_v28 }
 0x440   :  { %3050 = vst [vmem:[%s7720_s7 + $0x8] sm:$0xff] %v3044_v29  ;;  %4877 = vtanh.f32 %v3030_v30 }
 0x441   :  { %3052 = vst [vmem:[%s7720_s7 + $0x18] sm:$0xff] %v3046_v25 }
 0x449   :  { %v4876_v31 = vpop.eup %4875 }
 0x44a   :  { %v4878_v32 = vpop.eup %4877  ;;  %v3041_v33 = vadd.f32 1.0, %v4876_v31 }
 0x44b   :  { %v3042_v34 = vadd.f32 1.0, %v4878_v32 }
 0x44c   :  { %v3047_v35 = vmul.f32 0.5, %v3041_v33 }
 0x44d   :  { %v3048_v36 = vmul.f32 0.5, %v3042_v34 }
 0x44e   :  { %3053 = vst [vmem:[%s7720_s7 + $0x20] sm:$0xff] %v3047_v35 }
 0x44f   :  { %3055 = vst.msk [vmem:[%s7720_s7 + $0x28] sm:$0xff] %vm3054_vm2, %v3048_v36 }

</bundles_post_ra>
